<compile_context>
chip_gen: v7x
topology: tpu7x:2x2x1
jax: 0.10.0
libtpu: 0.0.40
codegen_flags: <defaults>
</compile_context>

<pallas_src>
import math
from functools import partial

import jax
import jax.numpy as jnp
from jax.experimental import pallas as pl
from jax.experimental.pallas import tpu as pltpu

LN_EPS = 1e-5  # FP32LayerNorm(elementwise_affine=False) default eps
VMEM_LIMIT = 64 * 1024 * 1024  # fits v5e/v6e/v7x physical VMEM


def find_multiple(n: int, k: int) -> int:
    if n % k == 0:
        return n
    return n + k - n % k


def _pick_tile(n: int, target: int, quanta=(16, 8)) -> int:
    """Largest multiple of a quantum (prefer 16 for bf16) dividing n and <= target.
    Falls back to n itself (legal only when n is the full array dim along that axis)."""
    for q in quanta:
        best = 0
        t = q
        while t <= min(n, target):
            if n % t == 0:
                best = t
            t += q
        if best:
            return best
    return n


def _matmul_xt_bf16(x_f32, w_bf16):
    # x: (M, K) -> bf16, w: (N, K) bf16  ->  (M, N) fp32   (x @ w.T on the MXU)
    return jax.lax.dot_general(
        x_f32.astype(jnp.bfloat16), w_bf16,
        (((1,), (1,)), ((), ())), preferred_element_type=jnp.float32)


def _ln_f32(x, eps=LN_EPS):
    x = x.astype(jnp.float32)
    mu = jnp.mean(x, axis=-1, keepdims=True)
    var = jnp.mean(jnp.square(x - mu), axis=-1, keepdims=True)
    return (x - mu) * jax.lax.rsqrt(var + eps)


# ----------------------------------------------------------------------------
# Kernel 1: AdaLayerNormZero modulation for both streams in one call
# ----------------------------------------------------------------------------
def adaln_kernel(temb_ref, w_ref, out_ref):
    t = temb_ref[...].astype(jnp.float32)
    s = t * jax.nn.sigmoid(t)                               # silu in fp32
    out_ref[...] = _matmul_xt_bf16(s, w_ref[...])           # (B, 12D) fp32


def adaln_modulation(temb, w_mod_bf16):
    B, D = temb.shape
    N = w_mod_bf16.shape[0]
    return pl.pallas_call(
        adaln_kernel,
        out_shape=jax.ShapeDtypeStruct((B, N), jnp.float32),
        grid=(1,),
        in_specs=[pl.BlockSpec((B, D), lambda i: (0, 0)),
                  pl.BlockSpec((N, D), lambda i: (0, 0))],
        out_specs=pl.BlockSpec((B, N), lambda i: (0, 0)),
    )(temb, w_mod_bf16)


# ----------------------------------------------------------------------------
# Kernel 2: LN + modulate ONCE per tile + full-width QKV projection + fp32 qk-norm.
# Output written head-major into the joint (B, 3H, Stot, Dh) buffer.  The second
# (context) call aliases the first call's output buffer -> no q/k/v concat.
# ----------------------------------------------------------------------------
def lnmod_qkv_kernel(x_ref, mod_ref, w_ref, *rest, num_heads, head_dim, sm_scale,
                     shift_row, scale_row):
    o_ref = rest[-1]                                        # rest = (o_ref,) or (alias_ref, o_ref)
    mv = mod_ref[0]                                         # (12, D) fp32
    scale = mv[scale_row:scale_row + 1, :]                  # (1, D)
    shift = mv[shift_row:shift_row + 1, :]

    x = x_ref[0].astype(jnp.float32)                        # (ts, D)
    xm = (_ln_f32(x) * (1.0 + scale) + shift).astype(jnp.bfloat16)   # LN + modulate, once per tile
    y = jax.lax.dot_general(xm, w_ref[...], (((1,), (1,)), ((), ())),
                            preferred_element_type=jnp.float32)      # (ts, 3H*Dh)

    H, Dh = num_heads, head_dim
    for hh in range(3 * H):                                 # static per-head epilogue
        ys = y[:, hh * Dh:(hh + 1) * Dh]
        if hh < H:                                          # q heads: fp32 LN + fold 1/sqrt(Dh)
            ys = _ln_f32(ys) * sm_scale
        elif hh < 2 * H:                                    # k heads: fp32 LN
            ys = _ln_f32(ys)
        o_ref[0, hh] = ys.astype(o_ref.dtype)               # (ts, Dh)


def lnmod_qkv_proj(x, mod, w_qkv_bf16, *, H, Dh, ts, Stot, seq_block_off, sm_scale,
                   shift_row, scale_row, qkv_alias=None):
    B, S, D = x.shape
    nH3 = 3 * H
    kernel = partial(lnmod_qkv_kernel, num_heads=H, head_dim=Dh, sm_scale=sm_scale,
                     shift_row=shift_row, scale_row=scale_row)
    in_specs = [
        pl.BlockSpec((1, ts, D), lambda b, s: (b, s, 0)),
        pl.BlockSpec((1, 12, D), lambda b, s: (b, 0, 0)),
        pl.BlockSpec((nH3 * Dh, D), lambda b, s: (0, 0)),   # VMEM-resident fused [Wq;Wk;Wv]
    ]
    args = [x, mod, w_qkv_bf16]
    io_alias = {}
    if qkv_alias is not None:
        in_specs.append(pl.BlockSpec(memory_space=pl.ANY))  # aliased joint buffer (never read)
        args.append(qkv_alias)
        io_alias = {3: 0}
    return pl.pallas_call(
        kernel,
        out_shape=jax.ShapeDtypeStruct((B, nH3, Stot, Dh), jnp.bfloat16),
        grid=(B, S // ts),
        in_specs=in_specs,
        out_specs=pl.BlockSpec((1, nH3, ts, Dh),
                               lambda b, s, off=seq_block_off: (b, 0, s + off, 0)),
        input_output_aliases=io_alias,
        compiler_params=pltpu.CompilerParams(
            dimension_semantics=("parallel", "parallel"),
            vmem_limit_bytes=VMEM_LIMIT),
    )(*args)


# ----------------------------------------------------------------------------
# Kernel 3: flash-style joint attention (online softmax, q/k already normed+scaled).
# q/k/v come from the single joint (B, 3H, Stot, Dh) buffer (passed three times with
# head-offset index maps); output is written token-major (B, Stot, D).
# ----------------------------------------------------------------------------
def flash_attn_kernel(q_ref, k_ref, v_ref, o_ref, m_sc, l_sc, acc_sc):
    kv = pl.program_id(3)

    @pl.when(kv == 0)
    def _():
        m_sc[...] = jnp.full(m_sc.shape, -jnp.inf, jnp.float32)
        l_sc[...] = jnp.zeros(l_sc.shape, jnp.float32)
        acc_sc[...] = jnp.zeros(acc_sc.shape, jnp.float32)

    s = jax.lax.dot_general(q_ref[0, 0], k_ref[0, 0],
                            (((1,), (1,)), ((), ())),
                            preferred_element_type=jnp.float32)     # (tq, tkv)
    m_prev = m_sc[...]                                              # (tq, 128), lanes identical
    m_new = jnp.maximum(m_prev, jnp.max(s, axis=-1, keepdims=True))
    alpha = jnp.exp(m_prev - m_new)
    p = jnp.exp(s - m_new[:, 0:1])
    l_sc[...] = alpha * l_sc[...] + jnp.sum(p, axis=-1, keepdims=True)
    acc_sc[...] = alpha[:, 0:1] * acc_sc[...] + jnp.dot(
        p.astype(jnp.bfloat16), v_ref[0, 0], preferred_element_type=jnp.float32)
    m_sc[...] = m_new

    @pl.when(kv == pl.num_programs(3) - 1)
    def _():
        inv_l = pl.reciprocal(l_sc[:, 0:1], approx=True)
        o_ref[0] = (acc_sc[...] * inv_l).astype(o_ref.dtype)        # (tq, Dh) lane slab of D


def flash_joint_attention(qkv, H, Dh, tq, tkv):
    B, nH3, Stot, _ = qkv.shape
    D = H * Dh
    q_spec = pl.BlockSpec((1, 1, tq, Dh), lambda b, h, sq, skv: (b, h, sq, 0))
    k_spec = pl.BlockSpec((1, 1, tkv, Dh), lambda b, h, sq, skv: (b, h + H, skv, 0))
    v_spec = pl.BlockSpec((1, 1, tkv, Dh), lambda b, h, sq, skv: (b, h + 2 * H, skv, 0))
    out_spec = pl.BlockSpec((1, tq, Dh), lambda b, h, sq, skv: (b, sq, h))
    return pl.pallas_call(
        flash_attn_kernel,
        out_shape=jax.ShapeDtypeStruct((B, Stot, D), jnp.bfloat16),
        grid=(B, H, Stot // tq, Stot // tkv),
        in_specs=[q_spec, k_spec, v_spec],
        out_specs=out_spec,
        scratch_shapes=[pltpu.VMEM((tq, 128), jnp.float32),          # lane-dense running max
                        pltpu.VMEM((tq, 128), jnp.float32),          # lane-dense running sum
                        pltpu.VMEM((tq, Dh), jnp.float32)],
        compiler_params=pltpu.CompilerParams(
            dimension_semantics=("parallel", "parallel", "parallel", "arbitrary"),
            vmem_limit_bytes=VMEM_LIMIT),
    )(qkv, qkv, qkv)


# ----------------------------------------------------------------------------
# Kernel 4: attention output projection (full K = D, resident weight) + gated
#           residual + fp32 LayerNorm (norm2) + mlp modulation.
# ----------------------------------------------------------------------------
def attn_out_lnmod_kernel(attn_ref, w_ref, res_ref, mod_ref, o_ref, *,
                          gate_row, scale_row, shift_row):
    y = jax.lax.dot_general(attn_ref[0], w_ref[...], (((1,), (1,)), ((), ())),
                            preferred_element_type=jnp.float32)      # (ts, D)
    mv = mod_ref[0]                                                  # (12, D)
    gate = mv[gate_row:gate_row + 1, :]
    scale = mv[scale_row:scale_row + 1, :]
    shift = mv[shift_row:shift_row + 1, :]
    x = res_ref[0].astype(jnp.float32) + gate * y
    o_ref[0] = (_ln_f32(x) * (1.0 + scale) + shift).astype(o_ref.dtype)


def attn_out_gated_lnmod(attn, w_out_bf16, residual, mod, *, ts, seq_block_off,
                         gate_row, scale_row, shift_row):
    B, S, D = residual.shape
    kernel = partial(attn_out_lnmod_kernel, gate_row=gate_row,
                     scale_row=scale_row, shift_row=shift_row)
    return pl.pallas_call(
        kernel,
        out_shape=jax.ShapeDtypeStruct((B, S, D), jnp.bfloat16),
        grid=(B, S // ts),
        in_specs=[
            pl.BlockSpec((1, ts, D), lambda b, s, off=seq_block_off: (b, s + off, 0)),
            pl.BlockSpec((D, D), lambda b, s: (0, 0)),               # VMEM-resident out-proj
            pl.BlockSpec((1, ts, D), lambda b, s: (b, s, 0)),
            pl.BlockSpec((1, 12, D), lambda b, s: (b, 0, 0)),
        ],
        out_specs=pl.BlockSpec((1, ts, D), lambda b, s: (b, s, 0)),
        compiler_params=pltpu.CompilerParams(
            dimension_semantics=("parallel", "parallel"),
            vmem_limit_bytes=VMEM_LIMIT),
    )(attn, w_out_bf16, residual, mod)


# ----------------------------------------------------------------------------
# Kernel 5: AuraFlowFeedForward tiled over Hff + fused gated residual epilogue
# ----------------------------------------------------------------------------
def ffn_gated_res_kernel(x_ref, w1_ref, w2_ref, w3_ref, res_ref, mod_ref,
                         o_ref, acc_ref, *, gate_row):
    f = pl.program_id(2)

    @pl.when(f == 0)
    def _():
        acc_ref[...] = jnp.zeros_like(acc_ref)

    x = x_ref[0]                                            # (ts, D) bf16
    h1 = jax.lax.dot_general(x, w1_ref[...], (((1,), (1,)), ((), ())),
                             preferred_element_type=jnp.float32)   # (ts, th)
    h2 = jax.lax.dot_general(x, w2_ref[...], (((1,), (1,)), ((), ())),
                             preferred_element_type=jnp.float32)
    hgate = (h1 * jax.nn.sigmoid(h1)) * h2                  # silu * gate in fp32
    acc_ref[...] += jax.lax.dot_general(
        hgate.astype(jnp.bfloat16), w3_ref[...], (((1,), (1,)), ((), ())),
        preferred_element_type=jnp.float32)                 # (ts, D)

    @pl.when(f == pl.num_programs(2) - 1)
    def _():
        gate = mod_ref[0][gate_row:gate_row + 1, :]
        o_ref[0] = (res_ref[0].astype(jnp.float32)
                    + gate * acc_ref[...]).astype(o_ref.dtype)


def ffn_gated_residual(x_bf16, w1, w2, w3, residual, mod, *, ts, th, gate_row):
    B, S, D = residual.shape
    Hff = w1.shape[0]
    kernel = partial(ffn_gated_res_kernel, gate_row=gate_row)
    return pl.pallas_call(
        kernel,
        out_shape=jax.ShapeDtypeStruct((B, S, D), jnp.float32),
        grid=(B, S // ts, Hff // th),
        in_specs=[
            pl.BlockSpec((1, ts, D), lambda b, s, f: (b, s, 0)),
            pl.BlockSpec((th, D), lambda b, s, f: (f, 0)),
            pl.BlockSpec((th, D), lambda b, s, f: (f, 0)),
            pl.BlockSpec((D, th), lambda b, s, f: (0, f)),
            pl.BlockSpec((1, ts, D), lambda b, s, f: (b, s, 0)),
            pl.BlockSpec((1, 12, D), lambda b, s, f: (b, 0, 0)),
        ],
        out_specs=pl.BlockSpec((1, ts, D), lambda b, s, f: (b, s, 0)),
        scratch_shapes=[pltpu.VMEM((ts, D), jnp.float32)],
        compiler_params=pltpu.CompilerParams(
            dimension_semantics=("parallel", "parallel", "arbitrary"),
            vmem_limit_bytes=VMEM_LIMIT),
    )(x_bf16, w1, w2, w3, residual, mod)


# ----------------------------------------------------------------------------
# Full block forward
# ----------------------------------------------------------------------------
def aura_flow_joint_block_forward(p, num_heads, hidden_states, encoder_hidden_states, temb):
    B, Sh, D = hidden_states.shape
    Sc = encoder_hidden_states.shape[1]
    H = num_heads
    Dh = D // H
    Stot = Sh + Sc
    sm_scale = 1.0 / math.sqrt(Dh)
    Hff = p["ff_w1"].shape[0]

    # --- tile selection (quantum 16 preferred; hidden tiles decoupled from ctx) ---
    ts_h = _pick_tile(Sh, 256)                      # hidden seq tile (free: only Sh % ts_h == 0)
    ts_c = _pick_tile(math.gcd(Sh, Sc), 256)        # ctx tile must also divide Sh (joint offsets)
    if ts_c % 8 != 0:
        raise ValueError("Sh and Sc must share a multiple-of-8 tile; pad the sequence lengths.")
    tq = _pick_tile(Stot, 256)
    tkv = _pick_tile(Stot, 256)
    th = _pick_tile(Hff, 256)

    bf16 = jnp.bfloat16
    # fused / bf16 weights (in a real model these would be prepared once outside the step)
    w_mod = jnp.concatenate([p["norm1_linear_w"], p["norm1_ctx_linear_w"]], 0).astype(bf16)
    w_qkv_h = jnp.concatenate([p["to_q_w"], p["to_k_w"], p["to_v_w"]], 0).astype(bf16)
    w_qkv_c = jnp.concatenate([p["add_q_w"], p["add_k_w"], p["add_v_w"]], 0).astype(bf16)
    w_out = p["to_out_w"].astype(bf16)
    w_add_out = p["to_add_out_w"].astype(bf16)
    ff_w1, ff_w2, ff_w3 = (p["ff_w1"].astype(bf16), p["ff_w2"].astype(bf16), p["ff_w3"].astype(bf16))
    ffc_w1, ffc_w2, ffc_w3 = (p["ffc_w1"].astype(bf16), p["ffc_w2"].astype(bf16), p["ffc_w3"].astype(bf16))

    # --- AdaLayerNormZero modulation (both streams, one kernel), one (B, 12, D) operand ---
    # rows: 0..5 hidden [shift_msa, scale_msa, gate_msa, shift_mlp, scale_mlp, gate_mlp], 6..11 ctx
    mod = adaln_modulation(temb, w_mod).reshape(B, 12, D)

    # --- fused LN + modulate + QKV (head-major, joint [hidden; ctx] buffer, no concat) ---
    qkv = lnmod_qkv_proj(hidden_states, mod, w_qkv_h, H=H, Dh=Dh, ts=ts_h, Stot=Stot,
                         seq_block_off=0, sm_scale=sm_scale, shift_row=0, scale_row=1)
    qkv = lnmod_qkv_proj(encoder_hidden_states, mod, w_qkv_c, H=H, Dh=Dh, ts=ts_c, Stot=Stot,
                         seq_block_off=Sh // ts_c, sm_scale=sm_scale, shift_row=6, scale_row=7,
                         qkv_alias=qkv)

    # --- joint flash attention; output token-major (B, Stot, D), rows [hidden; ctx] ---
    attn = flash_joint_attention(qkv, H, Dh, tq, tkv)

    # --- hidden branch: out-proj + gated residual + norm2 + modulate, then FFN + residual ---
    hid_mod = attn_out_gated_lnmod(attn, w_out, hidden_states, mod,
                                   ts=ts_h, seq_block_off=0,
                                   gate_row=2, scale_row=4, shift_row=3)
    hidden_out = ffn_gated_residual(hid_mod, ff_w1, ff_w2, ff_w3, hidden_states, mod,
                                    ts=ts_h, th=th, gate_row=5)

    # --- context branch ---
    ctx_mod = attn_out_gated_lnmod(attn, w_add_out, encoder_hidden_states, mod,
                                   ts=ts_c, seq_block_off=Sh // ts_c,
                                   gate_row=8, scale_row=10, shift_row=9)
    ctx_out = ffn_gated_residual(ctx_mod, ffc_w1, ffc_w2, ffc_w3, encoder_hidden_states, mod,
                                 ts=ts_c, th=th, gate_row=11)

    return ctx_out, hidden_out


# ----------------------------------------------------------------------------
# Pure-JAX fp32 reference (mirrors the PyTorch module)
# ----------------------------------------------------------------------------
def _ref_ln(x, eps=LN_EPS):
    x = x.astype(jnp.float32)
    m = jnp.mean(x, -1, keepdims=True)
    v = jnp.mean((x - m) ** 2, -1, keepdims=True)
    return (x - m) / jnp.sqrt(v + eps)


def reference_forward(p, num_heads, h, c, temb):
    B, Sh, D = h.shape
    Sc = c.shape[1]
    H = num_heads
    Dh = D // H
    silu = lambda t: t * jax.nn.sigmoid(t)
    lin = lambda x, w: jnp.einsum("...k,nk->...n", x, w)

    mod = lin(silu(temb), p["norm1_linear_w"])
    shift_msa, scale_msa, gate_msa, shift_mlp, scale_mlp, gate_mlp = jnp.split(mod, 6, 1)
    mod_c = lin(silu(temb), p["norm1_ctx_linear_w"])
    c_shift_msa, c_scale_msa, c_gate_msa, c_shift_mlp, c_scale_mlp, c_gate_mlp = jnp.split(mod_c, 6, 1)

    nh = _ref_ln(h) * (1 + scale_msa[:, None]) + shift_msa[:, None]
    nc = _ref_ln(c) * (1 + c_scale_msa[:, None]) + c_shift_msa[:, None]

    q_h = lin(nh, p["to_q_w"]).reshape(B, Sh, H, Dh)
    k_h = lin(nh, p["to_k_w"]).reshape(B, Sh, H, Dh)
    v_h = lin(nh, p["to_v_w"]).reshape(B, Sh, H, Dh)
    q_c = lin(nc, p["add_q_w"]).reshape(B, Sc, H, Dh)
    k_c = lin(nc, p["add_k_w"]).reshape(B, Sc, H, Dh)
    v_c = lin(nc, p["add_v_w"]).reshape(B, Sc, H, Dh)

    q = _ref_ln(jnp.concatenate([q_c, q_h], 1).transpose(0, 2, 1, 3))
    k = _ref_ln(jnp.concatenate([k_c, k_h], 1).transpose(0, 2, 1, 3))
    v = jnp.concatenate([v_c, v_h], 1).transpose(0, 2, 1, 3)

    s = jnp.einsum("bhqd,bhkd->bhqk", q, k) / jnp.sqrt(float(Dh))
    a = jax.nn.softmax(s, axis=-1)
    o = jnp.einsum("bhqk,bhkd->bhqd", a, v).transpose(0, 2, 1, 3).reshape(B, Sc + Sh, D)

    ctx_attn = lin(o[:, :Sc], p["to_add_out_w"])
    hid_attn = lin(o[:, Sc:], p["to_out_w"])

    def ff(x, w1, w2, w3):
        return lin(silu(lin(x, w1)) * lin(x, w2), w3)

    hh = _ref_ln(h + gate_msa[:, None] * hid_attn)
    hh = hh * (1 + scale_mlp[:, None]) + shift_mlp[:, None]
    h_out = h + gate_mlp[:, None] * ff(hh, p["ff_w1"], p["ff_w2"], p["ff_w3"])

    cc = _ref_ln(c + c_gate_msa[:, None] * ctx_attn)
    cc = cc * (1 + c_scale_mlp[:, None]) + c_shift_mlp[:, None]
    c_out = c + c_gate_mlp[:, None] * ff(cc, p["ffc_w1"], p["ffc_w2"], p["ffc_w3"])

    return c_out, h_out


# ----------------------------------------------------------------------------
if __name__ == "__main__":
    # Small but lane-aligned shapes: head_dim = 128 keeps every last-dim block lane-dense.
    B, SH, SC = 2, 16, 8
    D, H = 256, 2                                     # dim, num_attention_heads (head_dim = 128)
    HFF = find_multiple(int(2 * (4 * D) / 3), 256)    # AuraFlowFeedForward hidden = 768

    root = jax.random.PRNGKey(0)
    keys = jax.random.split(root, 32)

    def init(k, shape, scale=0.05):
        return (jax.random.normal(k, shape) * scale).astype(jnp.float32)

    params = {
        "norm1_linear_w":     init(keys[0], (6 * D, D)),
        "norm1_ctx_linear_w": init(keys[1], (6 * D, D)),
        "to_q_w":    init(keys[2], (D, D)),
        "to_k_w":    init(keys[3], (D, D)),
        "to_v_w":    init(keys[4], (D, D)),
        "add_q_w":   init(keys[5], (D, D)),
        "add_k_w":   init(keys[6], (D, D)),
        "add_v_w":   init(keys[7], (D, D)),
        "to_out_w":  init(keys[8], (D, D)),
        "to_add_out_w": init(keys[9], (D, D)),
        "ff_w1":  init(keys[10], (HFF, D)),
        "ff_w2":  init(keys[11], (HFF, D)),
        "ff_w3":  init(keys[12], (D, HFF)),
        "ffc_w1": init(keys[13], (HFF, D)),
        "ffc_w2": init(keys[14], (HFF, D)),
        "ffc_w3": init(keys[15], (D, HFF)),
    }

    hidden_states = jax.random.normal(keys[20], (B, SH, D), dtype=jnp.float32)
    encoder_hidden_states = jax.random.normal(keys[21], (B, SC, D), dtype=jnp.float32)
    temb = jax.random.normal(keys[22], (B, D), dtype=jnp.float32)

    fwd = jax.jit(aura_flow_joint_block_forward, static_argnums=(1,))
    ctx_out, hid_out = fwd(params, H, hidden_states, encoder_hidden_states, temb)
    jax.block_until_ready((ctx_out, hid_out))

    ctx_ref, hid_ref = reference_forward(params, H, hidden_states, encoder_hidden_states, temb)
    jax.block_until_ready((ctx_ref, hid_ref))

    assert ctx_out.shape == (B, SC, D) and hid_out.shape == (B, SH, D)
    tol = 3e-2  # bf16 matmul operands (fp32 accumulation) vs fp32 reference
    ok = (jnp.allclose(ctx_out, ctx_ref, rtol=tol, atol=tol)
          and jnp.allclose(hid_out, hid_ref, rtol=tol, atol=tol))
    if not ok:
        err_c = float(jnp.max(jnp.abs(ctx_out - ctx_ref)))
        err_h = float(jnp.max(jnp.abs(hid_out - hid_ref)))
        raise AssertionError(f"Pallas/reference mismatch: ctx max|d|={err_c:.4e}, hid max|d|={err_h:.4e}")

    print("KERNEL_OK")
</pallas_src>

<mosaic_0001>
module attributes {stable_mosaic.version = 11 : i64} {
  func.func @adaln_kernel(%arg0: i32, %arg1: memref<2x256xf32, #tpu.memory_space<vmem>>, %arg2: memref<3072x256xbf16, #tpu.memory_space<vmem>>, %arg3: memref<2x3072xf32, #tpu.memory_space<vmem>>) attributes {dimension_semantics = [#tpu.dimension_semantics<arbitrary>], iteration_bounds = array<i64: 1>, scalar_prefetch = 0 : i64, scratch_operands = 0 : i64, tpu.core_type = #tpu.core_type<tc>, window_params = [{pipeline_mode = #tpu.pipeline_mode<synchronous>, transform_indices = @transform_0, window_bounds = array<i64: 2, 256>}, {pipeline_mode = #tpu.pipeline_mode<synchronous>, transform_indices = @transform_1, window_bounds = array<i64: 3072, 256>}, {pipeline_mode = #tpu.pipeline_mode<synchronous>, transform_indices = @transform_2, window_bounds = array<i64: 2, 3072>}]} {
    %c0 = arith.constant 0 : index
    %c0_0 = arith.constant 0 : index
    %0 = vector.load %arg1[%c0, %c0_0] : memref<2x256xf32, #tpu.memory_space<vmem>>, vector<2x256xf32>
    %1 = arith.negf %0 : vector<2x256xf32>
    %2 = math.exp %1 : vector<2x256xf32>
    %cst = arith.constant 1.000000e+00 : f32
    %3 = vector.broadcast %cst : f32 to vector<2x256xf32>
    %4 = arith.addf %3, %2 : vector<2x256xf32>
    %5 = arith.divf %3, %4 : vector<2x256xf32>
    %6 = arith.mulf %0, %5 : vector<2x256xf32>
    %c0_1 = arith.constant 0 : index
    %c0_2 = arith.constant 0 : index
    %7 = vector.load %arg2[%c0_1, %c0_2] : memref<3072x256xbf16, #tpu.memory_space<vmem>>, vector<3072x256xbf16>
    %8 = arith.truncf %6 : vector<2x256xf32> to vector<2x256xbf16>
    %cst_3 = arith.constant dense<0.000000e+00> : vector<2x3072xf32>
    %9 = tpu.matmul %8, %7, %cst_3 {dimension_numbers = #tpu.dot_dimension_numbers<[1], [1], [0], [0], [0, 0, 1, 0], [], []>} : vector<2x256xbf16>, vector<3072x256xbf16>, vector<2x3072xf32> -> vector<2x3072xf32>
    %c0_4 = arith.constant 0 : index
    %c0_5 = arith.constant 0 : index
    %10 = vector.load %arg3[%c0_4, %c0_5] : memref<2x3072xf32, #tpu.memory_space<vmem>>, vector<2x3072xf32>
    tpu.vector_store %arg3[%c0_4, %c0_5], %9 {strides = array<i32>} : memref<2x3072xf32, #tpu.memory_space<vmem>>, vector<2x3072xf32>,
    return
  }
  func.func @transform_0(%arg0: i32) -> (i32, i32) {
    %c0_i32 = arith.constant 0 : i32
    %c0_i32_0 = arith.constant 0 : i32
    %c0_i32_1 = arith.constant 0 : i32
    return %c0_i32, %c0_i32_0 : i32, i32
  }
  func.func @transform_1(%arg0: i32) -> (i32, i32) {
    %c0_i32 = arith.constant 0 : i32
    %c0_i32_0 = arith.constant 0 : i32
    %c0_i32_1 = arith.constant 0 : i32
    return %c0_i32, %c0_i32_0 : i32, i32
  }
  func.func @transform_2(%arg0: i32) -> (i32, i32) {
    %c0_i32 = arith.constant 0 : i32
    %c0_i32_0 = arith.constant 0 : i32
    %c0_i32_1 = arith.constant 0 : i32
    return %c0_i32, %c0_i32_0 : i32, i32
  }
}

module attributes {stable_mosaic.version = 11 : i64} {
  func.func @lnmod_qkv_kernel(%arg0: i32, %arg1: i32, %arg2: memref<1x16x256xf32, #tpu.memory_space<vmem>>, %arg3: memref<1x12x256xf32, #tpu.memory_space<vmem>>, %arg4: memref<768x256xbf16, #tpu.memory_space<vmem>>, %arg5: memref<1x6x16x128xbf16, #tpu.memory_space<vmem>>) attributes {dimension_semantics = [#tpu.dimension_semantics<parallel>, #tpu.dimension_semantics<parallel>], iteration_bounds = array<i64: 2, 1>, scalar_prefetch = 0 : i64, scratch_operands = 0 : i64, tpu.core_type = #tpu.core_type<tc>, window_params = [{transform_indices = @transform_0, window_bounds = array<i64: 1, 16, 256>}, {transform_indices = @transform_1, window_bounds = array<i64: 1, 12, 256>}, {pipeline_mode = #tpu.pipeline_mode<synchronous>, transform_indices = @transform_2, window_bounds = array<i64: 768, 256>}, {transform_indices = @transform_3, window_bounds = array<i64: 1, 6, 16, 128>}]} {
    %c0 = arith.constant 0 : index
    %c0_0 = arith.constant 0 : index
    %c0_1 = arith.constant 0 : index
    %0 = vector.load %arg3[%c0, %c0_0, %c0_1] : memref<1x12x256xf32, #tpu.memory_space<vmem>>, vector<1x12x256xf32>
    %1 = vector.shape_cast %0 : vector<1x12x256xf32> to vector<12x256xf32>
    %2 = vector.extract_strided_slice %1 {offsets = [1, 0], sizes = [1, 256], strides = [1, 1]} : vector<12x256xf32> to vector<1x256xf32>
    %3 = vector.extract_strided_slice %1 {offsets = [0, 0], sizes = [1, 256], strides = [1, 1]} : vector<12x256xf32> to vector<1x256xf32>
    %c0_2 = arith.constant 0 : index
    %c0_3 = arith.constant 0 : index
    %c0_4 = arith.constant 0 : index
    %4 = vector.load %arg2[%c0_2, %c0_3, %c0_4] : memref<1x16x256xf32, #tpu.memory_space<vmem>>, vector<1x16x256xf32>
    %5 = vector.shape_cast %4 : vector<1x16x256xf32> to vector<16x256xf32>
    %cst = arith.constant dense<0.000000e+00> : vector<16xf32>
    %6 = vector.multi_reduction <add>, %5, %cst [1] : vector<16x256xf32> to vector<16xf32>
    %7 = vector.shape_cast %6 : vector<16xf32> to vector<16x1xf32>
    %cst_5 = arith.constant 2.560000e+02 : f32
    %8 = vector.broadcast %cst_5 : f32 to vector<16x1xf32>
    %9 = arith.divf %7, %8 : vector<16x1xf32>
    %10 = vector.broadcast %9 : vector<16x1xf32> to vector<16x256xf32>
    %11 = arith.subf %5, %10 : vector<16x256xf32>
    %12 = arith.mulf %11, %11 : vector<16x256xf32>
    %cst_6 = arith.constant dense<0.000000e+00> : vector<16xf32>
    %13 = vector.multi_reduction <add>, %12, %cst_6 [1] : vector<16x256xf32> to vector<16xf32>
    %14 = vector.shape_cast %13 : vector<16xf32> to vector<16x1xf32>
    %cst_7 = arith.constant 2.560000e+02 : f32
    %15 = vector.broadcast %cst_7 : f32 to vector<16x1xf32>
    %16 = arith.divf %14, %15 : vector<16x1xf32>
    %17 = vector.broadcast %9 : vector<16x1xf32> to vector<16x256xf32>
    %18 = arith.subf %5, %17 : vector<16x256xf32>
    %cst_8 = arith.constant 9.99999974E-6 : f32
    %19 = vector.broadcast %cst_8 : f32 to vector<16x1xf32>
    %20 = arith.addf %16, %19 : vector<16x1xf32>
    %21 = math.rsqrt %20 : vector<16x1xf32>
    %22 = vector.broadcast %21 : vector<16x1xf32> to vector<16x256xf32>
    %23 = arith.mulf %18, %22 : vector<16x256xf32>
    %cst_9 = arith.constant 1.000000e+00 : f32
    %24 = vector.broadcast %cst_9 : f32 to vector<1x256xf32>
    %25 = arith.addf %24, %2 : vector<1x256xf32>
    %26 = vector.broadcast %25 : vector<1x256xf32> to vector<16x256xf32>
    %27 = arith.mulf %23, %26 : vector<16x256xf32>
    %28 = vector.broadcast %3 : vector<1x256xf32> to vector<16x256xf32>
    %29 = arith.addf %27, %28 : vector<16x256xf32>
    %30 = arith.truncf %29 : vector<16x256xf32> to vector<16x256xbf16>
    %c0_10 = arith.constant 0 : index
    %c0_11 = arith.constant 0 : index
    %31 = vector.load %arg4[%c0_10, %c0_11] : memref<768x256xbf16, #tpu.memory_space<vmem>>, vector<768x256xbf16>
    %cst_12 = arith.constant dense<0.000000e+00> : vector<16x768xf32>
    %32 = tpu.matmul %30, %31, %cst_12 {dimension_numbers = #tpu.dot_dimension_numbers<[1], [1], [0], [0], [0, 0, 1, 0], [], []>} : vector<16x256xbf16>, vector<768x256xbf16>, vector<16x768xf32> -> vector<16x768xf32>
    %33 = vector.extract_strided_slice %32 {offsets = [0, 0], sizes = [16, 128], strides = [1, 1]} : vector<16x768xf32> to vector<16x128xf32>
    %cst_13 = arith.constant dense<0.000000e+00> : vector<16xf32>
    %34 = vector.multi_reduction <add>, %33, %cst_13 [1] : vector<16x128xf32> to vector<16xf32>
    %35 = vector.shape_cast %34 : vector<16xf32> to vector<16x1xf32>
    %cst_14 = arith.constant 1.280000e+02 : f32
    %36 = vector.broadcast %cst_14 : f32 to vector<16x1xf32>
    %37 = arith.divf %35, %36 : vector<16x1xf32>
    %38 = vector.broadcast %37 : vector<16x1xf32> to vector<16x128xf32>
    %39 = arith.subf %33, %38 : vector<16x128xf32>
    %40 = arith.mulf %39, %39 : vector<16x128xf32>
    %cst_15 = arith.constant dense<0.000000e+00> : vector<16xf32>
    %41 = vector.multi_reduction <add>, %40, %cst_15 [1] : vector<16x128xf32> to vector<16xf32>
    %42 = vector.shape_cast %41 : vector<16xf32> to vector<16x1xf32>
    %cst_16 = arith.constant 1.280000e+02 : f32
    %43 = vector.broadcast %cst_16 : f32 to vector<16x1xf32>
    %44 = arith.divf %42, %43 : vector<16x1xf32>
    %45 = vector.broadcast %37 : vector<16x1xf32> to vector<16x128xf32>
    %46 = arith.subf %33, %45 : vector<16x128xf32>
    %cst_17 = arith.constant 9.99999974E-6 : f32
    %47 = vector.broadcast %cst_17 : f32 to vector<16x1xf32>
    %48 = arith.addf %44, %47 : vector<16x1xf32>
    %49 = math.rsqrt %48 : vector<16x1xf32>
    %50 = vector.broadcast %49 : vector<16x1xf32> to vector<16x128xf32>
    %51 = arith.mulf %46, %50 : vector<16x128xf32>
    %cst_18 = arith.constant 0.0883883461 : f32
    %52 = vector.broadcast %cst_18 : f32 to vector<16x128xf32>
    %53 = arith.mulf %51, %52 : vector<16x128xf32>
    %54 = arith.truncf %53 : vector<16x128xf32> to vector<16x128xbf16>
    %c0_19 = arith.constant 0 : index
    %c0_20 = arith.constant 0 : index
    %c0_21 = arith.constant 0 : index
    %c0_22 = arith.constant 0 : index
    %55 = vector.load %arg5[%c0_19, %c0_20, %c0_21, %c0_22] : memref<1x6x16x128xbf16, #tpu.memory_space<vmem>>, vector<1x1x16x128xbf16>
    %56 = vector.shape_cast %55 : vector<1x1x16x128xbf16> to vector<16x128xbf16>
    %57 = vector.shape_cast %54 : vector<16x128xbf16> to vector<1x1x16x128xbf16>
    tpu.vector_store %arg5[%c0_19, %c0_20, %c0_21, %c0_22], %57 {strides = array<i32>} : memref<1x6x16x128xbf16, #tpu.memory_space<vmem>>, vector<1x1x16x128xbf16>,
    %58 = vector.extract_strided_slice %32 {offsets = [0, 128], sizes = [16, 128], strides = [1, 1]} : vector<16x768xf32> to vector<16x128xf32>
    %cst_23 = arith.constant dense<0.000000e+00> : vector<16xf32>
    %59 = vector.multi_reduction <add>, %58, %cst_23 [1] : vector<16x128xf32> to vector<16xf32>
    %60 = vector.shape_cast %59 : vector<16xf32> to vector<16x1xf32>
    %cst_24 = arith.constant 1.280000e+02 : f32
    %61 = vector.broadcast %cst_24 : f32 to vector<16x1xf32>
    %62 = arith.divf %60, %61 : vector<16x1xf32>
    %63 = vector.broadcast %62 : vector<16x1xf32> to vector<16x128xf32>
    %64 = arith.subf %58, %63 : vector<16x128xf32>
    %65 = arith.mulf %64, %64 : vector<16x128xf32>
    %cst_25 = arith.constant dense<0.000000e+00> : vector<16xf32>
    %66 = vector.multi_reduction <add>, %65, %cst_25 [1] : vector<16x128xf32> to vector<16xf32>
    %67 = vector.shape_cast %66 : vector<16xf32> to vector<16x1xf32>
    %cst_26 = arith.constant 1.280000e+02 : f32
    %68 = vector.broadcast %cst_26 : f32 to vector<16x1xf32>
    %69 = arith.divf %67, %68 : vector<16x1xf32>
    %70 = vector.broadcast %62 : vector<16x1xf32> to vector<16x128xf32>
    %71 = arith.subf %58, %70 : vector<16x128xf32>
    %cst_27 = arith.constant 9.99999974E-6 : f32
    %72 = vector.broadcast %cst_27 : f32 to vector<16x1xf32>
    %73 = arith.addf %69, %72 : vector<16x1xf32>
    %74 = math.rsqrt %73 : vector<16x1xf32>
    %75 = vector.broadcast %74 : vector<16x1xf32> to vector<16x128xf32>
    %76 = arith.mulf %71, %75 : vector<16x128xf32>
    %cst_28 = arith.constant 0.0883883461 : f32
    %77 = vector.broadcast %cst_28 : f32 to vector<16x128xf32>
    %78 = arith.mulf %76, %77 : vector<16x128xf32>
    %79 = arith.truncf %78 : vector<16x128xf32> to vector<16x128xbf16>
    %c0_29 = arith.constant 0 : index
    %c1 = arith.constant 1 : index
    %c0_30 = arith.constant 0 : index
    %c0_31 = arith.constant 0 : index
    %80 = vector.load %arg5[%c0_29, %c1, %c0_30, %c0_31] : memref<1x6x16x128xbf16, #tpu.memory_space<vmem>>, vector<1x1x16x128xbf16>
    %81 = vector.shape_cast %80 : vector<1x1x16x128xbf16> to vector<16x128xbf16>
    %82 = vector.shape_cast %79 : vector<16x128xbf16> to vector<1x1x16x128xbf16>
    tpu.vector_store %arg5[%c0_29, %c1, %c0_30, %c0_31], %82 {strides = array<i32>} : memref<1x6x16x128xbf16, #tpu.memory_space<vmem>>, vector<1x1x16x128xbf16>,
    %83 = vector.extract_strided_slice %32 {offsets = [0, 256], sizes = [16, 128], strides = [1, 1]} : vector<16x768xf32> to vector<16x128xf32>
    %cst_32 = arith.constant dense<0.000000e+00> : vector<16xf32>
    %84 = vector.multi_reduction <add>, %83, %cst_32 [1] : vector<16x128xf32> to vector<16xf32>
    %85 = vector.shape_cast %84 : vector<16xf32> to vector<16x1xf32>
    %cst_33 = arith.constant 1.280000e+02 : f32
    %86 = vector.broadcast %cst_33 : f32 to vector<16x1xf32>
    %87 = arith.divf %85, %86 : vector<16x1xf32>
    %88 = vector.broadcast %87 : vector<16x1xf32> to vector<16x128xf32>
    %89 = arith.subf %83, %88 : vector<16x128xf32>
    %90 = arith.mulf %89, %89 : vector<16x128xf32>
    %cst_34 = arith.constant dense<0.000000e+00> : vector<16xf32>
    %91 = vector.multi_reduction <add>, %90, %cst_34 [1] : vector<16x128xf32> to vector<16xf32>
    %92 = vector.shape_cast %91 : vector<16xf32> to vector<16x1xf32>
    %cst_35 = arith.constant 1.280000e+02 : f32
    %93 = vector.broadcast %cst_35 : f32 to vector<16x1xf32>
    %94 = arith.divf %92, %93 : vector<16x1xf32>
    %95 = vector.broadcast %87 : vector<16x1xf32> to vector<16x128xf32>
    %96 = arith.subf %83, %95 : vector<16x128xf32>
    %cst_36 = arith.constant 9.99999974E-6 : f32
    %97 = vector.broadcast %cst_36 : f32 to vector<16x1xf32>
    %98 = arith.addf %94, %97 : vector<16x1xf32>
    %99 = math.rsqrt %98 : vector<16x1xf32>
    %100 = vector.broadcast %99 : vector<16x1xf32> to vector<16x128xf32>
    %101 = arith.mulf %96, %100 : vector<16x128xf32>
    %102 = arith.truncf %101 : vector<16x128xf32> to vector<16x128xbf16>
    %c0_37 = arith.constant 0 : index
    %c2 = arith.constant 2 : index
    %c0_38 = arith.constant 0 : index
    %c0_39 = arith.constant 0 : index
    %103 = vector.load %arg5[%c0_37, %c2, %c0_38, %c0_39] : memref<1x6x16x128xbf16, #tpu.memory_space<vmem>>, vector<1x1x16x128xbf16>
    %104 = vector.shape_cast %103 : vector<1x1x16x128xbf16> to vector<16x128xbf16>
    %105 = vector.shape_cast %102 : vector<16x128xbf16> to vector<1x1x16x128xbf16>
    tpu.vector_store %arg5[%c0_37, %c2, %c0_38, %c0_39], %105 {strides = array<i32>} : memref<1x6x16x128xbf16, #tpu.memory_space<vmem>>, vector<1x1x16x128xbf16>,
    %106 = vector.extract_strided_slice %32 {offsets = [0, 384], sizes = [16, 128], strides = [1, 1]} : vector<16x768xf32> to vector<16x128xf32>
    %cst_40 = arith.constant dense<0.000000e+00> : vector<16xf32>
    %107 = vector.multi_reduction <add>, %106, %cst_40 [1] : vector<16x128xf32> to vector<16xf32>
    %108 = vector.shape_cast %107 : vector<16xf32> to vector<16x1xf32>
    %cst_41 = arith.constant 1.280000e+02 : f32
    %109 = vector.broadcast %cst_41 : f32 to vector<16x1xf32>
    %110 = arith.divf %108, %109 : vector<16x1xf32>
    %111 = vector.broadcast %110 : vector<16x1xf32> to vector<16x128xf32>
    %112 = arith.subf %106, %111 : vector<16x128xf32>
    %113 = arith.mulf %112, %112 : vector<16x128xf32>
    %cst_42 = arith.constant dense<0.000000e+00> : vector<16xf32>
    %114 = vector.multi_reduction <add>, %113, %cst_42 [1] : vector<16x128xf32> to vector<16xf32>
    %115 = vector.shape_cast %114 : vector<16xf32> to vector<16x1xf32>
    %cst_43 = arith.constant 1.280000e+02 : f32
    %116 = vector.broadcast %cst_43 : f32 to vector<16x1xf32>
    %117 = arith.divf %115, %116 : vector<16x1xf32>
    %118 = vector.broadcast %110 : vector<16x1xf32> to vector<16x128xf32>
    %119 = arith.subf %106, %118 : vector<16x128xf32>
    %cst_44 = arith.constant 9.99999974E-6 : f32
    %120 = vector.broadcast %cst_44 : f32 to vector<16x1xf32>
    %121 = arith.addf %117, %120 : vector<16x1xf32>
    %122 = math.rsqrt %121 : vector<16x1xf32>
    %123 = vector.broadcast %122 : vector<16x1xf32> to vector<16x128xf32>
    %124 = arith.mulf %119, %123 : vector<16x128xf32>
    %125 = arith.truncf %124 : vector<16x128xf32> to vector<16x128xbf16>
    %c0_45 = arith.constant 0 : index
    %c3 = arith.constant 3 : index
    %c0_46 = arith.constant 0 : index
    %c0_47 = arith.constant 0 : index
    %126 = vector.load %arg5[%c0_45, %c3, %c0_46, %c0_47] : memref<1x6x16x128xbf16, #tpu.memory_space<vmem>>, vector<1x1x16x128xbf16>
    %127 = vector.shape_cast %126 : vector<1x1x16x128xbf16> to vector<16x128xbf16>
    %128 = vector.shape_cast %125 : vector<16x128xbf16> to vector<1x1x16x128xbf16>
    tpu.vector_store %arg5[%c0_45, %c3, %c0_46, %c0_47], %128 {strides = array<i32>} : memref<1x6x16x128xbf16, #tpu.memory_space<vmem>>, vector<1x1x16x128xbf16>,
    %129 = vector.extract_strided_slice %32 {offsets = [0, 512], sizes = [16, 128], strides = [1, 1]} : vector<16x768xf32> to vector<16x128xf32>
    %130 = arith.truncf %129 : vector<16x128xf32> to vector<16x128xbf16>
    %c0_48 = arith.constant 0 : index
    %c4 = arith.constant 4 : index
    %c0_49 = arith.constant 0 : index
    %c0_50 = arith.constant 0 : index
    %131 = vector.load %arg5[%c0_48, %c4, %c0_49, %c0_50] : memref<1x6x16x128xbf16, #tpu.memory_space<vmem>>, vector<1x1x16x128xbf16>
    %132 = vector.shape_cast %131 : vector<1x1x16x128xbf16> to vector<16x128xbf16>
    %133 = vector.shape_cast %130 : vector<16x128xbf16> to vector<1x1x16x128xbf16>
    tpu.vector_store %arg5[%c0_48, %c4, %c0_49, %c0_50], %133 {strides = array<i32>} : memref<1x6x16x128xbf16, #tpu.memory_space<vmem>>, vector<1x1x16x128xbf16>,
    %134 = vector.extract_strided_slice %32 {offsets = [0, 640], sizes = [16, 128], strides = [1, 1]} : vector<16x768xf32> to vector<16x128xf32>
    %135 = arith.truncf %134 : vector<16x128xf32> to vector<16x128xbf16>
    %c0_51 = arith.constant 0 : index
    %c5 = arith.constant 5 : index
    %c0_52 = arith.constant 0 : index
    %c0_53 = arith.constant 0 : index
    %136 = vector.load %arg5[%c0_51, %c5, %c0_52, %c0_53] : memref<1x6x16x128xbf16, #tpu.memory_space<vmem>>, vector<1x1x16x128xbf16>
    %137 = vector.shape_cast %136 : vector<1x1x16x128xbf16> to vector<16x128xbf16>
    %138 = vector.shape_cast %135 : vector<16x128xbf16> to vector<1x1x16x128xbf16>
    tpu.vector_store %arg5[%c0_51, %c5, %c0_52, %c0_53], %138 {strides = array<i32>} : memref<1x6x16x128xbf16, #tpu.memory_space<vmem>>, vector<1x1x16x128xbf16>,
    return
  }
  func.func @transform_0(%arg0: i32, %arg1: i32) -> (i32, i32, i32) {
    %c0_i32 = arith.constant 0 : i32
    %c0_i32_0 = arith.constant 0 : i32
    return %arg0, %arg1, %c0_i32 : i32, i32, i32
  }
  func.func @transform_1(%arg0: i32, %arg1: i32) -> (i32, i32, i32) {
    %c0_i32 = arith.constant 0 : i32
    %c0_i32_0 = arith.constant 0 : i32
    %c0_i32_1 = arith.constant 0 : i32
    return %arg0, %c0_i32, %c0_i32_0 : i32, i32, i32
  }
  func.func @transform_2(%arg0: i32, %arg1: i32) -> (i32, i32) {
    %c0_i32 = arith.constant 0 : i32
    %c0_i32_0 = arith.constant 0 : i32
    %c0_i32_1 = arith.constant 0 : i32
    return %c0_i32, %c0_i32_0 : i32, i32
  }
  func.func @transform_3(%arg0: i32, %arg1: i32) -> (i32, i32, i32, i32) {
    %c0_i32 = arith.constant 0 : i32
    %0 = arith.addi %arg1, %c0_i32 : i32
    %c0_i32_0 = arith.constant 0 : i32
    %c0_i32_1 = arith.constant 0 : i32
    %c0_i32_2 = arith.constant 0 : i32
    return %arg0, %c0_i32_0, %0, %c0_i32_1 : i32, i32, i32, i32
  }
}

module attributes {stable_mosaic.version = 11 : i64} {
  func.func @lnmod_qkv_kernel(%arg0: i32, %arg1: i32, %arg2: memref<1x8x256xf32, #tpu.memory_space<vmem>>, %arg3: memref<1x12x256xf32, #tpu.memory_space<vmem>>, %arg4: memref<768x256xbf16, #tpu.memory_space<vmem>>, %arg5: memref<2x6x24x128xbf16, #tpu.memory_space<any>>, %arg6: memref<1x6x8x128xbf16, #tpu.memory_space<vmem>>) attributes {dimension_semantics = [#tpu.dimension_semantics<parallel>, #tpu.dimension_semantics<parallel>], iteration_bounds = array<i64: 2, 1>, scalar_prefetch = 0 : i64, scratch_operands = 0 : i64, tpu.core_type = #tpu.core_type<tc>, window_params = [{transform_indices = @transform_0, window_bounds = array<i64: 1, 8, 256>}, {transform_indices = @transform_1, window_bounds = array<i64: 1, 12, 256>}, {pipeline_mode = #tpu.pipeline_mode<synchronous>, transform_indices = @transform_2, window_bounds = array<i64: 768, 256>}, {}, {transform_indices = @transform_4, window_bounds = array<i64: 1, 6, 8, 128>}]} {
    %c0 = arith.constant 0 : index
    %c0_0 = arith.constant 0 : index
    %c0_1 = arith.constant 0 : index
    %0 = vector.load %arg3[%c0, %c0_0, %c0_1] : memref<1x12x256xf32, #tpu.memory_space<vmem>>, vector<1x12x256xf32>
    %1 = vector.shape_cast %0 : vector<1x12x256xf32> to vector<12x256xf32>
    %2 = vector.extract_strided_slice %1 {offsets = [7, 0], sizes = [1, 256], strides = [1, 1]} : vector<12x256xf32> to vector<1x256xf32>
    %3 = vector.extract_strided_slice %1 {offsets = [6, 0], sizes = [1, 256], strides = [1, 1]} : vector<12x256xf32> to vector<1x256xf32>
    %c0_2 = arith.constant 0 : index
    %c0_3 = arith.constant 0 : index
    %c0_4 = arith.constant 0 : index
    %4 = vector.load %arg2[%c0_2, %c0_3, %c0_4] : memref<1x8x256xf32, #tpu.memory_space<vmem>>, vector<1x8x256xf32>
    %5 = vector.shape_cast %4 : vector<1x8x256xf32> to vector<8x256xf32>
    %cst = arith.constant dense<0.000000e+00> : vector<8xf32>
    %6 = vector.multi_reduction <add>, %5, %cst [1] : vector<8x256xf32> to vector<8xf32>
    %7 = vector.shape_cast %6 : vector<8xf32> to vector<8x1xf32>
    %cst_5 = arith.constant 2.560000e+02 : f32
    %8 = vector.broadcast %cst_5 : f32 to vector<8x1xf32>
    %9 = arith.divf %7, %8 : vector<8x1xf32>
    %10 = vector.broadcast %9 : vector<8x1xf32> to vector<8x256xf32>
    %11 = arith.subf %5, %10 : vector<8x256xf32>
    %12 = arith.mulf %11, %11 : vector<8x256xf32>
    %cst_6 = arith.constant dense<0.000000e+00> : vector<8xf32>
    %13 = vector.multi_reduction <add>, %12, %cst_6 [1] : vector<8x256xf32> to vector<8xf32>
    %14 = vector.shape_cast %13 : vector<8xf32> to vector<8x1xf32>
    %cst_7 = arith.constant 2.560000e+02 : f32
    %15 = vector.broadcast %cst_7 : f32 to vector<8x1xf32>
    %16 = arith.divf %14, %15 : vector<8x1xf32>
    %17 = vector.broadcast %9 : vector<8x1xf32> to vector<8x256xf32>
    %18 = arith.subf %5, %17 : vector<8x256xf32>
    %cst_8 = arith.constant 9.99999974E-6 : f32
    %19 = vector.broadcast %cst_8 : f32 to vector<8x1xf32>
    %20 = arith.addf %16, %19 : vector<8x1xf32>
    %21 = math.rsqrt %20 : vector<8x1xf32>
    %22 = vector.broadcast %21 : vector<8x1xf32> to vector<8x256xf32>
    %23 = arith.mulf %18, %22 : vector<8x256xf32>
    %cst_9 = arith.constant 1.000000e+00 : f32
    %24 = vector.broadcast %cst_9 : f32 to vector<1x256xf32>
    %25 = arith.addf %24, %2 : vector<1x256xf32>
    %26 = vector.broadcast %25 : vector<1x256xf32> to vector<8x256xf32>
    %27 = arith.mulf %23, %26 : vector<8x256xf32>
    %28 = vector.broadcast %3 : vector<1x256xf32> to vector<8x256xf32>
    %29 = arith.addf %27, %28 : vector<8x256xf32>
    %30 = arith.truncf %29 : vector<8x256xf32> to vector<8x256xbf16>
    %c0_10 = arith.constant 0 : index
    %c0_11 = arith.constant 0 : index
    %31 = vector.load %arg4[%c0_10, %c0_11] : memref<768x256xbf16, #tpu.memory_space<vmem>>, vector<768x256xbf16>
    %cst_12 = arith.constant dense<0.000000e+00> : vector<8x768xf32>
    %32 = tpu.matmul %30, %31, %cst_12 {dimension_numbers = #tpu.dot_dimension_numbers<[1], [1], [0], [0], [0, 0, 1, 0], [], []>} : vector<8x256xbf16>, vector<768x256xbf16>, vector<8x768xf32> -> vector<8x768xf32>
    %33 = vector.extract_strided_slice %32 {offsets = [0, 0], sizes = [8, 128], strides = [1, 1]} : vector<8x768xf32> to vector<8x128xf32>
    %cst_13 = arith.constant dense<0.000000e+00> : vector<8xf32>
    %34 = vector.multi_reduction <add>, %33, %cst_13 [1] : vector<8x128xf32> to vector<8xf32>
    %35 = vector.shape_cast %34 : vector<8xf32> to vector<8x1xf32>
    %cst_14 = arith.constant 1.280000e+02 : f32
    %36 = vector.broadcast %cst_14 : f32 to vector<8x1xf32>
    %37 = arith.divf %35, %36 : vector<8x1xf32>
    %38 = vector.broadcast %37 : vector<8x1xf32> to vector<8x128xf32>
    %39 = arith.subf %33, %38 : vector<8x128xf32>
    %40 = arith.mulf %39, %39 : vector<8x128xf32>
    %cst_15 = arith.constant dense<0.000000e+00> : vector<8xf32>
    %41 = vector.multi_reduction <add>, %40, %cst_15 [1] : vector<8x128xf32> to vector<8xf32>
    %42 = vector.shape_cast %41 : vector<8xf32> to vector<8x1xf32>
    %cst_16 = arith.constant 1.280000e+02 : f32
    %43 = vector.broadcast %cst_16 : f32 to vector<8x1xf32>
    %44 = arith.divf %42, %43 : vector<8x1xf32>
    %45 = vector.broadcast %37 : vector<8x1xf32> to vector<8x128xf32>
    %46 = arith.subf %33, %45 : vector<8x128xf32>
    %cst_17 = arith.constant 9.99999974E-6 : f32
    %47 = vector.broadcast %cst_17 : f32 to vector<8x1xf32>
    %48 = arith.addf %44, %47 : vector<8x1xf32>
    %49 = math.rsqrt %48 : vector<8x1xf32>
    %50 = vector.broadcast %49 : vector<8x1xf32> to vector<8x128xf32>
    %51 = arith.mulf %46, %50 : vector<8x128xf32>
    %cst_18 = arith.constant 0.0883883461 : f32
    %52 = vector.broadcast %cst_18 : f32 to vector<8x128xf32>
    %53 = arith.mulf %51, %52 : vector<8x128xf32>
    %54 = arith.truncf %53 : vector<8x128xf32> to vector<8x128xbf16>
    %c0_19 = arith.constant 0 : index
    %c0_20 = arith.constant 0 : index
    %c0_21 = arith.constant 0 : index
    %c0_22 = arith.constant 0 : index
    %55 = vector.load %arg6[%c0_19, %c0_20, %c0_21, %c0_22] : memref<1x6x8x128xbf16, #tpu.memory_space<vmem>>, vector<1x1x8x128xbf16>
    %56 = vector.shape_cast %55 : vector<1x1x8x128xbf16> to vector<8x128xbf16>
    %57 = vector.shape_cast %54 : vector<8x128xbf16> to vector<1x1x8x128xbf16>
    tpu.vector_store %arg6[%c0_19, %c0_20, %c0_21, %c0_22], %57 {strides = array<i32>} : memref<1x6x8x128xbf16, #tpu.memory_space<vmem>>, vector<1x1x8x128xbf16>,
    %58 = vector.extract_strided_slice %32 {offsets = [0, 128], sizes = [8, 128], strides = [1, 1]} : vector<8x768xf32> to vector<8x128xf32>
    %cst_23 = arith.constant dense<0.000000e+00> : vector<8xf32>
    %59 = vector.multi_reduction <add>, %58, %cst_23 [1] : vector<8x128xf32> to vector<8xf32>
    %60 = vector.shape_cast %59 : vector<8xf32> to vector<8x1xf32>
    %cst_24 = arith.constant 1.280000e+02 : f32
    %61 = vector.broadcast %cst_24 : f32 to vector<8x1xf32>
    %62 = arith.divf %60, %61 : vector<8x1xf32>
    %63 = vector.broadcast %62 : vector<8x1xf32> to vector<8x128xf32>
    %64 = arith.subf %58, %63 : vector<8x128xf32>
    %65 = arith.mulf %64, %64 : vector<8x128xf32>
    %cst_25 = arith.constant dense<0.000000e+00> : vector<8xf32>
    %66 = vector.multi_reduction <add>, %65, %cst_25 [1] : vector<8x128xf32> to vector<8xf32>
    %67 = vector.shape_cast %66 : vector<8xf32> to vector<8x1xf32>
    %cst_26 = arith.constant 1.280000e+02 : f32
    %68 = vector.broadcast %cst_26 : f32 to vector<8x1xf32>
    %69 = arith.divf %67, %68 : vector<8x1xf32>
    %70 = vector.broadcast %62 : vector<8x1xf32> to vector<8x128xf32>
    %71 = arith.subf %58, %70 : vector<8x128xf32>
    %cst_27 = arith.constant 9.99999974E-6 : f32
    %72 = vector.broadcast %cst_27 : f32 to vector<8x1xf32>
    %73 = arith.addf %69, %72 : vector<8x1xf32>
    %74 = math.rsqrt %73 : vector<8x1xf32>
    %75 = vector.broadcast %74 : vector<8x1xf32> to vector<8x128xf32>
    %76 = arith.mulf %71, %75 : vector<8x128xf32>
    %cst_28 = arith.constant 0.0883883461 : f32
    %77 = vector.broadcast %cst_28 : f32 to vector<8x128xf32>
    %78 = arith.mulf %76, %77 : vector<8x128xf32>
    %79 = arith.truncf %78 : vector<8x128xf32> to vector<8x128xbf16>
    %c0_29 = arith.constant 0 : index
    %c1 = arith.constant 1 : index
    %c0_30 = arith.constant 0 : index
    %c0_31 = arith.constant 0 : index
    %80 = vector.load %arg6[%c0_29, %c1, %c0_30, %c0_31] : memref<1x6x8x128xbf16, #tpu.memory_space<vmem>>, vector<1x1x8x128xbf16>
    %81 = vector.shape_cast %80 : vector<1x1x8x128xbf16> to vector<8x128xbf16>
    %82 = vector.shape_cast %79 : vector<8x128xbf16> to vector<1x1x8x128xbf16>
    tpu.vector_store %arg6[%c0_29, %c1, %c0_30, %c0_31], %82 {strides = array<i32>} : memref<1x6x8x128xbf16, #tpu.memory_space<vmem>>, vector<1x1x8x128xbf16>,
    %83 = vector.extract_strided_slice %32 {offsets = [0, 256], sizes = [8, 128], strides = [1, 1]} : vector<8x768xf32> to vector<8x128xf32>
    %cst_32 = arith.constant dense<0.000000e+00> : vector<8xf32>
    %84 = vector.multi_reduction <add>, %83, %cst_32 [1] : vector<8x128xf32> to vector<8xf32>
    %85 = vector.shape_cast %84 : vector<8xf32> to vector<8x1xf32>
    %cst_33 = arith.constant 1.280000e+02 : f32
    %86 = vector.broadcast %cst_33 : f32 to vector<8x1xf32>
    %87 = arith.divf %85, %86 : vector<8x1xf32>
    %88 = vector.broadcast %87 : vector<8x1xf32> to vector<8x128xf32>
    %89 = arith.subf %83, %88 : vector<8x128xf32>
    %90 = arith.mulf %89, %89 : vector<8x128xf32>
    %cst_34 = arith.constant dense<0.000000e+00> : vector<8xf32>
    %91 = vector.multi_reduction <add>, %90, %cst_34 [1] : vector<8x128xf32> to vector<8xf32>
    %92 = vector.shape_cast %91 : vector<8xf32> to vector<8x1xf32>
    %cst_35 = arith.constant 1.280000e+02 : f32
    %93 = vector.broadcast %cst_35 : f32 to vector<8x1xf32>
    %94 = arith.divf %92, %93 : vector<8x1xf32>
    %95 = vector.broadcast %87 : vector<8x1xf32> to vector<8x128xf32>
    %96 = arith.subf %83, %95 : vector<8x128xf32>
    %cst_36 = arith.constant 9.99999974E-6 : f32
    %97 = vector.broadcast %cst_36 : f32 to vector<8x1xf32>
    %98 = arith.addf %94, %97 : vector<8x1xf32>
    %99 = math.rsqrt %98 : vector<8x1xf32>
    %100 = vector.broadcast %99 : vector<8x1xf32> to vector<8x128xf32>
    %101 = arith.mulf %96, %100 : vector<8x128xf32>
    %102 = arith.truncf %101 : vector<8x128xf32> to vector<8x128xbf16>
    %c0_37 = arith.constant 0 : index
    %c2 = arith.constant 2 : index
    %c0_38 = arith.constant 0 : index
    %c0_39 = arith.constant 0 : index
    %103 = vector.load %arg6[%c0_37, %c2, %c0_38, %c0_39] : memref<1x6x8x128xbf16, #tpu.memory_space<vmem>>, vector<1x1x8x128xbf16>
    %104 = vector.shape_cast %103 : vector<1x1x8x128xbf16> to vector<8x128xbf16>
    %105 = vector.shape_cast %102 : vector<8x128xbf16> to vector<1x1x8x128xbf16>
    tpu.vector_store %arg6[%c0_37, %c2, %c0_38, %c0_39], %105 {strides = array<i32>} : memref<1x6x8x128xbf16, #tpu.memory_space<vmem>>, vector<1x1x8x128xbf16>,
    %106 = vector.extract_strided_slice %32 {offsets = [0, 384], sizes = [8, 128], strides = [1, 1]} : vector<8x768xf32> to vector<8x128xf32>
    %cst_40 = arith.constant dense<0.000000e+00> : vector<8xf32>
    %107 = vector.multi_reduction <add>, %106, %cst_40 [1] : vector<8x128xf32> to vector<8xf32>
    %108 = vector.shape_cast %107 : vector<8xf32> to vector<8x1xf32>
    %cst_41 = arith.constant 1.280000e+02 : f32
    %109 = vector.broadcast %cst_41 : f32 to vector<8x1xf32>
    %110 = arith.divf %108, %109 : vector<8x1xf32>
    %111 = vector.broadcast %110 : vector<8x1xf32> to vector<8x128xf32>
    %112 = arith.subf %106, %111 : vector<8x128xf32>
    %113 = arith.mulf %112, %112 : vector<8x128xf32>
    %cst_42 = arith.constant dense<0.000000e+00> : vector<8xf32>
    %114 = vector.multi_reduction <add>, %113, %cst_42 [1] : vector<8x128xf32> to vector<8xf32>
    %115 = vector.shape_cast %114 : vector<8xf32> to vector<8x1xf32>
    %cst_43 = arith.constant 1.280000e+02 : f32
    %116 = vector.broadcast %cst_43 : f32 to vector<8x1xf32>
    %117 = arith.divf %115, %116 : vector<8x1xf32>
    %118 = vector.broadcast %110 : vector<8x1xf32> to vector<8x128xf32>
    %119 = arith.subf %106, %118 : vector<8x128xf32>
    %cst_44 = arith.constant 9.99999974E-6 : f32
    %120 = vector.broadcast %cst_44 : f32 to vector<8x1xf32>
    %121 = arith.addf %117, %120 : vector<8x1xf32>
    %122 = math.rsqrt %121 : vector<8x1xf32>
    %123 = vector.broadcast %122 : vector<8x1xf32> to vector<8x128xf32>
    %124 = arith.mulf %119, %123 : vector<8x128xf32>
    %125 = arith.truncf %124 : vector<8x128xf32> to vector<8x128xbf16>
    %c0_45 = arith.constant 0 : index
    %c3 = arith.constant 3 : index
    %c0_46 = arith.constant 0 : index
    %c0_47 = arith.constant 0 : index
    %126 = vector.load %arg6[%c0_45, %c3, %c0_46, %c0_47] : memref<1x6x8x128xbf16, #tpu.memory_space<vmem>>, vector<1x1x8x128xbf16>
    %127 = vector.shape_cast %126 : vector<1x1x8x128xbf16> to vector<8x128xbf16>
    %128 = vector.shape_cast %125 : vector<8x128xbf16> to vector<1x1x8x128xbf16>
    tpu.vector_store %arg6[%c0_45, %c3, %c0_46, %c0_47], %128 {strides = array<i32>} : memref<1x6x8x128xbf16, #tpu.memory_space<vmem>>, vector<1x1x8x128xbf16>,
    %129 = vector.extract_strided_slice %32 {offsets = [0, 512], sizes = [8, 128], strides = [1, 1]} : vector<8x768xf32> to vector<8x128xf32>
    %130 = arith.truncf %129 : vector<8x128xf32> to vector<8x128xbf16>
    %c0_48 = arith.constant 0 : index
    %c4 = arith.constant 4 : index
    %c0_49 = arith.constant 0 : index
    %c0_50 = arith.constant 0 : index
    %131 = vector.load %arg6[%c0_48, %c4, %c0_49, %c0_50] : memref<1x6x8x128xbf16, #tpu.memory_space<vmem>>, vector<1x1x8x128xbf16>
    %132 = vector.shape_cast %131 : vector<1x1x8x128xbf16> to vector<8x128xbf16>
    %133 = vector.shape_cast %130 : vector<8x128xbf16> to vector<1x1x8x128xbf16>
    tpu.vector_store %arg6[%c0_48, %c4, %c0_49, %c0_50], %133 {strides = array<i32>} : memref<1x6x8x128xbf16, #tpu.memory_space<vmem>>, vector<1x1x8x128xbf16>,
    %134 = vector.extract_strided_slice %32 {offsets = [0, 640], sizes = [8, 128], strides = [1, 1]} : vector<8x768xf32> to vector<8x128xf32>
    %135 = arith.truncf %134 : vector<8x128xf32> to vector<8x128xbf16>
    %c0_51 = arith.constant 0 : index
    %c5 = arith.constant 5 : index
    %c0_52 = arith.constant 0 : index
    %c0_53 = arith.constant 0 : index
    %136 = vector.load %arg6[%c0_51, %c5, %c0_52, %c0_53] : memref<1x6x8x128xbf16, #tpu.memory_space<vmem>>, vector<1x1x8x128xbf16>
    %137 = vector.shape_cast %136 : vector<1x1x8x128xbf16> to vector<8x128xbf16>
    %138 = vector.shape_cast %135 : vector<8x128xbf16> to vector<1x1x8x128xbf16>
    tpu.vector_store %arg6[%c0_51, %c5, %c0_52, %c0_53], %138 {strides = array<i32>} : memref<1x6x8x128xbf16, #tpu.memory_space<vmem>>, vector<1x1x8x128xbf16>,
    return
  }
  func.func @transform_0(%arg0: i32, %arg1: i32) -> (i32, i32, i32) {
    %c0_i32 = arith.constant 0 : i32
    %c0_i32_0 = arith.constant 0 : i32
    return %arg0, %arg1, %c0_i32 : i32, i32, i32
  }
  func.func @transform_1(%arg0: i32, %arg1: i32) -> (i32, i32, i32) {
    %c0_i32 = arith.constant 0 : i32
    %c0_i32_0 = arith.constant 0 : i32
    %c0_i32_1 = arith.constant 0 : i32
    return %arg0, %c0_i32, %c0_i32_0 : i32, i32, i32
  }
  func.func @transform_2(%arg0: i32, %arg1: i32) -> (i32, i32) {
    %c0_i32 = arith.constant 0 : i32
    %c0_i32_0 = arith.constant 0 : i32
    %c0_i32_1 = arith.constant 0 : i32
    return %c0_i32, %c0_i32_0 : i32, i32
  }
  func.func @transform_4(%arg0: i32, %arg1: i32) -> (i32, i32, i32, i32) {
    %c2_i32 = arith.constant 2 : i32
    %0 = arith.addi %arg1, %c2_i32 : i32
    %c0_i32 = arith.constant 0 : i32
    %c0_i32_0 = arith.constant 0 : i32
    %c0_i32_1 = arith.constant 0 : i32
    return %arg0, %c0_i32, %0, %c0_i32_0 : i32, i32, i32, i32
  }
}

module attributes {stable_mosaic.version = 11 : i64} {
  func.func @flash_attn_kernel(%arg0: i32, %arg1: i32, %arg2: i32, %arg3: i32, %arg4: memref<1x1x24x128xbf16, #tpu.memory_space<vmem>>, %arg5: memref<1x1x24x128xbf16, #tpu.memory_space<vmem>>, %arg6: memref<1x1x24x128xbf16, #tpu.memory_space<vmem>>, %arg7: memref<1x24x128xbf16, #tpu.memory_space<vmem>>, %arg8: memref<24x128xf32, #tpu.memory_space<vmem>>, %arg9: memref<24x128xf32, #tpu.memory_space<vmem>>, %arg10: memref<24x128xf32, #tpu.memory_space<vmem>>) attributes {dimension_semantics = [#tpu.dimension_semantics<parallel>, #tpu.dimension_semantics<parallel>, #tpu.dimension_semantics<parallel>, #tpu.dimension_semantics<arbitrary>], iteration_bounds = array<i64: 2, 2, 1, 1>, scalar_prefetch = 0 : i64, scratch_operands = 3 : i64, tpu.core_type = #tpu.core_type<tc>, window_params = [{transform_indices = @transform_0, window_bounds = array<i64: 1, 1, 24, 128>}, {transform_indices = @transform_1, window_bounds = array<i64: 1, 1, 24, 128>}, {transform_indices = @transform_2, window_bounds = array<i64: 1, 1, 24, 128>}, {transform_indices = @transform_3, window_bounds = array<i64: 1, 24, 128>}]} {
    %c0_i32 = arith.constant 0 : i32
    %0 = arith.cmpi eq, %arg3, %c0_i32 : i32
    %1 = arith.extui %0 : i1 to i32
    %c0_i32_0 = arith.constant 0 : i32
    %2 = arith.cmpi ne, %1, %c0_i32_0 : i32
    scf.if %2 {
      %cst_29 = arith.constant 0xFF800000 : f32
      %40 = vector.broadcast %cst_29 : f32 to vector<24x128xf32>
      %c0_30 = arith.constant 0 : index
      %c0_31 = arith.constant 0 : index
      %41 = vector.load %arg8[%c0_30, %c0_31] : memref<24x128xf32, #tpu.memory_space<vmem>>, vector<24x128xf32>
      tpu.vector_store %arg8[%c0_30, %c0_31], %40 {strides = array<i32>} : memref<24x128xf32, #tpu.memory_space<vmem>>, vector<24x128xf32>,
      %cst_32 = arith.constant 0.000000e+00 : f32
      %42 = vector.broadcast %cst_32 : f32 to vector<24x128xf32>
      %c0_33 = arith.constant 0 : index
      %c0_34 = arith.constant 0 : index
      %43 = vector.load %arg9[%c0_33, %c0_34] : memref<24x128xf32, #tpu.memory_space<vmem>>, vector<24x128xf32>
      tpu.vector_store %arg9[%c0_33, %c0_34], %42 {strides = array<i32>} : memref<24x128xf32, #tpu.memory_space<vmem>>, vector<24x128xf32>,
      %cst_35 = arith.constant 0.000000e+00 : f32
      %44 = vector.broadcast %cst_35 : f32 to vector<24x128xf32>
      %c0_36 = arith.constant 0 : index
      %c0_37 = arith.constant 0 : index
      %45 = vector.load %arg10[%c0_36, %c0_37] : memref<24x128xf32, #tpu.memory_space<vmem>>, vector<24x128xf32>
      tpu.vector_store %arg10[%c0_36, %c0_37], %44 {strides = array<i32>} : memref<24x128xf32, #tpu.memory_space<vmem>>, vector<24x128xf32>,
    } else {
    }
    %c0 = arith.constant 0 : index
    %c0_1 = arith.constant 0 : index
    %c0_2 = arith.constant 0 : index
    %c0_3 = arith.constant 0 : index
    %3 = vector.load %arg4[%c0, %c0_1, %c0_2, %c0_3] : memref<1x1x24x128xbf16, #tpu.memory_space<vmem>>, vector<1x1x24x128xbf16>
    %4 = vector.shape_cast %3 : vector<1x1x24x128xbf16> to vector<24x128xbf16>
    %c0_4 = arith.constant 0 : index
    %c0_5 = arith.constant 0 : index
    %c0_6 = arith.constant 0 : index
    %c0_7 = arith.constant 0 : index
    %5 = vector.load %arg5[%c0_4, %c0_5, %c0_6, %c0_7] : memref<1x1x24x128xbf16, #tpu.memory_space<vmem>>, vector<1x1x24x128xbf16>
    %6 = vector.shape_cast %5 : vector<1x1x24x128xbf16> to vector<24x128xbf16>
    %cst = arith.constant dense<0.000000e+00> : vector<24x24xf32>
    %7 = tpu.matmul %4, %6, %cst {dimension_numbers = #tpu.dot_dimension_numbers<[1], [1], [0], [0], [0, 0, 1, 0], [], []>} : vector<24x128xbf16>, vector<24x128xbf16>, vector<24x24xf32> -> vector<24x24xf32>
    %c0_8 = arith.constant 0 : index
    %c0_9 = arith.constant 0 : index
    %8 = vector.load %arg8[%c0_8, %c0_9] : memref<24x128xf32, #tpu.memory_space<vmem>>, vector<24x128xf32>
    %cst_10 = arith.constant dense<0xFF800000> : vector<24xf32>
    %9 = vector.multi_reduction <maximumf>, %7, %cst_10 [1] : vector<24x24xf32> to vector<24xf32>
    %10 = vector.shape_cast %9 : vector<24xf32> to vector<24x1xf32>
    %11 = vector.broadcast %10 : vector<24x1xf32> to vector<24x128xf32>
    %12 = arith.maximumf %8, %11 : vector<24x128xf32>
    %13 = arith.subf %8, %12 : vector<24x128xf32>
    %14 = math.exp %13 : vector<24x128xf32>
    %15 = vector.extract_strided_slice %12 {offsets = [0, 0], sizes = [24, 1], strides = [1, 1]} : vector<24x128xf32> to vector<24x1xf32>
    %16 = vector.broadcast %15 : vector<24x1xf32> to vector<24x24xf32>
    %17 = arith.subf %7, %16 : vector<24x24xf32>
    %18 = math.exp %17 : vector<24x24xf32>
    %c0_11 = arith.constant 0 : index
    %c0_12 = arith.constant 0 : index
    %19 = vector.load %arg9[%c0_11, %c0_12] : memref<24x128xf32, #tpu.memory_space<vmem>>, vector<24x128xf32>
    %20 = arith.mulf %14, %19 : vector<24x128xf32>
    %cst_13 = arith.constant dense<0.000000e+00> : vector<24xf32>
    %21 = vector.multi_reduction <add>, %18, %cst_13 [1] : vector<24x24xf32> to vector<24xf32>
    %22 = vector.shape_cast %21 : vector<24xf32> to vector<24x1xf32>
    %23 = vector.broadcast %22 : vector<24x1xf32> to vector<24x128xf32>
    %24 = arith.addf %20, %23 : vector<24x128xf32>
    %c0_14 = arith.constant 0 : index
    %c0_15 = arith.constant 0 : index
    %25 = vector.load %arg9[%c0_14, %c0_15] : memref<24x128xf32, #tpu.memory_space<vmem>>, vector<24x128xf32>
    tpu.vector_store %arg9[%c0_14, %c0_15], %24 {strides = array<i32>} : memref<24x128xf32, #tpu.memory_space<vmem>>, vector<24x128xf32>,
    %26 = vector.extract_strided_slice %14 {offsets = [0, 0], sizes = [24, 1], strides = [1, 1]} : vector<24x128xf32> to vector<24x1xf32>
    %c0_16 = arith.constant 0 : index
    %c0_17 = arith.constant 0 : index
    %27 = vector.load %arg10[%c0_16, %c0_17] : memref<24x128xf32, #tpu.memory_space<vmem>>, vector<24x128xf32>
    %28 = vector.broadcast %26 : vector<24x1xf32> to vector<24x128xf32>
    %29 = arith.mulf %28, %27 : vector<24x128xf32>
    %30 = arith.truncf %18 : vector<24x24xf32> to vector<24x24xbf16>
    %c0_18 = arith.constant 0 : index
    %c0_19 = arith.constant 0 : index
    %c0_20 = arith.constant 0 : index
    %c0_21 = arith.constant 0 : index
    %31 = vector.load %arg6[%c0_18, %c0_19, %c0_20, %c0_21] : memref<1x1x24x128xbf16, #tpu.memory_space<vmem>>, vector<1x1x24x128xbf16>
    %32 = vector.shape_cast %31 : vector<1x1x24x128xbf16> to vector<24x128xbf16>
    %cst_22 = arith.constant dense<0.000000e+00> : vector<24x128xf32>
    %33 = tpu.matmul %30, %32, %cst_22 {dimension_numbers = #tpu.dot_dimension_numbers<[1], [0], [0], [1], [0, 0, 1, 1], [], []>} : vector<24x24xbf16>, vector<24x128xbf16>, vector<24x128xf32> -> vector<24x128xf32>
    %34 = arith.addf %29, %33 : vector<24x128xf32>
    %c0_23 = arith.constant 0 : index
    %c0_24 = arith.constant 0 : index
    %35 = vector.load %arg10[%c0_23, %c0_24] : memref<24x128xf32, #tpu.memory_space<vmem>>, vector<24x128xf32>
    tpu.vector_store %arg10[%c0_23, %c0_24], %34 {strides = array<i32>} : memref<24x128xf32, #tpu.memory_space<vmem>>, vector<24x128xf32>,
    %c0_25 = arith.constant 0 : index
    %c0_26 = arith.constant 0 : index
    %36 = vector.load %arg8[%c0_25, %c0_26] : memref<24x128xf32, #tpu.memory_space<vmem>>, vector<24x128xf32>
    tpu.vector_store %arg8[%c0_25, %c0_26], %12 {strides = array<i32>} : memref<24x128xf32, #tpu.memory_space<vmem>>, vector<24x128xf32>,
    %c0_i32_27 = arith.constant 0 : i32
    %37 = arith.cmpi eq, %arg3, %c0_i32_27 : i32
    %38 = arith.extui %37 : i1 to i32
    %c0_i32_28 = arith.constant 0 : i32
    %39 = arith.cmpi ne, %38, %c0_i32_28 : i32
    scf.if %39 {
      %c0_29 = arith.constant 0 : index
      %c0_30 = arith.constant 0 : index
      %40 = vector.load %arg9[%c0_29, %c0_30] : memref<24x128xf32, #tpu.memory_space<vmem>>, vector<24x1xf32>
      %41 = tpu.reciprocal %40 {approx = true} : vector<24x1xf32> -> vector<24x1xf32>
      %c0_31 = arith.constant 0 : index
      %c0_32 = arith.constant 0 : index
      %42 = vector.load %arg10[%c0_31, %c0_32] : memref<24x128xf32, #tpu.memory_space<vmem>>, vector<24x128xf32>
      %43 = vector.broadcast %41 : vector<24x1xf32> to vector<24x128xf32>
      %44 = arith.mulf %42, %43 : vector<24x128xf32>
      %45 = arith.truncf %44 : vector<24x128xf32> to vector<24x128xbf16>
      %c0_33 = arith.constant 0 : index
      %c0_34 = arith.constant 0 : index
      %c0_35 = arith.constant 0 : index
      %46 = vector.load %arg7[%c0_33, %c0_34, %c0_35] : memref<1x24x128xbf16, #tpu.memory_space<vmem>>, vector<1x24x128xbf16>
      %47 = vector.shape_cast %46 : vector<1x24x128xbf16> to vector<24x128xbf16>
      %48 = vector.shape_cast %45 : vector<24x128xbf16> to vector<1x24x128xbf16>
      tpu.vector_store %arg7[%c0_33, %c0_34, %c0_35], %48 {strides = array<i32>} : memref<1x24x128xbf16, #tpu.memory_space<vmem>>, vector<1x24x128xbf16>,
    } else {
    }
    return
  }
  func.func @transform_0(%arg0: i32, %arg1: i32, %arg2: i32, %arg3: i32) -> (i32, i32, i32, i32) {
    %c0_i32 = arith.constant 0 : i32
    %c0_i32_0 = arith.constant 0 : i32
    return %arg0, %arg1, %arg2, %c0_i32 : i32, i32, i32, i32
  }
  func.func @transform_1(%arg0: i32, %arg1: i32, %arg2: i32, %arg3: i32) -> (i32, i32, i32, i32) {
    %c2_i32 = arith.constant 2 : i32
    %0 = arith.addi %arg1, %c2_i32 : i32
    %c0_i32 = arith.constant 0 : i32
    %c0_i32_0 = arith.constant 0 : i32
    return %arg0, %0, %arg3, %c0_i32 : i32, i32, i32, i32
  }
  func.func @transform_2(%arg0: i32, %arg1: i32, %arg2: i32, %arg3: i32) -> (i32, i32, i32, i32) {
    %c4_i32 = arith.constant 4 : i32
    %0 = arith.addi %arg1, %c4_i32 : i32
    %c0_i32 = arith.constant 0 : i32
    %c0_i32_0 = arith.constant 0 : i32
    return %arg0, %0, %arg3, %c0_i32 : i32, i32, i32, i32
  }
  func.func @transform_3(%arg0: i32, %arg1: i32, %arg2: i32, %arg3: i32) -> (i32, i32, i32) {
    %c0_i32 = arith.constant 0 : i32
    return %arg0, %arg2, %arg1 : i32, i32, i32
  }
}

module attributes {stable_mosaic.version = 11 : i64} {
  func.func @attn_out_lnmod_kernel(%arg0: i32, %arg1: i32, %arg2: memref<1x16x256xbf16, #tpu.memory_space<vmem>>, %arg3: memref<256x256xbf16, #tpu.memory_space<vmem>>, %arg4: memref<1x16x256xf32, #tpu.memory_space<vmem>>, %arg5: memref<1x12x256xf32, #tpu.memory_space<vmem>>, %arg6: memref<1x16x256xbf16, #tpu.memory_space<vmem>>) attributes {dimension_semantics = [#tpu.dimension_semantics<parallel>, #tpu.dimension_semantics<parallel>], iteration_bounds = array<i64: 2, 1>, scalar_prefetch = 0 : i64, scratch_operands = 0 : i64, tpu.core_type = #tpu.core_type<tc>, window_params = [{transform_indices = @transform_0, window_bounds = array<i64: 1, 16, 256>}, {pipeline_mode = #tpu.pipeline_mode<synchronous>, transform_indices = @transform_1, window_bounds = array<i64: 256, 256>}, {transform_indices = @transform_2, window_bounds = array<i64: 1, 16, 256>}, {transform_indices = @transform_3, window_bounds = array<i64: 1, 12, 256>}, {transform_indices = @transform_4, window_bounds = array<i64: 1, 16, 256>}]} {
    %c0 = arith.constant 0 : index
    %c0_0 = arith.constant 0 : index
    %c0_1 = arith.constant 0 : index
    %0 = vector.load %arg2[%c0, %c0_0, %c0_1] : memref<1x16x256xbf16, #tpu.memory_space<vmem>>, vector<1x16x256xbf16>
    %1 = vector.shape_cast %0 : vector<1x16x256xbf16> to vector<16x256xbf16>
    %c0_2 = arith.constant 0 : index
    %c0_3 = arith.constant 0 : index
    %2 = vector.load %arg3[%c0_2, %c0_3] : memref<256x256xbf16, #tpu.memory_space<vmem>>, vector<256x256xbf16>
    %cst = arith.constant dense<0.000000e+00> : vector<16x256xf32>
    %3 = tpu.matmul %1, %2, %cst {dimension_numbers = #tpu.dot_dimension_numbers<[1], [1], [0], [0], [0, 0, 1, 0], [], []>} : vector<16x256xbf16>, vector<256x256xbf16>, vector<16x256xf32> -> vector<16x256xf32>
    %c0_4 = arith.constant 0 : index
    %c0_5 = arith.constant 0 : index
    %c0_6 = arith.constant 0 : index
    %4 = vector.load %arg5[%c0_4, %c0_5, %c0_6] : memref<1x12x256xf32, #tpu.memory_space<vmem>>, vector<1x12x256xf32>
    %5 = vector.shape_cast %4 : vector<1x12x256xf32> to vector<12x256xf32>
    %6 = vector.extract_strided_slice %5 {offsets = [2, 0], sizes = [1, 256], strides = [1, 1]} : vector<12x256xf32> to vector<1x256xf32>
    %7 = vector.extract_strided_slice %5 {offsets = [4, 0], sizes = [1, 256], strides = [1, 1]} : vector<12x256xf32> to vector<1x256xf32>
    %8 = vector.extract_strided_slice %5 {offsets = [3, 0], sizes = [1, 256], strides = [1, 1]} : vector<12x256xf32> to vector<1x256xf32>
    %c0_7 = arith.constant 0 : index
    %c0_8 = arith.constant 0 : index
    %c0_9 = arith.constant 0 : index
    %9 = vector.load %arg4[%c0_7, %c0_8, %c0_9] : memref<1x16x256xf32, #tpu.memory_space<vmem>>, vector<1x16x256xf32>
    %10 = vector.shape_cast %9 : vector<1x16x256xf32> to vector<16x256xf32>
    %11 = vector.broadcast %6 : vector<1x256xf32> to vector<16x256xf32>
    %12 = arith.mulf %11, %3 : vector<16x256xf32>
    %13 = arith.addf %10, %12 : vector<16x256xf32>
    %cst_10 = arith.constant dense<0.000000e+00> : vector<16xf32>
    %14 = vector.multi_reduction <add>, %13, %cst_10 [1] : vector<16x256xf32> to vector<16xf32>
    %15 = vector.shape_cast %14 : vector<16xf32> to vector<16x1xf32>
    %cst_11 = arith.constant 2.560000e+02 : f32
    %16 = vector.broadcast %cst_11 : f32 to vector<16x1xf32>
    %17 = arith.divf %15, %16 : vector<16x1xf32>
    %18 = vector.broadcast %17 : vector<16x1xf32> to vector<16x256xf32>
    %19 = arith.subf %13, %18 : vector<16x256xf32>
    %20 = arith.mulf %19, %19 : vector<16x256xf32>
    %cst_12 = arith.constant dense<0.000000e+00> : vector<16xf32>
    %21 = vector.multi_reduction <add>, %20, %cst_12 [1] : vector<16x256xf32> to vector<16xf32>
    %22 = vector.shape_cast %21 : vector<16xf32> to vector<16x1xf32>
    %cst_13 = arith.constant 2.560000e+02 : f32
    %23 = vector.broadcast %cst_13 : f32 to vector<16x1xf32>
    %24 = arith.divf %22, %23 : vector<16x1xf32>
    %25 = vector.broadcast %17 : vector<16x1xf32> to vector<16x256xf32>
    %26 = arith.subf %13, %25 : vector<16x256xf32>
    %cst_14 = arith.constant 9.99999974E-6 : f32
    %27 = vector.broadcast %cst_14 : f32 to vector<16x1xf32>
    %28 = arith.addf %24, %27 : vector<16x1xf32>
    %29 = math.rsqrt %28 : vector<16x1xf32>
    %30 = vector.broadcast %29 : vector<16x1xf32> to vector<16x256xf32>
    %31 = arith.mulf %26, %30 : vector<16x256xf32>
    %cst_15 = arith.constant 1.000000e+00 : f32
    %32 = vector.broadcast %cst_15 : f32 to vector<1x256xf32>
    %33 = arith.addf %32, %7 : vector<1x256xf32>
    %34 = vector.broadcast %33 : vector<1x256xf32> to vector<16x256xf32>
    %35 = arith.mulf %31, %34 : vector<16x256xf32>
    %36 = vector.broadcast %8 : vector<1x256xf32> to vector<16x256xf32>
    %37 = arith.addf %35, %36 : vector<16x256xf32>
    %38 = arith.truncf %37 : vector<16x256xf32> to vector<16x256xbf16>
    %c0_16 = arith.constant 0 : index
    %c0_17 = arith.constant 0 : index
    %c0_18 = arith.constant 0 : index
    %39 = vector.load %arg6[%c0_16, %c0_17, %c0_18] : memref<1x16x256xbf16, #tpu.memory_space<vmem>>, vector<1x16x256xbf16>
    %40 = vector.shape_cast %39 : vector<1x16x256xbf16> to vector<16x256xbf16>
    %41 = vector.shape_cast %38 : vector<16x256xbf16> to vector<1x16x256xbf16>
    tpu.vector_store %arg6[%c0_16, %c0_17, %c0_18], %41 {strides = array<i32>} : memref<1x16x256xbf16, #tpu.memory_space<vmem>>, vector<1x16x256xbf16>,
    return
  }
  func.func @transform_0(%arg0: i32, %arg1: i32) -> (i32, i32, i32) {
    %c0_i32 = arith.constant 0 : i32
    %0 = arith.addi %arg1, %c0_i32 : i32
    %c0_i32_0 = arith.constant 0 : i32
    %c0_i32_1 = arith.constant 0 : i32
    return %arg0, %0, %c0_i32_0 : i32, i32, i32
  }
  func.func @transform_1(%arg0: i32, %arg1: i32) -> (i32, i32) {
    %c0_i32 = arith.constant 0 : i32
    %c0_i32_0 = arith.constant 0 : i32
    %c0_i32_1 = arith.constant 0 : i32
    return %c0_i32, %c0_i32_0 : i32, i32
  }
  func.func @transform_2(%arg0: i32, %arg1: i32) -> (i32, i32, i32) {
    %c0_i32 = arith.constant 0 : i32
    %c0_i32_0 = arith.constant 0 : i32
    return %arg0, %arg1, %c0_i32 : i32, i32, i32
  }
  func.func @transform_3(%arg0: i32, %arg1: i32) -> (i32, i32, i32) {
    %c0_i32 = arith.constant 0 : i32
    %c0_i32_0 = arith.constant 0 : i32
    %c0_i32_1 = arith.constant 0 : i32
    return %arg0, %c0_i32, %c0_i32_0 : i32, i32, i32
  }
  func.func @transform_4(%arg0: i32, %arg1: i32) -> (i32, i32, i32) {
    %c0_i32 = arith.constant 0 : i32
    %c0_i32_0 = arith.constant 0 : i32
    return %arg0, %arg1, %c0_i32 : i32, i32, i32
  }
}

module attributes {stable_mosaic.version = 11 : i64} {
  func.func @attn_out_lnmod_kernel(%arg0: i32, %arg1: i32, %arg2: memref<1x8x256xbf16, #tpu.memory_space<vmem>>, %arg3: memref<256x256xbf16, #tpu.memory_space<vmem>>, %arg4: memref<1x8x256xf32, #tpu.memory_space<vmem>>, %arg5: memref<1x12x256xf32, #tpu.memory_space<vmem>>, %arg6: memref<1x8x256xbf16, #tpu.memory_space<vmem>>) attributes {dimension_semantics = [#tpu.dimension_semantics<parallel>, #tpu.dimension_semantics<parallel>], iteration_bounds = array<i64: 2, 1>, scalar_prefetch = 0 : i64, scratch_operands = 0 : i64, tpu.core_type = #tpu.core_type<tc>, window_params = [{transform_indices = @transform_0, window_bounds = array<i64: 1, 8, 256>}, {pipeline_mode = #tpu.pipeline_mode<synchronous>, transform_indices = @transform_1, window_bounds = array<i64: 256, 256>}, {transform_indices = @transform_2, window_bounds = array<i64: 1, 8, 256>}, {transform_indices = @transform_3, window_bounds = array<i64: 1, 12, 256>}, {transform_indices = @transform_4, window_bounds = array<i64: 1, 8, 256>}]} {
    %c0 = arith.constant 0 : index
    %c0_0 = arith.constant 0 : index
    %c0_1 = arith.constant 0 : index
    %0 = vector.load %arg2[%c0, %c0_0, %c0_1] : memref<1x8x256xbf16, #tpu.memory_space<vmem>>, vector<1x8x256xbf16>
    %1 = vector.shape_cast %0 : vector<1x8x256xbf16> to vector<8x256xbf16>
    %c0_2 = arith.constant 0 : index
    %c0_3 = arith.constant 0 : index
    %2 = vector.load %arg3[%c0_2, %c0_3] : memref<256x256xbf16, #tpu.memory_space<vmem>>, vector<256x256xbf16>
    %cst = arith.constant dense<0.000000e+00> : vector<8x256xf32>
    %3 = tpu.matmul %1, %2, %cst {dimension_numbers = #tpu.dot_dimension_numbers<[1], [1], [0], [0], [0, 0, 1, 0], [], []>} : vector<8x256xbf16>, vector<256x256xbf16>, vector<8x256xf32> -> vector<8x256xf32>
    %c0_4 = arith.constant 0 : index
    %c0_5 = arith.constant 0 : index
    %c0_6 = arith.constant 0 : index
    %4 = vector.load %arg5[%c0_4, %c0_5, %c0_6] : memref<1x12x256xf32, #tpu.memory_space<vmem>>, vector<1x12x256xf32>
    %5 = vector.shape_cast %4 : vector<1x12x256xf32> to vector<12x256xf32>
    %6 = vector.extract_strided_slice %5 {offsets = [8, 0], sizes = [1, 256], strides = [1, 1]} : vector<12x256xf32> to vector<1x256xf32>
    %7 = vector.extract_strided_slice %5 {offsets = [10, 0], sizes = [1, 256], strides = [1, 1]} : vector<12x256xf32> to vector<1x256xf32>
    %8 = vector.extract_strided_slice %5 {offsets = [9, 0], sizes = [1, 256], strides = [1, 1]} : vector<12x256xf32> to vector<1x256xf32>
    %c0_7 = arith.constant 0 : index
    %c0_8 = arith.constant 0 : index
    %c0_9 = arith.constant 0 : index
    %9 = vector.load %arg4[%c0_7, %c0_8, %c0_9] : memref<1x8x256xf32, #tpu.memory_space<vmem>>, vector<1x8x256xf32>
    %10 = vector.shape_cast %9 : vector<1x8x256xf32> to vector<8x256xf32>
    %11 = vector.broadcast %6 : vector<1x256xf32> to vector<8x256xf32>
    %12 = arith.mulf %11, %3 : vector<8x256xf32>
    %13 = arith.addf %10, %12 : vector<8x256xf32>
    %cst_10 = arith.constant dense<0.000000e+00> : vector<8xf32>
    %14 = vector.multi_reduction <add>, %13, %cst_10 [1] : vector<8x256xf32> to vector<8xf32>
    %15 = vector.shape_cast %14 : vector<8xf32> to vector<8x1xf32>
    %cst_11 = arith.constant 2.560000e+02 : f32
    %16 = vector.broadcast %cst_11 : f32 to vector<8x1xf32>
    %17 = arith.divf %15, %16 : vector<8x1xf32>
    %18 = vector.broadcast %17 : vector<8x1xf32> to vector<8x256xf32>
    %19 = arith.subf %13, %18 : vector<8x256xf32>
    %20 = arith.mulf %19, %19 : vector<8x256xf32>
    %cst_12 = arith.constant dense<0.000000e+00> : vector<8xf32>
    %21 = vector.multi_reduction <add>, %20, %cst_12 [1] : vector<8x256xf32> to vector<8xf32>
    %22 = vector.shape_cast %21 : vector<8xf32> to vector<8x1xf32>
    %cst_13 = arith.constant 2.560000e+02 : f32
    %23 = vector.broadcast %cst_13 : f32 to vector<8x1xf32>
    %24 = arith.divf %22, %23 : vector<8x1xf32>
    %25 = vector.broadcast %17 : vector<8x1xf32> to vector<8x256xf32>
    %26 = arith.subf %13, %25 : vector<8x256xf32>
    %cst_14 = arith.constant 9.99999974E-6 : f32
    %27 = vector.broadcast %cst_14 : f32 to vector<8x1xf32>
    %28 = arith.addf %24, %27 : vector<8x1xf32>
    %29 = math.rsqrt %28 : vector<8x1xf32>
    %30 = vector.broadcast %29 : vector<8x1xf32> to vector<8x256xf32>
    %31 = arith.mulf %26, %30 : vector<8x256xf32>
    %cst_15 = arith.constant 1.000000e+00 : f32
    %32 = vector.broadcast %cst_15 : f32 to vector<1x256xf32>
    %33 = arith.addf %32, %7 : vector<1x256xf32>
    %34 = vector.broadcast %33 : vector<1x256xf32> to vector<8x256xf32>
    %35 = arith.mulf %31, %34 : vector<8x256xf32>
    %36 = vector.broadcast %8 : vector<1x256xf32> to vector<8x256xf32>
    %37 = arith.addf %35, %36 : vector<8x256xf32>
    %38 = arith.truncf %37 : vector<8x256xf32> to vector<8x256xbf16>
    %c0_16 = arith.constant 0 : index
    %c0_17 = arith.constant 0 : index
    %c0_18 = arith.constant 0 : index
    %39 = vector.load %arg6[%c0_16, %c0_17, %c0_18] : memref<1x8x256xbf16, #tpu.memory_space<vmem>>, vector<1x8x256xbf16>
    %40 = vector.shape_cast %39 : vector<1x8x256xbf16> to vector<8x256xbf16>
    %41 = vector.shape_cast %38 : vector<8x256xbf16> to vector<1x8x256xbf16>
    tpu.vector_store %arg6[%c0_16, %c0_17, %c0_18], %41 {strides = array<i32>} : memref<1x8x256xbf16, #tpu.memory_space<vmem>>, vector<1x8x256xbf16>,
    return
  }
  func.func @transform_0(%arg0: i32, %arg1: i32) -> (i32, i32, i32) {
    %c2_i32 = arith.constant 2 : i32
    %0 = arith.addi %arg1, %c2_i32 : i32
    %c0_i32 = arith.constant 0 : i32
    %c0_i32_0 = arith.constant 0 : i32
    return %arg0, %0, %c0_i32 : i32, i32, i32
  }
  func.func @transform_1(%arg0: i32, %arg1: i32) -> (i32, i32) {
    %c0_i32 = arith.constant 0 : i32
    %c0_i32_0 = arith.constant 0 : i32
    %c0_i32_1 = arith.constant 0 : i32
    return %c0_i32, %c0_i32_0 : i32, i32
  }
  func.func @transform_2(%arg0: i32, %arg1: i32) -> (i32, i32, i32) {
    %c0_i32 = arith.constant 0 : i32
    %c0_i32_0 = arith.constant 0 : i32
    return %arg0, %arg1, %c0_i32 : i32, i32, i32
  }
  func.func @transform_3(%arg0: i32, %arg1: i32) -> (i32, i32, i32) {
    %c0_i32 = arith.constant 0 : i32
    %c0_i32_0 = arith.constant 0 : i32
    %c0_i32_1 = arith.constant 0 : i32
    return %arg0, %c0_i32, %c0_i32_0 : i32, i32, i32
  }
  func.func @transform_4(%arg0: i32, %arg1: i32) -> (i32, i32, i32) {
    %c0_i32 = arith.constant 0 : i32
    %c0_i32_0 = arith.constant 0 : i32
    return %arg0, %arg1, %c0_i32 : i32, i32, i32
  }
}

module attributes {stable_mosaic.version = 11 : i64} {
  func.func @ffn_gated_res_kernel(%arg0: i32, %arg1: i32, %arg2: i32, %arg3: memref<1x8x256xbf16, #tpu.memory_space<vmem>>, %arg4: memref<256x256xbf16, #tpu.memory_space<vmem>>, %arg5: memref<256x256xbf16, #tpu.memory_space<vmem>>, %arg6: memref<256x256xbf16, #tpu.memory_space<vmem>>, %arg7: memref<1x8x256xf32, #tpu.memory_space<vmem>>, %arg8: memref<1x12x256xf32, #tpu.memory_space<vmem>>, %arg9: memref<1x8x256xf32, #tpu.memory_space<vmem>>, %arg10: memref<8x256xf32, #tpu.memory_space<vmem>>) attributes {dimension_semantics = [#tpu.dimension_semantics<parallel>, #tpu.dimension_semantics<parallel>, #tpu.dimension_semantics<arbitrary>], iteration_bounds = array<i64: 2, 1, 3>, scalar_prefetch = 0 : i64, scratch_operands = 1 : i64, tpu.core_type = #tpu.core_type<tc>, window_params = [{transform_indices = @transform_0, window_bounds = array<i64: 1, 8, 256>}, {transform_indices = @transform_1, window_bounds = array<i64: 256, 256>}, {transform_indices = @transform_2, window_bounds = array<i64: 256, 256>}, {transform_indices = @transform_3, window_bounds = array<i64: 256, 256>}, {transform_indices = @transform_4, window_bounds = array<i64: 1, 8, 256>}, {transform_indices = @transform_5, window_bounds = array<i64: 1, 12, 256>}, {transform_indices = @transform_6, window_bounds = array<i64: 1, 8, 256>}]} {
    %c0_i32 = arith.constant 0 : i32
    %0 = arith.cmpi eq, %arg2, %c0_i32 : i32
    %1 = arith.extui %0 : i1 to i32
    %c0_i32_0 = arith.constant 0 : i32
    %2 = arith.cmpi ne, %1, %c0_i32_0 : i32
    scf.if %2 {
      %cst_17 = arith.constant 0.000000e+00 : f32
      %25 = vector.broadcast %cst_17 : f32 to vector<8x256xf32>
      %c0_18 = arith.constant 0 : index
      %c0_19 = arith.constant 0 : index
      %26 = vector.load %arg10[%c0_18, %c0_19] : memref<8x256xf32, #tpu.memory_space<vmem>>, vector<8x256xf32>
      tpu.vector_store %arg10[%c0_18, %c0_19], %25 {strides = array<i32>} : memref<8x256xf32, #tpu.memory_space<vmem>>, vector<8x256xf32>,
    } else {
    }
    %c0 = arith.constant 0 : index
    %c0_1 = arith.constant 0 : index
    %c0_2 = arith.constant 0 : index
    %3 = vector.load %arg3[%c0, %c0_1, %c0_2] : memref<1x8x256xbf16, #tpu.memory_space<vmem>>, vector<1x8x256xbf16>
    %4 = vector.shape_cast %3 : vector<1x8x256xbf16> to vector<8x256xbf16>
    %c0_3 = arith.constant 0 : index
    %c0_4 = arith.constant 0 : index
    %5 = vector.load %arg4[%c0_3, %c0_4] : memref<256x256xbf16, #tpu.memory_space<vmem>>, vector<256x256xbf16>
    %cst = arith.constant dense<0.000000e+00> : vector<8x256xf32>
    %6 = tpu.matmul %4, %5, %cst {dimension_numbers = #tpu.dot_dimension_numbers<[1], [1], [0], [0], [0, 0, 1, 0], [], []>} : vector<8x256xbf16>, vector<256x256xbf16>, vector<8x256xf32> -> vector<8x256xf32>
    %c0_5 = arith.constant 0 : index
    %c0_6 = arith.constant 0 : index
    %7 = vector.load %arg5[%c0_5, %c0_6] : memref<256x256xbf16, #tpu.memory_space<vmem>>, vector<256x256xbf16>
    %cst_7 = arith.constant dense<0.000000e+00> : vector<8x256xf32>
    %8 = tpu.matmul %4, %7, %cst_7 {dimension_numbers = #tpu.dot_dimension_numbers<[1], [1], [0], [0], [0, 0, 1, 0], [], []>} : vector<8x256xbf16>, vector<256x256xbf16>, vector<8x256xf32> -> vector<8x256xf32>
    %9 = arith.negf %6 : vector<8x256xf32>
    %10 = math.exp %9 : vector<8x256xf32>
    %cst_8 = arith.constant 1.000000e+00 : f32
    %11 = vector.broadcast %cst_8 : f32 to vector<8x256xf32>
    %12 = arith.addf %11, %10 : vector<8x256xf32>
    %13 = arith.divf %11, %12 : vector<8x256xf32>
    %14 = arith.mulf %6, %13 : vector<8x256xf32>
    %15 = arith.mulf %14, %8 : vector<8x256xf32>
    %c0_9 = arith.constant 0 : index
    %c0_10 = arith.constant 0 : index
    %16 = vector.load %arg10[%c0_9, %c0_10] : memref<8x256xf32, #tpu.memory_space<vmem>>, vector<8x256xf32>
    %17 = arith.truncf %15 : vector<8x256xf32> to vector<8x256xbf16>
    %c0_11 = arith.constant 0 : index
    %c0_12 = arith.constant 0 : index
    %18 = vector.load %arg6[%c0_11, %c0_12] : memref<256x256xbf16, #tpu.memory_space<vmem>>, vector<256x256xbf16>
    %cst_13 = arith.constant dense<0.000000e+00> : vector<8x256xf32>
    %19 = tpu.matmul %17, %18, %cst_13 {dimension_numbers = #tpu.dot_dimension_numbers<[1], [1], [0], [0], [0, 0, 1, 0], [], []>} : vector<8x256xbf16>, vector<256x256xbf16>, vector<8x256xf32> -> vector<8x256xf32>
    %20 = arith.addf %16, %19 : vector<8x256xf32>
    %c0_14 = arith.constant 0 : index
    %c0_15 = arith.constant 0 : index
    %21 = vector.load %arg10[%c0_14, %c0_15] : memref<8x256xf32, #tpu.memory_space<vmem>>, vector<8x256xf32>
    tpu.vector_store %arg10[%c0_14, %c0_15], %20 {strides = array<i32>} : memref<8x256xf32, #tpu.memory_space<vmem>>, vector<8x256xf32>,
    %c2_i32 = arith.constant 2 : i32
    %22 = arith.cmpi eq, %arg2, %c2_i32 : i32
    %23 = arith.extui %22 : i1 to i32
    %c0_i32_16 = arith.constant 0 : i32
    %24 = arith.cmpi ne, %23, %c0_i32_16 : i32
    scf.if %24 {
      %c0_17 = arith.constant 0 : index
      %c0_18 = arith.constant 0 : index
      %c0_19 = arith.constant 0 : index
      %25 = vector.load %arg8[%c0_17, %c0_18, %c0_19] : memref<1x12x256xf32, #tpu.memory_space<vmem>>, vector<1x12x256xf32>
      %26 = vector.shape_cast %25 : vector<1x12x256xf32> to vector<12x256xf32>
      %27 = vector.extract_strided_slice %26 {offsets = [11, 0], sizes = [1, 256], strides = [1, 1]} : vector<12x256xf32> to vector<1x256xf32>
      %c0_20 = arith.constant 0 : index
      %c0_21 = arith.constant 0 : index
      %c0_22 = arith.constant 0 : index
      %28 = vector.load %arg7[%c0_20, %c0_21, %c0_22] : memref<1x8x256xf32, #tpu.memory_space<vmem>>, vector<1x8x256xf32>
      %29 = vector.shape_cast %28 : vector<1x8x256xf32> to vector<8x256xf32>
      %c0_23 = arith.constant 0 : index
      %c0_24 = arith.constant 0 : index
      %30 = vector.load %arg10[%c0_23, %c0_24] : memref<8x256xf32, #tpu.memory_space<vmem>>, vector<8x256xf32>
      %31 = vector.broadcast %27 : vector<1x256xf32> to vector<8x256xf32>
      %32 = arith.mulf %31, %30 : vector<8x256xf32>
      %33 = arith.addf %29, %32 : vector<8x256xf32>
      %c0_25 = arith.constant 0 : index
      %c0_26 = arith.constant 0 : index
      %c0_27 = arith.constant 0 : index
      %34 = vector.load %arg9[%c0_25, %c0_26, %c0_27] : memref<1x8x256xf32, #tpu.memory_space<vmem>>, vector<1x8x256xf32>
      %35 = vector.shape_cast %34 : vector<1x8x256xf32> to vector<8x256xf32>
      %36 = vector.shape_cast %33 : vector<8x256xf32> to vector<1x8x256xf32>
      tpu.vector_store %arg9[%c0_25, %c0_26, %c0_27], %36 {strides = array<i32>} : memref<1x8x256xf32, #tpu.memory_space<vmem>>, vector<1x8x256xf32>,
    } else {
    }
    return
  }
  func.func @transform_0(%arg0: i32, %arg1: i32, %arg2: i32) -> (i32, i32, i32) {
    %c0_i32 = arith.constant 0 : i32
    %c0_i32_0 = arith.constant 0 : i32
    return %arg0, %arg1, %c0_i32 : i32, i32, i32
  }
  func.func @transform_1(%arg0: i32, %arg1: i32, %arg2: i32) -> (i32, i32) {
    %c0_i32 = arith.constant 0 : i32
    %c0_i32_0 = arith.constant 0 : i32
    return %arg2, %c0_i32 : i32, i32
  }
  func.func @transform_2(%arg0: i32, %arg1: i32, %arg2: i32) -> (i32, i32) {
    %c0_i32 = arith.constant 0 : i32
    %c0_i32_0 = arith.constant 0 : i32
    return %arg2, %c0_i32 : i32, i32
  }
  func.func @transform_3(%arg0: i32, %arg1: i32, %arg2: i32) -> (i32, i32) {
    %c0_i32 = arith.constant 0 : i32
    %c0_i32_0 = arith.constant 0 : i32
    return %c0_i32, %arg2 : i32, i32
  }
  func.func @transform_4(%arg0: i32, %arg1: i32, %arg2: i32) -> (i32, i32, i32) {
    %c0_i32 = arith.constant 0 : i32
    %c0_i32_0 = arith.constant 0 : i32
    return %arg0, %arg1, %c0_i32 : i32, i32, i32
  }
  func.func @transform_5(%arg0: i32, %arg1: i32, %arg2: i32) -> (i32, i32, i32) {
    %c0_i32 = arith.constant 0 : i32
    %c0_i32_0 = arith.constant 0 : i32
    %c0_i32_1 = arith.constant 0 : i32
    return %arg0, %c0_i32, %c0_i32_0 : i32, i32, i32
  }
  func.func @transform_6(%arg0: i32, %arg1: i32, %arg2: i32) -> (i32, i32, i32) {
    %c0_i32 = arith.constant 0 : i32
    %c0_i32_0 = arith.constant 0 : i32
    return %arg0, %arg1, %c0_i32 : i32, i32, i32
  }
}

module attributes {stable_mosaic.version = 11 : i64} {
  func.func @ffn_gated_res_kernel(%arg0: i32, %arg1: i32, %arg2: i32, %arg3: memref<1x16x256xbf16, #tpu.memory_space<vmem>>, %arg4: memref<256x256xbf16, #tpu.memory_space<vmem>>, %arg5: memref<256x256xbf16, #tpu.memory_space<vmem>>, %arg6: memref<256x256xbf16, #tpu.memory_space<vmem>>, %arg7: memref<1x16x256xf32, #tpu.memory_space<vmem>>, %arg8: memref<1x12x256xf32, #tpu.memory_space<vmem>>, %arg9: memref<1x16x256xf32, #tpu.memory_space<vmem>>, %arg10: memref<16x256xf32, #tpu.memory_space<vmem>>) attributes {dimension_semantics = [#tpu.dimension_semantics<parallel>, #tpu.dimension_semantics<parallel>, #tpu.dimension_semantics<arbitrary>], iteration_bounds = array<i64: 2, 1, 3>, scalar_prefetch = 0 : i64, scratch_operands = 1 : i64, tpu.core_type = #tpu.core_type<tc>, window_params = [{transform_indices = @transform_0, window_bounds = array<i64: 1, 16, 256>}, {transform_indices = @transform_1, window_bounds = array<i64: 256, 256>}, {transform_indices = @transform_2, window_bounds = array<i64: 256, 256>}, {transform_indices = @transform_3, window_bounds = array<i64: 256, 256>}, {transform_indices = @transform_4, window_bounds = array<i64: 1, 16, 256>}, {transform_indices = @transform_5, window_bounds = array<i64: 1, 12, 256>}, {transform_indices = @transform_6, window_bounds = array<i64: 1, 16, 256>}]} {
    %c0_i32 = arith.constant 0 : i32
    %0 = arith.cmpi eq, %arg2, %c0_i32 : i32
    %1 = arith.extui %0 : i1 to i32
    %c0_i32_0 = arith.constant 0 : i32
    %2 = arith.cmpi ne, %1, %c0_i32_0 : i32
    scf.if %2 {
      %cst_17 = arith.constant 0.000000e+00 : f32
      %25 = vector.broadcast %cst_17 : f32 to vector<16x256xf32>
      %c0_18 = arith.constant 0 : index
      %c0_19 = arith.constant 0 : index
      %26 = vector.load %arg10[%c0_18, %c0_19] : memref<16x256xf32, #tpu.memory_space<vmem>>, vector<16x256xf32>
      tpu.vector_store %arg10[%c0_18, %c0_19], %25 {strides = array<i32>} : memref<16x256xf32, #tpu.memory_space<vmem>>, vector<16x256xf32>,
    } else {
    }
    %c0 = arith.constant 0 : index
    %c0_1 = arith.constant 0 : index
    %c0_2 = arith.constant 0 : index
    %3 = vector.load %arg3[%c0, %c0_1, %c0_2] : memref<1x16x256xbf16, #tpu.memory_space<vmem>>, vector<1x16x256xbf16>
    %4 = vector.shape_cast %3 : vector<1x16x256xbf16> to vector<16x256xbf16>
    %c0_3 = arith.constant 0 : index
    %c0_4 = arith.constant 0 : index
    %5 = vector.load %arg4[%c0_3, %c0_4] : memref<256x256xbf16, #tpu.memory_space<vmem>>, vector<256x256xbf16>
    %cst = arith.constant dense<0.000000e+00> : vector<16x256xf32>
    %6 = tpu.matmul %4, %5, %cst {dimension_numbers = #tpu.dot_dimension_numbers<[1], [1], [0], [0], [0, 0, 1, 0], [], []>} : vector<16x256xbf16>, vector<256x256xbf16>, vector<16x256xf32> -> vector<16x256xf32>
    %c0_5 = arith.constant 0 : index
    %c0_6 = arith.constant 0 : index
    %7 = vector.load %arg5[%c0_5, %c0_6] : memref<256x256xbf16, #tpu.memory_space<vmem>>, vector<256x256xbf16>
    %cst_7 = arith.constant dense<0.000000e+00> : vector<16x256xf32>
    %8 = tpu.matmul %4, %7, %cst_7 {dimension_numbers = #tpu.dot_dimension_numbers<[1], [1], [0], [0], [0, 0, 1, 0], [], []>} : vector<16x256xbf16>, vector<256x256xbf16>, vector<16x256xf32> -> vector<16x256xf32>
    %9 = arith.negf %6 : vector<16x256xf32>
    %10 = math.exp %9 : vector<16x256xf32>
    %cst_8 = arith.constant 1.000000e+00 : f32
    %11 = vector.broadcast %cst_8 : f32 to vector<16x256xf32>
    %12 = arith.addf %11, %10 : vector<16x256xf32>
    %13 = arith.divf %11, %12 : vector<16x256xf32>
    %14 = arith.mulf %6, %13 : vector<16x256xf32>
    %15 = arith.mulf %14, %8 : vector<16x256xf32>
    %c0_9 = arith.constant 0 : index
    %c0_10 = arith.constant 0 : index
    %16 = vector.load %arg10[%c0_9, %c0_10] : memref<16x256xf32, #tpu.memory_space<vmem>>, vector<16x256xf32>
    %17 = arith.truncf %15 : vector<16x256xf32> to vector<16x256xbf16>
    %c0_11 = arith.constant 0 : index
    %c0_12 = arith.constant 0 : index
    %18 = vector.load %arg6[%c0_11, %c0_12] : memref<256x256xbf16, #tpu.memory_space<vmem>>, vector<256x256xbf16>
    %cst_13 = arith.constant dense<0.000000e+00> : vector<16x256xf32>
    %19 = tpu.matmul %17, %18, %cst_13 {dimension_numbers = #tpu.dot_dimension_numbers<[1], [1], [0], [0], [0, 0, 1, 0], [], []>} : vector<16x256xbf16>, vector<256x256xbf16>, vector<16x256xf32> -> vector<16x256xf32>
    %20 = arith.addf %16, %19 : vector<16x256xf32>
    %c0_14 = arith.constant 0 : index
    %c0_15 = arith.constant 0 : index
    %21 = vector.load %arg10[%c0_14, %c0_15] : memref<16x256xf32, #tpu.memory_space<vmem>>, vector<16x256xf32>
    tpu.vector_store %arg10[%c0_14, %c0_15], %20 {strides = array<i32>} : memref<16x256xf32, #tpu.memory_space<vmem>>, vector<16x256xf32>,
    %c2_i32 = arith.constant 2 : i32
    %22 = arith.cmpi eq, %arg2, %c2_i32 : i32
    %23 = arith.extui %22 : i1 to i32
    %c0_i32_16 = arith.constant 0 : i32
    %24 = arith.cmpi ne, %23, %c0_i32_16 : i32
    scf.if %24 {
      %c0_17 = arith.constant 0 : index
      %c0_18 = arith.constant 0 : index
      %c0_19 = arith.constant 0 : index
      %25 = vector.load %arg8[%c0_17, %c0_18, %c0_19] : memref<1x12x256xf32, #tpu.memory_space<vmem>>, vector<1x12x256xf32>
      %26 = vector.shape_cast %25 : vector<1x12x256xf32> to vector<12x256xf32>
      %27 = vector.extract_strided_slice %26 {offsets = [5, 0], sizes = [1, 256], strides = [1, 1]} : vector<12x256xf32> to vector<1x256xf32>
      %c0_20 = arith.constant 0 : index
      %c0_21 = arith.constant 0 : index
      %c0_22 = arith.constant 0 : index
      %28 = vector.load %arg7[%c0_20, %c0_21, %c0_22] : memref<1x16x256xf32, #tpu.memory_space<vmem>>, vector<1x16x256xf32>
      %29 = vector.shape_cast %28 : vector<1x16x256xf32> to vector<16x256xf32>
      %c0_23 = arith.constant 0 : index
      %c0_24 = arith.constant 0 : index
      %30 = vector.load %arg10[%c0_23, %c0_24] : memref<16x256xf32, #tpu.memory_space<vmem>>, vector<16x256xf32>
      %31 = vector.broadcast %27 : vector<1x256xf32> to vector<16x256xf32>
      %32 = arith.mulf %31, %30 : vector<16x256xf32>
      %33 = arith.addf %29, %32 : vector<16x256xf32>
      %c0_25 = arith.constant 0 : index
      %c0_26 = arith.constant 0 : index
      %c0_27 = arith.constant 0 : index
      %34 = vector.load %arg9[%c0_25, %c0_26, %c0_27] : memref<1x16x256xf32, #tpu.memory_space<vmem>>, vector<1x16x256xf32>
      %35 = vector.shape_cast %34 : vector<1x16x256xf32> to vector<16x256xf32>
      %36 = vector.shape_cast %33 : vector<16x256xf32> to vector<1x16x256xf32>
      tpu.vector_store %arg9[%c0_25, %c0_26, %c0_27], %36 {strides = array<i32>} : memref<1x16x256xf32, #tpu.memory_space<vmem>>, vector<1x16x256xf32>,
    } else {
    }
    return
  }
  func.func @transform_0(%arg0: i32, %arg1: i32, %arg2: i32) -> (i32, i32, i32) {
    %c0_i32 = arith.constant 0 : i32
    %c0_i32_0 = arith.constant 0 : i32
    return %arg0, %arg1, %c0_i32 : i32, i32, i32
  }
  func.func @transform_1(%arg0: i32, %arg1: i32, %arg2: i32) -> (i32, i32) {
    %c0_i32 = arith.constant 0 : i32
    %c0_i32_0 = arith.constant 0 : i32
    return %arg2, %c0_i32 : i32, i32
  }
  func.func @transform_2(%arg0: i32, %arg1: i32, %arg2: i32) -> (i32, i32) {
    %c0_i32 = arith.constant 0 : i32
    %c0_i32_0 = arith.constant 0 : i32
    return %arg2, %c0_i32 : i32, i32
  }
  func.func @transform_3(%arg0: i32, %arg1: i32, %arg2: i32) -> (i32, i32) {
    %c0_i32 = arith.constant 0 : i32
    %c0_i32_0 = arith.constant 0 : i32
    return %c0_i32, %arg2 : i32, i32
  }
  func.func @transform_4(%arg0: i32, %arg1: i32, %arg2: i32) -> (i32, i32, i32) {
    %c0_i32 = arith.constant 0 : i32
    %c0_i32_0 = arith.constant 0 : i32
    return %arg0, %arg1, %c0_i32 : i32, i32, i32
  }
  func.func @transform_5(%arg0: i32, %arg1: i32, %arg2: i32) -> (i32, i32, i32) {
    %c0_i32 = arith.constant 0 : i32
    %c0_i32_0 = arith.constant 0 : i32
    %c0_i32_1 = arith.constant 0 : i32
    return %arg0, %c0_i32, %c0_i32_0 : i32, i32, i32
  }
  func.func @transform_6(%arg0: i32, %arg1: i32, %arg2: i32) -> (i32, i32, i32) {
    %c0_i32 = arith.constant 0 : i32
    %c0_i32_0 = arith.constant 0 : i32
    return %arg0, %arg1, %c0_i32 : i32, i32, i32
  }
}

</mosaic_0001>

<bundles_post_ra>
// kernel: aura_flow_joint_block_forward.9
= control target key start
LH: loop header
LB: loop body
LE: loop exit
PB: predicated region body
PF: predicated region fallthrough
CT: control target
= control target key end

     0   :  { %s2326_s0 = inlined_call_operand.hbm [shape: f32[2,16,256], index: 0, kind: input, shape index: {}]   ;;  %s2327_s1 = inlined_call_operand.hbm [shape: f32[2,12,256], index: 1, kind: input, shape index: {}]   ;;  %s2328_s2 = inlined_call_operand.hbm [shape: bf16[768,256], index: 2, kind: input, shape index: {}]   ;;  %s2329_s3 = inlined_call_operand.hbm [shape: bf16[2,6,24,128], index: 3, kind: output, shape index: {}]  }
   0x1   :  { %2333 = sst [smem:[#allocation15_spill]] %s2326_s0 }
   0x2   :  { %2334 = sst [smem:[#allocation16_spill]] %s2328_s2 }
   0x3   :  { %8 = vsyncpa [#allocation3], 0 }
   0x4   :  { %10 = vsyncpa [#allocation3 + $0x1], 0 }
   0x5   :  { %11 = vsyncpa [#allocation6], 0 }
   0x6   :  { %13 = vsyncpa [#allocation6 + $0x1], 0 }
   0x7   :  { %14 = vsyncpa [#allocation4], 0 }
   0x8   :  { %16 = vsyncpa [#allocation4 + $0x1], 0  ;;  %s2001_s12 = smov 0   ;;  %s2003_s13 = smov 0  }
   0x9   :  { %s2005_s14 = smov 0   ;;  %s2007_s15 = smov 0  }
   0xa   :  { %s2009_s16 = smov 0   ;;  %s2011_s17 = smov 0  }
   0xb LB: > { %s2032_s18 = sadd.s32 4294967295, %s1965_s17   ;;  %s1370_s19 = sadd.s32 4294967294, %s1965_s17   ;;  %s1965_s17 = sphi %s2011_s17, %s22_s17   ;;  %s1961_s16 = sphi %s2009_s16, %s2355_s16   ;;  %s1957_s15 = sphi %s2007_s15, %s2354_s15   ;;  %s1953_s14 = sphi %s2005_s14, %s2353_s14   ;;  %s1949_s13 = sphi %s2003_s13, %s2352_s13   ;;  %s1945_s12 = sphi %s2001_s12, %s2351_s12  }
   0xc   : > { %p56_p0 = scmp.ne.s32.totalorder %s1949_s13, %s1945_s12  ;;  %p2330_p1 = scmp.eq.s32.totalorder %s2032_s18, 0 }
   0xd   : > { %p135_p3 = scmp.eq.s32.totalorder %s1370_s19, 1  ;;  %p1371_p5 = scmp.ge.s32.totalorder %s1965_s17, 1 }
   0xe   : > { %p2041_p4 = por %p2330_p1, %p56_p0  ;;  %p142_p7 = scmp.lt.s32.totalorder %s1965_s17, 3 }
   0xf   : > { %p2046_p6 = por %p135_p3, %p56_p0  ;;  %s1967_s23 = smov [#allocation7]  }
  0x10   : > { %s2335_s20 = scalar_select %p2041_p4, 1, 0 }
  0x11   : > { %s2336_s21 = scalar_select %p2046_p6, 1, 0 }
  0x12   : > { %p2051_p8 = pnand %p1371_p5, %p142_p7  ;;  %s154_s24 = sshll.u32 %s1967_s23, 4  ;;  %s155_s24 = int_to_ptr.vmem [resolvable:$true] %s154_s24 }
  0x13   : > { %s34_s26 = sadd.s32 1, %s1961_s16  ;;  %s2339_s2 = sld [smem:[#allocation16_spill]] }
  0x14   : > { %s2337_s22 = scalar_select %p2051_p8, 1, 0 }
  0x15   : > { %p1572_p9 = pneg %p2051_p8 }
  0x17   : > { %p2060_p11 = pnand %p1572_p9, %p2330_p1 }
  0x19   : > { %s1815_s29 = scalar_lea.hbm %s2339_s2, 12288  ;;  %p1817_p13 = pneg %p2060_p11 }
  0x1a   : > { %p1816_p12 = scmp.ne.s32.totalorder %s2339_s2, %s1815_s29  ;;  %p1822_p5 = scmp.lt.u32.totalorder %s1815_s29, %s2339_s2 }
  0x1c   : > { %p1818_p0 = pnand %p1817_p13, %p1816_p12 }
  0x1e   : > { %p1819_p3 = pneg %p1818_p0 }
  0x20   : > { %p1824_p7 = pnand %p1822_p5, %p1819_p3 }
  0x22   : > { %1827 = shalt.err (!%p1824_p7)
}
  0x23   : > { %s1828_s7 = scalar_lea.vmem %s155_s24, 12288  ;;  %p1836_p2 = scmp.lt.s32.totalorder %s155_s24, %s155_s24 }
  0x24   : > { %p1829_p9 = scmp.ne.s32.totalorder %s155_s24, %s1828_s7  ;;  %p1837_p6 = scmp.lt.s32.totalorder %s1828_s7, %s1828_s7 }
  0x26   : > { %p1831_p10 = pnand %p1829_p9, %p1817_p13  ;;  %p1838_p4 = por %p1837_p6, %p1836_p2 }
  0x28   : > { %p1832_p1 = pneg %p1831_p10 }
  0x2a   : > { %p1839_p8 = pnand %p1838_p4, %p1832_p1 }
  0x2c   : > { %1842 = shalt.err (!%p1839_p8)
}
  0x2d   : > { %s1968_s8 = smov 128   ;;  %s1969_s9 = smov 8  }
  0x2e   : > { %1575 = dma.hbm_to_vmem [thread:$0]  (!%p2060_p11), %s2339_s2, 12288, %s155_s24, [#allocation6], %s1968_s8, %s1968_s8, %s1969_s9  }
  0x2f   : > { %p36_p1 = scmp.ge.s32.totalorder %s34_s26, 2  ;;  %s43_s19 = sadd.s32 1, %s1953_s14 }
  0x30   : > { %p50_p2 = scmp.ne.s32.totalorder %s1953_s14, %s1949_s13  ;;  %p51_p4 = scmp.eq.s32.totalorder %s1965_s17, 0 }
  0x31   : > { %s2357_s26 = smov (%p36_p1, %s34_s26), 0  ;;  %p2341_p8 = scmp.eq.s32.totalorder %s2032_s18, 1 }
  0x32   : > { %p2087_p6 = por %p51_p4, %p50_p2  ;;  %s38_s27 = ssub.s32 %s1961_s16, %s2357_s26 }
  0x33   : > { %p2093_p10 = por %p2341_p8, %p50_p2  ;;  %p1588_p12 = scmp.lt.s32.totalorder %s1965_s17, 2 }
  0x34   : > { %p41_p11 = scmp.eq.s32.totalorder %s38_s27, 0  ;;  %s168_s24 = sand.u32 1, %s1953_s14  }
  0x35   : > { %s2101_s28 = sshll.u32 %s168_s24, 5  ;;  %s1505_s30 = sshll.u32 %s1961_s16, 9 }
  0x36   : > { %s2104_s29 = scalar_select %p41_p11, %s1953_s14, %s43_s19  }
  0x37   : > { %s2343_s0 = sld [smem:[#allocation15_spill]]  ;;  %s172_s7 = scalar_lea.vmem [#allocation2], %s2101_s28 }
  0x38   : > { %s182_s8 = sshll.u32 %s172_s7, 4  ;;  %p2119_p13 = pnand %p1588_p12, %p2087_p6  ;;  %s2115_s8 = int_to_ptr.vmem [resolvable:$true] %s182_s8 }
  0x39   : > { %s2123_s10 = scalar_lea.sflag [#allocation3], %s168_s24 }
  0x3a   : > { %p1845_p3 = pneg %p2119_p13 }
  0x3d   : > { %s2112_s6 = scalar_lea.hbm %s2343_s0, %s1505_s30  ;;  %s1848_s23 = scalar_lea.hbm %s2343_s0, 1024 }
  0x3e   : > { %s1843_s11 = scalar_lea.hbm %s2112_s6, 512  ;;  %p1849_p9 = scmp.lt.u32.totalorder %s2112_s6, %s2343_s0 }
  0x3f   : > { %p1844_p0 = scmp.ne.s32.totalorder %s2112_s6, %s1843_s11  ;;  %p1850_p1 = scmp.lt.u32.totalorder %s1848_s23, %s1843_s11 }
  0x40   : > { %p1852_p4 = scmp.lt.u32.totalorder %s1843_s11, %s2112_s6 }
  0x41   : > { %p1846_p5 = pnand %p1845_p3, %p1844_p0  ;;  %p1851_p2 = por %p1850_p1, %p1849_p9 }
  0x43   : > { %p1847_p7 = pneg %p1846_p5  ;;  %p1853_p6 = por %p1852_p4, %p1851_p2 }
  0x45   : > { %p1854_p8 = pnand %p1853_p6, %p1847_p7 }
  0x47   : > { %1857 = shalt.err (!%p1854_p8)
}
  0x48   : > { %s1858_s24 = scalar_lea.vmem %s2115_s8, 512  ;;  %s1970_s7 = smov [#allocation2]  }
  0x49   : > { %p1859_p12 = scmp.ne.s32.totalorder %s2115_s8, %s1858_s24  ;;  %s1863_s19 = sshll.u32 %s1970_s7, 4  ;;  %s1864_s19 = int_to_ptr.vmem [resolvable:$false] %s1863_s19 }
  0x4a   : > { %s1865_s27 = scalar_lea.vmem %s1864_s19, 1024  ;;  %p1866_p5 = scmp.lt.s32.totalorder %s2115_s8, %s1864_s19 }
  0x4b   : > { %p1861_p11 = pnand %p1859_p12, %p1845_p3  ;;  %p1867_p9 = scmp.lt.s32.totalorder %s1865_s27, %s1858_s24 }
  0x4d   : > { %p1862_p0 = pneg %p1861_p11  ;;  %p1868_p1 = por %p1867_p9, %p1866_p5 }
  0x4f   : > { %p1869_p2 = pnand %p1868_p1, %p1862_p0 }
  0x51   : > { %1872 = shalt.err (!%p1869_p2)
}
  0x52   : > { %s1971_s11 = smov 256   ;;  %s1972_s23 = smov 16  }
  0x53   : > { %1579 = dma.hbm_to_vmem [thread:$0]  (!%p2119_p13), %s2112_s6, 512, %s2115_s8, %s2123_s10, %s1971_s11, %s1971_s11, %s1972_s23  }
  0x54   : > { %s2159_s24 = scalar_lea.hbm %s2327_s1, %s1505_s30  ;;  %s196_s7 = scalar_lea.vmem [#allocation5], %s2101_s28 }
  0x55   : > { %s203_s19 = sshll.u32 %s196_s7, 4  ;;  %s192_s27 = sand.u32 1, %s1965_s17   ;;  %s2162_s19 = int_to_ptr.vmem [resolvable:$true] %s203_s19 }
  0x56   : > { %s2165_s0 = scalar_lea.sflag [#allocation6], %s192_s27  ;;  %s1873_s2 = scalar_lea.hbm %s2159_s24, 512 }
  0x57   : > { %p1874_p7 = scmp.ne.s32.totalorder %s2159_s24, %s1873_s2  ;;  %s1878_s8 = scalar_lea.hbm %s2327_s1, 1024 }
  0x58   : > { %p1879_p8 = scmp.lt.u32.totalorder %s2159_s24, %s2327_s1  ;;  %p1880_p12 = scmp.lt.u32.totalorder %s1878_s8, %s1873_s2 }
  0x59   : > { %p1876_p4 = pnand %p1874_p7, %p1845_p3  ;;  %p1882_p0 = scmp.lt.u32.totalorder %s1873_s2, %s2159_s24 }
  0x5a   : > { %p1881_p11 = por %p1880_p12, %p1879_p8 }
  0x5b   : > { %p1877_p6 = pneg %p1876_p4 }
  0x5c   : > { %p1883_p5 = por %p1882_p0, %p1881_p11 }
  0x5e   : > { %p1884_p9 = pnand %p1883_p5, %p1877_p6 }
  0x60   : > { %1887 = shalt.err (!%p1884_p9)
}
  0x61   : > { %s1888_s28 = scalar_lea.vmem %s2162_s19, 512  ;;  %s1973_s5 = smov [#allocation5]  }
  0x62   : > { %p1889_p1 = scmp.ne.s32.totalorder %s2162_s19, %s1888_s28  ;;  %s1893_s7 = sshll.u32 %s1973_s5, 4  ;;  %s1894_s7 = int_to_ptr.vmem [resolvable:$false] %s1893_s7 }
  0x63   : > { %s1895_s27 = scalar_lea.vmem %s1894_s7, 1024  ;;  %p1896_p4 = scmp.lt.s32.totalorder %s2162_s19, %s1894_s7 }
  0x64   : > { %p1891_p2 = pnand %p1889_p1, %p1845_p3  ;;  %p1897_p8 = scmp.lt.s32.totalorder %s1895_s27, %s1888_s28 }
  0x66   : > { %p1892_p7 = pneg %p1891_p2  ;;  %p1898_p12 = por %p1897_p8, %p1896_p4 }
  0x68   : > { %p1899_p11 = pnand %p1898_p12, %p1892_p7 }
  0x6a   : > { %1902 = shalt.err (!%p1899_p11)
}
  0x6b   : > { %1582 = dma.hbm_to_vmem [thread:$0]  (!%p2119_p13), %s2159_s24, 512, %s2162_s19, %s2165_s0, %s1971_s11, %s1971_s11, %s1972_s23  }
  0x6c   : > { %p2345_p3 = scmp.ne.s32.totalorder %s2337_s22, 0 }
  0x6d   : > { %s2197_s2 = sand.u32 (!%p2345_p3), 1, %s1949_s13   ;;  %p2346_p6 = scmp.ne.s32.totalorder (!%p2345_p3), %s2335_s20, 0 }
  0x6e   : > { %215 = sbr.rel (%p2345_p3) target bundleno = 992 (0x3e0), region = 32  ;;  %s1381_s6 = sshll.u32 (!%p2345_p3), %s2197_s2, 5 }
  0x6f   : > { %s218_s30 = scalar_lea.sflag (!%p2345_p3), [#allocation3], %s2197_s2  ;;  %s221_s8 = scalar_lea.vmem (!%p2345_p3), [#allocation2], %s1381_s6 }
  0x75   : > { %1928 = dma.done.wait (%p2346_p6), %s218_s30, 512  }
  0x76   : > { %1930 = vsyncadd (%p2346_p6), %s218_s30, 4294966784  ;;  %s226_s0 = sand.u32 1, %s2032_s18   ;;  %s2206_s22 = scalar_lea.vmem [#allocation5], %s1381_s6 }
  0x77   : > { %s227_s9 = scalar_lea.sflag [#allocation6], %s226_s0 }
  0x78   : > { %1932 = dma.done.wait (%p2346_p6), %s227_s9, 512  }
  0x79   : > { %1934 = vsyncadd (%p2346_p6), %s227_s9, 4294966784  ;;  %p2347_p13 = scmp.eq.s32.totalorder %s2032_s18, 0 }
  0x7b   : > { %1936 = dma.done.wait (%p2347_p13), [#allocation6], 12288   ;;  %p2348_p0 = pmov %p2347_p13 }
  0x7c   : > { %v2216_v0 = vld [vmem:[%s221_s8] sm:$0xff]  ;;  %v2218_v1 = vld [vmem:[%s221_s8 + $0x8] sm:$0xff]  ;;  %v2220_v2 = vld [vmem:[%s221_s8 + $0x10] sm:$0xff]  ;;  %s1554_s18 = smul.u32 48, %s2197_s2  ;;  %s1199_s11 = scalar_lea.sflag [#allocation4], %s2197_s2 }
  0x7d   : > { %1938 = vsyncadd (%p2348_p0), [#allocation6], 4294955008  ;;  %v274_v3 = vadd.f32 %v2218_v1, %v2216_v0  ;;  %v2224_v4 = vld [vmem:[%s221_s8 + $0x18] sm:$0xff]  ;;  %v1651_v6 = vld [vmem:[#allocation7 + $0x4] ss:$8 sps:$4 sm:$0xff]  }
  0x7e   : > { %v277_v5 = vadd.f32 %v2224_v4, %v2220_v2  ;;  %v1653_v7 = vld [vmem:[#allocation7] ss:$8 sps:$4 sm:$0xff]   ;;  %v1654_v8 = vld [vmem:[#allocation7 + $0x104] ss:$8 sps:$4 sm:$0xff]   ;;  %v1657_v10 = vld [vmem:[#allocation7 + $0x14] ss:$8 sps:$4 sm:$0xff]   ;;  %911 = vmatprep.subr.bf16.mxu0 %v1651_v6 }
  0x7f   : > { %275 = vadd.xlane.f32.xlu0 %v274_v3  ;;  %v1656_v9 = vld [vmem:[#allocation7 + $0x100] ss:$8 sps:$4 sm:$0xff]   ;;  %954 = vmatprep.subr.bf16.mxu1 %v1654_v8  ;;  %v1660_v11 = vld [vmem:[#allocation7 + $0x114] ss:$8 sps:$4 sm:$0xff]   ;;  %v1659_v12 = vld [vmem:[#allocation7 + $0x10] ss:$8 sps:$4 sm:$0xff]  }
  0x80   : > { %912 = vmatpush1.bf16.xpose.msra.mxu0 %v1653_v7  ;;  %955 = vmatpush1.bf16.xpose.msra.mxu1 %v1656_v9  ;;  %v1662_v13 = vld [vmem:[#allocation7 + $0x110] ss:$8 sps:$4 sm:$0xff]   ;;  %v1663_v14 = vld [vmem:[#allocation7 + $0x24] ss:$8 sps:$4 sm:$0xff]   ;;  %v1665_v16 = vld [vmem:[#allocation7 + $0x20] ss:$8 sps:$4 sm:$0xff]  }
  0x81   : > { %913 = vmatprep.subr.bf16.mxu0 %v1657_v10  ;;  %956 = vmatprep.subr.bf16.mxu1 %v1660_v11  ;;  %v1666_v15 = vld [vmem:[#allocation7 + $0x124] ss:$8 sps:$4 sm:$0xff]   ;;  %v1668_v17 = vld [vmem:[#allocation7 + $0x120] ss:$8 sps:$4 sm:$0xff]   ;;  %v1669_v18 = vld [vmem:[#allocation7 + $0x34] ss:$8 sps:$4 sm:$0xff]  }
  0x82   : > { %v1672_v19 = vld [vmem:[#allocation7 + $0x134] ss:$8 sps:$4 sm:$0xff]   ;;  %v1671_v20 = vld [vmem:[#allocation7 + $0x30] ss:$8 sps:$4 sm:$0xff]   ;;  %v1675_v22 = vld [vmem:[#allocation7 + $0x44] ss:$8 sps:$4 sm:$0xff]  }
  0x83   : > { %278 = vadd.xlane.f32.xlu0 %v277_v5  ;;  %v1674_v21 = vld [vmem:[#allocation7 + $0x130] ss:$8 sps:$4 sm:$0xff]   ;;  %v1678_v23 = vld [vmem:[#allocation7 + $0x144] ss:$8 sps:$4 sm:$0xff]   ;;  %v1677_v24 = vld [vmem:[#allocation7 + $0x40] ss:$8 sps:$4 sm:$0xff]  }
  0x84   : > { %v1680_v25 = vld [vmem:[#allocation7 + $0x140] ss:$8 sps:$4 sm:$0xff]   ;;  %v1681_v26 = vld [vmem:[#allocation7 + $0x54] ss:$8 sps:$4 sm:$0xff]   ;;  %v1683_v28 = vld [vmem:[#allocation7 + $0x50] ss:$8 sps:$4 sm:$0xff]  }
  0x85   : > { %v1684_v27 = vld [vmem:[#allocation7 + $0x154] ss:$8 sps:$4 sm:$0xff]   ;;  %v1686_v29 = vld [vmem:[#allocation7 + $0x150] ss:$8 sps:$4 sm:$0xff]   ;;  %v1687_v30 = vld [vmem:[#allocation7 + $0x64] ss:$8 sps:$4 sm:$0xff]  }
  0x86   : > { %v1690_v31 = vld [vmem:[#allocation7 + $0x164] ss:$8 sps:$4 sm:$0xff]   ;;  %v1689_v32 = vld [vmem:[#allocation7 + $0x60] ss:$8 sps:$4 sm:$0xff]   ;;  %v1693_v34 = vld [vmem:[#allocation7 + $0x74] ss:$8 sps:$4 sm:$0xff]  }
  0x87   : > { %v1692_v33 = vld [vmem:[#allocation7 + $0x160] ss:$8 sps:$4 sm:$0xff]   ;;  %v1696_v35 = vld [vmem:[#allocation7 + $0x174] ss:$8 sps:$4 sm:$0xff]   ;;  %v1695_v36 = vld [vmem:[#allocation7 + $0x70] ss:$8 sps:$4 sm:$0xff]  }
  0x88   : > { %914 = vmatpush1.bf16.xpose.msra.mxu0 %v1659_v12  ;;  %957 = vmatpush1.bf16.xpose.msra.mxu1 %v1662_v13  ;;  %v1698_v37 = vld [vmem:[#allocation7 + $0x170] ss:$8 sps:$4 sm:$0xff]   ;;  %v1699_v38 = vld [vmem:[#allocation7 + $0x84] ss:$8 sps:$4 sm:$0xff]   ;;  %v1701_v40 = vld [vmem:[#allocation7 + $0x80] ss:$8 sps:$4 sm:$0xff]  }
  0x89   : > { %915 = vmatprep.subr.bf16.mxu0 %v1663_v14  ;;  %958 = vmatprep.subr.bf16.mxu1 %v1666_v15  ;;  %v1702_v39 = vld [vmem:[#allocation7 + $0x184] ss:$8 sps:$4 sm:$0xff]   ;;  %v1704_v41 = vld [vmem:[#allocation7 + $0x180] ss:$8 sps:$4 sm:$0xff]   ;;  %v1705_v42 = vld [vmem:[#allocation7 + $0x94] ss:$8 sps:$4 sm:$0xff]  }
  0x8a   : > { %v1708_v43 = vld [vmem:[#allocation7 + $0x194] ss:$8 sps:$4 sm:$0xff]   ;;  %v1707_v44 = vld [vmem:[#allocation7 + $0x90] ss:$8 sps:$4 sm:$0xff]   ;;  %v1711_v46 = vld [vmem:[#allocation7 + $0xa4] ss:$8 sps:$4 sm:$0xff]  }
  0x8b   : > { %v1710_v45 = vld [vmem:[#allocation7 + $0x190] ss:$8 sps:$4 sm:$0xff]   ;;  %v1714_v47 = vld [vmem:[#allocation7 + $0x1a4] ss:$8 sps:$4 sm:$0xff]   ;;  %v1713_v48 = vld [vmem:[#allocation7 + $0xa0] ss:$8 sps:$4 sm:$0xff]  }
  0x8c   : > { %v1716_v49 = vld [vmem:[#allocation7 + $0x1a0] ss:$8 sps:$4 sm:$0xff]   ;;  %v1717_v50 = vld [vmem:[#allocation7 + $0xb4] ss:$8 sps:$4 sm:$0xff]   ;;  %v1719_v52 = vld [vmem:[#allocation7 + $0xb0] ss:$8 sps:$4 sm:$0xff]  }
  0x8d   : > { %v1720_v51 = vld [vmem:[#allocation7 + $0x1b4] ss:$8 sps:$4 sm:$0xff]   ;;  %v1722_v53 = vld [vmem:[#allocation7 + $0x1b0] ss:$8 sps:$4 sm:$0xff]   ;;  %v1723_v54 = vld [vmem:[#allocation7 + $0xc4] ss:$8 sps:$4 sm:$0xff]  }
  0x8e   : > { %v1726_v55 = vld [vmem:[#allocation7 + $0x1c4] ss:$8 sps:$4 sm:$0xff]   ;;  %v1725_v56 = vld [vmem:[#allocation7 + $0xc0] ss:$8 sps:$4 sm:$0xff]   ;;  %v1729_v12 = vld [vmem:[#allocation7 + $0xd4] ss:$8 sps:$4 sm:$0xff]  }
  0x8f   : > { %v1728_v57 = vld [vmem:[#allocation7 + $0x1c0] ss:$8 sps:$4 sm:$0xff]   ;;  %v1731_v13 = vld [vmem:[#allocation7 + $0xd0] ss:$8 sps:$4 sm:$0xff]   ;;  %v1732_v14 = vld [vmem:[#allocation7 + $0x1d4] ss:$8 sps:$4 sm:$0xff]  }
  0x90   : > { %916 = vmatpush1.bf16.xpose.msra.mxu0 %v1665_v16  ;;  %959 = vmatpush1.bf16.xpose.msra.mxu1 %v1668_v17  ;;  %v1737_v15 = vld [vmem:[#allocation7 + $0xe0] ss:$8 sps:$4 sm:$0xff]   ;;  %v1738_v16 = vld [vmem:[#allocation7 + $0x1e4] ss:$8 sps:$4 sm:$0xff]   ;;  %v1741_v17 = vld [vmem:[#allocation7 + $0xf4] ss:$8 sps:$4 sm:$0xff]  }
  0x91   : > { %917 = vmatprep.subr.bf16.mxu0 %v1669_v18  ;;  %960 = vmatprep.subr.bf16.mxu1 %v1672_v19  ;;  %v1743_v18 = vld [vmem:[#allocation7 + $0xf0] ss:$8 sps:$4 sm:$0xff]   ;;  %s2240_s20 = scalar_lea.vmem [#allocation8], %s1554_s18 }
  0x92   : > { %v1746_v19 = vld [vmem:[#allocation7 + $0x1f0] ss:$8 sps:$4 sm:$0xff]  }
  0x98   : > { %918 = vmatpush1.bf16.xpose.msra.mxu0 %v1671_v20  ;;  %961 = vmatpush1.bf16.xpose.msra.mxu1 %v1674_v21  ;;  %v1749_v20 = vld [vmem:[#allocation7 + $0x204] ss:$8 sps:$4 sm:$0xff]  }
  0x99   : > { %919 = vmatprep.subr.bf16.mxu0 %v1675_v22  ;;  %962 = vmatprep.subr.bf16.mxu1 %v1678_v23 }
  0xa0   : > { %920 = vmatpush1.bf16.xpose.msra.mxu0 %v1677_v24  ;;  %963 = vmatpush1.bf16.xpose.msra.mxu1 %v1680_v25  ;;  %v309_v25 = vlaneseq }
  0xa1   : > { %921 = vmatprep.subr.bf16.mxu0 %v1681_v26  ;;  %964 = vmatprep.subr.bf16.mxu1 %v1684_v27 }
  0xa8   : > { %922 = vmatpush1.bf16.xpose.msra.mxu0 %v1683_v28  ;;  %965 = vmatpush1.bf16.xpose.msra.mxu1 %v1686_v29  ;;  %v310_v28 = vshrl.u32 %v309_v25, 7  ;;  %v269_v29 = vld [vmem:[%s2206_s22 + $0x8] sm:$0xff] }
  0xa9   : > { %923 = vmatprep.subr.bf16.mxu0 %v1687_v30  ;;  %966 = vmatprep.subr.bf16.mxu1 %v1690_v31  ;;  %v268_v30 = vld [vmem:[%s2206_s22] sm:$0xff]  ;;  %v308_v31 = vadd.f32 1.0, %v269_v29 }
  0xb0   : > { %924 = vmatpush1.bf16.xpose.msra.mxu0 %v1689_v32  ;;  %967 = vmatpush1.bf16.xpose.msra.mxu1 %v1692_v33  ;;  %v311_v32 = vsub.s32 1, %v310_v28  ;;  %v307_v33 = vadd.f32 1.0, %v268_v30 }
  0xb1   : > { %925 = vmatprep.subr.bf16.mxu0 %v1693_v34  ;;  %968 = vmatprep.subr.bf16.mxu1 %v1696_v35  ;;  %v323_v35 = vsub.s32 0, %v310_v28 }
  0xb8   : > { %926 = vmatpush1.bf16.xpose.msra.mxu0 %v1695_v36  ;;  %969 = vmatpush1.bf16.xpose.msra.mxu1 %v1698_v37  ;;  %v316_v37 = vrot.slane %v308_v31, %v311_v32 }
  0xb9   : > { %927 = vmatprep.subr.bf16.mxu0 %v1699_v38  ;;  %970 = vmatprep.subr.bf16.mxu1 %v1702_v39  ;;  %v312_v39 = vrot.slane %v307_v33, %v311_v32 }
  0xc0   : > { %928 = vmatpush1.bf16.xpose.msra.mxu0 %v1701_v40  ;;  %971 = vmatpush1.bf16.xpose.msra.mxu1 %v1704_v41  ;;  %v328_v41 = vrot.slane %v269_v29, %v323_v35 }
  0xc1   : > { %929 = vmatprep.subr.bf16.mxu0 %v1705_v42  ;;  %972 = vmatprep.subr.bf16.mxu1 %v1708_v43  ;;  %v324_v42 = vrot.slane %v268_v30, %v323_v35 }
  0xc8   : > { %930 = vmatpush1.bf16.xpose.msra.mxu0 %v1707_v44  ;;  %973 = vmatpush1.bf16.xpose.msra.mxu1 %v1710_v45 }
  0xc9   : > { %931 = vmatprep.subr.bf16.mxu0 %v1711_v46  ;;  %974 = vmatprep.subr.bf16.mxu1 %v1714_v47 }
  0xd0   : > { %932 = vmatpush1.bf16.xpose.msra.mxu0 %v1713_v48  ;;  %975 = vmatpush1.bf16.xpose.msra.mxu1 %v1716_v49 }
  0xd1   : > { %933 = vmatprep.subr.bf16.mxu0 %v1717_v50  ;;  %976 = vmatprep.subr.bf16.mxu1 %v1720_v51 }
  0xd8   : > { %934 = vmatpush1.bf16.xpose.msra.mxu0 %v1719_v52  ;;  %977 = vmatpush1.bf16.xpose.msra.mxu1 %v1722_v53 }
  0xd9   : > { %935 = vmatprep.subr.bf16.mxu0 %v1723_v54  ;;  %978 = vmatprep.subr.bf16.mxu1 %v1726_v55  ;;  %v1747_v54 = vld [vmem:[#allocation7 + $0x200] ss:$8 sps:$4 sm:$0xff]  }
  0xe0   : > { %936 = vmatpush1.bf16.xpose.msra.mxu0 %v1725_v56  ;;  %979 = vmatpush1.bf16.xpose.msra.mxu1 %v1728_v57  ;;  %v1752_v56 = vld [vmem:[#allocation7 + $0x214] ss:$8 sps:$4 sm:$0xff]   ;;  %v1750_v57 = vld [vmem:[#allocation7 + $0x210] ss:$8 sps:$4 sm:$0xff]  }
  0xe1   : > { %937 = vmatprep.subr.bf16.mxu0 %v1729_v12  ;;  %980 = vmatprep.subr.bf16.mxu1 %v1732_v14  ;;  %v1776_v12 = vld [vmem:[#allocation7 + $0x294] ss:$8 sps:$4 sm:$0xff]   ;;  %v1779_v14 = vld [vmem:[#allocation7 + $0x2a4] ss:$8 sps:$4 sm:$0xff]  }
  0xe8   : > { %938 = vmatpush1.bf16.xpose.msra.mxu0 %v1731_v13  ;;  %v1774_v13 = vld [vmem:[#allocation7 + $0x290] ss:$8 sps:$4 sm:$0xff]  }
 0x10c   : > { %v276_v58 = vpop.xlane.xlu0 %275 }
 0x10d   : > { %v281_v59 = vmul.f32 0.00390625, %v276_v58  ;;  %v1755_v58 = vld [vmem:[#allocation7 + $0x224] ss:$8 sps:$4 sm:$0xff]  }
 0x10f   : > { %v283_v60 = vsub.f32 %v2216_v0, %v281_v59  ;;  %v284_v61 = vsub.f32 %v2218_v1, %v281_v59  ;;  %v1734_v0 = vld [vmem:[#allocation7 + $0x1d0] ss:$8 sps:$4 sm:$0xff]   ;;  %v1735_v1 = vld [vmem:[#allocation7 + $0xe4] ss:$8 sps:$4 sm:$0xff]   ;;  %v1753_v59 = vld [vmem:[#allocation7 + $0x220] ss:$8 sps:$4 sm:$0xff]  }
 0x110   : > { %v279_v62 = vpop.xlane.xlu0 %278  ;;  %981 = vmatpush1.bf16.xpose.msra.mxu1 %v1734_v0  ;;  %939 = vmatprep.subr.bf16.mxu0 %v1735_v1  ;;  %v1777_v0 = vld [vmem:[#allocation7 + $0x2a0] ss:$8 sps:$4 sm:$0xff]   ;;  %v1782_v1 = vld [vmem:[#allocation7 + $0x2b4] ss:$8 sps:$4 sm:$0xff]  }
 0x111   : > { %v282_v63 = vmul.f32 0.00390625, %v279_v62  ;;  %v287_v3 = vmul.f32 %v283_v60, %v283_v60  ;;  %v288_v5 = vmul.f32 %v284_v61, %v284_v61  ;;  %982 = vmatprep.subr.bf16.mxu1 %v1738_v16  ;;  %940 = vmatpush1.bf16.xpose.msra.mxu0 %v1737_v15  ;;  %v1761_v62 = vld [vmem:[#allocation7 + $0x244] ss:$8 sps:$4 sm:$0xff]   ;;  %v1780_v15 = vld [vmem:[#allocation7 + $0x2b0] ss:$8 sps:$4 sm:$0xff]  }
 0x112   : > { %941 = vmatprep.subr.bf16.mxu0 %v1741_v17  ;;  %v1785_v16 = vld [vmem:[#allocation7 + $0x2c4] ss:$8 sps:$4 sm:$0xff]   ;;  %v1788_v17 = vld [vmem:[#allocation7 + $0x2d4] ss:$8 sps:$4 sm:$0xff]  }
 0x113   : > { %v285_v6 = vsub.f32 %v2220_v2, %v282_v63  ;;  %v286_v7 = vsub.f32 %v2224_v4, %v282_v63  ;;  %v291_v8 = vadd.f32 %v288_v5, %v287_v3  ;;  %v1740_v2 = vld [vmem:[#allocation7 + $0x1e0] ss:$8 sps:$4 sm:$0xff]   ;;  %v1744_v4 = vld [vmem:[#allocation7 + $0x1f4] ss:$8 sps:$4 sm:$0xff]   ;;  %v1762_v5 = vld [vmem:[#allocation7 + $0x250] ss:$8 sps:$4 sm:$0xff]  }
 0x114   : > { %v1759_v63 = vld [vmem:[#allocation7 + $0x240] ss:$8 sps:$4 sm:$0xff]   ;;  %v1764_v3 = vld [vmem:[#allocation7 + $0x254] ss:$8 sps:$4 sm:$0xff]  }
 0x115   : > { %292 = vadd.xlane.f32.xlu1 %v291_v8  ;;  %v289_v9 = vmul.f32 %v285_v6, %v285_v6  ;;  %v290_v10 = vmul.f32 %v286_v7, %v286_v7  ;;  %v1770_v8 = vld [vmem:[#allocation7 + $0x274] ss:$8 sps:$4 sm:$0xff]  }
 0x117   : > { %v294_v11 = vadd.f32 %v290_v10, %v289_v9  ;;  %v1768_v9 = vld [vmem:[#allocation7 + $0x270] ss:$8 sps:$4 sm:$0xff]   ;;  %v1773_v10 = vld [vmem:[#allocation7 + $0x284] ss:$8 sps:$4 sm:$0xff]  }
 0x118   : > { %983 = vmatpush1.bf16.xpose.msra.mxu1 %v1740_v2  ;;  %v1783_v2 = vld [vmem:[#allocation7 + $0x2c0] ss:$8 sps:$4 sm:$0xff]  }
 0x119   : > { %295 = vadd.xlane.f32.xlu1 %v294_v11  ;;  %984 = vmatprep.subr.bf16.mxu1 %v1744_v4  ;;  %v1771_v11 = vld [vmem:[#allocation7 + $0x280] ss:$8 sps:$4 sm:$0xff]   ;;  %v1786_v4 = vld [vmem:[#allocation7 + $0x2d0] ss:$8 sps:$4 sm:$0xff]  }
 0x11a   : > { %942 = vmatpush1.bf16.xpose.msra.mxu0 %v1743_v18  ;;  %v1791_v18 = vld [vmem:[#allocation7 + $0x2e4] ss:$8 sps:$4 sm:$0xff]  }
 0x11b   : > { %997 = vmatprep.subr.bf16.mxu0 %v1749_v20  ;;  %v1794_v20 = vld [vmem:[#allocation7 + $0x2f4] ss:$8 sps:$4 sm:$0xff]  }
 0x120   : > { %985 = vmatpush1.bf16.xpose.msra.mxu1 %v1746_v19  ;;  %v1789_v19 = vld [vmem:[#allocation7 + $0x2e0] ss:$8 sps:$4 sm:$0xff]  }
 0x1a2   : > { %v293_v21 = vpop.xlane.xlu1 %292 }
 0x1a3   : > { %v297_v22 = vmul.f32 0.00390625, %v293_v21  ;;  %v1792_v21 = vld [vmem:[#allocation7 + $0x2f0] ss:$8 sps:$4 sm:$0xff]  }
 0x1a5   : > { %v299_v23 = vadd.f32 1e-05, %v297_v22 }
 0x1a6   : > { %v296_v24 = vpop.xlane.xlu1 %295 }
 0x1a7   : > { %1795 = vrsqrt.f32 %v299_v23  ;;  %v298_v26 = vmul.f32 0.00390625, %v296_v24 }
 0x1a9   : > { %v300_v27 = vadd.f32 1e-05, %v298_v26 }
 0x1ab   : > { %1797 = vrsqrt.f32 %v300_v27 }
 0x1b1   : > { %v1796_v34 = vpop.eup %1795 }
 0x1b2   : > { %v304_v36 = vmul.f32 %v1796_v34, %v284_v61  ;;  %v303_v38 = vmul.f32 %v1796_v34, %v283_v60  ;;  %v1758_v60 = vld [vmem:[#allocation7 + $0x234] ss:$8 sps:$4 sm:$0xff]   ;;  %v1756_v61 = vld [vmem:[#allocation7 + $0x230] ss:$8 sps:$4 sm:$0xff]  }
 0x1b4   : > { %v318_v44 = vmul.f32 %v316_v37, %v304_v36  ;;  %v317_v46 = vmul.f32 %v312_v39, %v303_v38 }
 0x1b5   : > { %v1798_v40 = vpop.eup %1797 }
 0x1b6   : > { %v306_v43 = vmul.f32 %v1798_v40, %v286_v7  ;;  %v305_v45 = vmul.f32 %v1798_v40, %v285_v6  ;;  %v330_v49 = vadd.f32 %v328_v41, %v318_v44  ;;  %v329_v51 = vadd.f32 %v324_v42, %v317_v46  ;;  %v1767_v6 = vld [vmem:[#allocation7 + $0x264] ss:$8 sps:$4 sm:$0xff]   ;;  %v1765_v7 = vld [vmem:[#allocation7 + $0x260] ss:$8 sps:$4 sm:$0xff]  }
 0x1b8   : > { %v320_v47 = vmul.f32 %v316_v37, %v306_v43  ;;  %v319_v48 = vmul.f32 %v312_v39, %v305_v45 }
 0x1ba   : > { %v332_v50 = vadd.f32 %v328_v41, %v320_v47  ;;  %v331_v52 = vadd.f32 %v324_v42, %v319_v48 }
 0x1bc   : > { %v334_v53 = vpack.c.bf16 %v332_v50, %v330_v49  ;;  %v2234_v55 = vpack.c.bf16 %v331_v52, %v329_v51 }
 0x1be   : > { %943 = vmatprep.mubr.bf16.mxu0 %v334_v53  ;;  %986 = vmatprep.mubr.bf16.mxu1 %v334_v53 }
 0x1bf   : > { %944 = vmatmul.mubr.bf16.vlgmr.msra.gmra.mrb[0].mxu0 %v2234_v55  ;;  %987 = vmatmul.mubr.bf16.vlgmr.msra.gmra.mrb[0].mxu1 %v2234_v55 }
 0x1c0   : > { %998 = vmatpush1.bf16.xpose.msra.mxu0 %v1747_v54  ;;  %1029 = vmatprep.mubr.bf16.mxu0 %v334_v53 }
 0x1c1   : > { %999 = vmatprep.subr.bf16.mxu0 %v1752_v56 }
 0x1c8   : > { %1000 = vmatpush1.bf16.xpose.msra.mxu0 %v1750_v57 }
 0x1c9   : > { %1001 = vmatprep.subr.bf16.mxu0 %v1755_v58 }
 0x1d0   : > { %1002 = vmatpush1.bf16.xpose.msra.mxu0 %v1753_v59 }
 0x1d1   : > { %1003 = vmatprep.subr.bf16.mxu0 %v1758_v60 }
 0x1d8   : > { %1004 = vmatpush1.bf16.xpose.msra.mxu0 %v1756_v61 }
 0x1d9   : > { %1005 = vmatprep.subr.bf16.mxu0 %v1761_v62 }
 0x1e0   : > { %1006 = vmatpush1.bf16.xpose.msra.mxu0 %v1759_v63 }
 0x1e1   : > { %1007 = vmatprep.subr.bf16.mxu0 %v1764_v3 }
 0x1e8   : > { %1008 = vmatpush1.bf16.xpose.msra.mxu0 %v1762_v5 }
 0x1e9   : > { %1009 = vmatprep.subr.bf16.mxu0 %v1767_v6 }
 0x1f0   : > { %1010 = vmatpush1.bf16.xpose.msra.mxu0 %v1765_v7 }
 0x1f1   : > { %1011 = vmatprep.subr.bf16.mxu0 %v1770_v8 }
 0x1f8   : > { %1012 = vmatpush1.bf16.xpose.msra.mxu0 %v1768_v9 }
 0x1f9   : > { %1013 = vmatprep.subr.bf16.mxu0 %v1773_v10 }
 0x200   : > { %1014 = vmatpush1.bf16.xpose.msra.mxu0 %v1771_v11 }
 0x201   : > { %1015 = vmatprep.subr.bf16.mxu0 %v1776_v12 }
 0x208   : > { %1016 = vmatpush1.bf16.xpose.msra.mxu0 %v1774_v13 }
 0x209   : > { %1017 = vmatprep.subr.bf16.mxu0 %v1779_v14 }
 0x210   : > { %1018 = vmatpush1.bf16.xpose.msra.mxu0 %v1777_v0 }
 0x211   : > { %1019 = vmatprep.subr.bf16.mxu0 %v1782_v1 }
 0x218   : > { %1020 = vmatpush1.bf16.xpose.msra.mxu0 %v1780_v15 }
 0x219   : > { %1021 = vmatprep.subr.bf16.mxu0 %v1785_v16 }
 0x220   : > { %1022 = vmatpush1.bf16.xpose.msra.mxu0 %v1783_v2 }
 0x221   : > { %1023 = vmatprep.subr.bf16.mxu0 %v1788_v17 }
 0x228   : > { %1024 = vmatpush1.bf16.xpose.msra.mxu0 %v1786_v4 }
 0x229   : > { %1025 = vmatprep.subr.bf16.mxu0 %v1791_v18 }
 0x230   : > { %1026 = vmatpush1.bf16.xpose.msra.mxu0 %v1789_v19 }
 0x231   : > { %1027 = vmatprep.subr.bf16.mxu0 %v1794_v20 }
 0x238   : > { %1028 = vmatpush1.bf16.xpose.msra.mxu0 %v1792_v21 }
 0x23f   : > { %1030 = vmatmul.mubr.bf16.vlgmr.msra.gmra.mrb[4].mxu0 %v2234_v55 }
 0x292   : > { %v945_v22 = vpop.f32.mrb[0].mxu0  ;;  %v988_v23 = vpop.f32.mrb[0].mxu1 }
 0x293   : > { %v990_v24 = vpop.f32.mrb[1].mxu1  ;;  %1040 = vadd.xlane.f32.xlu0 %v945_v22  ;;  %v947_v25 = vpop.f32.mrb[1].mxu0 }
 0x294   : > { %v949_v26 = vpop.f32.mrb[2].mxu0  ;;  %v992_v27 = vpop.f32.mrb[2].mxu1 }
 0x295   : > { %v994_v28 = vpop.f32.mrb[3].mxu1  ;;  %1042 = vadd.xlane.f32.xlu1 %v949_v26  ;;  %v951_v29 = vpop.f32.mrb[3].mxu0 }
 0x297   : > { %1110 = vadd.xlane.f32.xlu0 %v988_v23 }
 0x299   : > { %1112 = vadd.xlane.f32.xlu1 %v992_v27 }
 0x29b   : > { %1075 = vadd.xlane.f32.xlu0 %v947_v25 }
 0x29d   : > { %1077 = vadd.xlane.f32.xlu1 %v951_v29 }
 0x29f   : > { %1143 = vadd.xlane.f32.xlu0 %v990_v24 }
 0x2a1   : > { %1145 = vadd.xlane.f32.xlu1 %v994_v28 }
 0x312   : > { %v1031_v30 = vpop.f32.mrb[4].mxu0 }
 0x313   : > { %v1033_v31 = vpop.f32.mrb[5].mxu0 }
 0x314   : > { %v1035_v32 = vpop.f32.mrb[6].mxu0 }
 0x315   : > { %v1542_v33 = vpack.c.bf16 %v1035_v32, %v1031_v30  ;;  %v1037_v34 = vpop.f32.mrb[7].mxu0 }
 0x316   : > { %v1547_v35 = vpack.c.bf16 %v1037_v34, %v1033_v31 }
 0x317   : > { %1552 = vst [vmem:[%s2240_s20 + $0x20] sm:$0xff] %v1542_v33  }
 0x318   : > { %1553 = vst [vmem:[%s2240_s20 + $0x28] sm:$0xff] %v1547_v35  }
 0x320   : > { %v1041_v36 = vpop.xlane.xlu0 %1040 }
 0x321   : > { %v1045_v37 = vmul.f32 0.0078125, %v1041_v36 }
 0x322   : > { %v1043_v38 = vpop.xlane.xlu1 %1042 }
 0x323   : > { %v2244_v39 = vsub.f32 %v945_v22, %v1045_v37  ;;  %v1046_v40 = vmul.f32 0.0078125, %v1043_v38 }
 0x324   : > { %v1111_v41 = vpop.xlane.xlu0 %1110 }
 0x325   : > { %v2246_v42 = vsub.f32 %v949_v26, %v1046_v40  ;;  %v1114_v43 = vmul.f32 0.0078125, %v1111_v41  ;;  %v1049_v44 = vmul.f32 %v2244_v39, %v2244_v39 }
 0x326   : > { %v1113_v45 = vpop.xlane.xlu1 %1112 }
 0x327   : > { %v2250_v46 = vsub.f32 %v988_v23, %v1114_v43  ;;  %v1115_v47 = vmul.f32 0.0078125, %v1113_v45  ;;  %1051 = vadd.xlane.f32.xlu0 %v1049_v44  ;;  %v1050_v48 = vmul.f32 %v2246_v42, %v2246_v42 }
 0x328   : > { %v1076_v49 = vpop.xlane.xlu0 %1075 }
 0x329   : > { %v2254_v50 = vsub.f32 %v992_v27, %v1115_v47  ;;  %v1079_v51 = vmul.f32 0.0078125, %v1076_v49  ;;  %1053 = vadd.xlane.f32.xlu1 %v1050_v48  ;;  %v1118_v52 = vmul.f32 %v2250_v46, %v2250_v46 }
 0x32a   : > { %v1078_v53 = vpop.xlane.xlu1 %1077 }
 0x32b   : > { %v2258_v54 = vsub.f32 %v947_v25, %v1079_v51  ;;  %v1080_v55 = vmul.f32 0.0078125, %v1078_v53  ;;  %1120 = vadd.xlane.f32.xlu0 %v1118_v52  ;;  %v1119_v56 = vmul.f32 %v2254_v50, %v2254_v50 }
 0x32c   : > { %v1144_v57 = vpop.xlane.xlu0 %1143 }
 0x32d   : > { %v2262_v58 = vsub.f32 %v951_v29, %v1080_v55  ;;  %v1147_v59 = vmul.f32 0.0078125, %v1144_v57  ;;  %1122 = vadd.xlane.f32.xlu1 %v1119_v56  ;;  %v1083_v60 = vmul.f32 %v2258_v54, %v2258_v54 }
 0x32e   : > { %v1146_v61 = vpop.xlane.xlu1 %1145 }
 0x32f   : > { %v2266_v62 = vsub.f32 %v990_v24, %v1147_v59  ;;  %v1148_v63 = vmul.f32 0.0078125, %v1146_v61  ;;  %1085 = vadd.xlane.f32.xlu0 %v1083_v60  ;;  %v1084_v3 = vmul.f32 %v2262_v58, %v2262_v58 }
 0x331   : > { %v1150_v5 = vsub.f32 %v994_v28, %v1148_v63  ;;  %1087 = vadd.xlane.f32.xlu1 %v1084_v3  ;;  %v1151_v6 = vmul.f32 %v2266_v62, %v2266_v62 }
 0x333   : > { %1153 = vadd.xlane.f32.xlu0 %v1151_v6  ;;  %v1152_v7 = vmul.f32 %v1150_v5, %v1150_v5 }
 0x335   : > { %1155 = vadd.xlane.f32.xlu1 %v1152_v7 }
 0x3b4   : > { %v1052_v8 = vpop.xlane.xlu0 %1051 }
 0x3b5   : > { %v1055_v9 = vmul.f32 0.0078125, %v1052_v8 }
 0x3b6   : > { %v1054_v10 = vpop.xlane.xlu1 %1053 }
 0x3b7   : > { %v1057_v11 = vadd.f32 1e-05, %v1055_v9  ;;  %v1056_v12 = vmul.f32 0.0078125, %v1054_v10 }
 0x3b8   : > { %v1121_v13 = vpop.xlane.xlu0 %1120 }
 0x3b9   : > { %1799 = vrsqrt.f32 %v1057_v11  ;;  %v1058_v14 = vadd.f32 1e-05, %v1056_v12  ;;  %v1124_v0 = vmul.f32 0.0078125, %v1121_v13 }
 0x3ba   : > { %v1123_v1 = vpop.xlane.xlu1 %1122 }
 0x3bb   : > { %1801 = vrsqrt.f32 %v1058_v14  ;;  %v1126_v15 = vadd.f32 1e-05, %v1124_v0  ;;  %v1125_v16 = vmul.f32 0.0078125, %v1123_v1 }
 0x3bc   : > { %v1086_v2 = vpop.xlane.xlu0 %1085 }
 0x3bd   : > { %1803 = vrsqrt.f32 %v1126_v15  ;;  %v1127_v17 = vadd.f32 1e-05, %v1125_v16  ;;  %v1089_v4 = vmul.f32 0.0078125, %v1086_v2 }
 0x3be   : > { %v1088_v18 = vpop.xlane.xlu1 %1087 }
 0x3bf   : > { %1805 = vrsqrt.f32 %v1127_v17  ;;  %v1091_v19 = vadd.f32 1e-05, %v1089_v4  ;;  %v1090_v20 = vmul.f32 0.0078125, %v1088_v18 }
 0x3c0   : > { %v1154_v21 = vpop.xlane.xlu0 %1153 }
 0x3c1   : > { %1807 = vrsqrt.f32 %v1091_v19  ;;  %v1092_v22 = vadd.f32 1e-05, %v1090_v20  ;;  %v1157_v23 = vmul.f32 0.0078125, %v1154_v21 }
 0x3c2   : > { %v1156_v24 = vpop.xlane.xlu1 %1155 }
 0x3c3   : > { %v1800_v25 = vpop.eup %1799  ;;  %1809 = vrsqrt.f32 %v1092_v22  ;;  %v1159_v26 = vadd.f32 1e-05, %v1157_v23  ;;  %v1158_v27 = vmul.f32 0.0078125, %v1156_v24 }
 0x3c4   : > { %v1061_v28 = vmul.f32 %v1800_v25, %v2244_v39 }
 0x3c5   : > { %v1802_v29 = vpop.eup %1801  ;;  %1811 = vrsqrt.f32 %v1159_v26  ;;  %v1160_v30 = vadd.f32 1e-05, %v1158_v27 }
 0x3c6   : > { %v1062_v31 = vmul.f32 %v1802_v29, %v2246_v42  ;;  %v1063_v33 = vmul.f32 0.088388346, %v1061_v28 }
 0x3c7   : > { %v1804_v32 = vpop.eup %1803  ;;  %1813 = vrsqrt.f32 %v1160_v30 }
 0x3c8   : > { %v1064_v34 = vmul.f32 0.088388346, %v1062_v31  ;;  %v1130_v37 = vmul.f32 %v1804_v32, %v2250_v46 }
 0x3c9   : > { %v1806_v35 = vpop.eup %1805 }
 0x3ca   : > { %v1522_v36 = vpack.c.bf16 %v1064_v34, %v1063_v33  ;;  %v1131_v38 = vmul.f32 %v1806_v35, %v2254_v50 }
 0x3cb   : > { %v1808_v40 = vpop.eup %1807 }
 0x3cc   : > { %1523 = vst [vmem:[%s2240_s20] sm:$0xff] %v1522_v36   ;;  %v1532_v39 = vpack.c.bf16 %v1131_v38, %v1130_v37  ;;  %v1095_v41 = vmul.f32 %v1808_v40, %v2258_v54 }
 0x3cd   : > { %v1810_v43 = vpop.eup %1809 }
 0x3ce   : > { %1550 = vst [vmem:[%s2240_s20 + $0x10] sm:$0xff] %v1532_v39   ;;  %v1096_v42 = vmul.f32 %v1810_v43, %v2262_v58  ;;  %v1097_v45 = vmul.f32 0.088388346, %v1095_v41 }
 0x3cf   : > { %v1812_v44 = vpop.eup %1811 }
 0x3d0   : > { %v1098_v47 = vmul.f32 0.088388346, %v1096_v42  ;;  %v1163_v46 = vmul.f32 %v1812_v44, %v2266_v62 }
 0x3d1   : > { %v1814_v48 = vpop.eup %1813 }
 0x3d2   : > { %v1527_v49 = vpack.c.bf16 %v1098_v47, %v1097_v45  ;;  %v1164_v51 = vmul.f32 %v1814_v48, %v1150_v5 }
 0x3d4   : > { %1549 = vst [vmem:[%s2240_s20 + $0x8] sm:$0xff] %v1527_v49   ;;  %v1537_v50 = vpack.c.bf16 %v1164_v51, %v1163_v46 }
 0x3d6   : > { %1551 = vst [vmem:[%s2240_s20 + $0x18] sm:$0xff] %v1537_v50  }
 0x3d7   : > { %s1555_s23 = smul.u32 1152, %s1957_s15  ;;  %s1237_s24 = sshll.u32 %s2240_s20, 4  ;;  %s1238_s24 = int_to_ptr.vmem [resolvable:$true] %s1237_s24 }
 0x3d8   : > { %s1974_s28 = smov 128   ;;  %s1975_s5 = smov 192  }
 0x3d9   : > { %s1218_s4 = scalar_lea.hbm %s2329_s3, %s1555_s23  ;;  %1564 = sst [smem:[#allocation10]] (%p2093_p10), %s1974_s28 }
 0x3da   : > { %1565 = sst [smem:[#allocation10 + $0x1]] (%p2093_p10), %s1975_s5  ;;  %s1976_s7 = smov 2  }
 0x3db   : > { %1566 = sst [smem:[#allocation10 + $0x2]] (%p2093_p10), %s1976_s7  ;;  %s1977_s27 = smov 64  }
 0x3dc   : > { %1567 = sst [smem:[#allocation10 + $0x3]] (%p2093_p10), %s1977_s27  ;;  %s1978_s15 = smov 4  }
 0x3dd   : > { %1568 = sst [smem:[#allocation10 + $0x4]] (%p2093_p10), %s1977_s27  ;;  %s1979_s2 = smov [#allocation9]  }
 0x3de   : > { %1569 = sst [smem:[#allocation10 + $0x5]] (%p2093_p10), %s1978_s15  ;;  %s1980_s6 = smov 0  }
 0x3df   : > { %1570 = dma.general (%p2093_p10), %s1238_s24, 768, %s1218_s4, %s1199_s11, %s1979_s2, [#allocation10], %s1980_s6, 0  }
 0x3e0 PF: > { %s1265_s30 = sand.u32 1, %s1945_s12   ;;  %p2349_p5 = scmp.ne.s32.totalorder %s2336_s21, 0 }
 0x3e1   : > { %p2350_p9 = scmp.ge.s32.totalorder %s1965_s17, 2  ;;  %s1266_s8 = scalar_lea.sflag [#allocation4], %s1265_s30 }
 0x3e3   : > { %p1584_p1 = pnand %p2350_p9, %p2349_p5 }
 0x3e5   : > { %1940 = dma.done.wait (!%p1584_p1), %s1266_s8, 768  }
 0x3e6   : > { %1942 = vsyncadd (!%p1584_p1), %s1266_s8, 4294966528  ;;  %s22_s17 = sadd.s32 1, %s1965_s17   ;;  %s2351_s12 = smov %s1949_s13 }
 0x3e7   : > { %p19_p2 = scmp.ge.s32.totalorder %s22_s17, 4   ;;  %s2352_s13 = smov %s1953_s14 }
 0x3e8   : > { %s2353_s14 = smov %s2104_s29  ;;  %s2354_s15 = smov %s1961_s16 }
 0x3e9   : > { %s2355_s16 = smov %s2357_s26  ;;  %21 = sbr.rel (!%p19_p2) target bundleno = 11 (0xb), region = 104 }
 0x3f0   :  { %1271 = vsyncpa [#allocation3], 1 }
 0x3f1   :  { %1273 = vsyncpa [#allocation3 + $0x1], 1 }
 0x3f2   :  { %1274 = vsyncpa [#allocation6], 1 }
 0x3f3   :  { %1276 = vsyncpa [#allocation6 + $0x1], 1 }
 0x3f4   :  { %1277 = vsyncpa [#allocation4], 1 }
 0x3f5   :  { %1279 = vsyncpa [#allocation4 + $0x1], 1 }

// kernel: aura_flow_joint_block_forward.8
= control target key start
LH: loop header
LB: loop body
LE: loop exit
PB: predicated region body
PF: predicated region fallthrough
CT: control target
= control target key end

     0   :  { %v3936_v38 = vmov 1983009808   ;;  %v407_v40 = vlaneseq  ;;  %s5168_s1 = inlined_call_operand.vmem [shape: bf16[3072,256], index: 1, kind: input, shape index: {}]   ;;  %s5169_s0 = inlined_call_operand.vmem [shape: f32[2,256], index: 0, kind: input, shape index: {}]   ;;  %s5170_s2 = inlined_call_operand.vmem [shape: f32[2,3072], index: 2, kind: output, shape index: {}]  }
   0x1   :  { %v3356_v0 = vld [vmem:[%s5168_s1 + $0x4] ss:$8 sps:$4 sm:$0xff]   ;;  %v3360_v2 = vld [vmem:[%s5168_s1] ss:$8 sps:$4 sm:$0xff]   ;;  %v3362_v4 = vld [vmem:[%s5168_s1 + $0x14] ss:$8 sps:$4 sm:$0xff]   ;;  %v405_v39 = vunpack.c.l.s4 %v3936_v38 }
   0x2   :  { %v3358_v1 = vld [vmem:[%s5168_s1 + $0x104] ss:$8 sps:$4 sm:$0xff]   ;;  %2336 = vmatprep.subr.bf16.mxu0 %v3356_v0  ;;  %v3361_v3 = vld [vmem:[%s5168_s1 + $0x100] ss:$8 sps:$4 sm:$0xff]   ;;  %v3364_v5 = vld [vmem:[%s5168_s1 + $0x114] ss:$8 sps:$4 sm:$0xff]  }
   0x3   :  { %2377 = vmatprep.subr.bf16.mxu1 %v3358_v1  ;;  %2337 = vmatpush1.bf16.xpose.msra.mxu0 %v3360_v2  ;;  %v3366_v6 = vld [vmem:[%s5168_s1 + $0x10] ss:$8 sps:$4 sm:$0xff]   ;;  %v3368_v8 = vld [vmem:[%s5168_s1 + $0x24] ss:$8 sps:$4 sm:$0xff]   ;;  %v3372_v10 = vld [vmem:[%s5168_s1 + $0x20] ss:$8 sps:$4 sm:$0xff]   ;;  %v406_v42 = vunpack.c.0.s8 %v405_v39 }
   0x4   :  { %2378 = vmatpush1.bf16.xpose.msra.mxu1 %v3361_v3  ;;  %2338 = vmatprep.subr.bf16.mxu0 %v3362_v4  ;;  %v3367_v7 = vld [vmem:[%s5168_s1 + $0x110] ss:$8 sps:$4 sm:$0xff]   ;;  %v3370_v9 = vld [vmem:[%s5168_s1 + $0x124] ss:$8 sps:$4 sm:$0xff]   ;;  %v3373_v11 = vld [vmem:[%s5168_s1 + $0x120] ss:$8 sps:$4 sm:$0xff]  }
   0x5   :  { %2379 = vmatprep.subr.bf16.mxu1 %v3364_v5  ;;  %v3374_v12 = vld [vmem:[%s5168_s1 + $0x34] ss:$8 sps:$4 sm:$0xff]   ;;  %v3378_v14 = vld [vmem:[%s5168_s1 + $0x30] ss:$8 sps:$4 sm:$0xff]   ;;  %v3380_v16 = vld [vmem:[%s5168_s1 + $0x44] ss:$8 sps:$4 sm:$0xff]  }
   0x6   :  { %v3376_v13 = vld [vmem:[%s5168_s1 + $0x134] ss:$8 sps:$4 sm:$0xff]   ;;  %v3379_v15 = vld [vmem:[%s5168_s1 + $0x130] ss:$8 sps:$4 sm:$0xff]   ;;  %v3382_v17 = vld [vmem:[%s5168_s1 + $0x144] ss:$8 sps:$4 sm:$0xff]  }
   0x7   :  { %v3384_v18 = vld [vmem:[%s5168_s1 + $0x40] ss:$8 sps:$4 sm:$0xff]   ;;  %v3386_v20 = vld [vmem:[%s5168_s1 + $0x54] ss:$8 sps:$4 sm:$0xff]   ;;  %v3390_v22 = vld [vmem:[%s5168_s1 + $0x50] ss:$8 sps:$4 sm:$0xff]  }
   0x8   :  { %v3385_v19 = vld [vmem:[%s5168_s1 + $0x140] ss:$8 sps:$4 sm:$0xff]   ;;  %v3388_v21 = vld [vmem:[%s5168_s1 + $0x154] ss:$8 sps:$4 sm:$0xff]   ;;  %v3391_v23 = vld [vmem:[%s5168_s1 + $0x150] ss:$8 sps:$4 sm:$0xff]  }
   0x9   :  { %v3392_v24 = vld [vmem:[%s5168_s1 + $0x64] ss:$8 sps:$4 sm:$0xff]   ;;  %v11_v26 = vld [vmem:[%s5169_s0] sm:$0xf]  ;;  %v3398_v30 = vld [vmem:[%s5168_s1 + $0x74] ss:$8 sps:$4 sm:$0xff]  }
   0xa   :  { %v3394_v25 = vld [vmem:[%s5168_s1 + $0x164] ss:$8 sps:$4 sm:$0xff]   ;;  %v2970_v27 = vmul.f32 -1.442695, %v11_v26  ;;  %v3396_v28 = vld [vmem:[%s5168_s1 + $0x60] ss:$8 sps:$4 sm:$0xff]  }
   0xb   :  { %2339 = vmatpush1.bf16.xpose.msra.mxu0 %v3366_v6  ;;  %v3397_v29 = vld [vmem:[%s5168_s1 + $0x160] ss:$8 sps:$4 sm:$0xff]   ;;  %v3400_v31 = vld [vmem:[%s5168_s1 + $0x174] ss:$8 sps:$4 sm:$0xff]   ;;  %v3402_v33 = vld [vmem:[%s5168_s1 + $0x70] ss:$8 sps:$4 sm:$0xff]  }
   0xc   :  { %2380 = vmatpush1.bf16.xpose.msra.mxu1 %v3367_v7  ;;  %2340 = vmatprep.subr.bf16.mxu0 %v3368_v8  ;;  %3932 = vpow2.f32 %v2970_v27  ;;  %v3403_v34 = vld [vmem:[%s5168_s1 + $0x170] ss:$8 sps:$4 sm:$0xff]   ;;  %v3404_v36 = vld [vmem:[%s5168_s1 + $0x84] ss:$8 sps:$4 sm:$0xff]   ;;  %v3408_v41 = vld [vmem:[%s5168_s1 + $0x80] ss:$8 sps:$4 sm:$0xff]  }
   0xd   :  { %2381 = vmatprep.subr.bf16.mxu1 %v3370_v9  ;;  %v3406_v37 = vld [vmem:[%s5168_s1 + $0x184] ss:$8 sps:$4 sm:$0xff]   ;;  %v408_v43 = vshrl.u32 %v407_v40, 7  ;;  %v3409_v44 = vld [vmem:[%s5168_s1 + $0x180] ss:$8 sps:$4 sm:$0xff]  }
   0xe   :  { %v3410_v45 = vld [vmem:[%s5168_s1 + $0x94] ss:$8 sps:$4 sm:$0xff]   ;;  %v3414_v50 = vld [vmem:[%s5168_s1 + $0x90] ss:$8 sps:$4 sm:$0xff]   ;;  %v3416_v52 = vld [vmem:[%s5168_s1 + $0xa4] ss:$8 sps:$4 sm:$0xff]  }
   0xf   :  { %v3412_v46 = vld [vmem:[%s5168_s1 + $0x194] ss:$8 sps:$4 sm:$0xff]   ;;  %v4069_v47 = vsub.s32 %v406_v42, %v408_v43  ;;  %v3415_v51 = vld [vmem:[%s5168_s1 + $0x190] ss:$8 sps:$4 sm:$0xff]   ;;  %v3418_v53 = vld [vmem:[%s5168_s1 + $0x1a4] ss:$8 sps:$4 sm:$0xff]  }
  0x10   :  { %v3420_v57 = vld [vmem:[%s5168_s1 + $0xa0] ss:$8 sps:$4 sm:$0xff]   ;;  %v3422_v59 = vld [vmem:[%s5168_s1 + $0xb4] ss:$8 sps:$4 sm:$0xff]   ;;  %v3426_v61 = vld [vmem:[%s5168_s1 + $0xb0] ss:$8 sps:$4 sm:$0xff]  }
  0x11   :  { %v3421_v58 = vld [vmem:[%s5168_s1 + $0x1a0] ss:$8 sps:$4 sm:$0xff]   ;;  %v3424_v60 = vld [vmem:[%s5168_s1 + $0x1b4] ss:$8 sps:$4 sm:$0xff]   ;;  %v3427_v62 = vld [vmem:[%s5168_s1 + $0x1b0] ss:$8 sps:$4 sm:$0xff]  }
  0x12   :  { %v3428_v63 = vld [vmem:[%s5168_s1 + $0xc4] ss:$8 sps:$4 sm:$0xff]   ;;  %v3432_v1 = vld [vmem:[%s5168_s1 + $0xc0] ss:$8 sps:$4 sm:$0xff]   ;;  %v3434_v3 = vld [vmem:[%s5168_s1 + $0xd4] ss:$8 sps:$4 sm:$0xff]  }
  0x13   :  { %2341 = vmatpush1.bf16.xpose.msra.mxu0 %v3372_v10  ;;  %v3430_v0 = vld [vmem:[%s5168_s1 + $0x1c4] ss:$8 sps:$4 sm:$0xff]   ;;  %v3433_v2 = vld [vmem:[%s5168_s1 + $0x1c0] ss:$8 sps:$4 sm:$0xff]   ;;  %v3436_v4 = vld [vmem:[%s5168_s1 + $0x1d4] ss:$8 sps:$4 sm:$0xff]  }
  0x14   :  { %2382 = vmatpush1.bf16.xpose.msra.mxu1 %v3373_v11  ;;  %2342 = vmatprep.subr.bf16.mxu0 %v3374_v12  ;;  %v3438_v5 = vld [vmem:[%s5168_s1 + $0xd0] ss:$8 sps:$4 sm:$0xff]   ;;  %v3440_v7 = vld [vmem:[%s5168_s1 + $0xe4] ss:$8 sps:$4 sm:$0xff]   ;;  %v3444_v9 = vld [vmem:[%s5168_s1 + $0xe0] ss:$8 sps:$4 sm:$0xff]  }
  0x15   :  { %2383 = vmatprep.subr.bf16.mxu1 %v3376_v13  ;;  %v3439_v6 = vld [vmem:[%s5168_s1 + $0x1d0] ss:$8 sps:$4 sm:$0xff]   ;;  %v3442_v8 = vld [vmem:[%s5168_s1 + $0x1e4] ss:$8 sps:$4 sm:$0xff]   ;;  %v3445_v10 = vld [vmem:[%s5168_s1 + $0x1e0] ss:$8 sps:$4 sm:$0xff]  }
  0x16   :  { %v3933_v32 = vpop.eup %3932  ;;  %v3446_v11 = vld [vmem:[%s5168_s1 + $0xf4] ss:$8 sps:$4 sm:$0xff]   ;;  %v3450_v13 = vld [vmem:[%s5168_s1 + $0xf0] ss:$8 sps:$4 sm:$0xff]   ;;  %v3467_v27 = vld [vmem:[%s5168_s1 + $0x320] ss:$8 sps:$4 sm:$0xff]  }
  0x17   :  { %v15_v35 = vadd.f32 1.0, %v3933_v32  ;;  %v3448_v12 = vld [vmem:[%s5168_s1 + $0x1f4] ss:$8 sps:$4 sm:$0xff]   ;;  %v3478_v32 = vld [vmem:[%s5168_s1 + $0x244] ss:$8 sps:$4 sm:$0xff]  }
  0x18   :  { %v3482_v38 = vld [vmem:[%s5168_s1 + $0x250] ss:$8 sps:$4 sm:$0xff]   ;;  %v3490_v40 = vld [vmem:[%s5168_s1 + $0x264] ss:$8 sps:$4 sm:$0xff]   ;;  %v3488_v42 = vld [vmem:[%s5168_s1 + $0x260] ss:$8 sps:$4 sm:$0xff]  }
  0x19   :  { %3934 = vrcp.f32 %v15_v35  ;;  %v3479_v35 = vld [vmem:[%s5168_s1 + $0x340] ss:$8 sps:$4 sm:$0xff]   ;;  %v3485_v39 = vld [vmem:[%s5168_s1 + $0x350] ss:$8 sps:$4 sm:$0xff]  }
  0x1a   :  { %v3491_v43 = vld [vmem:[%s5168_s1 + $0x360] ss:$8 sps:$4 sm:$0xff]  }
  0x1b   :  { %2343 = vmatpush1.bf16.xpose.msra.mxu0 %v3378_v14  ;;  %v3451_v14 = vld [vmem:[%s5168_s1 + $0x1f0] ss:$8 sps:$4 sm:$0xff]  }
  0x1c   :  { %2384 = vmatpush1.bf16.xpose.msra.mxu1 %v3379_v15  ;;  %2344 = vmatprep.subr.bf16.mxu0 %v3380_v16  ;;  %v3454_v15 = vld [vmem:[%s5168_s1 + $0x204] ss:$8 sps:$4 sm:$0xff]  }
  0x1d   :  { %2385 = vmatprep.subr.bf16.mxu1 %v3382_v17  ;;  %v3457_v16 = vld [vmem:[%s5168_s1 + $0x304] ss:$8 sps:$4 sm:$0xff]   ;;  %v3452_v17 = vld [vmem:[%s5168_s1 + $0x200] ss:$8 sps:$4 sm:$0xff]  }
  0x23   :  { %2345 = vmatpush1.bf16.xpose.msra.mxu0 %v3384_v18  ;;  %v3935_v48 = vpop.eup %3934  ;;  %v3455_v18 = vld [vmem:[%s5168_s1 + $0x300] ss:$8 sps:$4 sm:$0xff]  }
  0x24   :  { %2386 = vmatpush1.bf16.xpose.msra.mxu1 %v3385_v19  ;;  %2346 = vmatprep.subr.bf16.mxu0 %v3386_v20  ;;  %v18_v49 = vmul.f32 %v3935_v48, %v11_v26  ;;  %v3460_v20 = vld [vmem:[%s5168_s1 + $0x214] ss:$8 sps:$4 sm:$0xff]   ;;  %v3464_v26 = vld [vmem:[%s5168_s1 + $0x220] ss:$8 sps:$4 sm:$0xff]   ;;  %v3497_v48 = vld [vmem:[%s5168_s1 + $0x370] ss:$8 sps:$4 sm:$0xff]  }
  0x25   :  { %2387 = vmatprep.subr.bf16.mxu1 %v3388_v21  ;;  %v3463_v21 = vld [vmem:[%s5168_s1 + $0x314] ss:$8 sps:$4 sm:$0xff]  }
  0x26   :  { %v410_v54 = vrot.slane %v18_v49, %v4069_v47  ;;  %v3502_v49 = vld [vmem:[%s5168_s1 + $0x284] ss:$8 sps:$4 sm:$0xff]  }
  0x28   :  { %v411_v55 = vcombine.high %v410_v54, %v410_v54  ;;  %v4166_v19 = vpack.c.bf16 %v410_v54, %v410_v54  ;;  %v3511_v54 = vld [vmem:[%s5168_s1 + $0x394] ss:$8 sps:$4 sm:$0xff]  }
  0x2a   :  { %v4084_v56 = vpack.c.bf16 %v411_v55, %v411_v55  ;;  %v3506_v55 = vld [vmem:[%s5168_s1 + $0x290] ss:$8 sps:$4 sm:$0xff]  }
  0x2b   :  { %2347 = vmatpush1.bf16.xpose.msra.mxu0 %v3390_v22  ;;  %v3458_v22 = vld [vmem:[%s5168_s1 + $0x210] ss:$8 sps:$4 sm:$0xff]  }
  0x2c   :  { %2388 = vmatpush1.bf16.xpose.msra.mxu1 %v3391_v23  ;;  %2348 = vmatprep.subr.bf16.mxu0 %v3392_v24  ;;  %v3461_v23 = vld [vmem:[%s5168_s1 + $0x310] ss:$8 sps:$4 sm:$0xff]   ;;  %v3466_v24 = vld [vmem:[%s5168_s1 + $0x224] ss:$8 sps:$4 sm:$0xff]  }
  0x2d   :  { %2389 = vmatprep.subr.bf16.mxu1 %v3394_v25  ;;  %2368 = vmatprep.mubr.bf16.mxu0 %v4084_v56  ;;  %v3469_v25 = vld [vmem:[%s5168_s1 + $0x324] ss:$8 sps:$4 sm:$0xff]  }
  0x2e   :  { %2409 = vmatprep.mubr.bf16.mxu1 %v4084_v56 }
  0x33   :  { %2349 = vmatpush1.bf16.xpose.msra.mxu0 %v3396_v28  ;;  %v3472_v28 = vld [vmem:[%s5168_s1 + $0x234] ss:$8 sps:$4 sm:$0xff]  }
  0x34   :  { %2390 = vmatpush1.bf16.xpose.msra.mxu1 %v3397_v29  ;;  %2350 = vmatprep.subr.bf16.mxu0 %v3398_v30  ;;  %v3475_v29 = vld [vmem:[%s5168_s1 + $0x334] ss:$8 sps:$4 sm:$0xff]   ;;  %v3470_v30 = vld [vmem:[%s5168_s1 + $0x230] ss:$8 sps:$4 sm:$0xff]  }
  0x35   :  { %2391 = vmatprep.subr.bf16.mxu1 %v3400_v31  ;;  %v3473_v31 = vld [vmem:[%s5168_s1 + $0x330] ss:$8 sps:$4 sm:$0xff]  }
  0x3b   :  { %2351 = vmatpush1.bf16.xpose.msra.mxu0 %v3402_v33  ;;  %v3481_v33 = vld [vmem:[%s5168_s1 + $0x344] ss:$8 sps:$4 sm:$0xff]  }
  0x3c   :  { %2392 = vmatpush1.bf16.xpose.msra.mxu1 %v3403_v34  ;;  %2352 = vmatprep.subr.bf16.mxu0 %v3404_v36  ;;  %v3476_v34 = vld [vmem:[%s5168_s1 + $0x240] ss:$8 sps:$4 sm:$0xff]   ;;  %v3484_v36 = vld [vmem:[%s5168_s1 + $0x254] ss:$8 sps:$4 sm:$0xff]  }
  0x3d   :  { %2393 = vmatprep.subr.bf16.mxu1 %v3406_v37  ;;  %v3487_v37 = vld [vmem:[%s5168_s1 + $0x354] ss:$8 sps:$4 sm:$0xff]  }
  0x43   :  { %2353 = vmatpush1.bf16.xpose.msra.mxu0 %v3408_v41  ;;  %v3493_v41 = vld [vmem:[%s5168_s1 + $0x364] ss:$8 sps:$4 sm:$0xff]  }
  0x44   :  { %2394 = vmatpush1.bf16.xpose.msra.mxu1 %v3409_v44  ;;  %2354 = vmatprep.subr.bf16.mxu0 %v3410_v45  ;;  %v3496_v44 = vld [vmem:[%s5168_s1 + $0x274] ss:$8 sps:$4 sm:$0xff]  }
  0x45   :  { %2395 = vmatprep.subr.bf16.mxu1 %v3412_v46  ;;  %v3499_v45 = vld [vmem:[%s5168_s1 + $0x374] ss:$8 sps:$4 sm:$0xff]   ;;  %v3494_v46 = vld [vmem:[%s5168_s1 + $0x270] ss:$8 sps:$4 sm:$0xff]  }
  0x4b   :  { %2355 = vmatpush1.bf16.xpose.msra.mxu0 %v3414_v50  ;;  %v3505_v50 = vld [vmem:[%s5168_s1 + $0x384] ss:$8 sps:$4 sm:$0xff]  }
  0x4c   :  { %2396 = vmatpush1.bf16.xpose.msra.mxu1 %v3415_v51  ;;  %2356 = vmatprep.subr.bf16.mxu0 %v3416_v52  ;;  %v3500_v51 = vld [vmem:[%s5168_s1 + $0x280] ss:$8 sps:$4 sm:$0xff]  }
  0x4d   :  { %2397 = vmatprep.subr.bf16.mxu1 %v3418_v53  ;;  %v3503_v52 = vld [vmem:[%s5168_s1 + $0x380] ss:$8 sps:$4 sm:$0xff]   ;;  %v3508_v53 = vld [vmem:[%s5168_s1 + $0x294] ss:$8 sps:$4 sm:$0xff]  }
  0x53   :  { %2357 = vmatpush1.bf16.xpose.msra.mxu0 %v3420_v57  ;;  %v3509_v57 = vld [vmem:[%s5168_s1 + $0x390] ss:$8 sps:$4 sm:$0xff]  }
  0x54   :  { %2398 = vmatpush1.bf16.xpose.msra.mxu1 %v3421_v58  ;;  %2358 = vmatprep.subr.bf16.mxu0 %v3422_v59  ;;  %v3514_v58 = vld [vmem:[%s5168_s1 + $0x2a4] ss:$8 sps:$4 sm:$0xff]  }
  0x55   :  { %2399 = vmatprep.subr.bf16.mxu1 %v3424_v60  ;;  %v3517_v59 = vld [vmem:[%s5168_s1 + $0x3a4] ss:$8 sps:$4 sm:$0xff]   ;;  %v3512_v60 = vld [vmem:[%s5168_s1 + $0x2a0] ss:$8 sps:$4 sm:$0xff]  }
  0x5b   :  { %2359 = vmatpush1.bf16.xpose.msra.mxu0 %v3426_v61  ;;  %v3515_v61 = vld [vmem:[%s5168_s1 + $0x3a0] ss:$8 sps:$4 sm:$0xff]  }
  0x5c   :  { %2400 = vmatpush1.bf16.xpose.msra.mxu1 %v3427_v62  ;;  %2360 = vmatprep.subr.bf16.mxu0 %v3428_v63  ;;  %v3520_v62 = vld [vmem:[%s5168_s1 + $0x2b4] ss:$8 sps:$4 sm:$0xff]  }
  0x5d   :  { %2401 = vmatprep.subr.bf16.mxu1 %v3430_v0  ;;  %v3523_v63 = vld [vmem:[%s5168_s1 + $0x3b4] ss:$8 sps:$4 sm:$0xff]   ;;  %v3518_v0 = vld [vmem:[%s5168_s1 + $0x2b0] ss:$8 sps:$4 sm:$0xff]  }
  0x63   :  { %2361 = vmatpush1.bf16.xpose.msra.mxu0 %v3432_v1  ;;  %v3521_v1 = vld [vmem:[%s5168_s1 + $0x3b0] ss:$8 sps:$4 sm:$0xff]  }
  0x64   :  { %2402 = vmatpush1.bf16.xpose.msra.mxu1 %v3433_v2  ;;  %2362 = vmatprep.subr.bf16.mxu0 %v3434_v3  ;;  %v3526_v2 = vld [vmem:[%s5168_s1 + $0x2c4] ss:$8 sps:$4 sm:$0xff]  }
  0x65   :  { %2403 = vmatprep.subr.bf16.mxu1 %v3436_v4  ;;  %v3529_v3 = vld [vmem:[%s5168_s1 + $0x3c4] ss:$8 sps:$4 sm:$0xff]   ;;  %v3524_v4 = vld [vmem:[%s5168_s1 + $0x2c0] ss:$8 sps:$4 sm:$0xff]  }
  0x6b   :  { %2363 = vmatpush1.bf16.xpose.msra.mxu0 %v3438_v5  ;;  %v3527_v5 = vld [vmem:[%s5168_s1 + $0x3c0] ss:$8 sps:$4 sm:$0xff]  }
  0x6c   :  { %2404 = vmatpush1.bf16.xpose.msra.mxu1 %v3439_v6  ;;  %2364 = vmatprep.subr.bf16.mxu0 %v3440_v7  ;;  %v3532_v6 = vld [vmem:[%s5168_s1 + $0x2d4] ss:$8 sps:$4 sm:$0xff]  }
  0x6d   :  { %2405 = vmatprep.subr.bf16.mxu1 %v3442_v8  ;;  %v3535_v7 = vld [vmem:[%s5168_s1 + $0x3d4] ss:$8 sps:$4 sm:$0xff]   ;;  %v3530_v8 = vld [vmem:[%s5168_s1 + $0x2d0] ss:$8 sps:$4 sm:$0xff]  }
  0x73   :  { %2365 = vmatpush1.bf16.xpose.msra.mxu0 %v3444_v9  ;;  %v3533_v9 = vld [vmem:[%s5168_s1 + $0x3d0] ss:$8 sps:$4 sm:$0xff]  }
  0x74   :  { %2406 = vmatpush1.bf16.xpose.msra.mxu1 %v3445_v10  ;;  %2366 = vmatprep.subr.bf16.mxu0 %v3446_v11  ;;  %v3538_v10 = vld [vmem:[%s5168_s1 + $0x2e4] ss:$8 sps:$4 sm:$0xff]  }
  0x75   :  { %2407 = vmatprep.subr.bf16.mxu1 %v3448_v12  ;;  %v3541_v11 = vld [vmem:[%s5168_s1 + $0x3e4] ss:$8 sps:$4 sm:$0xff]   ;;  %v3536_v12 = vld [vmem:[%s5168_s1 + $0x2e0] ss:$8 sps:$4 sm:$0xff]  }
  0x7b   :  { %2367 = vmatpush1.bf16.xpose.msra.mxu0 %v3450_v13  ;;  %v3539_v13 = vld [vmem:[%s5168_s1 + $0x3e0] ss:$8 sps:$4 sm:$0xff]  }
  0x7c   :  { %2408 = vmatpush1.bf16.xpose.msra.mxu1 %v3451_v14  ;;  %2418 = vmatprep.subr.bf16.mxu0 %v3454_v15  ;;  %v3544_v14 = vld [vmem:[%s5168_s1 + $0x2f4] ss:$8 sps:$4 sm:$0xff]  }
  0x7d   :  { %2459 = vmatprep.subr.bf16.mxu1 %v3457_v16  ;;  %v3547_v15 = vld [vmem:[%s5168_s1 + $0x3f4] ss:$8 sps:$4 sm:$0xff]   ;;  %v3542_v16 = vld [vmem:[%s5168_s1 + $0x2f0] ss:$8 sps:$4 sm:$0xff]  }
  0x82   :  { %2369 = vmatmul.mubr.bf16.vlgmr.msra.gmra.mrb[0].mxu0 %v4166_v19 }
  0x83   :  { %2410 = vmatmul.mubr.bf16.vlgmr.msra.gmra.mrb[0].mxu1 %v4166_v19  ;;  %2419 = vmatpush1.bf16.xpose.msra.mxu0 %v3452_v17  ;;  %v3545_v17 = vld [vmem:[%s5168_s1 + $0x3f0] ss:$8 sps:$4 sm:$0xff]  }
  0x84   :  { %2460 = vmatpush1.bf16.xpose.msra.mxu1 %v3455_v18  ;;  %2420 = vmatprep.subr.bf16.mxu0 %v3460_v20  ;;  %v3550_v18 = vld [vmem:[%s5168_s1 + $0x404] ss:$8 sps:$4 sm:$0xff]  }
  0x85   :  { %2461 = vmatprep.subr.bf16.mxu1 %v3463_v21  ;;  %2450 = vmatprep.mubr.bf16.mxu0 %v4084_v56  ;;  %v3553_v20 = vld [vmem:[%s5168_s1 + $0x504] ss:$8 sps:$4 sm:$0xff]   ;;  %v3548_v21 = vld [vmem:[%s5168_s1 + $0x400] ss:$8 sps:$4 sm:$0xff]  }
  0x86   :  { %2491 = vmatprep.mubr.bf16.mxu1 %v4084_v56 }
  0x8b   :  { %2421 = vmatpush1.bf16.xpose.msra.mxu0 %v3458_v22  ;;  %v3551_v22 = vld [vmem:[%s5168_s1 + $0x500] ss:$8 sps:$4 sm:$0xff]  }
  0x8c   :  { %2462 = vmatpush1.bf16.xpose.msra.mxu1 %v3461_v23  ;;  %2422 = vmatprep.subr.bf16.mxu0 %v3466_v24  ;;  %v3556_v23 = vld [vmem:[%s5168_s1 + $0x414] ss:$8 sps:$4 sm:$0xff]  }
  0x8d   :  { %2463 = vmatprep.subr.bf16.mxu1 %v3469_v25  ;;  %v3559_v24 = vld [vmem:[%s5168_s1 + $0x514] ss:$8 sps:$4 sm:$0xff]   ;;  %v3554_v25 = vld [vmem:[%s5168_s1 + $0x410] ss:$8 sps:$4 sm:$0xff]  }
  0x93   :  { %2423 = vmatpush1.bf16.xpose.msra.mxu0 %v3464_v26  ;;  %v3557_v26 = vld [vmem:[%s5168_s1 + $0x510] ss:$8 sps:$4 sm:$0xff]  }
  0x94   :  { %2464 = vmatpush1.bf16.xpose.msra.mxu1 %v3467_v27  ;;  %2424 = vmatprep.subr.bf16.mxu0 %v3472_v28  ;;  %v3562_v27 = vld [vmem:[%s5168_s1 + $0x424] ss:$8 sps:$4 sm:$0xff]  }
  0x95   :  { %2465 = vmatprep.subr.bf16.mxu1 %v3475_v29  ;;  %v3565_v28 = vld [vmem:[%s5168_s1 + $0x524] ss:$8 sps:$4 sm:$0xff]   ;;  %v3560_v29 = vld [vmem:[%s5168_s1 + $0x420] ss:$8 sps:$4 sm:$0xff]  }
  0x9b   :  { %2425 = vmatpush1.bf16.xpose.msra.mxu0 %v3470_v30  ;;  %v3563_v30 = vld [vmem:[%s5168_s1 + $0x520] ss:$8 sps:$4 sm:$0xff]  }
  0x9c   :  { %2466 = vmatpush1.bf16.xpose.msra.mxu1 %v3473_v31  ;;  %2426 = vmatprep.subr.bf16.mxu0 %v3478_v32  ;;  %v3568_v31 = vld [vmem:[%s5168_s1 + $0x434] ss:$8 sps:$4 sm:$0xff]  }
  0x9d   :  { %2467 = vmatprep.subr.bf16.mxu1 %v3481_v33  ;;  %v3571_v32 = vld [vmem:[%s5168_s1 + $0x534] ss:$8 sps:$4 sm:$0xff]   ;;  %v3566_v33 = vld [vmem:[%s5168_s1 + $0x430] ss:$8 sps:$4 sm:$0xff]  }
  0xa3   :  { %2427 = vmatpush1.bf16.xpose.msra.mxu0 %v3476_v34  ;;  %v3569_v34 = vld [vmem:[%s5168_s1 + $0x530] ss:$8 sps:$4 sm:$0xff]  }
  0xa4   :  { %2468 = vmatpush1.bf16.xpose.msra.mxu1 %v3479_v35  ;;  %2428 = vmatprep.subr.bf16.mxu0 %v3484_v36  ;;  %v3574_v35 = vld [vmem:[%s5168_s1 + $0x444] ss:$8 sps:$4 sm:$0xff]  }
  0xa5   :  { %2469 = vmatprep.subr.bf16.mxu1 %v3487_v37  ;;  %v3577_v36 = vld [vmem:[%s5168_s1 + $0x544] ss:$8 sps:$4 sm:$0xff]   ;;  %v3572_v37 = vld [vmem:[%s5168_s1 + $0x440] ss:$8 sps:$4 sm:$0xff]  }
  0xab   :  { %2429 = vmatpush1.bf16.xpose.msra.mxu0 %v3482_v38  ;;  %v3575_v38 = vld [vmem:[%s5168_s1 + $0x540] ss:$8 sps:$4 sm:$0xff]  }
  0xac   :  { %2470 = vmatpush1.bf16.xpose.msra.mxu1 %v3485_v39  ;;  %2430 = vmatprep.subr.bf16.mxu0 %v3490_v40  ;;  %v3580_v39 = vld [vmem:[%s5168_s1 + $0x454] ss:$8 sps:$4 sm:$0xff]  }
  0xad   :  { %2471 = vmatprep.subr.bf16.mxu1 %v3493_v41  ;;  %v3583_v40 = vld [vmem:[%s5168_s1 + $0x554] ss:$8 sps:$4 sm:$0xff]   ;;  %v3578_v41 = vld [vmem:[%s5168_s1 + $0x450] ss:$8 sps:$4 sm:$0xff]  }
  0xb3   :  { %2431 = vmatpush1.bf16.xpose.msra.mxu0 %v3488_v42  ;;  %v3581_v42 = vld [vmem:[%s5168_s1 + $0x550] ss:$8 sps:$4 sm:$0xff]  }
  0xb4   :  { %2472 = vmatpush1.bf16.xpose.msra.mxu1 %v3491_v43  ;;  %2432 = vmatprep.subr.bf16.mxu0 %v3496_v44  ;;  %v3586_v43 = vld [vmem:[%s5168_s1 + $0x464] ss:$8 sps:$4 sm:$0xff]  }
  0xb5   :  { %2473 = vmatprep.subr.bf16.mxu1 %v3499_v45  ;;  %v3589_v44 = vld [vmem:[%s5168_s1 + $0x564] ss:$8 sps:$4 sm:$0xff]   ;;  %v3584_v45 = vld [vmem:[%s5168_s1 + $0x460] ss:$8 sps:$4 sm:$0xff]  }
  0xbb   :  { %2433 = vmatpush1.bf16.xpose.msra.mxu0 %v3494_v46  ;;  %v3587_v46 = vld [vmem:[%s5168_s1 + $0x560] ss:$8 sps:$4 sm:$0xff]  }
  0xbc   :  { %2474 = vmatpush1.bf16.xpose.msra.mxu1 %v3497_v48  ;;  %2434 = vmatprep.subr.bf16.mxu0 %v3502_v49  ;;  %v3592_v48 = vld [vmem:[%s5168_s1 + $0x474] ss:$8 sps:$4 sm:$0xff]  }
  0xbd   :  { %2475 = vmatprep.subr.bf16.mxu1 %v3505_v50  ;;  %v3595_v49 = vld [vmem:[%s5168_s1 + $0x574] ss:$8 sps:$4 sm:$0xff]   ;;  %v3590_v50 = vld [vmem:[%s5168_s1 + $0x470] ss:$8 sps:$4 sm:$0xff]  }
  0xc3   :  { %2435 = vmatpush1.bf16.xpose.msra.mxu0 %v3500_v51  ;;  %v3593_v51 = vld [vmem:[%s5168_s1 + $0x570] ss:$8 sps:$4 sm:$0xff]  }
  0xc4   :  { %2476 = vmatpush1.bf16.xpose.msra.mxu1 %v3503_v52  ;;  %2436 = vmatprep.subr.bf16.mxu0 %v3508_v53  ;;  %v3598_v52 = vld [vmem:[%s5168_s1 + $0x484] ss:$8 sps:$4 sm:$0xff]  }
  0xc5   :  { %2477 = vmatprep.subr.bf16.mxu1 %v3511_v54  ;;  %v3601_v53 = vld [vmem:[%s5168_s1 + $0x584] ss:$8 sps:$4 sm:$0xff]   ;;  %v3596_v54 = vld [vmem:[%s5168_s1 + $0x480] ss:$8 sps:$4 sm:$0xff]  }
  0xcb   :  { %2437 = vmatpush1.bf16.xpose.msra.mxu0 %v3506_v55  ;;  %v3599_v55 = vld [vmem:[%s5168_s1 + $0x580] ss:$8 sps:$4 sm:$0xff]  }
  0xcc   :  { %2478 = vmatpush1.bf16.xpose.msra.mxu1 %v3509_v57  ;;  %2438 = vmatprep.subr.bf16.mxu0 %v3514_v58  ;;  %v3604_v57 = vld [vmem:[%s5168_s1 + $0x494] ss:$8 sps:$4 sm:$0xff]  }
  0xcd   :  { %2479 = vmatprep.subr.bf16.mxu1 %v3517_v59  ;;  %v3607_v58 = vld [vmem:[%s5168_s1 + $0x594] ss:$8 sps:$4 sm:$0xff]   ;;  %v3602_v59 = vld [vmem:[%s5168_s1 + $0x490] ss:$8 sps:$4 sm:$0xff]  }
  0xd3   :  { %2439 = vmatpush1.bf16.xpose.msra.mxu0 %v3512_v60  ;;  %v3605_v60 = vld [vmem:[%s5168_s1 + $0x590] ss:$8 sps:$4 sm:$0xff]  }
  0xd4   :  { %2480 = vmatpush1.bf16.xpose.msra.mxu1 %v3515_v61  ;;  %2440 = vmatprep.subr.bf16.mxu0 %v3520_v62  ;;  %v3610_v61 = vld [vmem:[%s5168_s1 + $0x4a4] ss:$8 sps:$4 sm:$0xff]  }
  0xd5   :  { %2481 = vmatprep.subr.bf16.mxu1 %v3523_v63  ;;  %v3613_v62 = vld [vmem:[%s5168_s1 + $0x5a4] ss:$8 sps:$4 sm:$0xff]   ;;  %v3608_v63 = vld [vmem:[%s5168_s1 + $0x4a0] ss:$8 sps:$4 sm:$0xff]  }
  0xdb   :  { %2441 = vmatpush1.bf16.xpose.msra.mxu0 %v3518_v0  ;;  %v3611_v0 = vld [vmem:[%s5168_s1 + $0x5a0] ss:$8 sps:$4 sm:$0xff]  }
  0xdc   :  { %2482 = vmatpush1.bf16.xpose.msra.mxu1 %v3521_v1  ;;  %2442 = vmatprep.subr.bf16.mxu0 %v3526_v2  ;;  %v3616_v1 = vld [vmem:[%s5168_s1 + $0x4b4] ss:$8 sps:$4 sm:$0xff]  }
  0xdd   :  { %2483 = vmatprep.subr.bf16.mxu1 %v3529_v3  ;;  %v3619_v2 = vld [vmem:[%s5168_s1 + $0x5b4] ss:$8 sps:$4 sm:$0xff]  }
  0xe3   :  { %2443 = vmatpush1.bf16.xpose.msra.mxu0 %v3524_v4 }
  0xe4   :  { %2484 = vmatpush1.bf16.xpose.msra.mxu1 %v3527_v5  ;;  %2444 = vmatprep.subr.bf16.mxu0 %v3532_v6 }
  0xe5   :  { %2485 = vmatprep.subr.bf16.mxu1 %v3535_v7 }
  0xeb   :  { %2445 = vmatpush1.bf16.xpose.msra.mxu0 %v3530_v8 }
  0xec   :  { %2486 = vmatpush1.bf16.xpose.msra.mxu1 %v3533_v9  ;;  %2446 = vmatprep.subr.bf16.mxu0 %v3538_v10 }
  0xed   :  { %2487 = vmatprep.subr.bf16.mxu1 %v3541_v11  ;;  %v3614_v11 = vld [vmem:[%s5168_s1 + $0x4b0] ss:$8 sps:$4 sm:$0xff]  }
  0xf3   :  { %2447 = vmatpush1.bf16.xpose.msra.mxu0 %v3536_v12  ;;  %v3617_v12 = vld [vmem:[%s5168_s1 + $0x5b0] ss:$8 sps:$4 sm:$0xff]  }
  0xf4   :  { %2488 = vmatpush1.bf16.xpose.msra.mxu1 %v3539_v13  ;;  %2448 = vmatprep.subr.bf16.mxu0 %v3544_v14 }
  0xf5   :  { %2489 = vmatprep.subr.bf16.mxu1 %v3547_v15  ;;  %v3622_v15 = vld [vmem:[%s5168_s1 + $0x4c4] ss:$8 sps:$4 sm:$0xff]  }
  0xfb   :  { %2449 = vmatpush1.bf16.xpose.msra.mxu0 %v3542_v16  ;;  %v3625_v16 = vld [vmem:[%s5168_s1 + $0x5c4] ss:$8 sps:$4 sm:$0xff]  }
  0xfc   :  { %2490 = vmatpush1.bf16.xpose.msra.mxu1 %v3545_v17  ;;  %2500 = vmatprep.subr.bf16.mxu0 %v3550_v18 }
  0xfd   :  { %2541 = vmatprep.subr.bf16.mxu1 %v3553_v20 }
 0x102   :  { %2451 = vmatmul.mubr.bf16.vlgmr.msra.gmra.mrb[4].mxu0 %v4166_v19 }
 0x103   :  { %2492 = vmatmul.mubr.bf16.vlgmr.msra.gmra.mrb[4].mxu1 %v4166_v19  ;;  %2501 = vmatpush1.bf16.xpose.msra.mxu0 %v3548_v21  ;;  %v3620_v21 = vld [vmem:[%s5168_s1 + $0x4c0] ss:$8 sps:$4 sm:$0xff]  }
 0x104   :  { %2542 = vmatpush1.bf16.xpose.msra.mxu1 %v3551_v22  ;;  %2502 = vmatprep.subr.bf16.mxu0 %v3556_v23  ;;  %v3623_v22 = vld [vmem:[%s5168_s1 + $0x5c0] ss:$8 sps:$4 sm:$0xff]   ;;  %v3628_v23 = vld [vmem:[%s5168_s1 + $0x4d4] ss:$8 sps:$4 sm:$0xff]  }
 0x105   :  { %2543 = vmatprep.subr.bf16.mxu1 %v3559_v24  ;;  %2532 = vmatprep.mubr.bf16.mxu0 %v4084_v56  ;;  %v3631_v24 = vld [vmem:[%s5168_s1 + $0x5d4] ss:$8 sps:$4 sm:$0xff]  }
 0x106   :  { %2573 = vmatprep.mubr.bf16.mxu1 %v4084_v56 }
 0x10b   :  { %2503 = vmatpush1.bf16.xpose.msra.mxu0 %v3554_v25  ;;  %v3626_v25 = vld [vmem:[%s5168_s1 + $0x4d0] ss:$8 sps:$4 sm:$0xff]  }
 0x10c   :  { %2544 = vmatpush1.bf16.xpose.msra.mxu1 %v3557_v26  ;;  %2504 = vmatprep.subr.bf16.mxu0 %v3562_v27  ;;  %v3629_v26 = vld [vmem:[%s5168_s1 + $0x5d0] ss:$8 sps:$4 sm:$0xff]   ;;  %v3634_v27 = vld [vmem:[%s5168_s1 + $0x4e4] ss:$8 sps:$4 sm:$0xff]  }
 0x10d   :  { %2545 = vmatprep.subr.bf16.mxu1 %v3565_v28  ;;  %v3637_v28 = vld [vmem:[%s5168_s1 + $0x5e4] ss:$8 sps:$4 sm:$0xff]  }
 0x113   :  { %2505 = vmatpush1.bf16.xpose.msra.mxu0 %v3560_v29  ;;  %v3632_v29 = vld [vmem:[%s5168_s1 + $0x4e0] ss:$8 sps:$4 sm:$0xff]  }
 0x114   :  { %2546 = vmatpush1.bf16.xpose.msra.mxu1 %v3563_v30  ;;  %2506 = vmatprep.subr.bf16.mxu0 %v3568_v31  ;;  %v3635_v30 = vld [vmem:[%s5168_s1 + $0x5e0] ss:$8 sps:$4 sm:$0xff]   ;;  %v3640_v31 = vld [vmem:[%s5168_s1 + $0x4f4] ss:$8 sps:$4 sm:$0xff]  }
 0x115   :  { %2547 = vmatprep.subr.bf16.mxu1 %v3571_v32  ;;  %v3643_v32 = vld [vmem:[%s5168_s1 + $0x5f4] ss:$8 sps:$4 sm:$0xff]  }
 0x11b   :  { %2507 = vmatpush1.bf16.xpose.msra.mxu0 %v3566_v33  ;;  %v3638_v33 = vld [vmem:[%s5168_s1 + $0x4f0] ss:$8 sps:$4 sm:$0xff]  }
 0x11c   :  { %2548 = vmatpush1.bf16.xpose.msra.mxu1 %v3569_v34  ;;  %2508 = vmatprep.subr.bf16.mxu0 %v3574_v35  ;;  %v3641_v34 = vld [vmem:[%s5168_s1 + $0x5f0] ss:$8 sps:$4 sm:$0xff]   ;;  %v3646_v35 = vld [vmem:[%s5168_s1 + $0x604] ss:$8 sps:$4 sm:$0xff]  }
 0x11d   :  { %2549 = vmatprep.subr.bf16.mxu1 %v3577_v36  ;;  %v3649_v36 = vld [vmem:[%s5168_s1 + $0x704] ss:$8 sps:$4 sm:$0xff]  }
 0x123   :  { %2509 = vmatpush1.bf16.xpose.msra.mxu0 %v3572_v37  ;;  %v3644_v37 = vld [vmem:[%s5168_s1 + $0x600] ss:$8 sps:$4 sm:$0xff]  }
 0x124   :  { %2550 = vmatpush1.bf16.xpose.msra.mxu1 %v3575_v38  ;;  %2510 = vmatprep.subr.bf16.mxu0 %v3580_v39  ;;  %v3647_v38 = vld [vmem:[%s5168_s1 + $0x700] ss:$8 sps:$4 sm:$0xff]   ;;  %v3652_v39 = vld [vmem:[%s5168_s1 + $0x614] ss:$8 sps:$4 sm:$0xff]  }
 0x125   :  { %2551 = vmatprep.subr.bf16.mxu1 %v3583_v40  ;;  %v3655_v40 = vld [vmem:[%s5168_s1 + $0x714] ss:$8 sps:$4 sm:$0xff]  }
 0x12b   :  { %2511 = vmatpush1.bf16.xpose.msra.mxu0 %v3578_v41  ;;  %v3650_v41 = vld [vmem:[%s5168_s1 + $0x610] ss:$8 sps:$4 sm:$0xff]  }
 0x12c   :  { %2552 = vmatpush1.bf16.xpose.msra.mxu1 %v3581_v42  ;;  %2512 = vmatprep.subr.bf16.mxu0 %v3586_v43  ;;  %v3653_v42 = vld [vmem:[%s5168_s1 + $0x710] ss:$8 sps:$4 sm:$0xff]   ;;  %v3658_v43 = vld [vmem:[%s5168_s1 + $0x624] ss:$8 sps:$4 sm:$0xff]  }
 0x12d   :  { %2553 = vmatprep.subr.bf16.mxu1 %v3589_v44  ;;  %v3661_v44 = vld [vmem:[%s5168_s1 + $0x724] ss:$8 sps:$4 sm:$0xff]  }
 0x133   :  { %2513 = vmatpush1.bf16.xpose.msra.mxu0 %v3584_v45  ;;  %v3656_v45 = vld [vmem:[%s5168_s1 + $0x620] ss:$8 sps:$4 sm:$0xff]  }
 0x134   :  { %2554 = vmatpush1.bf16.xpose.msra.mxu1 %v3587_v46  ;;  %2514 = vmatprep.subr.bf16.mxu0 %v3592_v48  ;;  %v3659_v46 = vld [vmem:[%s5168_s1 + $0x720] ss:$8 sps:$4 sm:$0xff]   ;;  %v3664_v48 = vld [vmem:[%s5168_s1 + $0x634] ss:$8 sps:$4 sm:$0xff]  }
 0x135   :  { %2555 = vmatprep.subr.bf16.mxu1 %v3595_v49  ;;  %v3667_v49 = vld [vmem:[%s5168_s1 + $0x734] ss:$8 sps:$4 sm:$0xff]  }
 0x13b   :  { %2515 = vmatpush1.bf16.xpose.msra.mxu0 %v3590_v50  ;;  %v3662_v50 = vld [vmem:[%s5168_s1 + $0x630] ss:$8 sps:$4 sm:$0xff]  }
 0x13c   :  { %2556 = vmatpush1.bf16.xpose.msra.mxu1 %v3593_v51  ;;  %2516 = vmatprep.subr.bf16.mxu0 %v3598_v52  ;;  %v3665_v51 = vld [vmem:[%s5168_s1 + $0x730] ss:$8 sps:$4 sm:$0xff]   ;;  %v3670_v52 = vld [vmem:[%s5168_s1 + $0x644] ss:$8 sps:$4 sm:$0xff]  }
 0x13d   :  { %2557 = vmatprep.subr.bf16.mxu1 %v3601_v53  ;;  %v3673_v53 = vld [vmem:[%s5168_s1 + $0x744] ss:$8 sps:$4 sm:$0xff]  }
 0x143   :  { %2517 = vmatpush1.bf16.xpose.msra.mxu0 %v3596_v54  ;;  %v3668_v54 = vld [vmem:[%s5168_s1 + $0x640] ss:$8 sps:$4 sm:$0xff]  }
 0x144   :  { %2558 = vmatpush1.bf16.xpose.msra.mxu1 %v3599_v55  ;;  %2518 = vmatprep.subr.bf16.mxu0 %v3604_v57  ;;  %v3671_v55 = vld [vmem:[%s5168_s1 + $0x740] ss:$8 sps:$4 sm:$0xff]   ;;  %v3676_v57 = vld [vmem:[%s5168_s1 + $0x654] ss:$8 sps:$4 sm:$0xff]  }
 0x145   :  { %2559 = vmatprep.subr.bf16.mxu1 %v3607_v58  ;;  %v3679_v58 = vld [vmem:[%s5168_s1 + $0x754] ss:$8 sps:$4 sm:$0xff]  }
 0x14b   :  { %2519 = vmatpush1.bf16.xpose.msra.mxu0 %v3602_v59  ;;  %v3674_v59 = vld [vmem:[%s5168_s1 + $0x650] ss:$8 sps:$4 sm:$0xff]  }
 0x14c   :  { %2560 = vmatpush1.bf16.xpose.msra.mxu1 %v3605_v60  ;;  %2520 = vmatprep.subr.bf16.mxu0 %v3610_v61  ;;  %v3677_v60 = vld [vmem:[%s5168_s1 + $0x750] ss:$8 sps:$4 sm:$0xff]   ;;  %v3682_v61 = vld [vmem:[%s5168_s1 + $0x664] ss:$8 sps:$4 sm:$0xff]  }
 0x14d   :  { %2561 = vmatprep.subr.bf16.mxu1 %v3613_v62  ;;  %v3685_v62 = vld [vmem:[%s5168_s1 + $0x764] ss:$8 sps:$4 sm:$0xff]  }
 0x153   :  { %2521 = vmatpush1.bf16.xpose.msra.mxu0 %v3608_v63  ;;  %v3680_v63 = vld [vmem:[%s5168_s1 + $0x660] ss:$8 sps:$4 sm:$0xff]  }
 0x154   :  { %2562 = vmatpush1.bf16.xpose.msra.mxu1 %v3611_v0  ;;  %2522 = vmatprep.subr.bf16.mxu0 %v3616_v1  ;;  %v3683_v0 = vld [vmem:[%s5168_s1 + $0x760] ss:$8 sps:$4 sm:$0xff]   ;;  %v3688_v1 = vld [vmem:[%s5168_s1 + $0x674] ss:$8 sps:$4 sm:$0xff]  }
 0x155   :  { %2563 = vmatprep.subr.bf16.mxu1 %v3619_v2  ;;  %v2370_v3 = vpop.f32.mrb[0].mxu0  ;;  %v3691_v2 = vld [vmem:[%s5168_s1 + $0x774] ss:$8 sps:$4 sm:$0xff]  }
 0x156   :  { %v2411_v4 = vpop.f32.mrb[0].mxu1  ;;  %v2372_v5 = vpop.f32.mrb[1].mxu0 }
 0x157   :  { %v2413_v6 = vpop.f32.mrb[1].mxu1  ;;  %v2852_v7 = vcombine.low %v2370_v3, %v2372_v5  ;;  %v2374_v9 = vpop.f32.mrb[2].mxu0  ;;  %v3686_v3 = vld [vmem:[%s5168_s1 + $0x670] ss:$8 sps:$4 sm:$0xff]   ;;  %v3694_v5 = vld [vmem:[%s5168_s1 + $0x684] ss:$8 sps:$4 sm:$0xff]  }
 0x158   :  { %v2853_v8 = vcombine.low %v2411_v4, %v2413_v6  ;;  %v2415_v10 = vpop.f32.mrb[2].mxu1  ;;  %v2375_v13 = vpop.f32.mrb[3].mxu0  ;;  %v3689_v4 = vld [vmem:[%s5168_s1 + $0x770] ss:$8 sps:$4 sm:$0xff]   ;;  %v3697_v6 = vld [vmem:[%s5168_s1 + $0x784] ss:$8 sps:$4 sm:$0xff]  }
 0x159   :  { %v2416_v14 = vpop.f32.mrb[3].mxu1  ;;  %v2860_v17 = vrot.slane %v2852_v7, %v4069_v47  ;;  %v3692_v7 = vld [vmem:[%s5168_s1 + $0x680] ss:$8 sps:$4 sm:$0xff]   ;;  %v3700_v9 = vld [vmem:[%s5168_s1 + $0x694] ss:$8 sps:$4 sm:$0xff]  }
 0x15a   :  { %v2867_v18 = vrot.slane %v2853_v8, %v4069_v47  ;;  %v3695_v8 = vld [vmem:[%s5168_s1 + $0x780] ss:$8 sps:$4 sm:$0xff]   ;;  %v3703_v10 = vld [vmem:[%s5168_s1 + $0x794] ss:$8 sps:$4 sm:$0xff]   ;;  %v3706_v13 = vld [vmem:[%s5168_s1 + $0x6a4] ss:$8 sps:$4 sm:$0xff]  }
 0x15b   :  { %2523 = vmatpush1.bf16.xpose.msra.mxu0 %v3614_v11  ;;  %v3698_v11 = vld [vmem:[%s5168_s1 + $0x690] ss:$8 sps:$4 sm:$0xff]   ;;  %v3709_v14 = vld [vmem:[%s5168_s1 + $0x7a4] ss:$8 sps:$4 sm:$0xff]  }
 0x15c   :  { %v2868_v20 = vcombine.low %v2860_v17, %v2867_v18  ;;  %2564 = vmatpush1.bf16.xpose.msra.mxu1 %v3617_v12  ;;  %2524 = vmatprep.subr.bf16.mxu0 %v3622_v15  ;;  %v3701_v12 = vld [vmem:[%s5168_s1 + $0x790] ss:$8 sps:$4 sm:$0xff]   ;;  %v3704_v15 = vld [vmem:[%s5168_s1 + $0x6a0] ss:$8 sps:$4 sm:$0xff]   ;;  %v3712_v17 = vld [vmem:[%s5168_s1 + $0x6b4] ss:$8 sps:$4 sm:$0xff]  }
 0x15d   :  { %2565 = vmatprep.subr.bf16.mxu1 %v3625_v16  ;;  %v3707_v16 = vld [vmem:[%s5168_s1 + $0x7a0] ss:$8 sps:$4 sm:$0xff]   ;;  %v3715_v18 = vld [vmem:[%s5168_s1 + $0x7b4] ss:$8 sps:$4 sm:$0xff]  }
 0x15e   :  { %2960 = vst [vmem:[%s5170_s2] sm:$0xff] %v2868_v20 }
 0x163   :  { %2525 = vmatpush1.bf16.xpose.msra.mxu0 %v3620_v21 }
 0x164   :  { %2566 = vmatpush1.bf16.xpose.msra.mxu1 %v3623_v22  ;;  %2526 = vmatprep.subr.bf16.mxu0 %v3628_v23 }
 0x165   :  { %2567 = vmatprep.subr.bf16.mxu1 %v3631_v24 }
 0x16b   :  { %2527 = vmatpush1.bf16.xpose.msra.mxu0 %v3626_v25 }
 0x16c   :  { %2568 = vmatpush1.bf16.xpose.msra.mxu1 %v3629_v26  ;;  %2528 = vmatprep.subr.bf16.mxu0 %v3634_v27 }
 0x16d   :  { %2569 = vmatprep.subr.bf16.mxu1 %v3637_v28  ;;  %v3710_v28 = vld [vmem:[%s5168_s1 + $0x6b0] ss:$8 sps:$4 sm:$0xff]  }
 0x173   :  { %2529 = vmatpush1.bf16.xpose.msra.mxu0 %v3632_v29  ;;  %v3713_v29 = vld [vmem:[%s5168_s1 + $0x7b0] ss:$8 sps:$4 sm:$0xff]  }
 0x174   :  { %2570 = vmatpush1.bf16.xpose.msra.mxu1 %v3635_v30  ;;  %2530 = vmatprep.subr.bf16.mxu0 %v3640_v31 }
 0x175   :  { %2571 = vmatprep.subr.bf16.mxu1 %v3643_v32  ;;  %v3718_v32 = vld [vmem:[%s5168_s1 + $0x6c4] ss:$8 sps:$4 sm:$0xff]  }
 0x17b   :  { %2531 = vmatpush1.bf16.xpose.msra.mxu0 %v3638_v33  ;;  %v3721_v33 = vld [vmem:[%s5168_s1 + $0x7c4] ss:$8 sps:$4 sm:$0xff]  }
 0x17c   :  { %2572 = vmatpush1.bf16.xpose.msra.mxu1 %v3641_v34  ;;  %2582 = vmatprep.subr.bf16.mxu0 %v3646_v35 }
 0x17d   :  { %2623 = vmatprep.subr.bf16.mxu1 %v3649_v36 }
 0x182   :  { %2533 = vmatmul.mubr.bf16.vlgmr.msra.gmra.mrb[8].mxu0 %v4166_v19 }
 0x183   :  { %2574 = vmatmul.mubr.bf16.vlgmr.msra.gmra.mrb[8].mxu1 %v4166_v19  ;;  %2583 = vmatpush1.bf16.xpose.msra.mxu0 %v3644_v37  ;;  %v3716_v37 = vld [vmem:[%s5168_s1 + $0x6c0] ss:$8 sps:$4 sm:$0xff]  }
 0x184   :  { %2624 = vmatpush1.bf16.xpose.msra.mxu1 %v3647_v38  ;;  %2584 = vmatprep.subr.bf16.mxu0 %v3652_v39  ;;  %v3719_v38 = vld [vmem:[%s5168_s1 + $0x7c0] ss:$8 sps:$4 sm:$0xff]   ;;  %v3724_v39 = vld [vmem:[%s5168_s1 + $0x6d4] ss:$8 sps:$4 sm:$0xff]  }
 0x185   :  { %2625 = vmatprep.subr.bf16.mxu1 %v3655_v40  ;;  %2614 = vmatprep.mubr.bf16.mxu0 %v4084_v56  ;;  %v3727_v40 = vld [vmem:[%s5168_s1 + $0x7d4] ss:$8 sps:$4 sm:$0xff]  }
 0x186   :  { %2655 = vmatprep.mubr.bf16.mxu1 %v4084_v56 }
 0x18b   :  { %2585 = vmatpush1.bf16.xpose.msra.mxu0 %v3650_v41  ;;  %v3722_v41 = vld [vmem:[%s5168_s1 + $0x6d0] ss:$8 sps:$4 sm:$0xff]  }
 0x18c   :  { %2626 = vmatpush1.bf16.xpose.msra.mxu1 %v3653_v42  ;;  %2586 = vmatprep.subr.bf16.mxu0 %v3658_v43  ;;  %v3725_v42 = vld [vmem:[%s5168_s1 + $0x7d0] ss:$8 sps:$4 sm:$0xff]   ;;  %v3730_v43 = vld [vmem:[%s5168_s1 + $0x6e4] ss:$8 sps:$4 sm:$0xff]  }
 0x18d   :  { %2627 = vmatprep.subr.bf16.mxu1 %v3661_v44  ;;  %v3733_v44 = vld [vmem:[%s5168_s1 + $0x7e4] ss:$8 sps:$4 sm:$0xff]  }
 0x193   :  { %2587 = vmatpush1.bf16.xpose.msra.mxu0 %v3656_v45  ;;  %v3728_v45 = vld [vmem:[%s5168_s1 + $0x6e0] ss:$8 sps:$4 sm:$0xff]  }
 0x194   :  { %2628 = vmatpush1.bf16.xpose.msra.mxu1 %v3659_v46  ;;  %2588 = vmatprep.subr.bf16.mxu0 %v3664_v48  ;;  %v3731_v46 = vld [vmem:[%s5168_s1 + $0x7e0] ss:$8 sps:$4 sm:$0xff]   ;;  %v3736_v48 = vld [vmem:[%s5168_s1 + $0x6f4] ss:$8 sps:$4 sm:$0xff]  }
 0x195   :  { %2629 = vmatprep.subr.bf16.mxu1 %v3667_v49  ;;  %v3739_v49 = vld [vmem:[%s5168_s1 + $0x7f4] ss:$8 sps:$4 sm:$0xff]  }
 0x19b   :  { %2589 = vmatpush1.bf16.xpose.msra.mxu0 %v3662_v50  ;;  %v3734_v50 = vld [vmem:[%s5168_s1 + $0x6f0] ss:$8 sps:$4 sm:$0xff]  }
 0x19c   :  { %2630 = vmatpush1.bf16.xpose.msra.mxu1 %v3665_v51  ;;  %2590 = vmatprep.subr.bf16.mxu0 %v3670_v52  ;;  %v3737_v51 = vld [vmem:[%s5168_s1 + $0x7f0] ss:$8 sps:$4 sm:$0xff]   ;;  %v3742_v52 = vld [vmem:[%s5168_s1 + $0x804] ss:$8 sps:$4 sm:$0xff]  }
 0x19d   :  { %2631 = vmatprep.subr.bf16.mxu1 %v3673_v53  ;;  %v3745_v53 = vld [vmem:[%s5168_s1 + $0x904] ss:$8 sps:$4 sm:$0xff]  }
 0x1a3   :  { %2591 = vmatpush1.bf16.xpose.msra.mxu0 %v3668_v54  ;;  %v3740_v54 = vld [vmem:[%s5168_s1 + $0x800] ss:$8 sps:$4 sm:$0xff]  }
 0x1a4   :  { %2632 = vmatpush1.bf16.xpose.msra.mxu1 %v3671_v55  ;;  %2592 = vmatprep.subr.bf16.mxu0 %v3676_v57  ;;  %v3743_v55 = vld [vmem:[%s5168_s1 + $0x900] ss:$8 sps:$4 sm:$0xff]   ;;  %v3748_v57 = vld [vmem:[%s5168_s1 + $0x814] ss:$8 sps:$4 sm:$0xff]  }
 0x1a5   :  { %2633 = vmatprep.subr.bf16.mxu1 %v3679_v58  ;;  %v3751_v58 = vld [vmem:[%s5168_s1 + $0x914] ss:$8 sps:$4 sm:$0xff]  }
 0x1ab   :  { %2593 = vmatpush1.bf16.xpose.msra.mxu0 %v3674_v59  ;;  %v3746_v59 = vld [vmem:[%s5168_s1 + $0x810] ss:$8 sps:$4 sm:$0xff]  }
 0x1ac   :  { %2634 = vmatpush1.bf16.xpose.msra.mxu1 %v3677_v60  ;;  %2594 = vmatprep.subr.bf16.mxu0 %v3682_v61  ;;  %v3749_v60 = vld [vmem:[%s5168_s1 + $0x910] ss:$8 sps:$4 sm:$0xff]   ;;  %v3754_v61 = vld [vmem:[%s5168_s1 + $0x824] ss:$8 sps:$4 sm:$0xff]  }
 0x1ad   :  { %2635 = vmatprep.subr.bf16.mxu1 %v3685_v62  ;;  %v3757_v62 = vld [vmem:[%s5168_s1 + $0x924] ss:$8 sps:$4 sm:$0xff]  }
 0x1b3   :  { %2595 = vmatpush1.bf16.xpose.msra.mxu0 %v3680_v63  ;;  %v3752_v63 = vld [vmem:[%s5168_s1 + $0x820] ss:$8 sps:$4 sm:$0xff]  }
 0x1b4   :  { %2636 = vmatpush1.bf16.xpose.msra.mxu1 %v3683_v0  ;;  %2596 = vmatprep.subr.bf16.mxu0 %v3688_v1  ;;  %v3755_v0 = vld [vmem:[%s5168_s1 + $0x920] ss:$8 sps:$4 sm:$0xff]   ;;  %v3760_v1 = vld [vmem:[%s5168_s1 + $0x834] ss:$8 sps:$4 sm:$0xff]  }
 0x1b5   :  { %2637 = vmatprep.subr.bf16.mxu1 %v3691_v2  ;;  %v3763_v2 = vld [vmem:[%s5168_s1 + $0x934] ss:$8 sps:$4 sm:$0xff]  }
 0x1bb   :  { %2597 = vmatpush1.bf16.xpose.msra.mxu0 %v3686_v3  ;;  %v3758_v3 = vld [vmem:[%s5168_s1 + $0x830] ss:$8 sps:$4 sm:$0xff]  }
 0x1bc   :  { %2638 = vmatpush1.bf16.xpose.msra.mxu1 %v3689_v4  ;;  %2598 = vmatprep.subr.bf16.mxu0 %v3694_v5  ;;  %v3761_v4 = vld [vmem:[%s5168_s1 + $0x930] ss:$8 sps:$4 sm:$0xff]   ;;  %v3766_v5 = vld [vmem:[%s5168_s1 + $0x844] ss:$8 sps:$4 sm:$0xff]  }
 0x1bd   :  { %2639 = vmatprep.subr.bf16.mxu1 %v3697_v6  ;;  %v3769_v6 = vld [vmem:[%s5168_s1 + $0x944] ss:$8 sps:$4 sm:$0xff]  }
 0x1c3   :  { %2599 = vmatpush1.bf16.xpose.msra.mxu0 %v3692_v7  ;;  %v3764_v7 = vld [vmem:[%s5168_s1 + $0x840] ss:$8 sps:$4 sm:$0xff]  }
 0x1c4   :  { %2640 = vmatpush1.bf16.xpose.msra.mxu1 %v3695_v8  ;;  %2600 = vmatprep.subr.bf16.mxu0 %v3700_v9  ;;  %v3767_v8 = vld [vmem:[%s5168_s1 + $0x940] ss:$8 sps:$4 sm:$0xff]   ;;  %v3772_v9 = vld [vmem:[%s5168_s1 + $0x854] ss:$8 sps:$4 sm:$0xff]  }
 0x1c5   :  { %2641 = vmatprep.subr.bf16.mxu1 %v3703_v10  ;;  %v3775_v10 = vld [vmem:[%s5168_s1 + $0x954] ss:$8 sps:$4 sm:$0xff]  }
 0x1cb   :  { %2601 = vmatpush1.bf16.xpose.msra.mxu0 %v3698_v11  ;;  %v3770_v11 = vld [vmem:[%s5168_s1 + $0x850] ss:$8 sps:$4 sm:$0xff]  }
 0x1cc   :  { %2642 = vmatpush1.bf16.xpose.msra.mxu1 %v3701_v12  ;;  %2602 = vmatprep.subr.bf16.mxu0 %v3706_v13  ;;  %v3773_v12 = vld [vmem:[%s5168_s1 + $0x950] ss:$8 sps:$4 sm:$0xff]   ;;  %v3778_v13 = vld [vmem:[%s5168_s1 + $0x864] ss:$8 sps:$4 sm:$0xff]  }
 0x1cd   :  { %2643 = vmatprep.subr.bf16.mxu1 %v3709_v14  ;;  %v3781_v14 = vld [vmem:[%s5168_s1 + $0x964] ss:$8 sps:$4 sm:$0xff]  }
 0x1d3   :  { %2603 = vmatpush1.bf16.xpose.msra.mxu0 %v3704_v15  ;;  %v3776_v15 = vld [vmem:[%s5168_s1 + $0x860] ss:$8 sps:$4 sm:$0xff]  }
 0x1d4   :  { %2644 = vmatpush1.bf16.xpose.msra.mxu1 %v3707_v16  ;;  %2604 = vmatprep.subr.bf16.mxu0 %v3712_v17  ;;  %v3779_v16 = vld [vmem:[%s5168_s1 + $0x960] ss:$8 sps:$4 sm:$0xff]   ;;  %v3784_v17 = vld [vmem:[%s5168_s1 + $0x874] ss:$8 sps:$4 sm:$0xff]  }
 0x1d5   :  { %2645 = vmatprep.subr.bf16.mxu1 %v3715_v18  ;;  %v2452_v20 = vpop.f32.mrb[4].mxu0  ;;  %v3787_v18 = vld [vmem:[%s5168_s1 + $0x974] ss:$8 sps:$4 sm:$0xff]  }
 0x1d6   :  { %v2493_v21 = vpop.f32.mrb[4].mxu1  ;;  %v2454_v22 = vpop.f32.mrb[5].mxu0 }
 0x1d7   :  { %v2495_v23 = vpop.f32.mrb[5].mxu1  ;;  %v2869_v24 = vcombine.low %v2452_v20, %v2454_v22  ;;  %v2456_v26 = vpop.f32.mrb[6].mxu0  ;;  %v3782_v20 = vld [vmem:[%s5168_s1 + $0x870] ss:$8 sps:$4 sm:$0xff]   ;;  %v3790_v22 = vld [vmem:[%s5168_s1 + $0x884] ss:$8 sps:$4 sm:$0xff]  }
 0x1d8   :  { %v2870_v25 = vcombine.low %v2493_v21, %v2495_v23  ;;  %v2497_v27 = vpop.f32.mrb[6].mxu1  ;;  %v2457_v30 = vpop.f32.mrb[7].mxu0  ;;  %v3785_v21 = vld [vmem:[%s5168_s1 + $0x970] ss:$8 sps:$4 sm:$0xff]   ;;  %v3793_v23 = vld [vmem:[%s5168_s1 + $0x984] ss:$8 sps:$4 sm:$0xff]  }
 0x1d9   :  { %v2498_v31 = vpop.f32.mrb[7].mxu1  ;;  %v2877_v34 = vrot.slane %v2869_v24, %v4069_v47  ;;  %v3788_v24 = vld [vmem:[%s5168_s1 + $0x880] ss:$8 sps:$4 sm:$0xff]   ;;  %v3796_v26 = vld [vmem:[%s5168_s1 + $0x894] ss:$8 sps:$4 sm:$0xff]  }
 0x1da   :  { %v2884_v35 = vrot.slane %v2870_v25, %v4069_v47  ;;  %v3791_v25 = vld [vmem:[%s5168_s1 + $0x980] ss:$8 sps:$4 sm:$0xff]   ;;  %v3799_v27 = vld [vmem:[%s5168_s1 + $0x994] ss:$8 sps:$4 sm:$0xff]   ;;  %v3802_v30 = vld [vmem:[%s5168_s1 + $0x8a4] ss:$8 sps:$4 sm:$0xff]  }
 0x1db   :  { %2605 = vmatpush1.bf16.xpose.msra.mxu0 %v3710_v28  ;;  %v3794_v28 = vld [vmem:[%s5168_s1 + $0x890] ss:$8 sps:$4 sm:$0xff]   ;;  %v3805_v31 = vld [vmem:[%s5168_s1 + $0x9a4] ss:$8 sps:$4 sm:$0xff]  }
 0x1dc   :  { %v2885_v36 = vcombine.low %v2877_v34, %v2884_v35  ;;  %2646 = vmatpush1.bf16.xpose.msra.mxu1 %v3713_v29  ;;  %2606 = vmatprep.subr.bf16.mxu0 %v3718_v32  ;;  %v3797_v29 = vld [vmem:[%s5168_s1 + $0x990] ss:$8 sps:$4 sm:$0xff]   ;;  %v3800_v32 = vld [vmem:[%s5168_s1 + $0x8a0] ss:$8 sps:$4 sm:$0xff]   ;;  %v3808_v34 = vld [vmem:[%s5168_s1 + $0x8b4] ss:$8 sps:$4 sm:$0xff]  }
 0x1dd   :  { %2647 = vmatprep.subr.bf16.mxu1 %v3721_v33  ;;  %v3803_v33 = vld [vmem:[%s5168_s1 + $0x9a0] ss:$8 sps:$4 sm:$0xff]   ;;  %v3811_v35 = vld [vmem:[%s5168_s1 + $0x9b4] ss:$8 sps:$4 sm:$0xff]  }
 0x1de   :  { %2961 = vst [vmem:[%s5170_s2 + $0x8] sm:$0xff] %v2885_v36 }
 0x1e3   :  { %2607 = vmatpush1.bf16.xpose.msra.mxu0 %v3716_v37 }
 0x1e4   :  { %2648 = vmatpush1.bf16.xpose.msra.mxu1 %v3719_v38  ;;  %2608 = vmatprep.subr.bf16.mxu0 %v3724_v39 }
 0x1e5   :  { %2649 = vmatprep.subr.bf16.mxu1 %v3727_v40 }
 0x1eb   :  { %2609 = vmatpush1.bf16.xpose.msra.mxu0 %v3722_v41 }
 0x1ec   :  { %2650 = vmatpush1.bf16.xpose.msra.mxu1 %v3725_v42  ;;  %2610 = vmatprep.subr.bf16.mxu0 %v3730_v43 }
 0x1ed   :  { %2651 = vmatprep.subr.bf16.mxu1 %v3733_v44  ;;  %v3806_v44 = vld [vmem:[%s5168_s1 + $0x8b0] ss:$8 sps:$4 sm:$0xff]  }
 0x1f3   :  { %2611 = vmatpush1.bf16.xpose.msra.mxu0 %v3728_v45  ;;  %v3809_v45 = vld [vmem:[%s5168_s1 + $0x9b0] ss:$8 sps:$4 sm:$0xff]  }
 0x1f4   :  { %2652 = vmatpush1.bf16.xpose.msra.mxu1 %v3731_v46  ;;  %2612 = vmatprep.subr.bf16.mxu0 %v3736_v48 }
 0x1f5   :  { %2653 = vmatprep.subr.bf16.mxu1 %v3739_v49  ;;  %v3814_v49 = vld [vmem:[%s5168_s1 + $0x8c4] ss:$8 sps:$4 sm:$0xff]  }
 0x1fb   :  { %2613 = vmatpush1.bf16.xpose.msra.mxu0 %v3734_v50  ;;  %v3817_v50 = vld [vmem:[%s5168_s1 + $0x9c4] ss:$8 sps:$4 sm:$0xff]  }
 0x1fc   :  { %2654 = vmatpush1.bf16.xpose.msra.mxu1 %v3737_v51  ;;  %2664 = vmatprep.subr.bf16.mxu0 %v3742_v52 }
 0x1fd   :  { %2705 = vmatprep.subr.bf16.mxu1 %v3745_v53 }
 0x202   :  { %2615 = vmatmul.mubr.bf16.vlgmr.msra.gmra.mrb[12].mxu0 %v4166_v19 }
 0x203   :  { %2656 = vmatmul.mubr.bf16.vlgmr.msra.gmra.mrb[12].mxu1 %v4166_v19  ;;  %2665 = vmatpush1.bf16.xpose.msra.mxu0 %v3740_v54  ;;  %v3812_v54 = vld [vmem:[%s5168_s1 + $0x8c0] ss:$8 sps:$4 sm:$0xff]  }
 0x204   :  { %2706 = vmatpush1.bf16.xpose.msra.mxu1 %v3743_v55  ;;  %2666 = vmatprep.subr.bf16.mxu0 %v3748_v57  ;;  %v3815_v55 = vld [vmem:[%s5168_s1 + $0x9c0] ss:$8 sps:$4 sm:$0xff]   ;;  %v3820_v57 = vld [vmem:[%s5168_s1 + $0x8d4] ss:$8 sps:$4 sm:$0xff]  }
 0x205   :  { %2707 = vmatprep.subr.bf16.mxu1 %v3751_v58  ;;  %2696 = vmatprep.mubr.bf16.mxu0 %v4084_v56  ;;  %v3823_v58 = vld [vmem:[%s5168_s1 + $0x9d4] ss:$8 sps:$4 sm:$0xff]  }
 0x206   :  { %2737 = vmatprep.mubr.bf16.mxu1 %v4084_v56 }
 0x20b   :  { %2667 = vmatpush1.bf16.xpose.msra.mxu0 %v3746_v59  ;;  %v3818_v59 = vld [vmem:[%s5168_s1 + $0x8d0] ss:$8 sps:$4 sm:$0xff]  }
 0x20c   :  { %2708 = vmatpush1.bf16.xpose.msra.mxu1 %v3749_v60  ;;  %2668 = vmatprep.subr.bf16.mxu0 %v3754_v61  ;;  %v3821_v60 = vld [vmem:[%s5168_s1 + $0x9d0] ss:$8 sps:$4 sm:$0xff]   ;;  %v3826_v61 = vld [vmem:[%s5168_s1 + $0x8e4] ss:$8 sps:$4 sm:$0xff]  }
 0x20d   :  { %2709 = vmatprep.subr.bf16.mxu1 %v3757_v62  ;;  %v3829_v62 = vld [vmem:[%s5168_s1 + $0x9e4] ss:$8 sps:$4 sm:$0xff]  }
 0x213   :  { %2669 = vmatpush1.bf16.xpose.msra.mxu0 %v3752_v63  ;;  %v3824_v63 = vld [vmem:[%s5168_s1 + $0x8e0] ss:$8 sps:$4 sm:$0xff]  }
 0x214   :  { %2710 = vmatpush1.bf16.xpose.msra.mxu1 %v3755_v0  ;;  %2670 = vmatprep.subr.bf16.mxu0 %v3760_v1  ;;  %v3827_v0 = vld [vmem:[%s5168_s1 + $0x9e0] ss:$8 sps:$4 sm:$0xff]   ;;  %v3832_v1 = vld [vmem:[%s5168_s1 + $0x8f4] ss:$8 sps:$4 sm:$0xff]  }
 0x215   :  { %2711 = vmatprep.subr.bf16.mxu1 %v3763_v2  ;;  %v3835_v2 = vld [vmem:[%s5168_s1 + $0x9f4] ss:$8 sps:$4 sm:$0xff]  }
 0x21b   :  { %2671 = vmatpush1.bf16.xpose.msra.mxu0 %v3758_v3  ;;  %v3830_v3 = vld [vmem:[%s5168_s1 + $0x8f0] ss:$8 sps:$4 sm:$0xff]  }
 0x21c   :  { %2712 = vmatpush1.bf16.xpose.msra.mxu1 %v3761_v4  ;;  %2672 = vmatprep.subr.bf16.mxu0 %v3766_v5  ;;  %v3833_v4 = vld [vmem:[%s5168_s1 + $0x9f0] ss:$8 sps:$4 sm:$0xff]   ;;  %v3838_v5 = vld [vmem:[%s5168_s1 + $0xa04] ss:$8 sps:$4 sm:$0xff]  }
 0x21d   :  { %2713 = vmatprep.subr.bf16.mxu1 %v3769_v6  ;;  %v3841_v6 = vld [vmem:[%s5168_s1 + $0xb04] ss:$8 sps:$4 sm:$0xff]  }
 0x223   :  { %2673 = vmatpush1.bf16.xpose.msra.mxu0 %v3764_v7  ;;  %v3836_v7 = vld [vmem:[%s5168_s1 + $0xa00] ss:$8 sps:$4 sm:$0xff]  }
 0x224   :  { %2714 = vmatpush1.bf16.xpose.msra.mxu1 %v3767_v8  ;;  %2674 = vmatprep.subr.bf16.mxu0 %v3772_v9  ;;  %v3839_v8 = vld [vmem:[%s5168_s1 + $0xb00] ss:$8 sps:$4 sm:$0xff]   ;;  %v3844_v9 = vld [vmem:[%s5168_s1 + $0xa14] ss:$8 sps:$4 sm:$0xff]  }
 0x225   :  { %2715 = vmatprep.subr.bf16.mxu1 %v3775_v10  ;;  %v3847_v10 = vld [vmem:[%s5168_s1 + $0xb14] ss:$8 sps:$4 sm:$0xff]  }
 0x22b   :  { %2675 = vmatpush1.bf16.xpose.msra.mxu0 %v3770_v11  ;;  %v3842_v11 = vld [vmem:[%s5168_s1 + $0xa10] ss:$8 sps:$4 sm:$0xff]  }
 0x22c   :  { %2716 = vmatpush1.bf16.xpose.msra.mxu1 %v3773_v12  ;;  %2676 = vmatprep.subr.bf16.mxu0 %v3778_v13  ;;  %v3845_v12 = vld [vmem:[%s5168_s1 + $0xb10] ss:$8 sps:$4 sm:$0xff]   ;;  %v3850_v13 = vld [vmem:[%s5168_s1 + $0xa24] ss:$8 sps:$4 sm:$0xff]  }
 0x22d   :  { %2717 = vmatprep.subr.bf16.mxu1 %v3781_v14  ;;  %v3853_v14 = vld [vmem:[%s5168_s1 + $0xb24] ss:$8 sps:$4 sm:$0xff]  }
 0x233   :  { %2677 = vmatpush1.bf16.xpose.msra.mxu0 %v3776_v15  ;;  %v3851_v15 = vld [vmem:[%s5168_s1 + $0xb20] ss:$8 sps:$4 sm:$0xff]  }
 0x234   :  { %2718 = vmatpush1.bf16.xpose.msra.mxu1 %v3779_v16  ;;  %2678 = vmatprep.subr.bf16.mxu0 %v3784_v17  ;;  %v3856_v16 = vld [vmem:[%s5168_s1 + $0xa34] ss:$8 sps:$4 sm:$0xff]  }
 0x235   :  { %2719 = vmatprep.subr.bf16.mxu1 %v3787_v18  ;;  %v3859_v17 = vld [vmem:[%s5168_s1 + $0xb34] ss:$8 sps:$4 sm:$0xff]   ;;  %v3854_v18 = vld [vmem:[%s5168_s1 + $0xa30] ss:$8 sps:$4 sm:$0xff]  }
 0x23b   :  { %2679 = vmatpush1.bf16.xpose.msra.mxu0 %v3782_v20  ;;  %v3857_v20 = vld [vmem:[%s5168_s1 + $0xb30] ss:$8 sps:$4 sm:$0xff]  }
 0x23c   :  { %2720 = vmatpush1.bf16.xpose.msra.mxu1 %v3785_v21  ;;  %2680 = vmatprep.subr.bf16.mxu0 %v3790_v22  ;;  %v3862_v21 = vld [vmem:[%s5168_s1 + $0xa44] ss:$8 sps:$4 sm:$0xff]  }
 0x23d   :  { %2721 = vmatprep.subr.bf16.mxu1 %v3793_v23  ;;  %v3865_v22 = vld [vmem:[%s5168_s1 + $0xb44] ss:$8 sps:$4 sm:$0xff]   ;;  %v3860_v23 = vld [vmem:[%s5168_s1 + $0xa40] ss:$8 sps:$4 sm:$0xff]  }
 0x243   :  { %2681 = vmatpush1.bf16.xpose.msra.mxu0 %v3788_v24  ;;  %v3863_v24 = vld [vmem:[%s5168_s1 + $0xb40] ss:$8 sps:$4 sm:$0xff]  }
 0x244   :  { %2722 = vmatpush1.bf16.xpose.msra.mxu1 %v3791_v25  ;;  %2682 = vmatprep.subr.bf16.mxu0 %v3796_v26  ;;  %v3868_v25 = vld [vmem:[%s5168_s1 + $0xa54] ss:$8 sps:$4 sm:$0xff]  }
 0x245   :  { %2723 = vmatprep.subr.bf16.mxu1 %v3799_v27  ;;  %v3871_v26 = vld [vmem:[%s5168_s1 + $0xb54] ss:$8 sps:$4 sm:$0xff]   ;;  %v3866_v27 = vld [vmem:[%s5168_s1 + $0xa50] ss:$8 sps:$4 sm:$0xff]  }
 0x24b   :  { %2683 = vmatpush1.bf16.xpose.msra.mxu0 %v3794_v28  ;;  %v3869_v28 = vld [vmem:[%s5168_s1 + $0xb50] ss:$8 sps:$4 sm:$0xff]  }
 0x24c   :  { %2724 = vmatpush1.bf16.xpose.msra.mxu1 %v3797_v29  ;;  %2684 = vmatprep.subr.bf16.mxu0 %v3802_v30  ;;  %v3874_v29 = vld [vmem:[%s5168_s1 + $0xa64] ss:$8 sps:$4 sm:$0xff]  }
 0x24d   :  { %2725 = vmatprep.subr.bf16.mxu1 %v3805_v31  ;;  %v3877_v30 = vld [vmem:[%s5168_s1 + $0xb64] ss:$8 sps:$4 sm:$0xff]   ;;  %v3872_v31 = vld [vmem:[%s5168_s1 + $0xa60] ss:$8 sps:$4 sm:$0xff]  }
 0x253   :  { %2685 = vmatpush1.bf16.xpose.msra.mxu0 %v3800_v32  ;;  %v3875_v32 = vld [vmem:[%s5168_s1 + $0xb60] ss:$8 sps:$4 sm:$0xff]  }
 0x254   :  { %2726 = vmatpush1.bf16.xpose.msra.mxu1 %v3803_v33  ;;  %2686 = vmatprep.subr.bf16.mxu0 %v3808_v34  ;;  %v3880_v33 = vld [vmem:[%s5168_s1 + $0xa74] ss:$8 sps:$4 sm:$0xff]  }
 0x255   :  { %2727 = vmatprep.subr.bf16.mxu1 %v3811_v35  ;;  %v2534_v36 = vpop.f32.mrb[8].mxu0  ;;  %v3883_v34 = vld [vmem:[%s5168_s1 + $0xb74] ss:$8 sps:$4 sm:$0xff]   ;;  %v3878_v35 = vld [vmem:[%s5168_s1 + $0xa70] ss:$8 sps:$4 sm:$0xff]  }
 0x256   :  { %v2575_v37 = vpop.f32.mrb[8].mxu1  ;;  %v2536_v38 = vpop.f32.mrb[9].mxu0 }
 0x257   :  { %v2577_v39 = vpop.f32.mrb[9].mxu1  ;;  %v2886_v40 = vcombine.low %v2534_v36, %v2536_v38  ;;  %v2538_v42 = vpop.f32.mrb[10].mxu0  ;;  %v3881_v36 = vld [vmem:[%s5168_s1 + $0xb70] ss:$8 sps:$4 sm:$0xff]   ;;  %v3889_v38 = vld [vmem:[%s5168_s1 + $0xb84] ss:$8 sps:$4 sm:$0xff]  }
 0x258   :  { %v2887_v41 = vcombine.low %v2575_v37, %v2577_v39  ;;  %v2579_v43 = vpop.f32.mrb[10].mxu1  ;;  %v2539_v46 = vpop.f32.mrb[11].mxu0  ;;  %v3886_v37 = vld [vmem:[%s5168_s1 + $0xa84] ss:$8 sps:$4 sm:$0xff]   ;;  %v3884_v39 = vld [vmem:[%s5168_s1 + $0xa80] ss:$8 sps:$4 sm:$0xff]  }
 0x259   :  { %v2580_v48 = vpop.f32.mrb[11].mxu1  ;;  %v2894_v51 = vrot.slane %v2886_v40, %v4069_v47  ;;  %v3887_v40 = vld [vmem:[%s5168_s1 + $0xb80] ss:$8 sps:$4 sm:$0xff]   ;;  %v3895_v42 = vld [vmem:[%s5168_s1 + $0xb94] ss:$8 sps:$4 sm:$0xff]  }
 0x25a   :  { %v2901_v52 = vrot.slane %v2887_v41, %v4069_v47  ;;  %v3892_v41 = vld [vmem:[%s5168_s1 + $0xa94] ss:$8 sps:$4 sm:$0xff]   ;;  %v3890_v43 = vld [vmem:[%s5168_s1 + $0xa90] ss:$8 sps:$4 sm:$0xff]   ;;  %v3901_v46 = vld [vmem:[%s5168_s1 + $0xba4] ss:$8 sps:$4 sm:$0xff]  }
 0x25b   :  { %2687 = vmatpush1.bf16.xpose.msra.mxu0 %v3806_v44  ;;  %v3893_v44 = vld [vmem:[%s5168_s1 + $0xb90] ss:$8 sps:$4 sm:$0xff]   ;;  %v3896_v48 = vld [vmem:[%s5168_s1 + $0xaa0] ss:$8 sps:$4 sm:$0xff]  }
 0x25c   :  { %v2902_v53 = vcombine.low %v2894_v51, %v2901_v52  ;;  %2728 = vmatpush1.bf16.xpose.msra.mxu1 %v3809_v45  ;;  %2688 = vmatprep.subr.bf16.mxu0 %v3814_v49  ;;  %v3898_v45 = vld [vmem:[%s5168_s1 + $0xaa4] ss:$8 sps:$4 sm:$0xff]   ;;  %v3899_v49 = vld [vmem:[%s5168_s1 + $0xba0] ss:$8 sps:$4 sm:$0xff]   ;;  %v3907_v51 = vld [vmem:[%s5168_s1 + $0xbb4] ss:$8 sps:$4 sm:$0xff]  }
 0x25d   :  { %2729 = vmatprep.subr.bf16.mxu1 %v3817_v50  ;;  %v3904_v50 = vld [vmem:[%s5168_s1 + $0xab4] ss:$8 sps:$4 sm:$0xff]  }
 0x25e   :  { %2962 = vst [vmem:[%s5170_s2 + $0x10] sm:$0xff] %v2902_v53 }
 0x263   :  { %2689 = vmatpush1.bf16.xpose.msra.mxu0 %v3812_v54 }
 0x264   :  { %2730 = vmatpush1.bf16.xpose.msra.mxu1 %v3815_v55  ;;  %2690 = vmatprep.subr.bf16.mxu0 %v3820_v57 }
 0x265   :  { %2731 = vmatprep.subr.bf16.mxu1 %v3823_v58 }
 0x26b   :  { %2691 = vmatpush1.bf16.xpose.msra.mxu0 %v3818_v59 }
 0x26c   :  { %2732 = vmatpush1.bf16.xpose.msra.mxu1 %v3821_v60  ;;  %2692 = vmatprep.subr.bf16.mxu0 %v3826_v61  ;;  %v3902_v61 = vld [vmem:[%s5168_s1 + $0xab0] ss:$8 sps:$4 sm:$0xff]  }
 0x26d   :  { %2733 = vmatprep.subr.bf16.mxu1 %v3829_v62  ;;  %v3905_v62 = vld [vmem:[%s5168_s1 + $0xbb0] ss:$8 sps:$4 sm:$0xff]  }
 0x273   :  { %2693 = vmatpush1.bf16.xpose.msra.mxu0 %v3824_v63 }
 0x274   :  { %2734 = vmatpush1.bf16.xpose.msra.mxu1 %v3827_v0  ;;  %2694 = vmatprep.subr.bf16.mxu0 %v3832_v1  ;;  %v3910_v1 = vld [vmem:[%s5168_s1 + $0xac4] ss:$8 sps:$4 sm:$0xff]  }
 0x275   :  { %2735 = vmatprep.subr.bf16.mxu1 %v3835_v2  ;;  %v3913_v2 = vld [vmem:[%s5168_s1 + $0xbc4] ss:$8 sps:$4 sm:$0xff]  }
 0x27b   :  { %2695 = vmatpush1.bf16.xpose.msra.mxu0 %v3830_v3 }
 0x27c   :  { %2736 = vmatpush1.bf16.xpose.msra.mxu1 %v3833_v4  ;;  %2746 = vmatprep.subr.bf16.mxu0 %v3838_v5 }
 0x27d   :  { %2787 = vmatprep.subr.bf16.mxu1 %v3841_v6  ;;  %v3908_v6 = vld [vmem:[%s5168_s1 + $0xac0] ss:$8 sps:$4 sm:$0xff]  }
 0x282   :  { %2697 = vmatmul.mubr.bf16.vlgmr.msra.gmra.mrb[16].mxu0 %v4166_v19 }
 0x283   :  { %2738 = vmatmul.mubr.bf16.vlgmr.msra.gmra.mrb[16].mxu1 %v4166_v19  ;;  %2747 = vmatpush1.bf16.xpose.msra.mxu0 %v3836_v7  ;;  %v3911_v7 = vld [vmem:[%s5168_s1 + $0xbc0] ss:$8 sps:$4 sm:$0xff]  }
 0x284   :  { %2788 = vmatpush1.bf16.xpose.msra.mxu1 %v3839_v8  ;;  %2748 = vmatprep.subr.bf16.mxu0 %v3844_v9  ;;  %v3916_v8 = vld [vmem:[%s5168_s1 + $0xad4] ss:$8 sps:$4 sm:$0xff]  }
 0x285   :  { %2789 = vmatprep.subr.bf16.mxu1 %v3847_v10  ;;  %2778 = vmatprep.mubr.bf16.mxu0 %v4084_v56  ;;  %v3919_v9 = vld [vmem:[%s5168_s1 + $0xbd4] ss:$8 sps:$4 sm:$0xff]   ;;  %v3914_v10 = vld [vmem:[%s5168_s1 + $0xad0] ss:$8 sps:$4 sm:$0xff]  }
 0x286   :  { %2819 = vmatprep.mubr.bf16.mxu1 %v4084_v56  ;;  %v3848_v56 = vld [vmem:[%s5168_s1 + $0xa20] ss:$8 sps:$4 sm:$0xff]  }
 0x28b   :  { %2749 = vmatpush1.bf16.xpose.msra.mxu0 %v3842_v11  ;;  %v3917_v11 = vld [vmem:[%s5168_s1 + $0xbd0] ss:$8 sps:$4 sm:$0xff]  }
 0x28c   :  { %2790 = vmatpush1.bf16.xpose.msra.mxu1 %v3845_v12  ;;  %2750 = vmatprep.subr.bf16.mxu0 %v3850_v13  ;;  %v3922_v12 = vld [vmem:[%s5168_s1 + $0xae4] ss:$8 sps:$4 sm:$0xff]  }
 0x28d   :  { %2791 = vmatprep.subr.bf16.mxu1 %v3853_v14  ;;  %v3925_v13 = vld [vmem:[%s5168_s1 + $0xbe4] ss:$8 sps:$4 sm:$0xff]   ;;  %v3920_v14 = vld [vmem:[%s5168_s1 + $0xae0] ss:$8 sps:$4 sm:$0xff]  }
 0x293   :  { %2751 = vmatpush1.bf16.xpose.msra.mxu0 %v3848_v56  ;;  %v3923_v56 = vld [vmem:[%s5168_s1 + $0xbe0] ss:$8 sps:$4 sm:$0xff]  }
 0x294   :  { %2792 = vmatpush1.bf16.xpose.msra.mxu1 %v3851_v15  ;;  %2752 = vmatprep.subr.bf16.mxu0 %v3856_v16  ;;  %v3928_v15 = vld [vmem:[%s5168_s1 + $0xaf4] ss:$8 sps:$4 sm:$0xff]  }
 0x295   :  { %2793 = vmatprep.subr.bf16.mxu1 %v3859_v17  ;;  %v3931_v16 = vld [vmem:[%s5168_s1 + $0xbf4] ss:$8 sps:$4 sm:$0xff]   ;;  %v3926_v17 = vld [vmem:[%s5168_s1 + $0xaf0] ss:$8 sps:$4 sm:$0xff]  }
 0x29b   :  { %2753 = vmatpush1.bf16.xpose.msra.mxu0 %v3854_v18  ;;  %v3929_v18 = vld [vmem:[%s5168_s1 + $0xbf0] ss:$8 sps:$4 sm:$0xff]  }
 0x29c   :  { %2794 = vmatpush1.bf16.xpose.msra.mxu1 %v3857_v20  ;;  %2754 = vmatprep.subr.bf16.mxu0 %v3862_v21 }
 0x29d   :  { %2795 = vmatprep.subr.bf16.mxu1 %v3865_v22 }
 0x2a3   :  { %2755 = vmatpush1.bf16.xpose.msra.mxu0 %v3860_v23 }
 0x2a4   :  { %2796 = vmatpush1.bf16.xpose.msra.mxu1 %v3863_v24  ;;  %2756 = vmatprep.subr.bf16.mxu0 %v3868_v25 }
 0x2a5   :  { %2797 = vmatprep.subr.bf16.mxu1 %v3871_v26 }
 0x2ab   :  { %2757 = vmatpush1.bf16.xpose.msra.mxu0 %v3866_v27 }
 0x2ac   :  { %2798 = vmatpush1.bf16.xpose.msra.mxu1 %v3869_v28  ;;  %2758 = vmatprep.subr.bf16.mxu0 %v3874_v29 }
 0x2ad   :  { %2799 = vmatprep.subr.bf16.mxu1 %v3877_v30 }
 0x2b3   :  { %2759 = vmatpush1.bf16.xpose.msra.mxu0 %v3872_v31 }
 0x2b4   :  { %2800 = vmatpush1.bf16.xpose.msra.mxu1 %v3875_v32  ;;  %2760 = vmatprep.subr.bf16.mxu0 %v3880_v33 }
 0x2b5   :  { %2801 = vmatprep.subr.bf16.mxu1 %v3883_v34 }
 0x2bb   :  { %2761 = vmatpush1.bf16.xpose.msra.mxu0 %v3878_v35 }
 0x2bc   :  { %2802 = vmatpush1.bf16.xpose.msra.mxu1 %v3881_v36  ;;  %2762 = vmatprep.subr.bf16.mxu0 %v3886_v37 }
 0x2bd   :  { %2803 = vmatprep.subr.bf16.mxu1 %v3889_v38 }
 0x2c3   :  { %2763 = vmatpush1.bf16.xpose.msra.mxu0 %v3884_v39 }
 0x2c4   :  { %2804 = vmatpush1.bf16.xpose.msra.mxu1 %v3887_v40  ;;  %2764 = vmatprep.subr.bf16.mxu0 %v3892_v41 }
 0x2c5   :  { %2805 = vmatprep.subr.bf16.mxu1 %v3895_v42 }
 0x2cb   :  { %2765 = vmatpush1.bf16.xpose.msra.mxu0 %v3890_v43 }
 0x2cc   :  { %2806 = vmatpush1.bf16.xpose.msra.mxu1 %v3893_v44  ;;  %2766 = vmatprep.subr.bf16.mxu0 %v3898_v45 }
 0x2cd   :  { %2807 = vmatprep.subr.bf16.mxu1 %v3901_v46 }
 0x2d3   :  { %2767 = vmatpush1.bf16.xpose.msra.mxu0 %v3896_v48 }
 0x2d4   :  { %2808 = vmatpush1.bf16.xpose.msra.mxu1 %v3899_v49  ;;  %2768 = vmatprep.subr.bf16.mxu0 %v3904_v50 }
 0x2d5   :  { %2809 = vmatprep.subr.bf16.mxu1 %v3907_v51  ;;  %v2616_v52 = vpop.f32.mrb[12].mxu0 }
 0x2d6   :  { %v2657_v53 = vpop.f32.mrb[12].mxu1  ;;  %v2618_v54 = vpop.f32.mrb[13].mxu0 }
 0x2d7   :  { %v2659_v55 = vpop.f32.mrb[13].mxu1  ;;  %v2903_v57 = vcombine.low %v2616_v52, %v2618_v54  ;;  %v2620_v59 = vpop.f32.mrb[14].mxu0 }
 0x2d8   :  { %v2904_v58 = vcombine.low %v2657_v53, %v2659_v55  ;;  %v2661_v60 = vpop.f32.mrb[14].mxu1  ;;  %v2621_v63 = vpop.f32.mrb[15].mxu0 }
 0x2d9   :  { %v2662_v0 = vpop.f32.mrb[15].mxu1  ;;  %v2911_v3 = vrot.slane %v2903_v57, %v4069_v47 }
 0x2da   :  { %v2918_v4 = vrot.slane %v2904_v58, %v4069_v47 }
 0x2db   :  { %2769 = vmatpush1.bf16.xpose.msra.mxu0 %v3902_v61 }
 0x2dc   :  { %v2919_v5 = vcombine.low %v2911_v3, %v2918_v4  ;;  %2810 = vmatpush1.bf16.xpose.msra.mxu1 %v3905_v62  ;;  %2770 = vmatprep.subr.bf16.mxu0 %v3910_v1 }
 0x2dd   :  { %2811 = vmatprep.subr.bf16.mxu1 %v3913_v2 }
 0x2de   :  { %2963 = vst [vmem:[%s5170_s2 + $0x18] sm:$0xff] %v2919_v5 }
 0x2e3   :  { %2771 = vmatpush1.bf16.xpose.msra.mxu0 %v3908_v6 }
 0x2e4   :  { %2812 = vmatpush1.bf16.xpose.msra.mxu1 %v3911_v7  ;;  %2772 = vmatprep.subr.bf16.mxu0 %v3916_v8 }
 0x2e5   :  { %2813 = vmatprep.subr.bf16.mxu1 %v3919_v9 }
 0x2eb   :  { %2773 = vmatpush1.bf16.xpose.msra.mxu0 %v3914_v10 }
 0x2ec   :  { %2814 = vmatpush1.bf16.xpose.msra.mxu1 %v3917_v11  ;;  %2774 = vmatprep.subr.bf16.mxu0 %v3922_v12 }
 0x2ed   :  { %2815 = vmatprep.subr.bf16.mxu1 %v3925_v13 }
 0x2f3   :  { %2775 = vmatpush1.bf16.xpose.msra.mxu0 %v3920_v14 }
 0x2f4   :  { %2816 = vmatpush1.bf16.xpose.msra.mxu1 %v3923_v56  ;;  %2776 = vmatprep.subr.bf16.mxu0 %v3928_v15 }
 0x2f5   :  { %2817 = vmatprep.subr.bf16.mxu1 %v3931_v16 }
 0x2fb   :  { %2777 = vmatpush1.bf16.xpose.msra.mxu0 %v3926_v17 }
 0x2fc   :  { %2818 = vmatpush1.bf16.xpose.msra.mxu1 %v3929_v18 }
 0x302   :  { %2779 = vmatmul.mubr.bf16.vlgmr.msra.gmra.mrb[20].mxu0 %v4166_v19 }
 0x303   :  { %2820 = vmatmul.mubr.bf16.vlgmr.msra.gmra.mrb[20].mxu1 %v4166_v19 }
 0x355   :  { %v2698_v20 = vpop.f32.mrb[16].mxu0 }
 0x356   :  { %v2739_v21 = vpop.f32.mrb[16].mxu1  ;;  %v2700_v22 = vpop.f32.mrb[17].mxu0 }
 0x357   :  { %v2741_v23 = vpop.f32.mrb[17].mxu1  ;;  %v2920_v24 = vcombine.low %v2698_v20, %v2700_v22  ;;  %v2702_v26 = vpop.f32.mrb[18].mxu0 }
 0x358   :  { %v2921_v25 = vcombine.low %v2739_v21, %v2741_v23  ;;  %v2743_v27 = vpop.f32.mrb[18].mxu1  ;;  %v2703_v28 = vpop.f32.mrb[19].mxu0 }
 0x359   :  { %v2744_v29 = vpop.f32.mrb[19].mxu1  ;;  %v2928_v30 = vrot.slane %v2920_v24, %v4069_v47 }
 0x35a   :  { %v2935_v31 = vrot.slane %v2921_v25, %v4069_v47 }
 0x35c   :  { %v2936_v32 = vcombine.low %v2928_v30, %v2935_v31 }
 0x35e   :  { %2964 = vst [vmem:[%s5170_s2 + $0x20] sm:$0xff] %v2936_v32 }
 0x3d5   :  { %v2780_v19 = vpop.f32.mrb[20].mxu0 }
 0x3d6   :  { %v2821_v33 = vpop.f32.mrb[20].mxu1  ;;  %v2782_v34 = vpop.f32.mrb[21].mxu0 }
 0x3d7   :  { %v2823_v35 = vpop.f32.mrb[21].mxu1  ;;  %v2937_v36 = vcombine.low %v2780_v19, %v2782_v34  ;;  %v2784_v38 = vpop.f32.mrb[22].mxu0 }
 0x3d8   :  { %v2938_v37 = vcombine.low %v2821_v33, %v2823_v35  ;;  %v2825_v39 = vpop.f32.mrb[22].mxu1  ;;  %v2785_v40 = vpop.f32.mrb[23].mxu0 }
 0x3d9   :  { %v2826_v41 = vpop.f32.mrb[23].mxu1  ;;  %v2945_v42 = vrot.slane %v2937_v36, %v4069_v47 }
 0x3da   :  { %v2952_v43 = vrot.slane %v2938_v37, %v4069_v47 }
 0x3dc   :  { %v2953_v44 = vcombine.low %v2945_v42, %v2952_v43 }
 0x3de   :  { %2965 = vst [vmem:[%s5170_s2 + $0x28] sm:$0xff] %v2953_v44 }

// kernel: aura_flow_joint_block_forward.10
= control target key start
LH: loop header
LB: loop body
LE: loop exit
PB: predicated region body
PF: predicated region fallthrough
CT: control target
= control target key end

     0   :  { %s2077_s0 = inlined_call_operand.hbm [shape: f32[2,8,256], index: 0, kind: input, shape index: {}]   ;;  %s2078_s1 = inlined_call_operand.hbm [shape: f32[2,12,256], index: 1, kind: input, shape index: {}]   ;;  %s2079_s2 = inlined_call_operand.hbm [shape: bf16[768,256], index: 2, kind: input, shape index: {}]   ;;  %s2080_s3 = inlined_call_operand.hbm [shape: bf16[2,6,24,128], index: 3, kind: input, shape index: {}, may-alias: {3,4}]   ;;  %s2081_s4 = inlined_call_operand.hbm [shape: bf16[2,6,24,128], index: 4, kind: output, shape index: {}, may-alias: {3,4}]  }
   0x1   :  { %2085 = sst [smem:[#allocation13_spill]] %s2077_s0 }
   0x2   :  { %9 = vsyncpa [#allocation3], 0 }
   0x3   :  { %11 = vsyncpa [#allocation3 + $0x1], 0 }
   0x4   :  { %12 = vsyncpa [#allocation6], 0 }
   0x5   :  { %14 = vsyncpa [#allocation6 + $0x1], 0 }
   0x6   :  { %15 = vsyncpa [#allocation4], 0 }
   0x7   :  { %17 = vsyncpa [#allocation4 + $0x1], 0  ;;  %s1790_s15 = smov 0   ;;  %s1792_s16 = smov 0  }
   0x8   :  { %s1794_s17 = smov 0   ;;  %s1796_s18 = smov 0  }
   0x9   :  { %s1798_s19 = smov 0   ;;  %s1800_s3 = smov 0  }
   0xa LB: > { %s1821_s20 = sadd.s32 4294967295, %s1752_s3   ;;  %s1207_s21 = sadd.s32 4294967294, %s1752_s3   ;;  %s1752_s3 = sphi %s1800_s3, %s23_s3   ;;  %s1748_s19 = sphi %s1798_s19, %s2105_s19   ;;  %s1744_s18 = sphi %s1796_s18, %s2104_s18   ;;  %s1740_s17 = sphi %s1794_s17, %s2103_s17   ;;  %s1736_s16 = sphi %s1792_s16, %s2102_s16   ;;  %s1732_s15 = sphi %s1790_s15, %s2101_s15  }
   0xb   : > { %p57_p0 = scmp.ne.s32.totalorder %s1736_s16, %s1732_s15  ;;  %p2082_p1 = scmp.eq.s32.totalorder %s1821_s20, 0 }
   0xc   : > { %p138_p3 = scmp.eq.s32.totalorder %s1207_s21, 1  ;;  %p1208_p5 = scmp.ge.s32.totalorder %s1752_s3, 1 }
   0xd   : > { %p1830_p4 = por %p2082_p1, %p57_p0  ;;  %p145_p7 = scmp.lt.s32.totalorder %s1752_s3, 3 }
   0xe   : > { %p1835_p6 = por %p138_p3, %p57_p0  ;;  %s1754_s25 = smov [#allocation7]  }
   0xf   : > { %s2086_s22 = scalar_select %p1830_p4, 1, 0 }
  0x10   : > { %s2087_s23 = scalar_select %p1835_p6, 1, 0 }
  0x11   : > { %p1840_p8 = pnand %p1208_p5, %p145_p7  ;;  %s157_s26 = sshll.u32 %s1754_s25, 4  ;;  %s158_s26 = int_to_ptr.vmem [resolvable:$true] %s157_s26 }
  0x12   : > { %s35_s28 = sadd.s32 1, %s1748_s19  ;;  %s1573_s5 = scalar_lea.hbm %s2079_s2, 12288 }
  0x13   : > { %s2088_s24 = scalar_select %p1840_p8, 1, 0 }
  0x14   : > { %p1344_p9 = pneg %p1840_p8  ;;  %p1574_p12 = scmp.ne.s32.totalorder %s2079_s2, %s1573_s5 }
  0x15   : > { %p1580_p5 = scmp.lt.u32.totalorder %s1573_s5, %s2079_s2 }
  0x16   : > { %p1849_p11 = pnand %p1344_p9, %p2082_p1 }
  0x18   : > { %p1575_p13 = pneg %p1849_p11 }
  0x1a   : > { %p1576_p0 = pnand %p1575_p13, %p1574_p12 }
  0x1c   : > { %p1577_p3 = pneg %p1576_p0 }
  0x1e   : > { %p1582_p7 = pnand %p1580_p5, %p1577_p3 }
  0x20   : > { %1585 = shalt.err (!%p1582_p7)
}
  0x21   : > { %s1586_s10 = scalar_lea.vmem %s158_s26, 12288  ;;  %p1594_p2 = scmp.lt.s32.totalorder %s158_s26, %s158_s26 }
  0x22   : > { %p1587_p9 = scmp.ne.s32.totalorder %s158_s26, %s1586_s10  ;;  %p1595_p6 = scmp.lt.s32.totalorder %s1586_s10, %s1586_s10 }
  0x24   : > { %p1589_p10 = pnand %p1587_p9, %p1575_p13  ;;  %p1596_p4 = por %p1595_p6, %p1594_p2 }
  0x26   : > { %p1590_p1 = pneg %p1589_p10 }
  0x28   : > { %p1597_p8 = pnand %p1596_p4, %p1590_p1 }
  0x2a   : > { %1600 = shalt.err (!%p1597_p8)
}
  0x2b   : > { %s1755_s11 = smov 128   ;;  %s1756_s12 = smov 8  }
  0x2c   : > { %1347 = dma.hbm_to_vmem [thread:$0]  (!%p1849_p11), %s2079_s2, 12288, %s158_s26, [#allocation6], %s1755_s11, %s1755_s11, %s1756_s12  }
  0x2d   : > { %p37_p1 = scmp.ge.s32.totalorder %s35_s28, 2  ;;  %s44_s21 = sadd.s32 1, %s1740_s17 }
  0x2e   : > { %p51_p2 = scmp.ne.s32.totalorder %s1740_s17, %s1736_s16  ;;  %p52_p4 = scmp.eq.s32.totalorder %s1752_s3, 0 }
  0x2f   : > { %s2107_s28 = smov (%p37_p1, %s35_s28), 0  ;;  %p2091_p8 = scmp.eq.s32.totalorder %s1821_s20, 1 }
  0x30   : > { %p1876_p6 = por %p52_p4, %p51_p2  ;;  %s39_s29 = ssub.s32 %s1748_s19, %s2107_s28 }
  0x31   : > { %p1882_p10 = por %p2091_p8, %p51_p2  ;;  %p1360_p11 = scmp.lt.s32.totalorder %s1752_s3, 2 }
  0x32   : > { %p42_p12 = scmp.eq.s32.totalorder %s39_s29, 0  ;;  %s1890_s26 = sand.u32 1, %s1740_s17  }
  0x33   : > { %s1211_s30 = sshll.u32 %s1890_s26, 4  ;;  %s1325_s6 = sshll.u32 %s1748_s19, 8 }
  0x34   : > { %s1894_s5 = scalar_select %p42_p12, %s1740_s17, %s44_s21  }
  0x35   : > { %s2093_s0 = sld [smem:[#allocation13_spill]]  ;;  %s175_s10 = scalar_lea.vmem [#allocation2], %s1211_s30 }
  0x36   : > { %s185_s11 = sshll.u32 %s175_s10, 4  ;;  %p1906_p13 = pnand %p1360_p11, %p1876_p6  ;;  %s1902_s11 = int_to_ptr.vmem [resolvable:$true] %s185_s11 }
  0x37   : > { %s1214_s13 = sshll.u32 %s1890_s26, 5  ;;  %s1326_s14 = sshll.u32 %s1748_s19, 9 }
  0x38   : > { %s172_s21 = scalar_lea.sflag [#allocation3], %s1890_s26  ;;  %p1603_p3 = pneg %p1906_p13 }
  0x3b   : > { %s1900_s9 = scalar_lea.hbm %s2093_s0, %s1325_s6  ;;  %s1606_s25 = scalar_lea.hbm %s2093_s0, 512 }
  0x3c   : > { %s1601_s29 = scalar_lea.hbm %s1900_s9, 256  ;;  %p1607_p9 = scmp.lt.u32.totalorder %s1900_s9, %s2093_s0 }
  0x3d   : > { %p1602_p0 = scmp.ne.s32.totalorder %s1900_s9, %s1601_s29  ;;  %p1608_p1 = scmp.lt.u32.totalorder %s1606_s25, %s1601_s29 }
  0x3e   : > { %p1610_p4 = scmp.lt.u32.totalorder %s1601_s29, %s1900_s9 }
  0x3f   : > { %p1604_p5 = pnand %p1603_p3, %p1602_p0  ;;  %p1609_p2 = por %p1608_p1, %p1607_p9 }
  0x41   : > { %p1605_p7 = pneg %p1604_p5  ;;  %p1611_p6 = por %p1610_p4, %p1609_p2 }
  0x43   : > { %p1612_p8 = pnand %p1611_p6, %p1605_p7 }
  0x45   : > { %1615 = shalt.err (!%p1612_p8)
}
  0x46   : > { %s1616_s10 = scalar_lea.vmem %s1902_s11, 256  ;;  %s1757_s30 = smov [#allocation2]  }
  0x47   : > { %p1617_p11 = scmp.ne.s32.totalorder %s1902_s11, %s1616_s10  ;;  %s1621_s6 = sshll.u32 %s1757_s30, 4  ;;  %s1622_s6 = int_to_ptr.vmem [resolvable:$false] %s1621_s6 }
  0x48   : > { %s1623_s7 = scalar_lea.vmem %s1622_s6, 512  ;;  %p1624_p5 = scmp.lt.s32.totalorder %s1902_s11, %s1622_s6 }
  0x49   : > { %p1619_p12 = pnand %p1617_p11, %p1603_p3  ;;  %p1625_p9 = scmp.lt.s32.totalorder %s1623_s7, %s1616_s10 }
  0x4b   : > { %p1620_p0 = pneg %p1619_p12  ;;  %p1626_p1 = por %p1625_p9, %p1624_p5 }
  0x4d   : > { %p1627_p2 = pnand %p1626_p1, %p1620_p0 }
  0x4f   : > { %1630 = shalt.err (!%p1627_p2)
}
  0x50   : > { %1351 = dma.hbm_to_vmem [thread:$0]  (!%p1906_p13), %s1900_s9, 256, %s1902_s11, %s172_s21  }
  0x51   : > { %s196_s29 = scalar_lea.vmem [#allocation5], %s1214_s13  ;;  %s192_s8 = sand.u32 1, %s1752_s3  }
  0x52   : > { %s203_s25 = sshll.u32 %s196_s29, 4  ;;  %s1948_s6 = scalar_lea.hbm %s2078_s1, %s1326_s14  ;;  %s1941_s25 = int_to_ptr.vmem [resolvable:$true] %s203_s25 }
  0x53   : > { %s1950_s7 = scalar_lea.sflag [#allocation6], %s192_s8  ;;  %s1631_s0 = scalar_lea.hbm %s1948_s6, 512 }
  0x54   : > { %p1632_p7 = scmp.ne.s32.totalorder %s1948_s6, %s1631_s0  ;;  %s1636_s11 = scalar_lea.hbm %s2078_s1, 1024 }
  0x55   : > { %p1637_p8 = scmp.lt.u32.totalorder %s1948_s6, %s2078_s1  ;;  %p1638_p11 = scmp.lt.u32.totalorder %s1636_s11, %s1631_s0 }
  0x56   : > { %p1634_p4 = pnand %p1632_p7, %p1603_p3  ;;  %p1640_p0 = scmp.lt.u32.totalorder %s1631_s0, %s1948_s6 }
  0x57   : > { %p1639_p12 = por %p1638_p11, %p1637_p8 }
  0x58   : > { %p1635_p6 = pneg %p1634_p4 }
  0x59   : > { %p1641_p5 = por %p1640_p0, %p1639_p12 }
  0x5b   : > { %p1642_p9 = pnand %p1641_p5, %p1635_p6 }
  0x5d   : > { %1645 = shalt.err (!%p1642_p9)
}
  0x5e   : > { %s1646_s14 = scalar_lea.vmem %s1941_s25, 512  ;;  %s1758_s29 = smov [#allocation5]  }
  0x5f   : > { %p1647_p1 = scmp.ne.s32.totalorder %s1941_s25, %s1646_s14  ;;  %s1651_s8 = sshll.u32 %s1758_s29, 4  ;;  %s1652_s8 = int_to_ptr.vmem [resolvable:$false] %s1651_s8 }
  0x60   : > { %s1653_s10 = scalar_lea.vmem %s1652_s8, 1024  ;;  %p1654_p4 = scmp.lt.s32.totalorder %s1941_s25, %s1652_s8 }
  0x61   : > { %p1649_p2 = pnand %p1647_p1, %p1603_p3  ;;  %p1655_p8 = scmp.lt.s32.totalorder %s1653_s10, %s1646_s14 }
  0x63   : > { %p1650_p7 = pneg %p1649_p2  ;;  %p1656_p11 = por %p1655_p8, %p1654_p4 }
  0x65   : > { %p1657_p12 = pnand %p1656_p11, %p1650_p7 }
  0x67   : > { %1660 = shalt.err (!%p1657_p12)
}
  0x68   : > { %s1759_s0 = smov 256   ;;  %s1760_s30 = smov 16  }
  0x69   : > { %1354 = dma.hbm_to_vmem [thread:$0]  (!%p1906_p13), %s1948_s6, 512, %s1941_s25, %s1950_s7, %s1759_s0, %s1759_s0, %s1760_s30  }
  0x6a   : > { %p2095_p3 = scmp.ne.s32.totalorder %s2088_s24, 0 }
  0x6b   : > { %s1979_s26 = sand.u32 (!%p2095_p3), 1, %s1736_s16   ;;  %p2096_p6 = scmp.ne.s32.totalorder (!%p2095_p3), %s2086_s22, 0 }
  0x6c   : > { %215 = sbr.rel (%p2095_p3) target bundleno = 986 (0x3da), region = 32  ;;  %s1218_s9 = sshll.u32 (!%p2095_p3), %s1979_s26, 4 }
  0x6d   : > { %s218_s11 = scalar_lea.sflag (!%p2095_p3), [#allocation3], %s1979_s26  ;;  %s221_s13 = scalar_lea.vmem (!%p2095_p3), [#allocation2], %s1218_s9 }
  0x73   : > { %1715 = dma.done.wait (%p2096_p6), %s218_s11, 256  }
  0x74   : > { %1717 = vsyncadd (%p2096_p6), %s218_s11, 4294967040  ;;  %s226_s12 = sand.u32 1, %s1821_s20   ;;  %s1219_s24 = sshll.u32 %s1979_s26, 5 }
  0x75   : > { %s227_s25 = scalar_lea.sflag [#allocation6], %s226_s12  ;;  %s1989_s6 = scalar_lea.vmem [#allocation5], %s1219_s24 }
  0x76   : > { %1719 = dma.done.wait (%p2096_p6), %s227_s25, 512  }
  0x77   : > { %1721 = vsyncadd (%p2096_p6), %s227_s25, 4294966784  ;;  %p2097_p13 = scmp.eq.s32.totalorder %s1821_s20, 0 }
  0x79   : > { %1723 = dma.done.wait (%p2097_p13), [#allocation6], 12288   ;;  %p2098_p0 = pmov %p2097_p13 }
  0x7a   : > { %v1999_v0 = vld [vmem:[%s221_s13] sm:$0xff]  ;;  %v2001_v1 = vld [vmem:[%s221_s13 + $0x8] sm:$0xff]  ;;  %s1333_s20 = smul.u32 24, %s1979_s26  ;;  %s1072_s10 = scalar_lea.sflag [#allocation4], %s1979_s26 }
  0x7b   : > { %1725 = vsyncadd (%p2098_p0), [#allocation6], 4294955008  ;;  %v267_v2 = vadd.f32 %v2001_v1, %v1999_v0  ;;  %v1419_v3 = vld [vmem:[#allocation7 + $0x4] ss:$8 sps:$4 sm:$0xff]   ;;  %v1421_v4 = vld [vmem:[#allocation7] ss:$8 sps:$4 sm:$0xff]  }
  0x7c   : > { %v1422_v5 = vld [vmem:[#allocation7 + $0x104] ss:$8 sps:$4 sm:$0xff]   ;;  %v1424_v6 = vld [vmem:[#allocation7 + $0x100] ss:$8 sps:$4 sm:$0xff]   ;;  %v1425_v7 = vld [vmem:[#allocation7 + $0x14] ss:$8 sps:$4 sm:$0xff]   ;;  %884 = vmatprep.subr.bf16.mxu0 %v1419_v3 }
  0x7d   : > { %268 = vadd.xlane.f32.xlu0 %v267_v2  ;;  %925 = vmatprep.subr.bf16.mxu1 %v1422_v5  ;;  %v1428_v8 = vld [vmem:[#allocation7 + $0x114] ss:$8 sps:$4 sm:$0xff]   ;;  %v1427_v9 = vld [vmem:[#allocation7 + $0x10] ss:$8 sps:$4 sm:$0xff]   ;;  %v1431_v11 = vld [vmem:[#allocation7 + $0x24] ss:$8 sps:$4 sm:$0xff]  }
  0x7e   : > { %885 = vmatpush1.bf16.xpose.msra.mxu0 %v1421_v4  ;;  %926 = vmatpush1.bf16.xpose.msra.mxu1 %v1424_v6  ;;  %v1430_v10 = vld [vmem:[#allocation7 + $0x110] ss:$8 sps:$4 sm:$0xff]   ;;  %v1434_v12 = vld [vmem:[#allocation7 + $0x124] ss:$8 sps:$4 sm:$0xff]   ;;  %v1433_v13 = vld [vmem:[#allocation7 + $0x20] ss:$8 sps:$4 sm:$0xff]  }
  0x7f   : > { %886 = vmatprep.subr.bf16.mxu0 %v1425_v7  ;;  %927 = vmatprep.subr.bf16.mxu1 %v1428_v8  ;;  %v1436_v14 = vld [vmem:[#allocation7 + $0x120] ss:$8 sps:$4 sm:$0xff]   ;;  %v1437_v15 = vld [vmem:[#allocation7 + $0x34] ss:$8 sps:$4 sm:$0xff]   ;;  %v1439_v17 = vld [vmem:[#allocation7 + $0x30] ss:$8 sps:$4 sm:$0xff]  }
  0x80   : > { %v1440_v16 = vld [vmem:[#allocation7 + $0x134] ss:$8 sps:$4 sm:$0xff]   ;;  %v1442_v18 = vld [vmem:[#allocation7 + $0x130] ss:$8 sps:$4 sm:$0xff]   ;;  %v1443_v19 = vld [vmem:[#allocation7 + $0x44] ss:$8 sps:$4 sm:$0xff]  }
  0x81   : > { %v1446_v20 = vld [vmem:[#allocation7 + $0x144] ss:$8 sps:$4 sm:$0xff]   ;;  %v1445_v21 = vld [vmem:[#allocation7 + $0x40] ss:$8 sps:$4 sm:$0xff]   ;;  %v1449_v23 = vld [vmem:[#allocation7 + $0x54] ss:$8 sps:$4 sm:$0xff]  }
  0x82   : > { %v1448_v22 = vld [vmem:[#allocation7 + $0x140] ss:$8 sps:$4 sm:$0xff]   ;;  %v1452_v24 = vld [vmem:[#allocation7 + $0x154] ss:$8 sps:$4 sm:$0xff]   ;;  %v1451_v25 = vld [vmem:[#allocation7 + $0x50] ss:$8 sps:$4 sm:$0xff]  }
  0x83   : > { %v1454_v26 = vld [vmem:[#allocation7 + $0x150] ss:$8 sps:$4 sm:$0xff]   ;;  %v1455_v27 = vld [vmem:[#allocation7 + $0x64] ss:$8 sps:$4 sm:$0xff]   ;;  %v1457_v29 = vld [vmem:[#allocation7 + $0x60] ss:$8 sps:$4 sm:$0xff]  }
  0x84   : > { %v1458_v28 = vld [vmem:[#allocation7 + $0x164] ss:$8 sps:$4 sm:$0xff]   ;;  %v1460_v30 = vld [vmem:[#allocation7 + $0x160] ss:$8 sps:$4 sm:$0xff]   ;;  %v1461_v31 = vld [vmem:[#allocation7 + $0x74] ss:$8 sps:$4 sm:$0xff]  }
  0x85   : > { %v1464_v32 = vld [vmem:[#allocation7 + $0x174] ss:$8 sps:$4 sm:$0xff]   ;;  %v1463_v33 = vld [vmem:[#allocation7 + $0x70] ss:$8 sps:$4 sm:$0xff]   ;;  %v1467_v35 = vld [vmem:[#allocation7 + $0x84] ss:$8 sps:$4 sm:$0xff]  }
  0x86   : > { %887 = vmatpush1.bf16.xpose.msra.mxu0 %v1427_v9  ;;  %928 = vmatpush1.bf16.xpose.msra.mxu1 %v1430_v10  ;;  %v1466_v34 = vld [vmem:[#allocation7 + $0x170] ss:$8 sps:$4 sm:$0xff]   ;;  %v1470_v36 = vld [vmem:[#allocation7 + $0x184] ss:$8 sps:$4 sm:$0xff]   ;;  %v1469_v37 = vld [vmem:[#allocation7 + $0x80] ss:$8 sps:$4 sm:$0xff]  }
  0x87   : > { %888 = vmatprep.subr.bf16.mxu0 %v1431_v11  ;;  %929 = vmatprep.subr.bf16.mxu1 %v1434_v12  ;;  %v1472_v38 = vld [vmem:[#allocation7 + $0x180] ss:$8 sps:$4 sm:$0xff]   ;;  %v1473_v39 = vld [vmem:[#allocation7 + $0x94] ss:$8 sps:$4 sm:$0xff]   ;;  %v1475_v41 = vld [vmem:[#allocation7 + $0x90] ss:$8 sps:$4 sm:$0xff]  }
  0x88   : > { %v1476_v40 = vld [vmem:[#allocation7 + $0x194] ss:$8 sps:$4 sm:$0xff]   ;;  %v1478_v42 = vld [vmem:[#allocation7 + $0x190] ss:$8 sps:$4 sm:$0xff]   ;;  %v1479_v43 = vld [vmem:[#allocation7 + $0xa4] ss:$8 sps:$4 sm:$0xff]  }
  0x89   : > { %v1482_v44 = vld [vmem:[#allocation7 + $0x1a4] ss:$8 sps:$4 sm:$0xff]   ;;  %v1481_v45 = vld [vmem:[#allocation7 + $0xa0] ss:$8 sps:$4 sm:$0xff]   ;;  %v1485_v47 = vld [vmem:[#allocation7 + $0xb4] ss:$8 sps:$4 sm:$0xff]  }
  0x8a   : > { %v1484_v46 = vld [vmem:[#allocation7 + $0x1a0] ss:$8 sps:$4 sm:$0xff]   ;;  %v1488_v48 = vld [vmem:[#allocation7 + $0x1b4] ss:$8 sps:$4 sm:$0xff]   ;;  %v1487_v49 = vld [vmem:[#allocation7 + $0xb0] ss:$8 sps:$4 sm:$0xff]  }
  0x8b   : > { %v1490_v50 = vld [vmem:[#allocation7 + $0x1b0] ss:$8 sps:$4 sm:$0xff]   ;;  %v1491_v51 = vld [vmem:[#allocation7 + $0xc4] ss:$8 sps:$4 sm:$0xff]   ;;  %v1493_v53 = vld [vmem:[#allocation7 + $0xc0] ss:$8 sps:$4 sm:$0xff]  }
  0x8c   : > { %v1494_v52 = vld [vmem:[#allocation7 + $0x1c4] ss:$8 sps:$4 sm:$0xff]   ;;  %v1496_v54 = vld [vmem:[#allocation7 + $0x1c0] ss:$8 sps:$4 sm:$0xff]   ;;  %v1497_v55 = vld [vmem:[#allocation7 + $0xd4] ss:$8 sps:$4 sm:$0xff]  }
  0x8d   : > { %v1499_v63 = vld [vmem:[#allocation7 + $0xd0] ss:$8 sps:$4 sm:$0xff]   ;;  %v1500_v2 = vld [vmem:[#allocation7 + $0x1d4] ss:$8 sps:$4 sm:$0xff]   ;;  %v1503_v4 = vld [vmem:[#allocation7 + $0xe4] ss:$8 sps:$4 sm:$0xff]  }
  0x8e   : > { %889 = vmatpush1.bf16.xpose.msra.mxu0 %v1433_v13  ;;  %930 = vmatpush1.bf16.xpose.msra.mxu1 %v1436_v14  ;;  %v1502_v3 = vld [vmem:[#allocation7 + $0x1d0] ss:$8 sps:$4 sm:$0xff]   ;;  %v1505_v5 = vld [vmem:[#allocation7 + $0xe0] ss:$8 sps:$4 sm:$0xff]   ;;  %v1506_v6 = vld [vmem:[#allocation7 + $0x1e4] ss:$8 sps:$4 sm:$0xff]   ;;  %v286_v13 = vlaneseq }
  0x8f   : > { %890 = vmatprep.subr.bf16.mxu0 %v1437_v15  ;;  %931 = vmatprep.subr.bf16.mxu1 %v1440_v16  ;;  %v1508_v7 = vld [vmem:[#allocation7 + $0x1e0] ss:$8 sps:$4 sm:$0xff]   ;;  %v1509_v8 = vld [vmem:[#allocation7 + $0xf4] ss:$8 sps:$4 sm:$0xff]   ;;  %v1514_v9 = vld [vmem:[#allocation7 + $0x1f0] ss:$8 sps:$4 sm:$0xff]  }
  0x90   : > { %v1517_v10 = vld [vmem:[#allocation7 + $0x204] ss:$8 sps:$4 sm:$0xff]   ;;  %v287_v15 = vshrl.u32 %v286_v13, 7  ;;  %s2015_s22 = scalar_lea.vmem [#allocation8], %s1333_s20  ;;  %s1322_s7 = smul.u32 1152, %s1744_s18 }
  0x91   : > { %v264_v16 = vld [vmem:[%s1989_s6 + $0x8] sm:$0xff]  ;;  %s1087_s21 = sshll.u32 %s2015_s22, 4  ;;  %s1761_s30 = smov [#allocation8]   ;;  %s2024_s21 = int_to_ptr.vmem [resolvable:$true] %s1087_s21 }
  0x92   : > { %s1151_s8 = scalar_lea.hbm %s2081_s4, %s1322_s7  ;;  %s1661_s0 = scalar_lea.vmem %s2024_s21, 384 }
  0x93   : > { %s2027_s18 = scalar_lea.hbm %s1151_s8, 128  ;;  %p1662_p5 = scmp.ne.s32.totalorder %s2024_s21, %s1661_s0 }
  0x94   : > { %s1665_s9 = sshll.u32 %s1761_s30, 4  ;;  %s1666_s9 = int_to_ptr.vmem [resolvable:$false] %s1665_s9 }
  0x95   : > { %p1663_p9 = pnand %p1662_p5, %p1882_p10  ;;  %s1667_s11 = scalar_lea.vmem %s1666_s9, 768 }
  0x96   : > { %891 = vmatpush1.bf16.xpose.msra.mxu0 %v1439_v17  ;;  %932 = vmatpush1.bf16.xpose.msra.mxu1 %v1442_v18  ;;  %v263_v17 = vld [vmem:[%s1989_s6] sm:$0xff]  ;;  %v285_v18 = vadd.f32 1.0, %v264_v16  ;;  %p1668_p2 = scmp.lt.s32.totalorder %s2024_s21, %s1666_s9  ;;  %p1669_p7 = scmp.lt.s32.totalorder %s1667_s11, %s1661_s0 }
  0x97   : > { %892 = vmatprep.subr.bf16.mxu0 %v1443_v19  ;;  %933 = vmatprep.subr.bf16.mxu1 %v1446_v20  ;;  %v288_v19 = vsub.s32 7, %v287_v15  ;;  %v284_v20 = vadd.f32 1.0, %v263_v17  ;;  %p1664_p1 = pneg %p1663_p9 }
  0x98   : > { %p1670_p4 = por %p1669_p7, %p1668_p2 }
  0x9a   : > { %p1671_p8 = pnand %p1670_p4, %p1664_p1 }
  0x9e   : > { %893 = vmatpush1.bf16.xpose.msra.mxu0 %v1445_v21  ;;  %934 = vmatpush1.bf16.xpose.msra.mxu1 %v1448_v22  ;;  %v298_v21 = vsub.s32 6, %v287_v15  ;;  %v293_v22 = vrot.slane %v285_v18, %v288_v19 }
  0x9f   : > { %894 = vmatprep.subr.bf16.mxu0 %v1449_v23  ;;  %935 = vmatprep.subr.bf16.mxu1 %v1452_v24  ;;  %v289_v23 = vrot.slane %v284_v20, %v288_v19 }
  0xa6   : > { %895 = vmatpush1.bf16.xpose.msra.mxu0 %v1451_v25  ;;  %936 = vmatpush1.bf16.xpose.msra.mxu1 %v1454_v26  ;;  %v303_v26 = vrot.slane %v264_v16, %v298_v21 }
  0xa7   : > { %896 = vmatprep.subr.bf16.mxu0 %v1455_v27  ;;  %937 = vmatprep.subr.bf16.mxu1 %v1458_v28  ;;  %v299_v28 = vrot.slane %v263_v17, %v298_v21 }
  0xae   : > { %897 = vmatpush1.bf16.xpose.msra.mxu0 %v1457_v29  ;;  %938 = vmatpush1.bf16.xpose.msra.mxu1 %v1460_v30 }
  0xaf   : > { %898 = vmatprep.subr.bf16.mxu0 %v1461_v31  ;;  %939 = vmatprep.subr.bf16.mxu1 %v1464_v32 }
  0xb6   : > { %899 = vmatpush1.bf16.xpose.msra.mxu0 %v1463_v33  ;;  %940 = vmatpush1.bf16.xpose.msra.mxu1 %v1466_v34  ;;  %v1515_v34 = vld [vmem:[#allocation7 + $0x200] ss:$8 sps:$4 sm:$0xff]  }
  0xb7   : > { %900 = vmatprep.subr.bf16.mxu0 %v1467_v35  ;;  %941 = vmatprep.subr.bf16.mxu1 %v1470_v36  ;;  %v1520_v36 = vld [vmem:[#allocation7 + $0x214] ss:$8 sps:$4 sm:$0xff]  }
  0xbe   : > { %901 = vmatpush1.bf16.xpose.msra.mxu0 %v1469_v37  ;;  %942 = vmatpush1.bf16.xpose.msra.mxu1 %v1472_v38  ;;  %v1518_v37 = vld [vmem:[#allocation7 + $0x210] ss:$8 sps:$4 sm:$0xff]   ;;  %v1523_v38 = vld [vmem:[#allocation7 + $0x224] ss:$8 sps:$4 sm:$0xff]  }
  0xbf   : > { %902 = vmatprep.subr.bf16.mxu0 %v1473_v39  ;;  %943 = vmatprep.subr.bf16.mxu1 %v1476_v40  ;;  %v1521_v39 = vld [vmem:[#allocation7 + $0x220] ss:$8 sps:$4 sm:$0xff]   ;;  %v1526_v40 = vld [vmem:[#allocation7 + $0x234] ss:$8 sps:$4 sm:$0xff]  }
  0xc6   : > { %903 = vmatpush1.bf16.xpose.msra.mxu0 %v1475_v41  ;;  %944 = vmatpush1.bf16.xpose.msra.mxu1 %v1478_v42  ;;  %v1524_v41 = vld [vmem:[#allocation7 + $0x230] ss:$8 sps:$4 sm:$0xff]   ;;  %v1529_v42 = vld [vmem:[#allocation7 + $0x244] ss:$8 sps:$4 sm:$0xff]  }
  0xc7   : > { %904 = vmatprep.subr.bf16.mxu0 %v1479_v43  ;;  %945 = vmatprep.subr.bf16.mxu1 %v1482_v44  ;;  %v1527_v43 = vld [vmem:[#allocation7 + $0x240] ss:$8 sps:$4 sm:$0xff]   ;;  %v1532_v44 = vld [vmem:[#allocation7 + $0x254] ss:$8 sps:$4 sm:$0xff]  }
  0xce   : > { %905 = vmatpush1.bf16.xpose.msra.mxu0 %v1481_v45  ;;  %946 = vmatpush1.bf16.xpose.msra.mxu1 %v1484_v46  ;;  %v1530_v45 = vld [vmem:[#allocation7 + $0x250] ss:$8 sps:$4 sm:$0xff]   ;;  %v1535_v46 = vld [vmem:[#allocation7 + $0x264] ss:$8 sps:$4 sm:$0xff]  }
  0xcf   : > { %906 = vmatprep.subr.bf16.mxu0 %v1485_v47  ;;  %947 = vmatprep.subr.bf16.mxu1 %v1488_v48  ;;  %v1533_v47 = vld [vmem:[#allocation7 + $0x260] ss:$8 sps:$4 sm:$0xff]   ;;  %v1538_v48 = vld [vmem:[#allocation7 + $0x274] ss:$8 sps:$4 sm:$0xff]  }
  0xd6   : > { %907 = vmatpush1.bf16.xpose.msra.mxu0 %v1487_v49  ;;  %948 = vmatpush1.bf16.xpose.msra.mxu1 %v1490_v50  ;;  %v1536_v49 = vld [vmem:[#allocation7 + $0x270] ss:$8 sps:$4 sm:$0xff]   ;;  %v1541_v50 = vld [vmem:[#allocation7 + $0x284] ss:$8 sps:$4 sm:$0xff]  }
  0xd7   : > { %908 = vmatprep.subr.bf16.mxu0 %v1491_v51  ;;  %949 = vmatprep.subr.bf16.mxu1 %v1494_v52  ;;  %v1539_v51 = vld [vmem:[#allocation7 + $0x280] ss:$8 sps:$4 sm:$0xff]   ;;  %v1544_v52 = vld [vmem:[#allocation7 + $0x294] ss:$8 sps:$4 sm:$0xff]  }
  0xde   : > { %909 = vmatpush1.bf16.xpose.msra.mxu0 %v1493_v53  ;;  %950 = vmatpush1.bf16.xpose.msra.mxu1 %v1496_v54  ;;  %v1542_v53 = vld [vmem:[#allocation7 + $0x290] ss:$8 sps:$4 sm:$0xff]   ;;  %v1547_v54 = vld [vmem:[#allocation7 + $0x2a4] ss:$8 sps:$4 sm:$0xff]  }
  0xdf   : > { %910 = vmatprep.subr.bf16.mxu0 %v1497_v55  ;;  %951 = vmatprep.subr.bf16.mxu1 %v1500_v2  ;;  %v1545_v55 = vld [vmem:[#allocation7 + $0x2a0] ss:$8 sps:$4 sm:$0xff]   ;;  %v1562_v2 = vld [vmem:[#allocation7 + $0x2f4] ss:$8 sps:$4 sm:$0xff]  }
  0xe6   : > { %911 = vmatpush1.bf16.xpose.msra.mxu0 %v1499_v63  ;;  %952 = vmatpush1.bf16.xpose.msra.mxu1 %v1502_v3  ;;  %v1557_v63 = vld [vmem:[#allocation7 + $0x2e0] ss:$8 sps:$4 sm:$0xff]   ;;  %v1560_v3 = vld [vmem:[#allocation7 + $0x2f0] ss:$8 sps:$4 sm:$0xff]  }
  0xe7   : > { %912 = vmatprep.subr.bf16.mxu0 %v1503_v4  ;;  %953 = vmatprep.subr.bf16.mxu1 %v1506_v6 }
  0xee   : > { %913 = vmatpush1.bf16.xpose.msra.mxu0 %v1505_v5  ;;  %954 = vmatpush1.bf16.xpose.msra.mxu1 %v1508_v7 }
  0xef   : > { %914 = vmatprep.subr.bf16.mxu0 %v1509_v8 }
 0x10a   : > { %v269_v56 = vpop.xlane.xlu0 %268 }
 0x10b   : > { %v271_v57 = vmul.f32 0.00390625, %v269_v56  ;;  %v1550_v56 = vld [vmem:[#allocation7 + $0x2b4] ss:$8 sps:$4 sm:$0xff]  }
 0x10d   : > { %v272_v58 = vsub.f32 %v1999_v0, %v271_v57  ;;  %v273_v59 = vsub.f32 %v2001_v1, %v271_v57  ;;  %v1512_v0 = vld [vmem:[#allocation7 + $0x1f4] ss:$8 sps:$4 sm:$0xff]   ;;  %v1511_v1 = vld [vmem:[#allocation7 + $0xf0] ss:$8 sps:$4 sm:$0xff]  }
 0x10e   : > { %955 = vmatprep.subr.bf16.mxu1 %v1512_v0  ;;  %915 = vmatpush1.bf16.xpose.msra.mxu0 %v1511_v1  ;;  %v1548_v57 = vld [vmem:[#allocation7 + $0x2b0] ss:$8 sps:$4 sm:$0xff]  }
 0x10f   : > { %v274_v60 = vmul.f32 %v272_v58, %v272_v58  ;;  %v275_v61 = vmul.f32 %v273_v59, %v273_v59  ;;  %956 = vmatpush1.bf16.xpose.msra.mxu1 %v1514_v9  ;;  %966 = vmatprep.subr.bf16.mxu0 %v1517_v10 }
 0x111   : > { %v276_v62 = vadd.f32 %v275_v61, %v274_v60  ;;  %v1556_v60 = vld [vmem:[#allocation7 + $0x2d4] ss:$8 sps:$4 sm:$0xff]   ;;  %v1554_v61 = vld [vmem:[#allocation7 + $0x2d0] ss:$8 sps:$4 sm:$0xff]  }
 0x113   : > { %277 = vadd.xlane.f32.xlu0 %v276_v62  ;;  %v1559_v62 = vld [vmem:[#allocation7 + $0x2e4] ss:$8 sps:$4 sm:$0xff]  }
 0x1a0   : > { %v278_v11 = vpop.xlane.xlu0 %277 }
 0x1a1   : > { %v279_v12 = vmul.f32 0.00390625, %v278_v11 }
 0x1a3   : > { %v280_v14 = vadd.f32 1e-05, %v279_v12 }
 0x1a5   : > { %1563 = vrsqrt.f32 %v280_v14 }
 0x1af   : > { %v1564_v24 = vpop.eup %1563 }
 0x1b0   : > { %v283_v25 = vmul.f32 %v1564_v24, %v273_v59  ;;  %v282_v27 = vmul.f32 %v1564_v24, %v272_v58  ;;  %v1553_v58 = vld [vmem:[#allocation7 + $0x2c4] ss:$8 sps:$4 sm:$0xff]   ;;  %v1551_v59 = vld [vmem:[#allocation7 + $0x2c0] ss:$8 sps:$4 sm:$0xff]  }
 0x1b2   : > { %v295_v29 = vmul.f32 %v293_v22, %v283_v25  ;;  %v294_v30 = vmul.f32 %v289_v23, %v282_v27 }
 0x1b4   : > { %v305_v31 = vadd.f32 %v303_v26, %v295_v29  ;;  %v304_v32 = vadd.f32 %v299_v28, %v294_v30 }
 0x1b6   : > { %v307_v33 = vpack.c.bf16 %v305_v31, %v305_v31  ;;  %v2009_v35 = vpack.c.bf16 %v304_v32, %v304_v32 }
 0x1b8   : > { %916 = vmatprep.mubr.bf16.mxu0 %v307_v33  ;;  %957 = vmatprep.mubr.bf16.mxu1 %v307_v33 }
 0x1b9   : > { %917 = vmatmul.mubr.bf16.vlgmr.msra.gmra.mrb[0].mxu0 %v2009_v35  ;;  %958 = vmatmul.mubr.bf16.vlgmr.msra.gmra.mrb[0].mxu1 %v2009_v35 }
 0x1ba   : > { %967 = vmatpush1.bf16.xpose.msra.mxu0 %v1515_v34  ;;  %998 = vmatprep.mubr.bf16.mxu0 %v307_v33 }
 0x1bb   : > { %968 = vmatprep.subr.bf16.mxu0 %v1520_v36 }
 0x1c2   : > { %969 = vmatpush1.bf16.xpose.msra.mxu0 %v1518_v37 }
 0x1c3   : > { %970 = vmatprep.subr.bf16.mxu0 %v1523_v38 }
 0x1ca   : > { %971 = vmatpush1.bf16.xpose.msra.mxu0 %v1521_v39 }
 0x1cb   : > { %972 = vmatprep.subr.bf16.mxu0 %v1526_v40 }
 0x1d2   : > { %973 = vmatpush1.bf16.xpose.msra.mxu0 %v1524_v41 }
 0x1d3   : > { %974 = vmatprep.subr.bf16.mxu0 %v1529_v42 }
 0x1da   : > { %975 = vmatpush1.bf16.xpose.msra.mxu0 %v1527_v43 }
 0x1db   : > { %976 = vmatprep.subr.bf16.mxu0 %v1532_v44 }
 0x1e2   : > { %977 = vmatpush1.bf16.xpose.msra.mxu0 %v1530_v45 }
 0x1e3   : > { %978 = vmatprep.subr.bf16.mxu0 %v1535_v46 }
 0x1ea   : > { %979 = vmatpush1.bf16.xpose.msra.mxu0 %v1533_v47 }
 0x1eb   : > { %980 = vmatprep.subr.bf16.mxu0 %v1538_v48 }
 0x1f2   : > { %981 = vmatpush1.bf16.xpose.msra.mxu0 %v1536_v49 }
 0x1f3   : > { %982 = vmatprep.subr.bf16.mxu0 %v1541_v50 }
 0x1fa   : > { %983 = vmatpush1.bf16.xpose.msra.mxu0 %v1539_v51 }
 0x1fb   : > { %984 = vmatprep.subr.bf16.mxu0 %v1544_v52 }
 0x202   : > { %985 = vmatpush1.bf16.xpose.msra.mxu0 %v1542_v53 }
 0x203   : > { %986 = vmatprep.subr.bf16.mxu0 %v1547_v54 }
 0x20a   : > { %987 = vmatpush1.bf16.xpose.msra.mxu0 %v1545_v55 }
 0x20b   : > { %988 = vmatprep.subr.bf16.mxu0 %v1550_v56 }
 0x212   : > { %989 = vmatpush1.bf16.xpose.msra.mxu0 %v1548_v57 }
 0x213   : > { %990 = vmatprep.subr.bf16.mxu0 %v1553_v58 }
 0x21a   : > { %991 = vmatpush1.bf16.xpose.msra.mxu0 %v1551_v59 }
 0x21b   : > { %992 = vmatprep.subr.bf16.mxu0 %v1556_v60 }
 0x222   : > { %993 = vmatpush1.bf16.xpose.msra.mxu0 %v1554_v61 }
 0x223   : > { %994 = vmatprep.subr.bf16.mxu0 %v1559_v62 }
 0x22a   : > { %995 = vmatpush1.bf16.xpose.msra.mxu0 %v1557_v63 }
 0x22b   : > { %996 = vmatprep.subr.bf16.mxu0 %v1562_v2 }
 0x232   : > { %997 = vmatpush1.bf16.xpose.msra.mxu0 %v1560_v3 }
 0x239   : > { %999 = vmatmul.mubr.bf16.vlgmr.msra.gmra.mrb[4].mxu0 %v2009_v35 }
 0x28c   : > { %v918_v4 = vpop.f32.mrb[0].mxu0  ;;  %v959_v5 = vpop.f32.mrb[0].mxu1 }
 0x28d   : > { %1037 = vadd.xlane.f32.xlu0 %v959_v5  ;;  %v961_v6 = vpop.f32.mrb[1].mxu1  ;;  %1007 = vadd.xlane.f32.xlu1 %v918_v4  ;;  %v920_v7 = vpop.f32.mrb[1].mxu0 }
 0x28e   : > { %v922_v8 = vpop.f32.mrb[2].mxu0  ;;  %v963_v0 = vpop.f32.mrb[2].mxu1 }
 0x28f   : > { %v923_v1 = vpop.f32.mrb[3].mxu0  ;;  %v964_v9 = vpop.f32.mrb[3].mxu1 }
 0x291   : > { %1022 = vadd.xlane.f32.xlu1 %v920_v7 }
 0x295   : > { %1051 = vadd.xlane.f32.xlu1 %v961_v6 }
 0x30c   : > { %v1000_v10 = vpop.f32.mrb[4].mxu0 }
 0x30d   : > { %v1002_v11 = vpop.f32.mrb[5].mxu0 }
 0x30e   : > { %v1330_v12 = vpack.c.bf16 %v1002_v11, %v1000_v10  ;;  %v1004_v13 = vpop.f32.mrb[6].mxu0 }
 0x30f   : > { %v1005_v14 = vpop.f32.mrb[7].mxu0 }
 0x310   : > { %1332 = vst [vmem:[%s2015_s22 + $0x10] sm:$0xff] %v1330_v12  }
 0x31a   : > { %v1038_v15 = vpop.xlane.xlu0 %1037  ;;  %v1008_v16 = vpop.xlane.xlu1 %1007 }
 0x31b   : > { %v1039_v17 = vmul.f32 0.0078125, %v1038_v15  ;;  %v1010_v18 = vmul.f32 0.0078125, %v1008_v16 }
 0x31d   : > { %v1011_v19 = vsub.f32 %v918_v4, %v1010_v18  ;;  %v1040_v21 = vsub.f32 %v959_v5, %v1039_v17 }
 0x31e   : > { %v1023_v20 = vpop.xlane.xlu1 %1022 }
 0x31f   : > { %v1024_v22 = vmul.f32 0.0078125, %v1023_v20  ;;  %v1012_v23 = vmul.f32 %v1011_v19, %v1011_v19  ;;  %v1041_v27 = vmul.f32 %v1040_v21, %v1040_v21 }
 0x321   : > { %v1025_v24 = vsub.f32 %v920_v7, %v1024_v22  ;;  %1013 = vadd.xlane.f32.xlu0 %v1012_v23 }
 0x322   : > { %v1052_v25 = vpop.xlane.xlu1 %1051 }
 0x323   : > { %v1053_v26 = vmul.f32 0.0078125, %v1052_v25  ;;  %v1026_v28 = vmul.f32 %v1025_v24, %v1025_v24 }
 0x325   : > { %v1054_v29 = vsub.f32 %v961_v6, %v1053_v26  ;;  %1042 = vadd.xlane.f32.xlu0 %v1041_v27  ;;  %1027 = vadd.xlane.f32.xlu1 %v1026_v28 }
 0x327   : > { %v1055_v30 = vmul.f32 %v1054_v29, %v1054_v29 }
 0x329   : > { %1056 = vadd.xlane.f32.xlu1 %v1055_v30 }
 0x3ae   : > { %v1014_v31 = vpop.xlane.xlu0 %1013 }
 0x3af   : > { %v1015_v32 = vmul.f32 0.0078125, %v1014_v31 }
 0x3b1   : > { %v1016_v33 = vadd.f32 1e-05, %v1015_v32 }
 0x3b2   : > { %v1043_v34 = vpop.xlane.xlu0 %1042  ;;  %v1028_v35 = vpop.xlane.xlu1 %1027 }
 0x3b3   : > { %1565 = vrsqrt.f32 %v1016_v33  ;;  %v1044_v36 = vmul.f32 0.0078125, %v1043_v34  ;;  %v1029_v37 = vmul.f32 0.0078125, %v1028_v35 }
 0x3b5   : > { %v1045_v38 = vadd.f32 1e-05, %v1044_v36  ;;  %v1030_v39 = vadd.f32 1e-05, %v1029_v37 }
 0x3b6   : > { %v1057_v40 = vpop.xlane.xlu1 %1056 }
 0x3b7   : > { %1567 = vrsqrt.f32 %v1045_v38  ;;  %v1058_v41 = vmul.f32 0.0078125, %v1057_v40 }
 0x3b8   : > { %1569 = vrsqrt.f32 %v1030_v39 }
 0x3b9   : > { %v1059_v42 = vadd.f32 1e-05, %v1058_v41 }
 0x3bb   : > { %1571 = vrsqrt.f32 %v1059_v42 }
 0x3bd   : > { %v1566_v43 = vpop.eup %1565 }
 0x3be   : > { %v1018_v44 = vmul.f32 %v1566_v43, %v1011_v19 }
 0x3c0   : > { %v1019_v45 = vmul.f32 0.088388346, %v1018_v44 }
 0x3c1   : > { %v1568_v46 = vpop.eup %1567 }
 0x3c2   : > { %v1570_v47 = vpop.eup %1569  ;;  %v1020_v48 = vpack.c.bf16 %v1019_v45, %v1019_v45  ;;  %v1047_v49 = vmul.f32 %v1568_v46, %v1040_v21 }
 0x3c3   : > { %v1032_v50 = vmul.f32 %v1570_v47, %v1025_v24 }
 0x3c4   : > { %1021 = vst [vmem:[%s2015_s22] sm:$0xf] %v1020_v48  ;;  %v1048_v51 = vpack.c.bf16 %v1047_v49, %v1047_v49 }
 0x3c5   : > { %v1572_v52 = vpop.eup %1571  ;;  %v1033_v53 = vmul.f32 0.088388346, %v1032_v50 }
 0x3c6   : > { %1318 = vst [vmem:[%s2015_s22 + $0x8] sm:$0xf] %v1048_v51  ;;  %v1061_v54 = vmul.f32 %v1572_v52, %v1054_v29 }
 0x3c7   : > { %v1034_v55 = vpack.c.bf16 %v1033_v53, %v1033_v53 }
 0x3c8   : > { %v1062_v56 = vpack.c.bf16 %v1061_v54, %v1061_v54 }
 0x3c9   : > { %1317 = vst [vmem:[%s2015_s22 + $0x4] sm:$0xf] %v1034_v55 }
 0x3ca   : > { %1319 = vst [vmem:[%s2015_s22 + $0xc] sm:$0xf] %v1062_v56 }
 0x3cb   : > { %1674 = shalt.err (!%p1671_p8)
}
 0x3cc   : > { %s1689_s13 = scalar_lea.hbm %s1151_s8, 512  ;;  %s1679_s25 = scalar_lea.hbm %s2081_s4, 2304 }
 0x3cd   : > { %p1676_p11 = scmp.ne.s32.totalorder %s2027_s18, %s1689_s13  ;;  %p1680_p6 = scmp.lt.u32.totalorder %s2027_s18, %s2081_s4 }
 0x3ce   : > { %p1681_p13 = scmp.lt.u32.totalorder %s1679_s25, %s1689_s13  ;;  %p1683_p5 = scmp.lt.u32.totalorder %s1689_s13, %s2027_s18 }
 0x3cf   : > { %p1677_p12 = pnand %p1676_p11, %p1882_p10 }
 0x3d0   : > { %p1682_p0 = por %p1681_p13, %p1680_p6 }
 0x3d1   : > { %p1678_p3 = pneg %p1677_p12 }
 0x3d2   : > { %p1684_p9 = por %p1683_p5, %p1682_p0 }
 0x3d4   : > { %p1685_p1 = pnand %p1684_p9, %p1678_p3 }
 0x3d6   : > { %1688 = shalt.err (!%p1685_p1)
}
 0x3d7   : > { %s1762_s22 = smov 64   ;;  %s1763_s7 = smov 192  }
 0x3d8   : > { %s1764_s14 = smov 4  }
 0x3d9   : > { %1342 = dma.vmem_to_hbm [thread:$0]  (%p1882_p10), %s2024_s21, 384, %s2027_s18, %s1072_s10, %s1762_s22, %s1763_s7, %s1764_s14  }
 0x3da PF: > { %s1102_s29 = sand.u32 1, %s1732_s15   ;;  %p2099_p2 = scmp.ne.s32.totalorder %s2087_s23, 0 }
 0x3db   : > { %p2100_p7 = scmp.ge.s32.totalorder %s1752_s3, 2  ;;  %s1103_s8 = scalar_lea.sflag [#allocation4], %s1102_s29 }
 0x3dd   : > { %p1356_p4 = pnand %p2100_p7, %p2099_p2 }
 0x3df   : > { %1727 = dma.done.wait (!%p1356_p4), %s1103_s8, 384  }
 0x3e0   : > { %1729 = vsyncadd (!%p1356_p4), %s1103_s8, 4294966912  ;;  %s23_s3 = sadd.s32 1, %s1752_s3   ;;  %s2101_s15 = smov %s1736_s16 }
 0x3e1   : > { %p20_p8 = scmp.ge.s32.totalorder %s23_s3, 4   ;;  %s2102_s16 = smov %s1740_s17 }
 0x3e2   : > { %s2103_s17 = smov %s1894_s5  ;;  %s2104_s18 = smov %s1748_s19 }
 0x3e3   : > { %s2105_s19 = smov %s2107_s28  ;;  %22 = sbr.rel (!%p20_p8) target bundleno = 10 (0xa), region = 99 }
 0x3ea   :  { %1108 = vsyncpa [#allocation3], 1 }
 0x3eb   :  { %1110 = vsyncpa [#allocation3 + $0x1], 1 }
 0x3ec   :  { %1111 = vsyncpa [#allocation6], 1 }
 0x3ed   :  { %1113 = vsyncpa [#allocation6 + $0x1], 1 }
 0x3ee   :  { %1114 = vsyncpa [#allocation4], 1 }
 0x3ef   :  { %1116 = vsyncpa [#allocation4 + $0x1], 1 }

// kernel: aura_flow_joint_block_forward.11
= control target key start
LH: loop header
LB: loop body
LE: loop exit
PB: predicated region body
PF: predicated region fallthrough
CT: control target
= control target key end

     0   :  { %s1761_s0 = inlined_call_operand.hbm [shape: bf16[2,6,24,128], index: 0, kind: input, shape index: {}, may-alias: {0,1,2}]   ;;  %s1762_s1 = inlined_call_operand.hbm [shape: bf16[2,6,24,128], index: 1, kind: input, shape index: {}, may-alias: {0,1,2}]   ;;  %s1763_s2 = inlined_call_operand.hbm [shape: bf16[2,6,24,128], index: 2, kind: input, shape index: {}, may-alias: {0,1,2}]   ;;  %s1764_s3 = inlined_call_operand.hbm [shape: bf16[2,24,256], index: 3, kind: output, shape index: {}]  }
   0x1   :  { %1784 = sst [smem:[#allocation25_spill]] %s1761_s0 }
   0x2   :  { %1785 = sst [smem:[#allocation26_spill]] %s1762_s1 }
   0x3   :  { %1786 = sst [smem:[#allocation27_spill]] %s1763_s2 }
   0x4   :  { %1787 = sst [smem:[#allocation28_spill]] %s1764_s3 }
   0x5   :  { %8 = vsyncpa [#allocation6], 0 }
   0x6   :  { %10 = vsyncpa [#allocation6 + $0x1], 0 }
   0x7   :  { %11 = vsyncpa [#allocation9], 0 }
   0x8   :  { %13 = vsyncpa [#allocation9 + $0x1], 0 }
   0x9   :  { %14 = vsyncpa [#allocation7], 0 }
   0xa   :  { %16 = vsyncpa [#allocation7 + $0x1], 0  ;;  %s1320_s12 = smov 0   ;;  %s1322_s13 = smov 0  }
   0xb   :  { %s1324_s14 = smov 0   ;;  %s1326_s15 = smov 0  }
   0xc   :  { %s1328_s16 = smov 0   ;;  %s1330_s17 = smov 0  }
   0xd   :  { %s1332_s18 = smov 0   ;;  %s1334_s19 = smov 0  }
   0xe   :  { %s1336_s20 = smov 0   ;;  %s1338_s21 = smov 0  }
   0xf   :  { %s1340_s22 = smov 0   ;;  %s1342_s23 = smov 0  }
  0x10   :  { %s1344_s24 = smov 0   ;;  %s1346_s25 = smov 0  }
  0x11 LB: > { %1788 = sst [smem:[#allocation16_spill]] %s1252_s16  ;;  %s1391_s26 = sadd.s32 4294967295, %s1288_s25   ;;  %s1288_s25 = sphi %s1346_s25, %s22_s25   ;;  %s1284_s24 = sphi %s1344_s24, %s1838_s24   ;;  %s1280_s23 = sphi %s1342_s23, %s1837_s23   ;;  %s1276_s22 = sphi %s1340_s22, %s1847_s22   ;;  %s1272_s21 = sphi %s1338_s21, %s1835_s21   ;;  %s1268_s20 = sphi %s1336_s20, %s1846_s20   ;;  %s1264_s19 = sphi %s1334_s19, %s1845_s19   ;;  %s1260_s18 = sphi %s1332_s18, %s1844_s18   ;;  %s1256_s17 = sphi %s1330_s17, %s1843_s17   ;;  %s1252_s16 = sphi %s1328_s16, %s1842_s16   ;;  %s1248_s15 = sphi %s1326_s15, %s1833_s15   ;;  %s1244_s14 = sphi %s1324_s14, %s1841_s14   ;;  %s1240_s13 = sphi %s1322_s13, %s1840_s13   ;;  %s1236_s12 = sphi %s1320_s12, %s1839_s12  }
  0x12   : > { %1789 = sst [smem:[#allocation17_spill]] %s1272_s21  ;;  %s44_s27 = sadd.s32 1, %s1280_s23 }
  0x13   : > { %1790 = sst [smem:[#allocation18_spill]] %s1276_s22  ;;  %p46_p0 = scmp.ge.s32.totalorder %s44_s27, 2 }
  0x14   : > { %1791 = sst [smem:[#allocation19_spill]] %s1280_s23  ;;  %s48_s28 = sadd.s32 1, %s1284_s24 }
  0x15   : > { %1792 = sst [smem:[#allocation20_spill]] %s1284_s24  ;;  %p1773_p1 = scmp.eq.s32.totalorder %s1288_s25, 0 }
  0x16   : > { %p1772_p2 = scmp.eq.s32.totalorder %s1391_s26, 0  ;;  %s1849_s27 = smov (%p46_p0, %s44_s27), 0 }
  0x17   : > { %1793 = sst [smem:[#allocation21_spill]] %s1849_s27  ;;  %s1851_s28 = smov (!%p46_p0, %s48_s28), %s1284_s24 }
  0x18   : > { %s82_s29 = sadd.s32 2, %s1280_s23  ;;  %s83_s30 = sadd.s32 2, %s1849_s27 }
  0x19   : > { %p50_p3 = scmp.ge.s32.totalorder %s1851_s28, 2  ;;  %s85_s4 = ssub.s32 %s82_s29, %s83_s30 }
  0x1a   : > { %s91_s5 = sadd.s32 1, %s1256_s17  ;;  %p98_p4 = scmp.ne.s32.totalorder %s1256_s17, %s1252_s16 }
  0x1b   : > { %s1853_s28 = smov (%p50_p3, %s1851_s28), 0  ;;  %p104_p6 = scmp.ne.s32.totalorder %s1252_s16, %s1248_s15 }
  0x1c   : > { %1794 = sst [smem:[#allocation22_spill]] %s1853_s28  ;;  %p1409_p5 = por %p98_p4, %p1773_p1 }
  0x1d   : > { %s1417_s7 = ssub.s32 %s1284_s24, %s1853_s28  ;;  %s114_s8 = sadd.s32 4, %s1280_s23 }
  0x1e   : > { %s86_s9 = sor.u32 %s85_s4, %s1417_s7  ;;  %p1423_p7 = por %p104_p6, %p1772_p2 }
  0x1f   : > { %p89_p8 = scmp.eq.s32.totalorder %s86_s9, 0  ;;  %s115_s11 = sadd.s32 4, %s1849_s27 }
  0x20   : > { %s1796_s10 = scalar_select %p1423_p7, 1, 0 }
  0x21   : > { %s117_s29 = ssub.s32 %s114_s8, %s115_s11  ;;  %p1771_p9 = scmp.lt.s32.totalorder %s1288_s25, 4 }
  0x22   : > { %1797 = sst [smem:[#allocation23_spill]] %s1796_s10  ;;  %s118_s15 = sor.u32 %s117_s29, %s1417_s7 }
  0x23   : > { %s1429_s30 = scalar_select %p89_p8, %s1256_s17, %s91_s5  }
  0x24   : > { %p1433_p10 = scmp.eq.s32.totalorder %s118_s15, 0  ;;  %s866_s4 = smul.u32 3, %s1280_s23 }
  0x25   : > { %s867_s3 = smul.u32 18, %s1284_s24  ;;  %s215_s21 = sand.u32 1, %s1288_s25  }
  0x26   : > { %s217_s9 = sand.u32 1, %s1256_s17   ;;  %s1799_s1 = sld [smem:[#allocation26_spill]] }
  0x27   : > { %s202_s22 = sadd.s32 %s867_s3, %s866_s4  ;;  %s868_s16 = smul.u32 12, %s217_s9 }
  0x28   : > { %s1440_s10 = sshll.u32 %s202_s22, 6  ;;  %p1453_p11 = pnand %p1771_p9, %p1409_p5 }
  0x29   : > { %s219_s3 = scalar_lea.vmem [#allocation8], %s868_s16  ;;  %s1461_s2 = scalar_lea.sflag [#allocation9], %s215_s21 }
  0x2a   : > { %s231_s22 = sshll.u32 %s219_s3, 4  ;;  %p1044_p3 = pneg %p1453_p11  ;;  %s1458_s22 = int_to_ptr.vmem [resolvable:$true] %s231_s22 }
  0x2c   : > { %s705_s5 = scalar_lea.hbm %s1799_s1, %s1440_s10  ;;  %s1047_s9 = scalar_lea.hbm %s1799_s1, 2304 }
  0x2d   : > { %s1447_s11 = scalar_lea.hbm %s705_s5, 384  ;;  %s1072_s15 = scalar_lea.hbm %s705_s5, 576 }
  0x2e   : > { %p1043_p0 = scmp.ne.s32.totalorder %s1447_s11, %s1072_s15  ;;  %p1048_p6 = scmp.lt.u32.totalorder %s1447_s11, %s1799_s1 }
  0x2f   : > { %p1049_p8 = scmp.lt.u32.totalorder %s1047_s9, %s1072_s15  ;;  %p1051_p2 = scmp.lt.u32.totalorder %s1072_s15, %s1447_s11 }
  0x30   : > { %p1045_p4 = pnand %p1044_p3, %p1043_p0 }
  0x31   : > { %p1050_p9 = por %p1049_p8, %p1048_p6 }
  0x32   : > { %p1046_p5 = pneg %p1045_p4 }
  0x33   : > { %p1052_p1 = por %p1051_p2, %p1050_p9 }
  0x35   : > { %p1053_p12 = pnand %p1052_p1, %p1046_p5 }
  0x37   : > { %1056 = shalt.err (!%p1053_p12)
}
  0x38   : > { %s1057_s21 = scalar_lea.vmem %s1458_s22, 192  ;;  %s1290_s5 = smov [#allocation8]  }
  0x39   : > { %p1058_p0 = scmp.ne.s32.totalorder %s1458_s22, %s1057_s21  ;;  %s1062_s3 = sshll.u32 %s1290_s5, 4  ;;  %s1063_s3 = int_to_ptr.vmem [resolvable:$false] %s1062_s3 }
  0x3a   : > { %s1064_s6 = scalar_lea.vmem %s1063_s3, 384  ;;  %p1065_p7 = scmp.lt.s32.totalorder %s1458_s22, %s1063_s3 }
  0x3b   : > { %p1060_p4 = pnand %p1058_p0, %p1044_p3  ;;  %p1066_p6 = scmp.lt.s32.totalorder %s1064_s6, %s1057_s21 }
  0x3d   : > { %p1061_p13 = pneg %p1060_p4  ;;  %p1067_p8 = por %p1066_p6, %p1065_p7 }
  0x3f   : > { %p1068_p2 = pnand %p1067_p8, %p1061_p13 }
  0x41   : > { %1071 = shalt.err (!%p1068_p2)
}
  0x42   : > { %s1775_s15 = smov 64   ;;  %s1777_s4 = smov 4  }
  0x43   : > { %888 = dma.hbm_to_vmem [thread:$0]  (!%p1453_p11), %s1447_s11, 192, %s1458_s22, %s1461_s2, %s1775_s15, %s1775_s15, %s1777_s4  }
  0x44   : > { %p1801_p1 = scmp.lt.s32.totalorder %s1288_s25, 5  ;;  %p1802_p7 = scmp.ge.s32.totalorder %s1288_s25, 1 }
  0x45   : > { %s811_s8 = sadd.s32 4294967294, %s1288_s25   ;;  %s53_s16 = ssub.s32 %s1280_s23, %s1849_s27 }
  0x46   : > { %p1495_p9 = pnand %p1802_p7, %p1801_p1  ;;  %s59_s21 = sadd.s32 1, %s1268_s20 }
  0x47   : > { %s54_s5 = sor.u32 %s53_s16, %s1417_s7  ;;  %p66_p12 = scmp.ne.s32.totalorder %s1268_s20, %s1264_s19 }
  0x48   : > { %s1803_s9 = scalar_select %p1495_p9, 1, 0 }
  0x49   : > { %p57_p13 = scmp.eq.s32.totalorder %s54_s5, 0  ;;  %p72_p3 = scmp.ne.s32.totalorder %s1264_s19, %s1260_s18 }
  0x4a   : > { %p1804_p5 = scmp.eq.s32.totalorder %s1288_s25, 0  ;;  %p164_p4 = scmp.eq.s32.totalorder %s1391_s26, 3 }
  0x4b   : > { %s1512_s29 = scalar_select %p57_p13, %s1268_s20, %s59_s21  }
  0x4c   : > { %p68_p0 = por %p1804_p5, %p66_p12  ;;  %p1806_p11 = scmp.eq.s32.totalorder %s1391_s26, 0 }
  0x4d   : > { %1805 = sst [smem:[#allocation24_spill]] %s1512_s29  ;;  %p1520_p8 = por %p164_p4, %p66_p12 }
  0x4e   : > { %p1516_p6 = por %p1806_p11, %p72_p3  ;;  %p170_p2 = scmp.eq.s32.totalorder %s811_s8, 3 }
  0x4f   : > { %s1808_s22 = scalar_select %p1520_p8, 1, 0 }
  0x50   : > { %s1807_s11 = scalar_select %p1516_p6, 1, 0 }
  0x51   : > { %s190_s3 = sand.u32 1, %s1268_s20   ;;  %p1525_p1 = por %p170_p2, %p72_p3 }
  0x52   : > { %s865_s7 = smul.u32 12, %s190_s3  ;;  %s1810_s0 = sld [smem:[#allocation25_spill]] }
  0x53   : > { %s1809_s6 = scalar_select %p1525_p1, 1, 0 }
  0x54   : > { %p1811_p7 = scmp.lt.s32.totalorder %s1288_s25, 4  ;;  %s194_s8 = scalar_lea.vmem [#allocation5], %s865_s7 }
  0x55   : > { %s205_s4 = sshll.u32 %s194_s8, 4  ;;  %s1543_s1 = scalar_lea.sflag [#allocation6], %s190_s3  ;;  %s1541_s4 = int_to_ptr.vmem [resolvable:$true] %s205_s4 }
  0x56   : > { %p1537_p12 = pnand %p1811_p7, %p68_p0 }
  0x58   : > { %s1533_s21 = scalar_lea.hbm %s1810_s0, %s1440_s10  ;;  %p1075_p3 = pneg %p1537_p12 }
  0x59   : > { %s1073_s16 = scalar_lea.hbm %s1533_s21, 192  ;;  %s1078_s24 = scalar_lea.hbm %s1810_s0, 2304 }
  0x5a   : > { %p1074_p13 = scmp.ne.s32.totalorder %s1533_s21, %s1073_s16  ;;  %p1079_p0 = scmp.lt.u32.totalorder %s1533_s21, %s1810_s0 }
  0x5b   : > { %p1080_p11 = scmp.lt.u32.totalorder %s1078_s24, %s1073_s16  ;;  %p1082_p7 = scmp.lt.u32.totalorder %s1073_s16, %s1533_s21 }
  0x5c   : > { %p1076_p5 = pnand %p1075_p3, %p1074_p13 }
  0x5d   : > { %p1081_p2 = por %p1080_p11, %p1079_p0 }
  0x5e   : > { %p1077_p4 = pneg %p1076_p5 }
  0x5f   : > { %p1083_p1 = por %p1082_p7, %p1081_p2 }
  0x61   : > { %p1084_p8 = pnand %p1083_p1, %p1077_p4 }
  0x63   : > { %1087 = shalt.err (!%p1084_p8)
}
  0x64   : > { %s1088_s3 = scalar_lea.vmem %s1541_s4, 192  ;;  %s1293_s27 = smov [#allocation5]  }
  0x65   : > { %p1089_p13 = scmp.ne.s32.totalorder %s1541_s4, %s1088_s3  ;;  %s1093_s7 = sshll.u32 %s1293_s27, 4  ;;  %s1094_s7 = int_to_ptr.vmem [resolvable:$false] %s1093_s7 }
  0x66   : > { %s1095_s23 = scalar_lea.vmem %s1094_s7, 384  ;;  %p1096_p9 = scmp.lt.s32.totalorder %s1541_s4, %s1094_s7 }
  0x67   : > { %p1091_p5 = pnand %p1089_p13, %p1075_p3  ;;  %p1097_p0 = scmp.lt.s32.totalorder %s1095_s23, %s1088_s3 }
  0x69   : > { %p1092_p6 = pneg %p1091_p5  ;;  %p1098_p11 = por %p1097_p0, %p1096_p9 }
  0x6b   : > { %p1099_p2 = pnand %p1098_p11, %p1092_p6 }
  0x6d   : > { %1102 = shalt.err (!%p1099_p2)
}
  0x6e   : > { %s1813_s24 = smov 4   ;;  %s1814_s29 = smov 64  }
  0x6f   : > { %885 = dma.hbm_to_vmem [thread:$0]  (!%p1537_p12), %s1533_s21, 192, %s1541_s4, %s1543_s1, %s1814_s29, %s1814_s29, %s1813_s24  }
  0x70   : > { %s123_s15 = sadd.s32 1, %s1244_s14  ;;  %p130_p9 = scmp.ne.s32.totalorder %s1244_s14, %s1240_s13 }
  0x71   : > { %s1578_s8 = scalar_select %p1433_p10, %s1244_s14, %s123_s15  }
  0x72   : > { %p136_p6 = scmp.ne.s32.totalorder %s1240_s13, %s1236_s12  ;;  %s243_s16 = sand.u32 1, %s1244_s14  }
  0x73   : > { %s1815_s27 = sld [smem:[#allocation27_spill]]  ;;  %p1816_p8 = scmp.eq.s32.totalorder %s1288_s25, 0 }
  0x74   : > { %p1817_p3 = scmp.eq.s32.totalorder %s1391_s26, 0  ;;  %s869_s0 = smul.u32 12, %s243_s16 }
  0x75   : > { %p132_p1 = por %p130_p9, %p1816_p8  ;;  %p1819_p12 = scmp.lt.s32.totalorder %s1288_s25, 4 }
  0x76   : > { %p1593_p4 = por %p136_p6, %p1817_p3  ;;  %s245_s28 = scalar_lea.vmem [#allocation10], %s869_s0 }
  0x77   : > { %p1599_p7 = pnand %p1819_p12, %p132_p1 }
  0x79   : > { %s716_s7 = scalar_lea.hbm %s1815_s27, %s1440_s10  ;;  %s257_s10 = sshll.u32 %s245_s28, 4  ;;  %s1605_s10 = int_to_ptr.vmem [resolvable:$true] %s257_s10 }
  0x7a   : > { %s1603_s12 = scalar_lea.hbm %s716_s7, 768  ;;  %s1133_s4 = scalar_lea.hbm %s716_s7, 960 }
  0x7b   : > { %p1104_p10 = scmp.ne.s32.totalorder %s1603_s12, %s1133_s4  ;;  %p1105_p13 = pneg %p1599_p7 }
  0x7c   : > { %s1108_s16 = scalar_lea.hbm %s1815_s27, 2304  ;;  %p1109_p11 = scmp.lt.u32.totalorder %s1603_s12, %s1815_s27 }
  0x7d   : > { %p1106_p5 = pnand %p1105_p13, %p1104_p10  ;;  %p1110_p2 = scmp.lt.u32.totalorder %s1108_s16, %s1133_s4 }
  0x7e   : > { %p1112_p6 = scmp.lt.u32.totalorder %s1133_s4, %s1603_s12 }
  0x7f   : > { %p1107_p0 = pneg %p1106_p5  ;;  %p1111_p9 = por %p1110_p2, %p1109_p11 }
  0x81   : > { %p1113_p8 = por %p1112_p6, %p1111_p9 }
  0x83   : > { %p1114_p1 = pnand %p1113_p8, %p1107_p0 }
  0x85   : > { %1117 = shalt.err (!%p1114_p1)
}
  0x86   : > { %s1118_s0 = scalar_lea.vmem %s1605_s10, 192  ;;  %s1294_s7 = smov [#allocation10]  }
  0x87   : > { %p1119_p3 = scmp.ne.s32.totalorder %s1605_s10, %s1118_s0  ;;  %s1123_s28 = sshll.u32 %s1294_s7, 4  ;;  %s1124_s28 = int_to_ptr.vmem [resolvable:$false] %s1123_s28 }
  0x88   : > { %s1125_s21 = scalar_lea.vmem %s1124_s28, 384  ;;  %p1126_p5 = scmp.lt.s32.totalorder %s1605_s10, %s1124_s28 }
  0x89   : > { %p1121_p12 = pnand %p1119_p3, %p1105_p13  ;;  %p1127_p11 = scmp.lt.s32.totalorder %s1125_s21, %s1118_s0 }
  0x8b   : > { %p1122_p10 = pneg %p1121_p12  ;;  %p1128_p2 = por %p1127_p11, %p1126_p5 }
  0x8d   : > { %p1129_p9 = pnand %p1128_p2, %p1122_p10 }
  0x8f   : > { %1132 = shalt.err (!%p1129_p9)
}
  0x90   : > { %891 = dma.hbm_to_vmem [thread:$0]  (!%p1599_p7), %s1603_s12, 192, %s1605_s10, %s1461_s2, %s1814_s29, %s1814_s29, %s1813_s24  }
  0x91   : > { %p1821_p13 = scmp.ne.s32.totalorder %s1803_s9, 0 }
  0x92   : > { %s1638_s4 = sand.u32 (!%p1821_p13), 1, %s1264_s19   ;;  %p1822_p0 = scmp.ne.s32.totalorder (!%p1821_p13), %s1807_s11, 0 }
  0x93   : > { %269 = sbr.rel (%p1821_p13) target bundleno = 1000 (0x3e8), region = 32  ;;  %s272_s16 = scalar_lea.sflag (!%p1821_p13), [#allocation6], %s1638_s4 }
  0x94   : > { %s870_s15 = smul.u32 (!%p1821_p13), 12, %s1638_s4 }
  0x96   : > { %s275_s1 = scalar_lea.vmem (!%p1821_p13), [#allocation5], %s870_s15 }
  0x9a   : > { %1219 = dma.done.wait (%p1822_p0), %s272_s16, 192  }
  0x9b   : > { %1221 = vsyncadd (%p1822_p0), %s272_s16, 4294967104  ;;  %s1823_s2 = sld [smem:[#allocation16_spill]]  ;;  %s280_s24 = sand.u32 1, %s1391_s26  }
  0x9c   : > { %s1824_s9 = sld [smem:[#allocation23_spill]]  ;;  %s281_s10 = scalar_lea.sflag [#allocation9], %s280_s24 }
  0xa1   : > { %s282_s29 = sand.u32 1, %s1823_s2  }
  0xa2   : > { %s871_s12 = smul.u32 12, %s282_s29  ;;  %p1825_p7 = scmp.ne.s32.totalorder %s1824_s9, 0 }
  0xa4   : > { %s284_s5 = scalar_lea.vmem [#allocation8], %s871_s12 }
  0xa5   : > { %1223 = dma.done.wait (%p1825_p7), %s281_s10, 192  }
  0xa6   : > { %1225 = vsyncadd (%p1825_p7), %s281_s10, 4294967104  ;;  %s291_s3 = sand.u32 1, %s1240_s13  }
  0xa7   : > { %s1655_s0 = smul.u32 12, %s291_s3 }
  0xa9   : > { %s293_s11 = scalar_lea.vmem [#allocation10], %s1655_s0 }
  0xaa   : > { %1227 = dma.done.wait (%p1593_p4), %s281_s10, 192  }
  0xab   : > { %1229 = vsyncadd (%p1593_p4), %s281_s10, 4294967104  ;;  %v1018_v0 = vld [vmem:[%s284_s5] sm:$0xff]   ;;  %v1019_v1 = vld [vmem:[%s284_s5 + $0x8] ss:$0 sps:$4 sm:$0xff]   ;;  %vm423_vm0 = vcmask 195584   ;;  %v1295_v11 = vmov 0  }
  0xac   : > { %848 = vmatprep.subr.bf16.mxu0 %v1018_v0  ;;  %v1020_v2 = vld [vmem:[%s275_s1] sm:$0xff]   ;;  %v1021_v3 = vld [vmem:[%s275_s1 + $0x8] ss:$0 sps:$4 sm:$0xff]   ;;  %1016 = vset.pattern.permute.xlu1 %v1295_v11  ;;  %v1022_v15 = vld [vmem:[%s293_s11] sm:$0xff]   ;;  %vm531_vm1 = vcmask 1043456   ;;  %s1826_s26 = sld [smem:[#allocation18_spill]] }
  0xad   : > { %849 = vmatpush3.bf16.xpose.msra.mxu0 %v1018_v0  ;;  %852 = vmatprep.mubr.bf16.mxu0 %v1020_v2  ;;  %v1023_v16 = vld [vmem:[%s293_s11 + $0x8] ss:$0 sps:$4 sm:$0xff]   ;;  %s1827_s23 = sld [smem:[#allocation17_spill]]  ;;  %s325_s21 = scalar_lea.vmem [#allocation11], %s870_s15 }
  0xae   : > { %850 = vmatprep.subr.bf16.mxu0 %v1019_v1  ;;  %1017 = vset.pattern.permute.xlu0 %v1295_v11  ;;  %v533_v17 = vsel %vm531_vm1, %v1023_v16, 0  ;;  %s656_s16 = sshll.u32 %s325_s21, 4  ;;  %s1828_s24 = sld [smem:[#allocation28_spill]]  ;;  %s1678_s16 = int_to_ptr.vmem [resolvable:$true] %s656_s16 }
  0xaf   : > { %856 = vmatprep.subr.bf16.mxu1 %v1022_v15  ;;  %s639_s15 = scalar_lea.sflag [#allocation7], %s1638_s4  ;;  %s1134_s10 = scalar_lea.vmem %s1678_s16, 192 }
  0xb0   : > { %857 = vmatpush3.bf16.msra.mxu1 %v1022_v15  ;;  %p1135_p4 = scmp.ne.s32.totalorder %s1678_s16, %s1134_s10  ;;  %p1830_p6 = scmp.ne.s32.totalorder %s1808_s22, 0 }
  0xb1   : > { %864 = vmatprep.subr.msk.bf16.mxu1 %vm531_vm1, %v1023_v16  ;;  %s1296_s5 = smov [#allocation11]  }
  0xb2   : > { %s873_s7 = smul.u32 6, %s1826_s26  ;;  %p1136_p8 = pnand %p1135_p4, %p1830_p6 }
  0xb3   : > { %s1138_s3 = sshll.u32 %s1296_s5, 4  ;;  %s1139_s3 = int_to_ptr.vmem [resolvable:$false] %s1138_s3 }
  0xb4   : > { %859 = vmatpush3.bf16.msra.mxu1 %v533_v17  ;;  %s653_s28 = sadd.s32 %s1827_s23, %s873_s7  ;;  %s1829_s29 = smov %s1828_s24 }
  0xb5   : > { %851 = vmatpush3.bf16.xpose.msra.mxu0 %v1019_v1  ;;  %s829_s1 = sshll.u32 %s653_s28, 6  ;;  %p1137_p1 = pneg %p1136_p8 }
  0xb6   : > { %s1683_s12 = scalar_lea.hbm %s1828_s24, %s829_s1  ;;  %s1140_s0 = scalar_lea.vmem %s1139_s3, 384 }
  0xb7   : > { %p1141_p3 = scmp.lt.s32.totalorder %s1678_s16, %s1139_s3  ;;  %p1142_p12 = scmp.lt.s32.totalorder %s1140_s0, %s1134_s10 }
  0xb9   : > { %p1143_p10 = por %p1142_p12, %p1141_p3 }
  0xbb   : > { %p1144_p5 = pnand %p1143_p10, %p1137_p1 }
  0xbc   : > { %853 = vmatmul.mubr.bf16.vlgmr.msra.gmra.mrb[0].mxu0 %v1021_v3 }
 0x18f   : > { %v854_v4 = vpop.f32.mrb[0].mxu0 }
 0x190   : > { %v406_v5 = vpop.f32.mrb[1].mxu0  ;;  %v430_v6 = vsel %vm423_vm0, %v854_v4, -inf }
 0x191   : > { %431 = vmax.xlane.f32.xlu1 %v430_v6  ;;  %v855_v7 = vpop.f32.mrb[2].mxu0  ;;  %v424_v8 = vsel %vm423_vm0, %v406_v5, -inf }
 0x192   : > { %425 = vmax.xlane.f32.xlu0 %v424_v8  ;;  %v409_v9 = vpop.f32.mrb[3].mxu0 }
 0x193   : > { %v427_v10 = vsel %vm423_vm0, %v409_v9, -inf }
 0x196   : > { %428 = vmax.xlane.f32.xlu0 %v427_v10 }
 0x21e   : > { %v432_v13 = vpop.xlane.xlu1 %431 }
 0x21f   : > { %v426_v12 = vpop.xlane.xlu0 %425  ;;  %v438_v38 = vsub.f32 -inf, %v432_v13 }
 0x220   : > { %447 = vperm.xlu1 %1016, %v426_v12   ;;  %v436_v30 = vsub.f32 -inf, %v426_v12 }
 0x221   : > { %v443_v40 = vmul.f32 1.442695, %v438_v38 }
 0x222   : > { %v439_v36 = vmul.f32 1.442695, %v436_v30 }
 0x223   : > { %v429_v14 = vpop.xlane.xlu0 %428 }
 0x224   : > { %457 = vperm.xlu1 %1016, %v432_v13   ;;  %452 = vperm.xlu0 %1017, %v429_v14   ;;  %v437_v37 = vsub.f32 -inf, %v429_v14 }
 0x226   : > { %v441_v39 = vmul.f32 1.442695, %v437_v37 }
 0x29f   : > { %v448_v18 = vpop.permute.xlu1 %447 }
 0x2a0   : > { %v460_v19 = vsub.f32 %v406_v5, %v448_v18 }
 0x2a2   : > { %v463_v20 = vmul.f32 1.442695, %v460_v19 }
 0x2a3   : > { %v458_v21 = vpop.permute.xlu1 %457  ;;  %v453_v22 = vpop.permute.xlu0 %452 }
 0x2a4   : > { %1024 = vpow2.f32 %v463_v20  ;;  %v462_v23 = vsub.f32 %v854_v4, %v458_v21  ;;  %v461_v24 = vsub.f32 %v409_v9, %v453_v22 }
 0x2a6   : > { %v467_v25 = vmul.f32 1.442695, %v462_v23  ;;  %v465_v26 = vmul.f32 1.442695, %v461_v24 }
 0x2a8   : > { %1026 = vpow2.f32 %v467_v25 }
 0x2a9   : > { %1028 = vpow2.f32 %v465_v26 }
 0x2aa   : > { %1030 = vpow2.f32 %v439_v36 }
 0x2ab   : > { %1032 = vpow2.f32 %v441_v39 }
 0x2ac   : > { %1034 = vpow2.f32 %v443_v40 }
 0x2ae   : > { %v1025_v27 = vpop.eup %1024 }
 0x2af   : > { %v475_v28 = vsel %vm423_vm0, %v1025_v27, 0.0 }
 0x2b0   : > { %476 = vadd.xlane.f32.xlu1 %v475_v28 }
 0x2b2   : > { %v1027_v29 = vpop.eup %1026 }
 0x2b3   : > { %v1029_v31 = vpop.eup %1028  ;;  %v481_v32 = vsel %vm423_vm0, %v1027_v29, 0.0  ;;  %v512_v33 = vpack.c.bf16 %v1027_v29, %v1027_v29 }
 0x2b4   : > { %482 = vadd.xlane.f32.xlu1 %v481_v32  ;;  %v478_v34 = vsel %vm423_vm0, %v1029_v31, 0.0  ;;  %v511_v35 = vpack.c.bf16 %v1029_v31, %v1025_v27  ;;  %v1031_v41 = vpop.eup %1030 }
 0x2b5   : > { %479 = vadd.xlane.f32.xlu0 %v478_v34  ;;  %v1033_v42 = vpop.eup %1032  ;;  %v472_v44 = vmul.f32 0.0, %v1031_v41 }
 0x2b6   : > { %860 = vmatprep.mubr.msk.bf16.mxu1 %vm423_vm0, %v511_v35  ;;  %v1035_v43 = vpop.eup %1034  ;;  %v473_v47 = vmul.f32 0.0, %v1033_v42 }
 0x2b7   : > { %861 = vmatmul.mubr.msk.bf16.vlgmr.msra.gmra.mrb[0].mxu1 %vm423_vm0, %v512_v33  ;;  %v474_v50 = vmul.f32 0.0, %v1035_v43 }
 0x2c5   : > { %495 = vperm.xlu1 %1016, %v1031_v41  }
 0x2c9   : > { %500 = vperm.xlu1 %1016, %v1033_v42  }
 0x2cb   : > { %505 = vperm.xlu0 %1017, %v1035_v43  }
 0x33d   : > { %v477_v45 = vpop.xlane.xlu1 %476 }
 0x33e   : > { %v484_v46 = vadd.f32 %v477_v45, %v472_v44 }
 0x340   : > { %1036 = vrcp.f32 %v484_v46 }
 0x341   : > { %v483_v48 = vpop.xlane.xlu1 %482 }
 0x342   : > { %v480_v49 = vpop.xlane.xlu0 %479  ;;  %v486_v52 = vadd.f32 %v483_v48, %v474_v50 }
 0x343   : > { %v485_v51 = vadd.f32 %v480_v49, %v473_v47 }
 0x345   : > { %1038 = vrcp.f32 %v485_v51  ;;  %v496_v60 = vpop.permute.xlu1 %495 }
 0x346   : > { %1040 = vrcp.f32 %v486_v52  ;;  %v508_v63 = vmul.f32 0.0, %v496_v60 }
 0x349   : > { %v501_v61 = vpop.permute.xlu1 %500 }
 0x34a   : > { %v1037_v53 = vpop.eup %1036  ;;  %v509_v0 = vmul.f32 0.0, %v501_v61  ;;  %v506_v1 = vpop.permute.xlu0 %505 }
 0x34b   : > { %606 = vperm.xlu1 %1016, %v1037_v53   ;;  %v510_v5 = vmul.f32 0.0, %v506_v1 }
 0x34f   : > { %v1039_v54 = vpop.eup %1038 }
 0x350   : > { %611 = vperm.xlu1 %1016, %v1039_v54   ;;  %v1041_v55 = vpop.eup %1040 }
 0x354   : > { %616 = vperm.xlu1 %1016, %v1041_v55  }
 0x38a   : > { %v862_v56 = vpop.f32.mrb[0].mxu1 }
 0x38b   : > { %v569_v57 = vpop.f32.mrb[1].mxu1  ;;  %v585_v8 = vadd.f32 %v862_v56, %v510_v5 }
 0x38c   : > { %v863_v58 = vpop.f32.mrb[2].mxu1  ;;  %v583_v2 = vadd.f32 %v569_v57, %v508_v63 }
 0x38d   : > { %v572_v59 = vpop.f32.mrb[3].mxu1 }
 0x38e   : > { %v584_v3 = vadd.f32 %v572_v59, %v509_v0 }
 0x3ca   : > { %v607_v62 = vpop.permute.xlu1 %606 }
 0x3cb   : > { %v619_v6 = vmul.f32 %v607_v62, %v583_v2 }
 0x3cf   : > { %v612_v4 = vpop.permute.xlu1 %611 }
 0x3d0   : > { %v620_v7 = vmul.f32 %v612_v4, %v584_v3 }
 0x3d2   : > { %v838_v9 = vpack.c.bf16 %v620_v7, %v619_v6 }
 0x3d3   : > { %v617_v10 = vpop.permute.xlu1 %616 }
 0x3d4   : > { %839 = vst [vmem:[%s325_s21] sm:$0xff] %v838_v9   ;;  %v621_v11 = vmul.f32 %v617_v10, %v585_v8 }
 0x3d6   : > { %v834_v12 = vpack.c.bf16 %v621_v11, %v621_v11 }
 0x3d8   : > { %637 = vst [vmem:[%s325_s21 + $0x8] sm:$0xf] %v834_v12 }
 0x3d9   : > { %1147 = shalt.err (!%p1144_p5)
}
 0x3da   : > { %s1148_s11 = scalar_lea.hbm %s1683_s12, 192  ;;  %s1152_s7 = scalar_lea.hbm %s1829_s29, 768 }
 0x3db   : > { %p1149_p11 = scmp.ne.s32.totalorder %s1683_s12, %s1148_s11  ;;  %p1153_p13 = scmp.lt.u32.totalorder %s1683_s12, %s1829_s29 }
 0x3dc   : > { %p1154_p0 = scmp.lt.u32.totalorder %s1152_s7, %s1148_s11  ;;  %p1156_p4 = scmp.lt.u32.totalorder %s1148_s11, %s1683_s12 }
 0x3dd   : > { %p1150_p2 = pnand %p1149_p11, %p1830_p6 }
 0x3de   : > { %p1155_p7 = por %p1154_p0, %p1153_p13 }
 0x3df   : > { %p1151_p9 = pneg %p1150_p2 }
 0x3e0   : > { %p1157_p8 = por %p1156_p4, %p1155_p7 }
 0x3e2   : > { %p1158_p1 = pnand %p1157_p8, %p1151_p9 }
 0x3e4   : > { %1161 = shalt.err (!%p1158_p1)
}
 0x3e5   : > { %s1297_s1 = smov 64   ;;  %s1298_s2 = smov 128  }
 0x3e6   : > { %s1299_s9 = smov 4  }
 0x3e7   : > { %880 = dma.vmem_to_hbm [thread:$0]  (%p1830_p6), %s1678_s16, 192, %s1683_s12, %s639_s15, %s1297_s1, %s1298_s2, %s1299_s9  }
 0x3e8 PF: > { %p897_p3 = scmp.ge.s32.totalorder %s1288_s25, 2  ;;  %s671_s24 = sand.u32 1, %s1260_s18  }
 0x3e9   : > { %p1831_p12 = scmp.ne.s32.totalorder %s1809_s6, 0  ;;  %s672_s10 = scalar_lea.sflag [#allocation7], %s671_s24 }
 0x3eb   : > { %p893_p10 = pnand %p897_p3, %p1831_p12 }
 0x3ed   : > { %1231 = dma.done.wait (!%p893_p10), %s672_s10, 192  }
 0x3ee   : > { %1233 = vsyncadd (!%p893_p10), %s672_s10, 4294967104  ;;  %s22_s25 = sadd.s32 1, %s1288_s25   ;;  %s1833_s15 = sld [smem:[#allocation16_spill]] }
 0x3ef   : > { %p1714_p5 = scmp.ge.s32.totalorder %s22_s25, 6   ;;  %s1834_s22 = sld [smem:[#allocation24_spill]] }
 0x3f0   : > { %s1835_s21 = sld [smem:[#allocation19_spill]]  ;;  %s1836_s6 = sld [smem:[#allocation20_spill]] }
 0x3f1   : > { %s1837_s23 = sld [smem:[#allocation21_spill]]  ;;  %s1838_s24 = sld [smem:[#allocation22_spill]] }
 0x3f2   : > { %s1839_s12 = smov %s1240_s13  ;;  %s1840_s13 = smov %s1244_s14 }
 0x3f3   : > { %s1841_s14 = smov %s1578_s8  ;;  %s1842_s16 = smov %s1256_s17 }
 0x3f4   : > { %s1843_s17 = smov %s1429_s30  ;;  %s1844_s18 = smov %s1264_s19 }
 0x3f5   : > { %s1845_s19 = smov %s1268_s20  ;;  %s1846_s20 = smov %s1834_s22 }
 0x3f6   : > { %s1847_s22 = smov %s1836_s6  ;;  %21 = sbr.rel (!%p1714_p5) target bundleno = 17 (0x11), region = 109 }
 0x3fd   :  { %677 = vsyncpa [#allocation6], 1 }
 0x3fe   :  { %679 = vsyncpa [#allocation6 + $0x1], 1 }
 0x3ff   :  { %680 = vsyncpa [#allocation9], 1 }
 0x400   :  { %682 = vsyncpa [#allocation9 + $0x1], 1 }
 0x401   :  { %683 = vsyncpa [#allocation7], 1 }
 0x402   :  { %685 = vsyncpa [#allocation7 + $0x1], 1 }

// kernel: aura_flow_joint_block_forward.12
= control target key start
LH: loop header
LB: loop body
LE: loop exit
PB: predicated region body
PF: predicated region fallthrough
CT: control target
= control target key end

     0   :  { %s1632_s0 = inlined_call_operand.hbm [shape: bf16[2,24,256], index: 0, kind: input, shape index: {}]   ;;  %s1633_s1 = inlined_call_operand.hbm [shape: bf16[256,256], index: 1, kind: input, shape index: {}]   ;;  %s1634_s2 = inlined_call_operand.hbm [shape: f32[2,16,256], index: 2, kind: input, shape index: {}]   ;;  %s1635_s3 = inlined_call_operand.hbm [shape: f32[2,12,256], index: 3, kind: input, shape index: {}]   ;;  %s1636_s4 = inlined_call_operand.hbm [shape: bf16[2,16,256], index: 4, kind: output, shape index: {}]  }
   0x1   :  { %1647 = sst [smem:[#allocation14_spill]] %s1632_s0 }
   0x2   :  { %1648 = sst [smem:[#allocation15_spill]] %s1634_s2 }
   0x3   :  { %9 = vsyncpa [#allocation3], 0 }
   0x4   :  { %11 = vsyncpa [#allocation3 + $0x1], 0 }
   0x5   :  { %12 = vsyncpa [#allocation6], 0 }
   0x6   :  { %13 = vsyncpa [#allocation4], 0 }
   0x7   :  { %15 = vsyncpa [#allocation4 + $0x1], 0  ;;  %s1299_s15 = smov 0   ;;  %s1301_s16 = smov 0  }
   0x8   :  { %s1303_s17 = smov 0   ;;  %s1305_s18 = smov 0  }
   0x9   :  { %s1307_s19 = smov 0   ;;  %s1309_s20 = smov 0  }
   0xa LB: > { %s33_s21 = sadd.s32 1, %s1257_s19  ;;  %s42_s22 = sadd.s32 1, %s1249_s17  ;;  %s1261_s20 = sphi %s1309_s20, %s21_s20   ;;  %s1257_s19 = sphi %s1307_s19, %s1675_s19   ;;  %s1253_s18 = sphi %s1305_s18, %s1674_s18   ;;  %s1249_s17 = sphi %s1303_s17, %s1673_s17   ;;  %s1245_s16 = sphi %s1301_s16, %s1672_s16   ;;  %s1241_s15 = sphi %s1299_s15, %s1671_s15  }
   0xb   : > { %p35_p0 = scmp.ge.s32.totalorder %s33_s21, 2  ;;  %p1637_p1 = scmp.ne.s32.totalorder %s1249_s17, %s1245_s16 }
   0xc   : > { %p50_p2 = scmp.eq.s32.totalorder %s1261_s20, 0  ;;  %p940_p6 = scmp.lt.s32.totalorder %s1261_s20, 2 }
   0xd   : > { %s1677_s21 = smov (%p35_p0, %s33_s21), 0  ;;  %s195_s24 = sand.u32 1, %s1261_s20  }
   0xe   : > { %p51_p3 = por %p50_p2, %p1637_p1  ;;  %s37_s23 = ssub.s32 %s1257_s19, %s1677_s21 }
   0xf   : > { %p40_p5 = scmp.eq.s32.totalorder %s37_s23, 0  ;;  %s197_s25 = sand.u32 1, %s1249_s17  }
  0x10   : > { %s848_s27 = sshll.u32 %s197_s25, 4  ;;  %s908_s28 = smul.u32 384, %s1257_s19 }
  0x11   : > { %s1346_s26 = scalar_select %p40_p5, %s1249_s17, %s42_s22  }
  0x12   : > { %s199_s29 = scalar_lea.vmem [#allocation2], %s848_s27  ;;  %p1349_p7 = pnand %p940_p6, %p51_p3 }
  0x13   : > { %s216_s30 = sshll.u32 %s199_s29, 4  ;;  %s1650_s0 = sld [smem:[#allocation14_spill]]  ;;  %s1358_s30 = int_to_ptr.vmem [resolvable:$true] %s216_s30 }
  0x14   : > { %s1360_s9 = sshll.u32 %s197_s25, 5  ;;  %s1362_s10 = scalar_lea.sflag [#allocation3], %s195_s24 }
  0x15   : > { %p1368_p9 = pneg %p1349_p7 }
  0x19   : > { %s1356_s8 = scalar_lea.hbm %s1650_s0, %s908_s28  ;;  %s1058_s22 = scalar_lea.hbm %s1650_s0, 768 }
  0x1a   : > { %s1053_s11 = scalar_lea.hbm %s1356_s8, 256  ;;  %p1059_p12 = scmp.lt.u32.totalorder %s1356_s8, %s1650_s0 }
  0x1b   : > { %p1054_p8 = scmp.ne.s32.totalorder %s1356_s8, %s1053_s11  ;;  %p1060_p13 = scmp.lt.u32.totalorder %s1058_s22, %s1053_s11 }
  0x1c   : > { %p1062_p2 = scmp.lt.u32.totalorder %s1053_s11, %s1356_s8 }
  0x1d   : > { %p1056_p10 = pnand %p1368_p9, %p1054_p8  ;;  %p1061_p0 = por %p1060_p13, %p1059_p12 }
  0x1f   : > { %p1057_p11 = pneg %p1056_p10  ;;  %p1063_p3 = por %p1062_p2, %p1061_p0 }
  0x21   : > { %p1064_p5 = pnand %p1063_p3, %p1057_p11 }
  0x23   : > { %1067 = shalt.err (!%p1064_p5)
}
  0x24   : > { %s1068_s24 = scalar_lea.vmem %s1358_s30, 256  ;;  %s1263_s27 = smov [#allocation2]  }
  0x25   : > { %p1069_p6 = scmp.ne.s32.totalorder %s1358_s30, %s1068_s24  ;;  %s1073_s28 = sshll.u32 %s1263_s27, 4  ;;  %s1074_s28 = int_to_ptr.vmem [resolvable:$false] %s1073_s28 }
  0x26   : > { %s1075_s29 = scalar_lea.vmem %s1074_s28, 512  ;;  %p1076_p4 = scmp.lt.s32.totalorder %s1358_s30, %s1074_s28 }
  0x27   : > { %p1071_p8 = pnand %p1069_p6, %p1368_p9  ;;  %p1077_p1 = scmp.lt.s32.totalorder %s1075_s29, %s1068_s24 }
  0x29   : > { %p1072_p10 = pneg %p1071_p8  ;;  %p1078_p12 = por %p1077_p1, %p1076_p4 }
  0x2b   : > { %p1079_p13 = pnand %p1078_p12, %p1072_p10 }
  0x2d   : > { %1082 = shalt.err (!%p1079_p13)
}
  0x2e   : > { %s1638_s6 = smov 128   ;;  %s1639_s7 = smov 8  }
  0x2f   : > { %928 = dma.hbm_to_vmem [thread:$0]  (!%p1349_p7), %s1356_s8, 256, %s1358_s30, %s1362_s10, %s1638_s6, %s1638_s6, %s1639_s7  }
  0x30   : > { %s903_s11 = sshll.u32 %s1257_s19, 9  ;;  %s1652_s2 = sld [smem:[#allocation15_spill]] }
  0x31   : > { %s230_s23 = scalar_lea.vmem [#allocation7], %s1360_s9 }
  0x32   : > { %s240_s25 = sshll.u32 %s230_s23, 4  ;;  %s1404_s25 = int_to_ptr.vmem [resolvable:$true] %s240_s25 }
  0x36   : > { %s1401_s22 = scalar_lea.hbm %s1652_s2, %s903_s11  ;;  %s1088_s27 = scalar_lea.hbm %s1652_s2, 1024 }
  0x37   : > { %s1083_s24 = scalar_lea.hbm %s1401_s22, 512  ;;  %p1089_p0 = scmp.lt.u32.totalorder %s1401_s22, %s1652_s2 }
  0x38   : > { %p1084_p1 = scmp.ne.s32.totalorder %s1401_s22, %s1083_s24  ;;  %p1090_p2 = scmp.lt.u32.totalorder %s1088_s27, %s1083_s24 }
  0x39   : > { %p1092_p5 = scmp.lt.u32.totalorder %s1083_s24, %s1401_s22 }
  0x3a   : > { %p1086_p4 = pnand %p1084_p1, %p1368_p9  ;;  %p1091_p3 = por %p1090_p2, %p1089_p0 }
  0x3c   : > { %p1087_p11 = pneg %p1086_p4  ;;  %p1093_p6 = por %p1092_p5, %p1091_p3 }
  0x3e   : > { %p1094_p8 = pnand %p1093_p6, %p1087_p11 }
  0x40   : > { %1097 = shalt.err (!%p1094_p8)
}
  0x41   : > { %s1098_s13 = scalar_lea.vmem %s1404_s25, 512  ;;  %s1266_s14 = smov [#allocation7]  }
  0x42   : > { %p1099_p10 = scmp.ne.s32.totalorder %s1404_s25, %s1098_s13  ;;  %s1103_s23 = sshll.u32 %s1266_s14, 4  ;;  %s1104_s23 = int_to_ptr.vmem [resolvable:$false] %s1103_s23 }
  0x43   : > { %s1105_s30 = scalar_lea.vmem %s1104_s23, 1024  ;;  %p1106_p1 = scmp.lt.s32.totalorder %s1404_s25, %s1104_s23 }
  0x44   : > { %p1101_p12 = pnand %p1099_p10, %p1368_p9  ;;  %p1107_p4 = scmp.lt.s32.totalorder %s1105_s30, %s1098_s13 }
  0x46   : > { %p1102_p13 = pneg %p1101_p12  ;;  %p1108_p0 = por %p1107_p4, %p1106_p1 }
  0x48   : > { %p1109_p2 = pnand %p1108_p0, %p1102_p13 }
  0x4a   : > { %1112 = shalt.err (!%p1109_p2)
}
  0x4b   : > { %s1640_s24 = smov 256   ;;  %s1641_s8 = smov 16  }
  0x4c   : > { %931 = dma.hbm_to_vmem [thread:$0]  (!%p1349_p7), %s1401_s22, 512, %s1404_s25, %s1362_s10, %s1640_s24, %s1640_s24, %s1641_s8  }
  0x4d   : > { %s1432_s27 = sadd.s32 4294967295, %s1261_s20   ;;  %s844_s28 = sadd.s32 4294967294, %s1261_s20  }
  0x4e   : > { %p55_p11 = scmp.ne.s32.totalorder %s1245_s16, %s1241_s15  ;;  %p1642_p3 = scmp.eq.s32.totalorder %s1432_s27, 0 }
  0x4f   : > { %p156_p5 = scmp.eq.s32.totalorder %s1432_s27, 1  ;;  %p162_p6 = scmp.eq.s32.totalorder %s844_s28, 1 }
  0x50   : > { %p845_p8 = scmp.ge.s32.totalorder %s1261_s20, 1  ;;  %p1442_p10 = por %p1642_p3, %p55_p11 }
  0x51   : > { %p1654_p12 = scmp.ne.s32.totalorder %s1249_s17, %s1245_s16  ;;  %p1453_p1 = por %p162_p6, %p55_p11 }
  0x52   : > { %s1653_s29 = scalar_select %p1442_p10, 1, 0 }
  0x53   : > { %p1449_p13 = por %p156_p5, %p1654_p12  ;;  %p169_p4 = scmp.lt.s32.totalorder %s1261_s20, 3 }
  0x54   : > { %s1656_s25 = scalar_select %p1453_p1, 1, 0 }
  0x55   : > { %s1655_s22 = scalar_select %p1449_p13, 1, 0 }
  0x56   : > { %p1458_p0 = pnand %p845_p8, %p169_p4  ;;  %s1269_s14 = smov [#allocation5]  }
  0x57   : > { %s181_s23 = sshll.u32 %s1269_s14, 4  ;;  %s1469_s6 = scalar_lea.hbm %s1635_s3, %s903_s11  ;;  %s1471_s23 = int_to_ptr.vmem [resolvable:$true] %s181_s23 }
  0x58   : > { %s1657_s13 = scalar_select %p1458_p0, 1, 0 }
  0x59   : > { %p921_p2 = pneg %p1458_p0  ;;  %s254_s7 = scalar_lea.vmem [#allocation8], %s1360_s9 }
  0x5a   : > { %s261_s24 = sshll.u32 %s254_s7, 4  ;;  %s1113_s14 = scalar_lea.hbm %s1469_s6, 512  ;;  %s1480_s24 = int_to_ptr.vmem [resolvable:$true] %s261_s24 }
  0x5b   : > { %p1476_p11 = pnand %p921_p2, %p1642_p3  ;;  %p1114_p5 = scmp.ne.s32.totalorder %s1469_s6, %s1113_s14 }
  0x5c   : > { %s1118_s28 = scalar_lea.hbm %s1635_s3, 1024  ;;  %p1119_p12 = scmp.lt.u32.totalorder %s1469_s6, %s1635_s3 }
  0x5d   : > { %s1658_s8 = scalar_select %p1476_p11, 1, 0 }
  0x5e   : > { %p1116_p6 = pnand %p1114_p5, %p1368_p9  ;;  %p1120_p4 = scmp.lt.u32.totalorder %s1118_s28, %s1113_s14 }
  0x5f   : > { %p1122_p3 = scmp.lt.u32.totalorder %s1113_s14, %s1469_s6 }
  0x60   : > { %p1117_p8 = pneg %p1116_p6  ;;  %p1121_p2 = por %p1120_p4, %p1119_p12 }
  0x62   : > { %p1123_p1 = por %p1122_p3, %p1121_p2 }
  0x64   : > { %p1124_p13 = pnand %p1123_p1, %p1117_p8 }
  0x66   : > { %1127 = shalt.err (!%p1124_p13)
}
  0x67   : > { %s1128_s9 = scalar_lea.vmem %s1480_s24, 512  ;;  %s1270_s7 = smov [#allocation8]  }
  0x68   : > { %p1129_p5 = scmp.ne.s32.totalorder %s1480_s24, %s1128_s9  ;;  %s1133_s11 = sshll.u32 %s1270_s7, 4  ;;  %s1134_s11 = int_to_ptr.vmem [resolvable:$false] %s1133_s11 }
  0x69   : > { %s1135_s0 = scalar_lea.vmem %s1134_s11, 1024  ;;  %p1136_p0 = scmp.lt.s32.totalorder %s1480_s24, %s1134_s11 }
  0x6a   : > { %p1131_p6 = pnand %p1129_p5, %p1368_p9  ;;  %p1137_p11 = scmp.lt.s32.totalorder %s1135_s0, %s1128_s9 }
  0x6c   : > { %p1132_p10 = pneg %p1131_p6  ;;  %p1138_p12 = por %p1137_p11, %p1136_p0 }
  0x6e   : > { %p1139_p4 = pnand %p1138_p12, %p1132_p10 }
  0x70   : > { %1142 = shalt.err (!%p1139_p4)
}
  0x71   : > { %s1659_s2 = smov 16   ;;  %s1660_s14 = smov 256  }
  0x72   : > { %934 = dma.hbm_to_vmem [thread:$0]  (!%p1349_p7), %s1469_s6, 512, %s1480_s24, %s1362_s10, %s1660_s14, %s1660_s14, %s1659_s2  }
  0x73   : > { %s1143_s28 = scalar_lea.hbm %s1633_s1, 4096  ;;  %p1661_p3 = scmp.ne.s32.totalorder %s1658_s8, 0 }
  0x74   : > { %p1144_p9 = scmp.ne.s32.totalorder %s1633_s1, %s1143_s28  ;;  %p1150_p0 = scmp.lt.u32.totalorder %s1143_s28, %s1633_s1 }
  0x75   : > { %p1145_p10 = pneg %p1661_p3 }
  0x77   : > { %p1146_p13 = pnand %p1145_p10, %p1144_p9 }
  0x79   : > { %p1147_p1 = pneg %p1146_p13 }
  0x7b   : > { %p1152_p11 = pnand %p1150_p0, %p1147_p1 }
  0x7d   : > { %1155 = shalt.err (!%p1152_p11)
}
  0x7e   : > { %s1156_s10 = scalar_lea.vmem %s1471_s23, 4096  ;;  %p1164_p5 = scmp.lt.s32.totalorder %s1471_s23, %s1471_s23 }
  0x7f   : > { %p1157_p7 = scmp.ne.s32.totalorder %s1471_s23, %s1156_s10  ;;  %p1165_p6 = scmp.lt.s32.totalorder %s1156_s10, %s1156_s10 }
  0x81   : > { %p1159_p8 = pnand %p1157_p7, %p1145_p10  ;;  %p1166_p12 = por %p1165_p6, %p1164_p5 }
  0x83   : > { %p1160_p2 = pneg %p1159_p8 }
  0x85   : > { %p1167_p4 = pnand %p1166_p12, %p1160_p2 }
  0x87   : > { %1170 = shalt.err (!%p1167_p4)
}
  0x88   : > { %s1662_s6 = smov 8   ;;  %s1663_s24 = smov 128  }
  0x89   : > { %924 = dma.hbm_to_vmem [thread:$0]  (!%p1661_p3), %s1633_s1, 4096, %s1471_s23, [#allocation6], %s1663_s24, %s1663_s24, %s1662_s6  }
  0x8a   : > { %p1664_p9 = scmp.ne.s32.totalorder %s1657_s13, 0 }
  0x8b   : > { %s275_s14 = sand.u32 (!%p1664_p9), 1, %s1432_s27   ;;  %s1535_s12 = sand.u32 (!%p1664_p9), 1, %s1245_s16  }
  0x8c   : > { %273 = sbr.rel (%p1664_p9) target bundleno = 836 (0x344), region = 36  ;;  %s857_s8 = sshll.u32 (!%p1664_p9), %s1535_s12, 4 }
  0x8d   : > { %s276_s30 = scalar_lea.sflag (!%p1664_p9), [#allocation3], %s275_s14  ;;  %s1540_s28 = scalar_lea.vmem (!%p1664_p9), [#allocation2], %s857_s8 }
  0x8e   : > { %p1665_p10 = scmp.ne.s32.totalorder (!%p1664_p9), %s1653_s29, 0 }
  0x93   : > { %1224 = dma.done.wait (%p1665_p10), %s276_s30, 256  }
  0x94   : > { %1226 = vsyncadd (%p1665_p10), %s276_s30, 4294967040  ;;  %p1666_p3 = scmp.eq.s32.totalorder %s1432_s27, 0 }
  0x96   : > { %1228 = dma.done.wait (%p1666_p3), [#allocation6], 4096   ;;  %p1667_p13 = pmov %p1666_p3 }
  0x97   : > { %s859_s13 = sshll.u32 %s1535_s12, 5 }
  0x98   : > { %1230 = vsyncadd (%p1667_p13), [#allocation6], 4294963200  ;;  %s1553_s23 = scalar_lea.vmem [#allocation7], %s859_s13 }
  0x99   : > { %1232 = dma.done.wait (%p1665_p10), %s276_s30, 1024  }
  0x9a   : > { %1234 = vsyncadd (%p1665_p10), %s276_s30, 4294966272  ;;  %v998_v0 = vld [vmem:[#allocation5 + $0x4] ss:$8 sps:$4 sm:$0xff]   ;;  %v1000_v1 = vld [vmem:[#allocation5] ss:$8 sps:$4 sm:$0xff]   ;;  %v597_v34 = vlaneseq  ;;  %s301_s27 = scalar_lea.vmem [#allocation8], %s859_s13 }
  0x9b   : > { %548 = vmatprep.subr.bf16.mxu0 %v998_v0  ;;  %v1001_v2 = vld [vmem:[#allocation5 + $0x14] ss:$8 sps:$4 sm:$0xff]   ;;  %v1003_v3 = vld [vmem:[#allocation5 + $0x10] ss:$8 sps:$4 sm:$0xff]   ;;  %v1004_v4 = vld [vmem:[#allocation5 + $0x24] ss:$8 sps:$4 sm:$0xff]  }
  0x9c   : > { %549 = vmatpush1.bf16.xpose.msra.mxu0 %v1000_v1  ;;  %v1006_v5 = vld [vmem:[#allocation5 + $0x20] ss:$8 sps:$4 sm:$0xff]   ;;  %v1007_v6 = vld [vmem:[#allocation5 + $0x34] ss:$8 sps:$4 sm:$0xff]   ;;  %v1009_v8 = vld [vmem:[#allocation5 + $0x30] ss:$8 sps:$4 sm:$0xff]  }
  0x9d   : > { %550 = vmatprep.subr.bf16.mxu0 %v1001_v2  ;;  %v1048_v7 = vld [vmem:[%s1540_s28 + $0x4] ss:$8 sps:$4 sm:$0xff]   ;;  %v1012_v10 = vld [vmem:[#allocation5 + $0x40] ss:$8 sps:$4 sm:$0xff]   ;;  %v1015_v12 = vld [vmem:[#allocation5 + $0x50] ss:$8 sps:$4 sm:$0xff]  }
  0x9e   : > { %v1010_v9 = vld [vmem:[#allocation5 + $0x44] ss:$8 sps:$4 sm:$0xff]   ;;  %580 = vmatprep.mubr.bf16.mxu0 %v1048_v7  ;;  %v1013_v11 = vld [vmem:[#allocation5 + $0x54] ss:$8 sps:$4 sm:$0xff]   ;;  %v1018_v14 = vld [vmem:[#allocation5 + $0x60] ss:$8 sps:$4 sm:$0xff]  }
  0x9f   : > { %v1016_v13 = vld [vmem:[#allocation5 + $0x64] ss:$8 sps:$4 sm:$0xff]   ;;  %v1019_v15 = vld [vmem:[#allocation5 + $0x74] ss:$8 sps:$4 sm:$0xff]   ;;  %v1021_v16 = vld [vmem:[#allocation5 + $0x70] ss:$8 sps:$4 sm:$0xff]  }
  0xa0   : > { %v1022_v17 = vld [vmem:[#allocation5 + $0x84] ss:$8 sps:$4 sm:$0xff]   ;;  %v1024_v18 = vld [vmem:[#allocation5 + $0x80] ss:$8 sps:$4 sm:$0xff]   ;;  %v1025_v19 = vld [vmem:[#allocation5 + $0x94] ss:$8 sps:$4 sm:$0xff]  }
  0xa1   : > { %v1027_v20 = vld [vmem:[#allocation5 + $0x90] ss:$8 sps:$4 sm:$0xff]   ;;  %v1028_v21 = vld [vmem:[#allocation5 + $0xa4] ss:$8 sps:$4 sm:$0xff]   ;;  %v1030_v22 = vld [vmem:[#allocation5 + $0xa0] ss:$8 sps:$4 sm:$0xff]  }
  0xa2   : > { %v1031_v23 = vld [vmem:[#allocation5 + $0xb4] ss:$8 sps:$4 sm:$0xff]   ;;  %v1033_v24 = vld [vmem:[#allocation5 + $0xb0] ss:$8 sps:$4 sm:$0xff]   ;;  %v1034_v25 = vld [vmem:[#allocation5 + $0xc4] ss:$8 sps:$4 sm:$0xff]  }
  0xa3   : > { %v1036_v26 = vld [vmem:[#allocation5 + $0xc0] ss:$8 sps:$4 sm:$0xff]   ;;  %v1037_v27 = vld [vmem:[#allocation5 + $0xd4] ss:$8 sps:$4 sm:$0xff]   ;;  %v1039_v28 = vld [vmem:[#allocation5 + $0xd0] ss:$8 sps:$4 sm:$0xff]  }
  0xa4   : > { %551 = vmatpush1.bf16.xpose.msra.mxu0 %v1003_v3  ;;  %v1040_v29 = vld [vmem:[#allocation5 + $0xe4] ss:$8 sps:$4 sm:$0xff]   ;;  %v1042_v30 = vld [vmem:[#allocation5 + $0xe0] ss:$8 sps:$4 sm:$0xff]   ;;  %v1043_v31 = vld [vmem:[#allocation5 + $0xf4] ss:$8 sps:$4 sm:$0xff]  }
  0xa5   : > { %552 = vmatprep.subr.bf16.mxu0 %v1004_v4  ;;  %v1045_v32 = vld [vmem:[#allocation5 + $0xf0] ss:$8 sps:$4 sm:$0xff]   ;;  %v598_v35 = vshrl.u32 %v597_v34, 7  ;;  %v591_v36 = vld [vmem:[%s301_s27] sm:$0xff]  ;;  %v592_v40 = vld [vmem:[%s301_s27 + $0x8] sm:$0xff]  ;;  %s907_s29 = sshll.u32 %s1253_s18, 8 }
  0xa6   : > { %v1046_v33 = vld [vmem:[%s1540_s28] ss:$8 sps:$4 sm:$0xff]   ;;  %v646_v37 = vadd.f32 1.0, %v591_v36  ;;  %v647_v41 = vadd.f32 1.0, %v592_v40  ;;  %s335_s7 = scalar_lea.vmem [#allocation9], %s857_s8  ;;  %s1581_s10 = scalar_lea.hbm %s1636_s4, %s907_s29 }
  0xa7   : > { %v650_v38 = vsub.s32 4, %v598_v35  ;;  %v662_v39 = vsub.s32 3, %v598_v35  ;;  %v599_v46 = vsub.s32 2, %v598_v35  ;;  %v593_v50 = vld [vmem:[%s1553_s23] sm:$0xff]  ;;  %v594_v53 = vld [vmem:[%s1553_s23 + $0x8] sm:$0xff]  ;;  %v595_v56 = vld [vmem:[%s1553_s23 + $0x10] sm:$0xff] }
  0xa8   : > { %v596_v59 = vld [vmem:[%s1553_s23 + $0x18] sm:$0xff]  ;;  %s703_s11 = sshll.u32 %s335_s7, 4  ;;  %s687_s18 = scalar_lea.sflag [#allocation4], %s1535_s12  ;;  %s1583_s11 = int_to_ptr.vmem [resolvable:$true] %s703_s11 }
  0xa9   : > { %v651_v42 = vrot.slane %v646_v37, %v650_v38  ;;  %v1563_v43 = vrot.slane %v591_v36, %v662_v39  ;;  %v1565_v44 = vrot.slane %v592_v40, %v662_v39  ;;  %v655_v45 = vrot.slane %v647_v41, %v650_v38  ;;  %s1171_s6 = scalar_lea.vmem %s1583_s11, 256  ;;  %p1668_p0 = scmp.ne.s32.totalorder %s1655_s22, 0 }
  0xaa   : > { %v600_v47 = vrot.slane %v591_v36, %v599_v46  ;;  %v604_v48 = vrot.slane %v592_v40, %v599_v46  ;;  %p1172_p1 = scmp.ne.s32.totalorder %s1583_s11, %s1171_s6  ;;  %s1271_s24 = smov [#allocation9]  }
  0xab   : > { %s1175_s0 = sshll.u32 %s1271_s24, 4  ;;  %s1176_s0 = int_to_ptr.vmem [resolvable:$false] %s1175_s0 }
  0xac   : > { %553 = vmatpush1.bf16.xpose.msra.mxu0 %v1006_v5  ;;  %p1173_p11 = pnand %p1172_p1, %p1668_p0  ;;  %s1177_s2 = scalar_lea.vmem %s1176_s0, 512 }
  0xad   : > { %554 = vmatprep.subr.bf16.mxu0 %v1007_v6  ;;  %p1178_p8 = scmp.lt.s32.totalorder %s1583_s11, %s1176_s0  ;;  %p1179_p2 = scmp.lt.s32.totalorder %s1177_s2, %s1171_s6 }
  0xae   : > { %p1174_p7 = pneg %p1173_p11 }
  0xaf   : > { %p1180_p5 = por %p1179_p2, %p1178_p8 }
  0xb1   : > { %p1181_p6 = pnand %p1180_p5, %p1174_p7 }
  0xb4   : > { %555 = vmatpush1.bf16.xpose.msra.mxu0 %v1009_v8 }
  0xb5   : > { %556 = vmatprep.subr.bf16.mxu0 %v1010_v9 }
  0xbc   : > { %557 = vmatpush1.bf16.xpose.msra.mxu0 %v1012_v10 }
  0xbd   : > { %558 = vmatprep.subr.bf16.mxu0 %v1013_v11 }
  0xc4   : > { %559 = vmatpush1.bf16.xpose.msra.mxu0 %v1015_v12 }
  0xc5   : > { %560 = vmatprep.subr.bf16.mxu0 %v1016_v13 }
  0xcc   : > { %561 = vmatpush1.bf16.xpose.msra.mxu0 %v1018_v14 }
  0xcd   : > { %562 = vmatprep.subr.bf16.mxu0 %v1019_v15 }
  0xd4   : > { %563 = vmatpush1.bf16.xpose.msra.mxu0 %v1021_v16 }
  0xd5   : > { %564 = vmatprep.subr.bf16.mxu0 %v1022_v17 }
  0xdc   : > { %565 = vmatpush1.bf16.xpose.msra.mxu0 %v1024_v18 }
  0xdd   : > { %566 = vmatprep.subr.bf16.mxu0 %v1025_v19 }
  0xe4   : > { %567 = vmatpush1.bf16.xpose.msra.mxu0 %v1027_v20 }
  0xe5   : > { %568 = vmatprep.subr.bf16.mxu0 %v1028_v21 }
  0xec   : > { %569 = vmatpush1.bf16.xpose.msra.mxu0 %v1030_v22 }
  0xed   : > { %570 = vmatprep.subr.bf16.mxu0 %v1031_v23 }
  0xf4   : > { %571 = vmatpush1.bf16.xpose.msra.mxu0 %v1033_v24 }
  0xf5   : > { %572 = vmatprep.subr.bf16.mxu0 %v1034_v25 }
  0xfc   : > { %573 = vmatpush1.bf16.xpose.msra.mxu0 %v1036_v26 }
  0xfd   : > { %574 = vmatprep.subr.bf16.mxu0 %v1037_v27 }
 0x104   : > { %575 = vmatpush1.bf16.xpose.msra.mxu0 %v1039_v28 }
 0x105   : > { %576 = vmatprep.subr.bf16.mxu0 %v1040_v29 }
 0x10c   : > { %577 = vmatpush1.bf16.xpose.msra.mxu0 %v1042_v30 }
 0x10d   : > { %578 = vmatprep.subr.bf16.mxu0 %v1043_v31 }
 0x114   : > { %579 = vmatpush1.bf16.xpose.msra.mxu0 %v1045_v32 }
 0x11b   : > { %581 = vmatmul.mubr.bf16.vlgmr.msra.gmra.mrb[0].mxu0 %v1046_v33 }
 0x1ee   : > { %v582_v49 = vpop.f32.mrb[0].mxu0 }
 0x1ef   : > { %v605_v51 = vmul.f32 %v600_v47, %v582_v49  ;;  %v584_v52 = vpop.f32.mrb[1].mxu0 }
 0x1f0   : > { %v606_v54 = vmul.f32 %v604_v48, %v584_v52  ;;  %v586_v55 = vpop.f32.mrb[2].mxu0 }
 0x1f1   : > { %v607_v57 = vmul.f32 %v600_v47, %v586_v55  ;;  %v588_v58 = vpop.f32.mrb[3].mxu0  ;;  %v609_v60 = vadd.f32 %v605_v51, %v593_v50 }
 0x1f2   : > { %v608_v61 = vmul.f32 %v604_v48, %v588_v58  ;;  %v610_v62 = vadd.f32 %v606_v54, %v594_v53 }
 0x1f3   : > { %v611_v63 = vadd.f32 %v607_v57, %v595_v56 }
 0x1f4   : > { %v612_v0 = vadd.f32 %v608_v61, %v596_v59  ;;  %v613_v1 = vadd.f32 %v610_v62, %v609_v60 }
 0x1f6   : > { %614 = vadd.xlane.f32.xlu0 %v613_v1  ;;  %v616_v2 = vadd.f32 %v612_v0, %v611_v63 }
 0x1fa   : > { %617 = vadd.xlane.f32.xlu0 %v616_v2 }
 0x283   : > { %v615_v3 = vpop.xlane.xlu0 %614 }
 0x284   : > { %v620_v4 = vmul.f32 0.00390625, %v615_v3 }
 0x286   : > { %v622_v5 = vsub.f32 %v609_v60, %v620_v4  ;;  %v623_v6 = vsub.f32 %v610_v62, %v620_v4 }
 0x287   : > { %v618_v7 = vpop.xlane.xlu0 %617 }
 0x288   : > { %v621_v8 = vmul.f32 0.00390625, %v618_v7  ;;  %v626_v9 = vmul.f32 %v622_v5, %v622_v5  ;;  %v627_v10 = vmul.f32 %v623_v6, %v623_v6 }
 0x28a   : > { %v624_v11 = vsub.f32 %v611_v63, %v621_v8  ;;  %v625_v12 = vsub.f32 %v612_v0, %v621_v8  ;;  %v630_v13 = vadd.f32 %v627_v10, %v626_v9 }
 0x28c   : > { %631 = vadd.xlane.f32.xlu1 %v630_v13  ;;  %v628_v14 = vmul.f32 %v624_v11, %v624_v11  ;;  %v629_v15 = vmul.f32 %v625_v12, %v625_v12 }
 0x28e   : > { %v633_v16 = vadd.f32 %v629_v15, %v628_v14 }
 0x290   : > { %634 = vadd.xlane.f32.xlu1 %v633_v16 }
 0x319   : > { %v632_v17 = vpop.xlane.xlu1 %631 }
 0x31a   : > { %v636_v18 = vmul.f32 0.00390625, %v632_v17 }
 0x31c   : > { %v638_v19 = vadd.f32 1e-05, %v636_v18 }
 0x31d   : > { %v635_v20 = vpop.xlane.xlu1 %634 }
 0x31e   : > { %1049 = vrsqrt.f32 %v638_v19  ;;  %v637_v21 = vmul.f32 0.00390625, %v635_v20 }
 0x320   : > { %v639_v22 = vadd.f32 1e-05, %v637_v21 }
 0x322   : > { %1051 = vrsqrt.f32 %v639_v22 }
 0x328   : > { %v1050_v23 = vpop.eup %1049 }
 0x329   : > { %v642_v24 = vmul.f32 %v1050_v23, %v622_v5  ;;  %v643_v25 = vmul.f32 %v1050_v23, %v623_v6 }
 0x32b   : > { %v656_v26 = vmul.f32 %v651_v42, %v642_v24  ;;  %v657_v27 = vmul.f32 %v655_v45, %v643_v25 }
 0x32c   : > { %v1052_v28 = vpop.eup %1051 }
 0x32d   : > { %v668_v29 = vadd.f32 %v1563_v43, %v656_v26  ;;  %v669_v30 = vadd.f32 %v1565_v44, %v657_v27  ;;  %v644_v31 = vmul.f32 %v1052_v28, %v624_v11  ;;  %v645_v32 = vmul.f32 %v1052_v28, %v625_v12 }
 0x32f   : > { %v905_v33 = vpack.c.bf16 %v669_v30, %v668_v29  ;;  %v658_v34 = vmul.f32 %v651_v42, %v644_v31  ;;  %v659_v35 = vmul.f32 %v655_v45, %v645_v32 }
 0x331   : > { %v670_v36 = vadd.f32 %v1563_v43, %v658_v34  ;;  %v671_v37 = vadd.f32 %v1565_v44, %v659_v35  ;;  %684 = vst [vmem:[%s335_s7] sm:$0xff] %v905_v33 }
 0x333   : > { %v906_v38 = vpack.c.bf16 %v671_v37, %v670_v36 }
 0x335   : > { %685 = vst [vmem:[%s335_s7 + $0x8] sm:$0xff] %v906_v38 }
 0x336   : > { %1184 = shalt.err (!%p1181_p6)
}
 0x337   : > { %s1185_s14 = scalar_lea.hbm %s1581_s10, 256  ;;  %s1189_s28 = scalar_lea.hbm %s1636_s4, 512 }
 0x338   : > { %p1186_p12 = scmp.ne.s32.totalorder %s1581_s10, %s1185_s14  ;;  %p1190_p10 = scmp.lt.u32.totalorder %s1581_s10, %s1636_s4 }
 0x339   : > { %p1191_p3 = scmp.lt.u32.totalorder %s1189_s28, %s1185_s14  ;;  %p1193_p1 = scmp.lt.u32.totalorder %s1185_s14, %s1581_s10 }
 0x33a   : > { %p1187_p4 = pnand %p1186_p12, %p1668_p0 }
 0x33b   : > { %p1192_p13 = por %p1191_p3, %p1190_p10 }
 0x33c   : > { %p1188_p9 = pneg %p1187_p4 }
 0x33d   : > { %p1194_p11 = por %p1193_p1, %p1192_p13 }
 0x33f   : > { %p1195_p7 = pnand %p1194_p11, %p1188_p9 }
 0x341   : > { %1198 = shalt.err (!%p1195_p7)
}
 0x342   : > { %s1272_s27 = smov 128   ;;  %s1273_s29 = smov 8  }
 0x343   : > { %919 = dma.vmem_to_hbm [thread:$0]  (%p1668_p0), %s1583_s11, 256, %s1581_s10, %s687_s18, %s1272_s27, %s1272_s27, %s1273_s29  }
 0x344 PF: > { %s718_s7 = sand.u32 1, %s1241_s15   ;;  %p1669_p8 = scmp.ne.s32.totalorder %s1656_s25, 0 }
 0x345   : > { %p1670_p2 = scmp.ge.s32.totalorder %s1261_s20, 2  ;;  %s719_s5 = scalar_lea.sflag [#allocation4], %s718_s7 }
 0x347   : > { %p936_p5 = pnand %p1670_p2, %p1669_p8 }
 0x349   : > { %1236 = dma.done.wait (!%p936_p5), %s719_s5, 256  }
 0x34a   : > { %1238 = vsyncadd (!%p936_p5), %s719_s5, 4294967040  ;;  %s21_s20 = sadd.s32 1, %s1261_s20   ;;  %s1671_s15 = smov %s1245_s16 }
 0x34b   : > { %p18_p6 = scmp.ge.s32.totalorder %s21_s20, 4   ;;  %s1672_s16 = smov %s1249_s17 }
 0x34c   : > { %s1673_s17 = smov %s1346_s26  ;;  %s1674_s18 = smov %s1257_s19 }
 0x34d   : > { %s1675_s19 = smov %s1677_s21  ;;  %20 = sbr.rel (!%p18_p6) target bundleno = 10 (0xa), region = 107 }
 0x354   :  { %724 = vsyncpa [#allocation3], 1 }
 0x355   :  { %726 = vsyncpa [#allocation3 + $0x1], 1 }
 0x356   :  { %727 = vsyncpa [#allocation6], 1 }
 0x357   :  { %728 = vsyncpa [#allocation4], 1 }
 0x358   :  { %730 = vsyncpa [#allocation4 + $0x1], 1 }

// kernel: aura_flow_joint_block_forward.14
= control target key start
LH: loop header
LB: loop body
LE: loop exit
PB: predicated region body
PF: predicated region fallthrough
CT: control target
= control target key end

     0   :  { %s1528_s0 = inlined_call_operand.hbm [shape: bf16[2,24,256], index: 0, kind: input, shape index: {}]   ;;  %s1529_s1 = inlined_call_operand.hbm [shape: bf16[256,256], index: 1, kind: input, shape index: {}]   ;;  %s1530_s2 = inlined_call_operand.hbm [shape: f32[2,8,256], index: 2, kind: input, shape index: {}]   ;;  %s1531_s3 = inlined_call_operand.hbm [shape: f32[2,12,256], index: 3, kind: input, shape index: {}]   ;;  %s1532_s4 = inlined_call_operand.hbm [shape: bf16[2,8,256], index: 4, kind: output, shape index: {}]  }
   0x1   :  { %1541 = sst [smem:[#allocation14_spill]] %s1528_s0 }
   0x2   :  { %1542 = sst [smem:[#allocation15_spill]] %s1530_s2 }
   0x3   :  { %1543 = sst [smem:[#allocation16_spill]] %s1531_s3 }
   0x4   :  { %9 = vsyncpa [#allocation3], 0 }
   0x5   :  { %11 = vsyncpa [#allocation3 + $0x1], 0 }
   0x6   :  { %12 = vsyncpa [#allocation6], 0 }
   0x7   :  { %13 = vsyncpa [#allocation4], 0 }
   0x8   :  { %15 = vsyncpa [#allocation4 + $0x1], 0  ;;  %s1234_s15 = smov 0   ;;  %s1236_s16 = smov 0  }
   0x9   :  { %s1238_s17 = smov 0   ;;  %s1240_s18 = smov 0  }
   0xa   :  { %s1242_s19 = smov 0   ;;  %s1244_s20 = smov 0  }
   0xb LB: > { %s33_s21 = sadd.s32 1, %s1194_s19  ;;  %s44_s22 = sadd.s32 1, %s1186_s17  ;;  %s1198_s20 = sphi %s1244_s20, %s21_s20   ;;  %s1194_s19 = sphi %s1242_s19, %s1569_s19   ;;  %s1190_s18 = sphi %s1240_s18, %s1568_s18   ;;  %s1186_s17 = sphi %s1238_s17, %s1567_s17   ;;  %s1182_s16 = sphi %s1236_s16, %s1566_s16   ;;  %s1178_s15 = sphi %s1234_s15, %s1565_s15  }
   0xc   : > { %p35_p0 = scmp.ge.s32.totalorder %s33_s21, 2  ;;  %p1533_p1 = scmp.ne.s32.totalorder %s1186_s17, %s1182_s16 }
   0xd   : > { %p52_p2 = scmp.eq.s32.totalorder %s1198_s20, 0  ;;  %p881_p5 = scmp.lt.s32.totalorder %s1198_s20, 2 }
   0xe   : > { %s1571_s21 = smov (%p35_p0, %s33_s21), 0  ;;  %s197_s25 = sand.u32 1, %s1198_s20  }
   0xf   : > { %p1275_p4 = por %p52_p2, %p1533_p1  ;;  %s39_s24 = ssub.s32 %s1194_s19, %s1571_s21 }
  0x10   : > { %p42_p6 = scmp.eq.s32.totalorder %s39_s24, 0  ;;  %s1284_s26 = sand.u32 1, %s1186_s17  }
  0x11   : > { %s793_s27 = smul.u32 384, %s1194_s19  ;;  %s792_s29 = sshll.u32 %s1284_s26, 3 }
  0x12   : > { %s1288_s28 = scalar_select %p42_p6, %s1186_s17, %s44_s22  }
  0x13   : > { %s1545_s0 = sld [smem:[#allocation14_spill]]  ;;  %s201_s8 = scalar_lea.vmem [#allocation2], %s792_s29 }
  0x14   : > { %s212_s9 = sshll.u32 %s201_s8, 4  ;;  %p1298_p7 = pnand %p881_p5, %p1275_p4  ;;  %s1302_s9 = int_to_ptr.vmem [resolvable:$true] %s212_s9 }
  0x15   : > { %s797_s11 = sshll.u32 %s1284_s26, 5  ;;  %s1305_s12 = scalar_lea.sflag [#allocation3], %s197_s25 }
  0x16   : > { %s1546_s10 = scalar_select %p1298_p7, 1, 0 }
  0x17   : > { %p1310_p9 = pneg %p1298_p7 }
  0x19   : > { %s681_s6 = scalar_lea.hbm %s1545_s0, %s793_s27  ;;  %s994_s24 = scalar_lea.hbm %s1545_s0, 768 }
  0x1a   : > { %s1294_s7 = scalar_lea.hbm %s681_s6, 256  ;;  %s1019_s13 = scalar_lea.hbm %s681_s6, 384 }
  0x1b   : > { %p990_p8 = scmp.ne.s32.totalorder %s1294_s7, %s1019_s13  ;;  %p995_p12 = scmp.lt.u32.totalorder %s1294_s7, %s1545_s0 }
  0x1c   : > { %p996_p13 = scmp.lt.u32.totalorder %s994_s24, %s1019_s13  ;;  %p998_p2 = scmp.lt.u32.totalorder %s1019_s13, %s1294_s7 }
  0x1d   : > { %p992_p10 = pnand %p1310_p9, %p990_p8 }
  0x1e   : > { %p997_p0 = por %p996_p13, %p995_p12 }
  0x1f   : > { %p993_p11 = pneg %p992_p10 }
  0x20   : > { %p999_p4 = por %p998_p2, %p997_p0 }
  0x22   : > { %p1000_p5 = pnand %p999_p4, %p993_p11 }
  0x24   : > { %1003 = shalt.err (!%p1000_p5)
}
  0x25   : > { %s1004_s25 = scalar_lea.vmem %s1302_s9, 128  ;;  %s1200_s30 = smov [#allocation2]  }
  0x26   : > { %p1005_p6 = scmp.ne.s32.totalorder %s1302_s9, %s1004_s25  ;;  %s1009_s5 = sshll.u32 %s1200_s30, 4  ;;  %s1010_s5 = int_to_ptr.vmem [resolvable:$false] %s1009_s5 }
  0x27   : > { %s1011_s6 = scalar_lea.vmem %s1010_s5, 256  ;;  %p1012_p3 = scmp.lt.s32.totalorder %s1302_s9, %s1010_s5 }
  0x28   : > { %p1007_p8 = pnand %p1005_p6, %p1310_p9  ;;  %p1013_p1 = scmp.lt.s32.totalorder %s1011_s6, %s1004_s25 }
  0x2a   : > { %p1008_p10 = pneg %p1007_p8  ;;  %p1014_p12 = por %p1013_p1, %p1012_p3 }
  0x2c   : > { %p1015_p13 = pnand %p1014_p12, %p1008_p10 }
  0x2e   : > { %1018 = shalt.err (!%p1015_p13)
}
  0x2f   : > { %869 = dma.hbm_to_vmem [thread:$0]  (!%p1298_p7), %s1294_s7, 128, %s1302_s9, %s1305_s12  }
  0x30   : > { %s244_s8 = scalar_lea.vmem [#allocation8], %s797_s11  ;;  %s794_s22 = sshll.u32 %s1284_s26, 4 }
  0x31   : > { %s251_s13 = sshll.u32 %s244_s8, 4  ;;  %s846_s23 = sshll.u32 %s1194_s19, 8  ;;  %s1337_s13 = int_to_ptr.vmem [resolvable:$true] %s251_s13 }
  0x32   : > { %s223_s24 = scalar_lea.vmem [#allocation7], %s794_s22  ;;  %s1548_s2 = sld [smem:[#allocation15_spill]] }
  0x33   : > { %s233_s27 = sshll.u32 %s223_s24, 4  ;;  %s234_s27 = int_to_ptr.vmem [resolvable:$true] %s233_s27 }
  0x38   : > { %s231_s30 = scalar_lea.hbm %s1548_s2, %s846_s23  ;;  %s1025_s11 = scalar_lea.hbm %s1548_s2, 512 }
  0x39   : > { %s1020_s5 = scalar_lea.hbm %s231_s30, 256  ;;  %p1026_p0 = scmp.lt.u32.totalorder %s231_s30, %s1548_s2 }
  0x3a   : > { %p1021_p1 = scmp.ne.s32.totalorder %s231_s30, %s1020_s5  ;;  %p1027_p2 = scmp.lt.u32.totalorder %s1025_s11, %s1020_s5 }
  0x3b   : > { %p1029_p5 = scmp.lt.u32.totalorder %s1020_s5, %s231_s30 }
  0x3c   : > { %p1023_p3 = pnand %p1021_p1, %p1310_p9  ;;  %p1028_p4 = por %p1027_p2, %p1026_p0 }
  0x3e   : > { %p1024_p11 = pneg %p1023_p3  ;;  %p1030_p6 = por %p1029_p5, %p1028_p4 }
  0x40   : > { %p1031_p8 = pnand %p1030_p6, %p1024_p11 }
  0x42   : > { %1034 = shalt.err (!%p1031_p8)
}
  0x43   : > { %s1035_s8 = scalar_lea.vmem %s234_s27, 256  ;;  %s1201_s22 = smov [#allocation7]  }
  0x44   : > { %p1036_p10 = scmp.ne.s32.totalorder %s234_s27, %s1035_s8  ;;  %s1040_s23 = sshll.u32 %s1201_s22, 4  ;;  %s1041_s23 = int_to_ptr.vmem [resolvable:$false] %s1040_s23 }
  0x45   : > { %s1042_s24 = scalar_lea.vmem %s1041_s23, 512  ;;  %p1043_p1 = scmp.lt.s32.totalorder %s234_s27, %s1041_s23 }
  0x46   : > { %p1038_p12 = pnand %p1036_p10, %p1310_p9  ;;  %p1044_p3 = scmp.lt.s32.totalorder %s1042_s24, %s1035_s8 }
  0x48   : > { %p1039_p13 = pneg %p1038_p12  ;;  %p1045_p7 = por %p1044_p3, %p1043_p1 }
  0x4a   : > { %p1046_p0 = pnand %p1045_p7, %p1039_p13 }
  0x4c   : > { %1049 = shalt.err (!%p1046_p0)
}
  0x4d   : > { %p1549_p2 = scmp.ne.s32.totalorder %s1546_s10, 0  ;;  %s1357_s29 = sadd.s32 4294967295, %s1198_s20  }
  0x4e   : > { %s788_s25 = sadd.s32 4294967294, %s1198_s20   ;;  %p57_p7 = scmp.ne.s32.totalorder %s1182_s16, %s1178_s15 }
  0x4f   : > { %872 = dma.hbm_to_vmem [thread:$0]  (!%p1549_p2), %s231_s30, 256, %s234_s27, %s1305_s12  }
  0x50   : > { %p1537_p11 = scmp.eq.s32.totalorder %s1357_s29, 0  ;;  %p158_p4 = scmp.eq.s32.totalorder %s1357_s29, 1 }
  0x51   : > { %p164_p5 = scmp.eq.s32.totalorder %s788_s25, 1  ;;  %p789_p8 = scmp.ge.s32.totalorder %s1198_s20, 1 }
  0x52   : > { %p1366_p6 = por %p1537_p11, %p57_p7  ;;  %p1551_p10 = scmp.ne.s32.totalorder %s1186_s17, %s1182_s16 }
  0x53   : > { %p1378_p13 = por %p164_p5, %p57_p7  ;;  %p171_p1 = scmp.lt.s32.totalorder %s1198_s20, 3 }
  0x54   : > { %s1550_s5 = scalar_select %p1366_p6, 1, 0 }
  0x55   : > { %p1374_p12 = por %p158_p4, %p1551_p10  ;;  %p1383_p3 = pnand %p789_p8, %p171_p1 }
  0x56   : > { %s1553_s30 = scalar_select %p1378_p13, 1, 0 }
  0x57   : > { %s1552_s27 = scalar_select %p1374_p12, 1, 0 }
  0x58   : > { %s1554_s7 = scalar_select %p1383_p3, 1, 0 }
  0x59   : > { %s1202_s9 = smov [#allocation5]   ;;  %p862_p0 = pneg %p1383_p3 }
  0x5a   : > { %s183_s11 = sshll.u32 %s1202_s9, 4  ;;  %s847_s26 = sshll.u32 %s1194_s19, 9  ;;  %s1387_s11 = int_to_ptr.vmem [resolvable:$true] %s183_s11 }
  0x5b   : > { %s1555_s3 = sld [smem:[#allocation16_spill]]  ;;  %p1399_p7 = pnand %p862_p0, %p1537_p11 }
  0x5d   : > { %s1556_s23 = scalar_select %p1399_p7, 1, 0 }
  0x61   : > { %s1395_s22 = scalar_lea.hbm %s1555_s3, %s847_s26  ;;  %s1055_s6 = scalar_lea.hbm %s1555_s3, 1024 }
  0x62   : > { %s1050_s24 = scalar_lea.hbm %s1395_s22, 512  ;;  %p1056_p10 = scmp.lt.u32.totalorder %s1395_s22, %s1555_s3 }
  0x63   : > { %p1051_p4 = scmp.ne.s32.totalorder %s1395_s22, %s1050_s24  ;;  %p1057_p1 = scmp.lt.u32.totalorder %s1055_s6, %s1050_s24 }
  0x64   : > { %p1059_p12 = scmp.lt.u32.totalorder %s1050_s24, %s1395_s22 }
  0x65   : > { %p1053_p5 = pnand %p1051_p4, %p1310_p9  ;;  %p1058_p13 = por %p1057_p1, %p1056_p10 }
  0x67   : > { %p1054_p8 = pneg %p1053_p5  ;;  %p1060_p0 = por %p1059_p12, %p1058_p13 }
  0x69   : > { %p1061_p11 = pnand %p1060_p0, %p1054_p8 }
  0x6b   : > { %1064 = shalt.err (!%p1061_p11)
}
  0x6c   : > { %s1065_s0 = scalar_lea.vmem %s1337_s13, 512  ;;  %s1203_s25 = smov [#allocation8]  }
  0x6d   : > { %p1066_p4 = scmp.ne.s32.totalorder %s1337_s13, %s1065_s0  ;;  %s1070_s9 = sshll.u32 %s1203_s25, 4  ;;  %s1071_s9 = int_to_ptr.vmem [resolvable:$false] %s1070_s9 }
  0x6e   : > { %s1072_s26 = scalar_lea.vmem %s1071_s9, 1024  ;;  %p1073_p3 = scmp.lt.s32.totalorder %s1337_s13, %s1071_s9 }
  0x6f   : > { %p1068_p5 = pnand %p1066_p4, %p1310_p9  ;;  %p1074_p7 = scmp.lt.s32.totalorder %s1072_s26, %s1065_s0 }
  0x71   : > { %p1069_p6 = pneg %p1068_p5  ;;  %p1075_p10 = por %p1074_p7, %p1073_p3 }
  0x73   : > { %p1076_p1 = pnand %p1075_p10, %p1069_p6 }
  0x75   : > { %1079 = shalt.err (!%p1076_p1)
}
  0x76   : > { %s1204_s24 = smov 256   ;;  %s1205_s6 = smov 16  }
  0x77   : > { %875 = dma.hbm_to_vmem [thread:$0]  (!%p1549_p2), %s1395_s22, 512, %s1337_s13, %s1305_s12, %s1204_s24, %s1204_s24, %s1205_s6  }
  0x78   : > { %s1080_s25 = scalar_lea.hbm %s1529_s1, 4096  ;;  %p1557_p11 = scmp.ne.s32.totalorder %s1556_s23, 0 }
  0x79   : > { %p1081_p9 = scmp.ne.s32.totalorder %s1529_s1, %s1080_s25  ;;  %p1087_p3 = scmp.lt.u32.totalorder %s1080_s25, %s1529_s1 }
  0x7a   : > { %p1082_p6 = pneg %p1557_p11 }
  0x7c   : > { %p1083_p12 = pnand %p1082_p6, %p1081_p9 }
  0x7e   : > { %p1084_p13 = pneg %p1083_p12 }
  0x80   : > { %p1089_p7 = pnand %p1087_p3, %p1084_p13 }
  0x82   : > { %1092 = shalt.err (!%p1089_p7)
}
  0x83   : > { %s1093_s10 = scalar_lea.vmem %s1387_s11, 4096  ;;  %p1101_p4 = scmp.lt.s32.totalorder %s1387_s11, %s1387_s11 }
  0x84   : > { %p1094_p2 = scmp.ne.s32.totalorder %s1387_s11, %s1093_s10  ;;  %p1102_p5 = scmp.lt.s32.totalorder %s1093_s10, %s1093_s10 }
  0x86   : > { %p1096_p8 = pnand %p1094_p2, %p1082_p6  ;;  %p1103_p10 = por %p1102_p5, %p1101_p4 }
  0x88   : > { %p1097_p0 = pneg %p1096_p8 }
  0x8a   : > { %p1104_p1 = pnand %p1103_p10, %p1097_p0 }
  0x8c   : > { %1107 = shalt.err (!%p1104_p1)
}
  0x8d   : > { %s1206_s2 = smov 128   ;;  %s1207_s3 = smov 8  }
  0x8e   : > { %865 = dma.hbm_to_vmem [thread:$0]  (!%p1557_p11), %s1529_s1, 4096, %s1387_s11, [#allocation6], %s1206_s2, %s1206_s2, %s1207_s3  }
  0x8f   : > { %p1558_p9 = scmp.ne.s32.totalorder %s1554_s7, 0 }
  0x90   : > { %s265_s22 = sand.u32 (!%p1558_p9), 1, %s1357_s29   ;;  %s1450_s26 = sand.u32 (!%p1558_p9), 1, %s1182_s16  }
  0x91   : > { %263 = sbr.rel (%p1558_p9) target bundleno = 836 (0x344), region = 36  ;;  %s801_s24 = sshll.u32 (!%p1558_p9), %s1450_s26, 3 }
  0x92   : > { %s266_s6 = scalar_lea.sflag (!%p1558_p9), [#allocation3], %s265_s22  ;;  %s269_s14 = scalar_lea.vmem (!%p1558_p9), [#allocation2], %s801_s24 }
  0x93   : > { %p1559_p6 = scmp.ne.s32.totalorder (!%p1558_p9), %s1550_s5, 0 }
  0x98   : > { %1161 = dma.done.wait (%p1559_p6), %s266_s6, 128  }
  0x99   : > { %1163 = vsyncadd (%p1559_p6), %s266_s6, 4294967168  ;;  %p1560_p11 = scmp.eq.s32.totalorder %s1357_s29, 0 }
  0x9b   : > { %1165 = dma.done.wait (%p1560_p11), [#allocation6], 4096   ;;  %p1561_p12 = pmov %p1560_p11 }
  0x9c   : > { %s803_s7 = sshll.u32 %s1450_s26, 4 }
  0x9d   : > { %1167 = vsyncadd (%p1561_p12), [#allocation6], 4294963200  ;;  %s1464_s11 = scalar_lea.vmem [#allocation7], %s803_s7 }
  0x9e   : > { %1169 = dma.done.wait (%p1559_p6), %s266_s6, 768  }
  0x9f   : > { %1171 = vsyncadd (%p1559_p6), %s266_s6, 4294966528  ;;  %v937_v0 = vld [vmem:[#allocation5 + $0x4] ss:$8 sps:$4 sm:$0xff]   ;;  %v939_v1 = vld [vmem:[#allocation5] ss:$8 sps:$4 sm:$0xff]   ;;  %s804_s29 = sshll.u32 %s1450_s26, 5  ;;  %v572_v35 = vlaneseq }
  0xa0   : > { %527 = vmatprep.subr.bf16.mxu0 %v937_v0  ;;  %v940_v2 = vld [vmem:[#allocation5 + $0x14] ss:$8 sps:$4 sm:$0xff]   ;;  %v942_v3 = vld [vmem:[#allocation5 + $0x10] ss:$8 sps:$4 sm:$0xff]   ;;  %v943_v4 = vld [vmem:[#allocation5 + $0x24] ss:$8 sps:$4 sm:$0xff]  }
  0xa1   : > { %528 = vmatpush1.bf16.xpose.msra.mxu0 %v939_v1  ;;  %v945_v5 = vld [vmem:[#allocation5 + $0x20] ss:$8 sps:$4 sm:$0xff]   ;;  %v946_v6 = vld [vmem:[#allocation5 + $0x34] ss:$8 sps:$4 sm:$0xff]   ;;  %v948_v9 = vld [vmem:[#allocation5 + $0x30] ss:$8 sps:$4 sm:$0xff]  }
  0xa2   : > { %529 = vmatprep.subr.bf16.mxu0 %v940_v2  ;;  %v327_v7 = vld [vmem:[%s269_s14] sm:$0xff]  ;;  %v949_v10 = vld [vmem:[#allocation5 + $0x44] ss:$8 sps:$4 sm:$0xff]   ;;  %v951_v11 = vld [vmem:[#allocation5 + $0x40] ss:$8 sps:$4 sm:$0xff]   ;;  %v573_v36 = vshrl.u32 %v572_v35, 7 }
  0xa3   : > { %v807_v8 = vcombine.high %v327_v7, %v327_v7  ;;  %v952_v12 = vld [vmem:[#allocation5 + $0x54] ss:$8 sps:$4 sm:$0xff]   ;;  %v954_v13 = vld [vmem:[#allocation5 + $0x50] ss:$8 sps:$4 sm:$0xff]   ;;  %v955_v14 = vld [vmem:[#allocation5 + $0x64] ss:$8 sps:$4 sm:$0xff]   ;;  %v806_v34 = vcombine.low %v327_v7, %v327_v7 }
  0xa4   : > { %v957_v15 = vld [vmem:[#allocation5 + $0x60] ss:$8 sps:$4 sm:$0xff]   ;;  %v958_v16 = vld [vmem:[#allocation5 + $0x74] ss:$8 sps:$4 sm:$0xff]   ;;  %v960_v17 = vld [vmem:[#allocation5 + $0x70] ss:$8 sps:$4 sm:$0xff]  }
  0xa5   : > { %559 = vmatprep.mubr.bf16.mxu0 %v807_v8  ;;  %v961_v18 = vld [vmem:[#allocation5 + $0x84] ss:$8 sps:$4 sm:$0xff]   ;;  %v963_v19 = vld [vmem:[#allocation5 + $0x80] ss:$8 sps:$4 sm:$0xff]   ;;  %v964_v20 = vld [vmem:[#allocation5 + $0x94] ss:$8 sps:$4 sm:$0xff]  }
  0xa6   : > { %v966_v21 = vld [vmem:[#allocation5 + $0x90] ss:$8 sps:$4 sm:$0xff]   ;;  %v967_v22 = vld [vmem:[#allocation5 + $0xa4] ss:$8 sps:$4 sm:$0xff]   ;;  %v969_v23 = vld [vmem:[#allocation5 + $0xa0] ss:$8 sps:$4 sm:$0xff]  }
  0xa7   : > { %v970_v24 = vld [vmem:[#allocation5 + $0xb4] ss:$8 sps:$4 sm:$0xff]   ;;  %v972_v25 = vld [vmem:[#allocation5 + $0xb0] ss:$8 sps:$4 sm:$0xff]   ;;  %v973_v26 = vld [vmem:[#allocation5 + $0xc4] ss:$8 sps:$4 sm:$0xff]  }
  0xa8   : > { %v975_v27 = vld [vmem:[#allocation5 + $0xc0] ss:$8 sps:$4 sm:$0xff]   ;;  %v976_v28 = vld [vmem:[#allocation5 + $0xd4] ss:$8 sps:$4 sm:$0xff]   ;;  %v978_v29 = vld [vmem:[#allocation5 + $0xd0] ss:$8 sps:$4 sm:$0xff]  }
  0xa9   : > { %530 = vmatpush1.bf16.xpose.msra.mxu0 %v942_v3  ;;  %v979_v30 = vld [vmem:[#allocation5 + $0xe4] ss:$8 sps:$4 sm:$0xff]   ;;  %v981_v31 = vld [vmem:[#allocation5 + $0xe0] ss:$8 sps:$4 sm:$0xff]   ;;  %v982_v32 = vld [vmem:[#allocation5 + $0xf4] ss:$8 sps:$4 sm:$0xff]  }
  0xaa   : > { %531 = vmatprep.subr.bf16.mxu0 %v943_v4  ;;  %v984_v33 = vld [vmem:[#allocation5 + $0xf0] ss:$8 sps:$4 sm:$0xff]   ;;  %s291_s5 = scalar_lea.vmem [#allocation8], %s804_s29  ;;  %v605_v39 = vsub.s32 2, %v573_v36  ;;  %v615_v40 = vsub.s32 1, %v573_v36  ;;  %v574_v47 = vsub.s32 0, %v573_v36 }
  0xab   : > { %v568_v37 = vld [vmem:[%s291_s5 + $0x10] sm:$0xf]  ;;  %v569_v41 = vld [vmem:[%s291_s5 + $0x18] sm:$0xf]  ;;  %s849_s23 = sshll.u32 %s1190_s18, 7  ;;  %s325_s8 = scalar_lea.vmem [#allocation9], %s801_s24 }
  0xac   : > { %v601_v38 = vadd.f32 1.0, %v568_v37  ;;  %v602_v42 = vadd.f32 1.0, %v569_v41  ;;  %v616_v44 = vrot.slane %v568_v37, %v615_v40  ;;  %v620_v45 = vrot.slane %v569_v41, %v615_v40  ;;  %v570_v51 = vld [vmem:[%s1464_s11] sm:$0xff]  ;;  %v571_v54 = vld [vmem:[%s1464_s11 + $0x8] sm:$0xff]  ;;  %s649_s25 = sshll.u32 %s325_s8, 4  ;;  %s1479_s10 = scalar_lea.hbm %s1532_s4, %s849_s23  ;;  %s1481_s25 = int_to_ptr.vmem [resolvable:$true] %s649_s25 }
  0xad   : > { %v575_v48 = vrot.slane %v568_v37, %v574_v47  ;;  %v579_v49 = vrot.slane %v569_v41, %v574_v47  ;;  %s633_s2 = scalar_lea.sflag [#allocation4], %s1450_s26  ;;  %s1108_s3 = scalar_lea.vmem %s1481_s25, 128 }
  0xae   : > { %v606_v43 = vrot.slane %v601_v38, %v605_v39  ;;  %v610_v46 = vrot.slane %v602_v42, %v605_v39  ;;  %p1109_p13 = scmp.ne.s32.totalorder %s1481_s25, %s1108_s3  ;;  %p1562_p3 = scmp.ne.s32.totalorder %s1552_s27, 0 }
  0xaf   : > { %s1208_s18 = smov [#allocation9]  }
  0xb0   : > { %p1110_p7 = pnand %p1109_p13, %p1562_p3  ;;  %s1112_s12 = sshll.u32 %s1208_s18, 4  ;;  %s1113_s12 = int_to_ptr.vmem [resolvable:$false] %s1112_s12 }
  0xb1   : > { %532 = vmatpush1.bf16.xpose.msra.mxu0 %v945_v5  ;;  %s1114_s13 = scalar_lea.vmem %s1113_s12, 256  ;;  %p1115_p8 = scmp.lt.s32.totalorder %s1481_s25, %s1113_s12 }
  0xb2   : > { %533 = vmatprep.subr.bf16.mxu0 %v946_v6  ;;  %p1111_p2 = pneg %p1110_p7  ;;  %p1116_p0 = scmp.lt.s32.totalorder %s1114_s13, %s1108_s3 }
  0xb4   : > { %p1117_p4 = por %p1116_p0, %p1115_p8 }
  0xb6   : > { %p1118_p5 = pnand %p1117_p4, %p1111_p2 }
  0xb9   : > { %534 = vmatpush1.bf16.xpose.msra.mxu0 %v948_v9 }
  0xba   : > { %535 = vmatprep.subr.bf16.mxu0 %v949_v10 }
  0xc1   : > { %536 = vmatpush1.bf16.xpose.msra.mxu0 %v951_v11 }
  0xc2   : > { %537 = vmatprep.subr.bf16.mxu0 %v952_v12 }
  0xc9   : > { %538 = vmatpush1.bf16.xpose.msra.mxu0 %v954_v13 }
  0xca   : > { %539 = vmatprep.subr.bf16.mxu0 %v955_v14 }
  0xd1   : > { %540 = vmatpush1.bf16.xpose.msra.mxu0 %v957_v15 }
  0xd2   : > { %541 = vmatprep.subr.bf16.mxu0 %v958_v16 }
  0xd9   : > { %542 = vmatpush1.bf16.xpose.msra.mxu0 %v960_v17 }
  0xda   : > { %543 = vmatprep.subr.bf16.mxu0 %v961_v18 }
  0xe1   : > { %544 = vmatpush1.bf16.xpose.msra.mxu0 %v963_v19 }
  0xe2   : > { %545 = vmatprep.subr.bf16.mxu0 %v964_v20 }
  0xe9   : > { %546 = vmatpush1.bf16.xpose.msra.mxu0 %v966_v21 }
  0xea   : > { %547 = vmatprep.subr.bf16.mxu0 %v967_v22 }
  0xf1   : > { %548 = vmatpush1.bf16.xpose.msra.mxu0 %v969_v23 }
  0xf2   : > { %549 = vmatprep.subr.bf16.mxu0 %v970_v24 }
  0xf9   : > { %550 = vmatpush1.bf16.xpose.msra.mxu0 %v972_v25 }
  0xfa   : > { %551 = vmatprep.subr.bf16.mxu0 %v973_v26 }
 0x101   : > { %552 = vmatpush1.bf16.xpose.msra.mxu0 %v975_v27 }
 0x102   : > { %553 = vmatprep.subr.bf16.mxu0 %v976_v28 }
 0x109   : > { %554 = vmatpush1.bf16.xpose.msra.mxu0 %v978_v29 }
 0x10a   : > { %555 = vmatprep.subr.bf16.mxu0 %v979_v30 }
 0x111   : > { %556 = vmatpush1.bf16.xpose.msra.mxu0 %v981_v31 }
 0x112   : > { %557 = vmatprep.subr.bf16.mxu0 %v982_v32 }
 0x119   : > { %558 = vmatpush1.bf16.xpose.msra.mxu0 %v984_v33 }
 0x120   : > { %560 = vmatmul.mubr.bf16.vlgmr.msra.gmra.mrb[0].mxu0 %v806_v34 }
 0x1f3   : > { %v561_v50 = vpop.f32.mrb[0].mxu0 }
 0x1f4   : > { %v580_v52 = vmul.f32 %v575_v48, %v561_v50  ;;  %v563_v53 = vpop.f32.mrb[1].mxu0 }
 0x1f5   : > { %v581_v55 = vmul.f32 %v579_v49, %v563_v53  ;;  %v565_v56 = vpop.f32.mrb[2].mxu0 }
 0x1f6   : > { %v566_v57 = vpop.f32.mrb[3].mxu0  ;;  %v582_v58 = vadd.f32 %v580_v52, %v570_v51 }
 0x1f7   : > { %v583_v59 = vadd.f32 %v581_v55, %v571_v54 }
 0x1f9   : > { %v584_v60 = vadd.f32 %v583_v59, %v582_v58 }
 0x1fb   : > { %585 = vadd.xlane.f32.xlu0 %v584_v60 }
 0x288   : > { %v586_v61 = vpop.xlane.xlu0 %585 }
 0x289   : > { %v588_v62 = vmul.f32 0.00390625, %v586_v61 }
 0x28b   : > { %v589_v63 = vsub.f32 %v582_v58, %v588_v62  ;;  %v590_v0 = vsub.f32 %v583_v59, %v588_v62 }
 0x28d   : > { %v591_v1 = vmul.f32 %v589_v63, %v589_v63  ;;  %v592_v2 = vmul.f32 %v590_v0, %v590_v0 }
 0x28f   : > { %v593_v3 = vadd.f32 %v592_v2, %v591_v1 }
 0x291   : > { %594 = vadd.xlane.f32.xlu0 %v593_v3 }
 0x31e   : > { %v595_v4 = vpop.xlane.xlu0 %594 }
 0x31f   : > { %v596_v5 = vmul.f32 0.00390625, %v595_v4 }
 0x321   : > { %v597_v6 = vadd.f32 1e-05, %v596_v5 }
 0x323   : > { %987 = vrsqrt.f32 %v597_v6 }
 0x32d   : > { %v988_v7 = vpop.eup %987 }
 0x32e   : > { %v599_v8 = vmul.f32 %v988_v7, %v589_v63  ;;  %v600_v9 = vmul.f32 %v988_v7, %v590_v0 }
 0x330   : > { %v611_v10 = vmul.f32 %v606_v43, %v599_v8  ;;  %v612_v11 = vmul.f32 %v610_v46, %v600_v9 }
 0x332   : > { %v621_v12 = vadd.f32 %v616_v44, %v611_v10  ;;  %v622_v13 = vadd.f32 %v620_v45, %v612_v11 }
 0x334   : > { %v848_v14 = vpack.c.bf16 %v622_v13, %v621_v12 }
 0x336   : > { %631 = vst [vmem:[%s325_s8] sm:$0xff] %v848_v14 }
 0x337   : > { %1121 = shalt.err (!%p1118_p5)
}
 0x338   : > { %s1122_s22 = scalar_lea.hbm %s1479_s10, 128  ;;  %s1126_s6 = scalar_lea.hbm %s1532_s4, 256 }
 0x339   : > { %p1123_p10 = scmp.ne.s32.totalorder %s1479_s10, %s1122_s22  ;;  %p1127_p6 = scmp.lt.u32.totalorder %s1479_s10, %s1532_s4 }
 0x33a   : > { %p1128_p11 = scmp.lt.u32.totalorder %s1126_s6, %s1122_s22  ;;  %p1130_p13 = scmp.lt.u32.totalorder %s1122_s22, %s1479_s10 }
 0x33b   : > { %p1124_p1 = pnand %p1123_p10, %p1562_p3 }
 0x33c   : > { %p1129_p12 = por %p1128_p11, %p1127_p6 }
 0x33d   : > { %p1125_p9 = pneg %p1124_p1 }
 0x33e   : > { %p1131_p7 = por %p1130_p13, %p1129_p12 }
 0x340   : > { %p1132_p2 = pnand %p1131_p7, %p1125_p9 }
 0x342   : > { %1135 = shalt.err (!%p1132_p2)
}
 0x343   : > { %860 = dma.vmem_to_hbm [thread:$0]  (%p1562_p3), %s1481_s25, 128, %s1479_s10, %s633_s2  }
 0x344 PF: > { %s661_s11 = sand.u32 1, %s1178_s15   ;;  %p1563_p8 = scmp.ne.s32.totalorder %s1553_s30, 0 }
 0x345   : > { %p1564_p0 = scmp.ge.s32.totalorder %s1198_s20, 2  ;;  %s662_s29 = scalar_lea.sflag [#allocation4], %s661_s11 }
 0x347   : > { %p877_p4 = pnand %p1564_p0, %p1563_p8 }
 0x349   : > { %1173 = dma.done.wait (!%p877_p4), %s662_s29, 128  }
 0x34a   : > { %1175 = vsyncadd (!%p877_p4), %s662_s29, 4294967168  ;;  %s21_s20 = sadd.s32 1, %s1198_s20   ;;  %s1565_s15 = smov %s1182_s16 }
 0x34b   : > { %p18_p5 = scmp.ge.s32.totalorder %s21_s20, 4   ;;  %s1566_s16 = smov %s1186_s17 }
 0x34c   : > { %s1567_s17 = smov %s1288_s28  ;;  %s1568_s18 = smov %s1194_s19 }
 0x34d   : > { %s1569_s19 = smov %s1571_s21  ;;  %20 = sbr.rel (!%p18_p5) target bundleno = 11 (0xb), region = 107 }
 0x354   :  { %667 = vsyncpa [#allocation3], 1 }
 0x355   :  { %669 = vsyncpa [#allocation3 + $0x1], 1 }
 0x356   :  { %670 = vsyncpa [#allocation6], 1 }
 0x357   :  { %671 = vsyncpa [#allocation4], 1 }
 0x358   :  { %673 = vsyncpa [#allocation4 + $0x1], 1 }

// kernel: aura_flow_joint_block_forward.15
= control target key start
LH: loop header
LB: loop body
LE: loop exit
PB: predicated region body
PF: predicated region fallthrough
CT: control target
= control target key end

     0   :  { %s2871_s0 = inlined_call_operand.hbm [shape: bf16[2,8,256], index: 0, kind: input, shape index: {}]   ;;  %s2872_s1 = inlined_call_operand.hbm [shape: bf16[768,256], index: 1, kind: input, shape index: {}]   ;;  %s2873_s2 = inlined_call_operand.hbm [shape: bf16[768,256], index: 2, kind: input, shape index: {}]   ;;  %s2874_s3 = inlined_call_operand.hbm [shape: bf16[256,768], index: 3, kind: input, shape index: {}]   ;;  %s2875_s4 = inlined_call_operand.hbm [shape: f32[2,8,256], index: 4, kind: input, shape index: {}]   ;;  %s2876_s5 = inlined_call_operand.hbm [shape: f32[2,12,256], index: 5, kind: input, shape index: {}]   ;;  %s2877_s6 = inlined_call_operand.hbm [shape: f32[2,8,256], index: 6, kind: output, shape index: {}]  }
   0x1   :  { %2906 = sst [smem:[#allocation35_spill]] %s2872_s1 }
   0x2   :  { %2907 = sst [smem:[#allocation36_spill]] %s2874_s3 }
   0x3   :  { %2908 = sst [smem:[#allocation37_spill]] %s2877_s6 }
   0x4   :  { %11 = vsyncpa [#allocation4], 0 }
   0x5   :  { %13 = vsyncpa [#allocation4 + $0x1], 0 }
   0x6   :  { %14 = vsyncpa [#allocation7], 0 }
   0x7   :  { %16 = vsyncpa [#allocation7 + $0x1], 0 }
   0x8   :  { %17 = vsyncpa [#allocation10], 0 }
   0x9   :  { %19 = vsyncpa [#allocation10 + $0x1], 0 }
   0xa   :  { %20 = vsyncpa [#allocation13], 0 }
   0xb   :  { %22 = vsyncpa [#allocation13 + $0x1], 0 }
   0xc   :  { %23 = vsyncpa [#allocation5], 0 }
   0xd   :  { %25 = vsyncpa [#allocation5 + $0x1], 0  ;;  %s2277_s21 = smov 0   ;;  %s2279_s22 = smov 0  }
   0xe   :  { %s2281_s23 = smov 0   ;;  %s2283_s24 = smov 0  }
   0xf   :  { %s2285_s25 = smov 0   ;;  %s2287_s26 = smov 0  }
  0x10   :  { %s2289_s27 = smov 0   ;;  %s2291_s28 = smov 0  }
  0x11   :  { %s2293_s29 = smov 0   ;;  %s2295_s30 = smov 0  }
  0x12   :  { %s2297_s7 = smov 0  }
  0x13 LB: > { %2909 = sst [smem:[#allocation21_spill]] %s2191_s22  ;;  %s43_s8 = sadd.s32 1, %s2219_s29  ;;  %s2227_s7 = sphi %s2297_s7, %s31_s7   ;;  %s2223_s30 = sphi %s2295_s30, %s2971_s30   ;;  %s2219_s29 = sphi %s2293_s29, %s2966_s29   ;;  %s2215_s28 = sphi %s2291_s28, %s2970_s28   ;;  %s2211_s27 = sphi %s2289_s27, %s2965_s27   ;;  %s2207_s26 = sphi %s2287_s26, %s2964_s26   ;;  %s2203_s25 = sphi %s2285_s25, %s2969_s25   ;;  %s2199_s24 = sphi %s2283_s24, %s2968_s24   ;;  %s2195_s23 = sphi %s2281_s23, %s2962_s23   ;;  %s2191_s22 = sphi %s2279_s22, %s2961_s22   ;;  %s2187_s21 = sphi %s2277_s21, %s2960_s21  }
  0x14   : > { %2910 = sst [smem:[#allocation22_spill]] %s2195_s23  ;;  %p2882_p0 = scmp.eq.s32.totalorder %s2227_s7, 0 }
  0x15   : > { %2911 = sst [smem:[#allocation23_spill]] %s2207_s26  ;;  %p2334_p1 = scmp.ge.s32.totalorder %s43_s8, 3 }
  0x16   : > { %2912 = sst [smem:[#allocation24_spill]] %s2211_s27  ;;  %s85_s10 = sadd.s32 1, %s2195_s23 }
  0x17   : > { %2913 = sst [smem:[#allocation25_spill]] %s2215_s28  ;;  %p92_p2 = scmp.ne.s32.totalorder %s2195_s23, %s2191_s22 }
  0x18   : > { %2914 = sst [smem:[#allocation26_spill]] %s2219_s29  ;;  %s2973_s8 = smov (%p2334_p1, %s43_s8), 0 }
  0x19   : > { %s2915_s9 = scalar_select %p2334_p1, 1, 0 }
  0x1a   : > { %2916 = sst [smem:[#allocation27_spill]] %s2973_s8  ;;  %p94_p3 = por %p92_p2, %p2882_p0 }
  0x1b   : > { %p2881_p4 = scmp.lt.s32.totalorder %s2227_s7, 6  ;;  %s82_s11 = ssub.s32 %s2219_s29, %s2973_s8 }
  0x1c   : > { %p83_p5 = scmp.eq.s32.totalorder %s82_s11, 0  ;;  %s279_s13 = sand.u32 1, %s2195_s23  }
  0x1d   : > { %s1615_s14 = sshll.u32 %s2219_s29, 12  ;;  %s2356_s16 = sshll.u32 %s279_s13, 8 }
  0x1e   : > { %s2354_s15 = scalar_select %p83_p5, %s2195_s23, %s85_s10  }
  0x1f   : > { %s2918_s1 = sld [smem:[#allocation35_spill]]  ;;  %p2365_p6 = pnand %p2881_p4, %p94_p3 }
  0x20   : > { %2917 = sst [smem:[#allocation28_spill]] %s2354_s15  ;;  %s281_s10 = scalar_lea.vmem [#allocation6], %s2356_s16 }
  0x21   : > { %s2919_s20 = scalar_select %p2365_p6, 1, 0 }
  0x22   : > { %s289_s11 = sshll.u32 %s281_s10, 4  ;;  %s2375_s17 = scalar_lea.hbm %s2873_s2, %s1615_s14  ;;  %s2370_s11 = int_to_ptr.vmem [resolvable:$true] %s289_s11 }
  0x23   : > { %s2920_s18 = sand.u32 1, %s2227_s7   ;;  %p2385_p8 = pneg %p2365_p6 }
  0x24   : > { %s2379_s8 = scalar_lea.sflag [#allocation7], %s2920_s18 }
  0x25   : > { %s2361_s19 = scalar_lea.hbm %s2918_s1, %s1615_s14  ;;  %s1914_s12 = scalar_lea.hbm %s2918_s1, 12288 }
  0x26   : > { %s1909_s15 = scalar_lea.hbm %s2361_s19, 4096  ;;  %p1915_p11 = scmp.lt.u32.totalorder %s2361_s19, %s2918_s1 }
  0x27   : > { %p1910_p7 = scmp.ne.s32.totalorder %s2361_s19, %s1909_s15  ;;  %p1916_p12 = scmp.lt.u32.totalorder %s1914_s12, %s1909_s15 }
  0x28   : > { %s2921_s23 = scalar_select %p2385_p8, 1, 0 }
  0x29   : > { %p1912_p9 = pnand %p2385_p8, %p1910_p7  ;;  %p1917_p13 = por %p1916_p12, %p1915_p11 }
  0x2a   : > { %p1918_p2 = scmp.lt.u32.totalorder %s1909_s15, %s2361_s19 }
  0x2b   : > { %p1913_p10 = pneg %p1912_p9 }
  0x2c   : > { %p1919_p3 = por %p1918_p2, %p1917_p13 }
  0x2e   : > { %p1920_p5 = pnand %p1919_p3, %p1913_p10 }
  0x30   : > { %1923 = shalt.err (!%p1920_p5)
}
  0x31   : > { %s1924_s18 = scalar_lea.vmem %s2370_s11, 4096  ;;  %s2229_s6 = smov [#allocation6]  }
  0x32   : > { %p1925_p7 = scmp.ne.s32.totalorder %s2370_s11, %s1924_s18  ;;  %s1929_s10 = sshll.u32 %s2229_s6, 4  ;;  %s1930_s10 = int_to_ptr.vmem [resolvable:$false] %s1929_s10 }
  0x33   : > { %s1931_s14 = scalar_lea.vmem %s1930_s10, 8192  ;;  %p1932_p0 = scmp.lt.s32.totalorder %s2370_s11, %s1930_s10 }
  0x34   : > { %p1927_p9 = pnand %p1925_p7, %p2385_p8  ;;  %p1933_p1 = scmp.lt.s32.totalorder %s1931_s14, %s1924_s18 }
  0x36   : > { %p1928_p4 = pneg %p1927_p9  ;;  %p1934_p11 = por %p1933_p1, %p1932_p0 }
  0x38   : > { %p1935_p12 = pnand %p1934_p11, %p1928_p4 }
  0x3a   : > { %1938 = shalt.err (!%p1935_p12)
}
  0x3b   : > { %s2884_s15 = smov 128   ;;  %s2886_s12 = smov 8  }
  0x3c   : > { %1642 = dma.hbm_to_vmem [thread:$0]  (!%p2365_p6), %s2361_s19, 4096, %s2370_s11, %s2379_s8, %s2884_s15, %s2884_s15, %s2886_s12  }
  0x3d   : > { %p1498_p0 = scmp.ge.s32.totalorder %s2227_s7, 1  ;;  %p382_p1 = scmp.lt.s32.totalorder %s2227_s7, 7 }
  0x3e   : > { %s1618_s13 = sshll.u32 %s2219_s29, 7  ;;  %s325_s18 = scalar_lea.vmem [#allocation9], %s2356_s16 }
  0x3f   : > { %s332_s6 = sshll.u32 %s325_s18, 4  ;;  %p2416_p4 = pnand %p1498_p0, %p382_p1  ;;  %s2425_s6 = int_to_ptr.vmem [resolvable:$true] %s332_s6 }
  0x40   : > { %s2923_s3 = sld [smem:[#allocation36_spill]]  ;;  %s2924_s19 = sand.u32 1, %s2227_s7  }
  0x41   : > { %s2922_s10 = scalar_select %p2416_p4, 1, 0 }
  0x42   : > { %s2429_s11 = scalar_lea.sflag [#allocation10], %s2924_s19 }
  0x46   : > { %s2423_s28 = scalar_lea.hbm %s2923_s3, %s1618_s13  ;;  %s1944_s1 = scalar_lea.hbm %s2923_s3, 12288 }
  0x47   : > { %s1939_s15 = scalar_lea.hbm %s2423_s28, 4096  ;;  %p1945_p3 = scmp.lt.u32.totalorder %s2423_s28, %s2923_s3 }
  0x48   : > { %p1940_p10 = scmp.ne.s32.totalorder %s2423_s28, %s1939_s15  ;;  %p1946_p5 = scmp.lt.u32.totalorder %s1944_s1, %s1939_s15 }
  0x49   : > { %p1948_p9 = scmp.lt.u32.totalorder %s1939_s15, %s2423_s28 }
  0x4a   : > { %p1942_p13 = pnand %p1940_p10, %p2385_p8  ;;  %p1947_p7 = por %p1946_p5, %p1945_p3 }
  0x4c   : > { %p1943_p2 = pneg %p1942_p13  ;;  %p1949_p11 = por %p1948_p9, %p1947_p7 }
  0x4e   : > { %p1950_p12 = pnand %p1949_p11, %p1943_p2 }
  0x50   : > { %1953 = shalt.err (!%p1950_p12)
}
  0x51   : > { %s1954_s19 = scalar_lea.vmem %s2425_s6, 4096  ;;  %s2232_s12 = smov [#allocation9]  }
  0x52   : > { %p1955_p0 = scmp.ne.s32.totalorder %s2425_s6, %s1954_s19  ;;  %s1959_s18 = sshll.u32 %s2232_s12, 4  ;;  %s1960_s18 = int_to_ptr.vmem [resolvable:$false] %s1959_s18 }
  0x53   : > { %s1961_s13 = scalar_lea.vmem %s1960_s18, 8192  ;;  %p1962_p13 = scmp.lt.s32.totalorder %s2425_s6, %s1960_s18 }
  0x54   : > { %p1957_p1 = pnand %p1955_p0, %p2385_p8  ;;  %p1963_p4 = scmp.lt.s32.totalorder %s1961_s13, %s1954_s19 }
  0x56   : > { %p1958_p10 = pneg %p1957_p1  ;;  %p1964_p3 = por %p1963_p4, %p1962_p13 }
  0x58   : > { %p1965_p5 = pnand %p1964_p3, %p1958_p10 }
  0x5a   : > { %1968 = shalt.err (!%p1965_p5)
}
  0x5b   : > { %s2233_s15 = smov 384   ;;  %s2925_s1 = smov 8  }
  0x5c   : > { %s2926_s14 = smov 128   ;;  %s2456_s19 = sadd.s32 4294967295, %s2227_s7  }
  0x5d   : > { %1648 = dma.hbm_to_vmem [thread:$0]  (!%p2365_p6), %s2423_s28, 4096, %s2425_s6, %s2429_s11, %s2233_s15, %s2926_s14, %s2925_s1  }
  0x5e   : > { %2927 = sst [smem:[#allocation29_spill]] %s2456_s19  ;;  %s1475_s12 = sadd.s32 4294967294, %s2227_s7  }
  0x5f   : > { %s50_s18 = sadd.s32 1, %s2223_s30  ;;  %s59_s13 = sadd.s32 1, %s2207_s26 }
  0x60   : > { %p2928_p4 = scmp.ne.s32.totalorder %s2915_s9, 0  ;;  %p66_p2 = scmp.ne.s32.totalorder %s2207_s26, %s2203_s25 }
  0x61   : > { %p72_p7 = scmp.ne.s32.totalorder %s2203_s25, %s2199_s24  ;;  %p73_p11 = scmp.eq.s32.totalorder %s2456_s19, 0 }
  0x62   : > { %s2975_s18 = smov (!%p2928_p4, %s50_s18), %s2223_s30  ;;  %p2929_p12 = scmp.eq.s32.totalorder %s2227_s7, 0 }
  0x63   : > { %p52_p9 = scmp.ge.s32.totalorder %s2975_s18, 2  ;;  %p98_p1 = scmp.ne.s32.totalorder %s2191_s22, %s2187_s21 }
  0x64   : > { %p2474_p0 = por %p2929_p12, %p66_p2  ;;  %p2485_p10 = por %p73_p11, %p72_p7 }
  0x65   : > { %s2977_s18 = smov (%p52_p9, %s2975_s18), 0  ;;  %p2489_p13 = por %p98_p1, %p73_p11 }
  0x66   : > { %2931 = sst [smem:[#allocation30_spill]] %s2977_s18  ;;  %s54_s15 = ssub.s32 %s2223_s30, %s2977_s18 }
  0x67   : > { %s2932_s9 = scalar_select %p2485_p10, 1, 0 }
  0x68   : > { %s2933_s6 = scalar_select %p2489_p13, 1, 0 }
  0x69   : > { %p230_p3 = scmp.eq.s32.totalorder %s2456_s19, 5  ;;  %p57_p5 = scmp.eq.s32.totalorder %s54_s15, 0 }
  0x6a   : > { %2934 = sst [smem:[#allocation31_spill]] %s2933_s6  ;;  %p236_p4 = scmp.eq.s32.totalorder %s1475_s12, 5 }
  0x6b   : > { %p2499_p9 = por %p230_p3, %p66_p2  ;;  %s2504_s3 = sand.u32 1, %s2207_s26  }
  0x6c   : > { %s2507_s29 = scalar_select %p57_p5, %s2207_s26, %s59_s13  }
  0x6d   : > { %s2935_s21 = scalar_select %p2499_p9, 1, 0 }
  0x6e   : > { %2937 = sst [smem:[#allocation33_spill]] %s2507_s29  ;;  %p2512_p11 = por %p236_p4, %p72_p7 }
  0x6f   : > { %2936 = sst [smem:[#allocation32_spill]] %s2935_s21  ;;  %s1478_s18 = sshll.u32 %s2504_s3, 3 }
  0x70   : > { %s2938_s27 = scalar_select %p2512_p11, 1, 0 }
  0x71   : > { %s1613_s6 = sshll.u32 %s2223_s30, 7  ;;  %s260_s21 = scalar_lea.vmem [#allocation3], %s1478_s18 }
  0x72   : > { %2939 = sst [smem:[#allocation34_spill]] %s2938_s27  ;;  %s2521_s22 = scalar_lea.hbm %s2871_s0, %s1613_s6 }
  0x73   : > { %s270_s19 = sshll.u32 %s260_s21, 4  ;;  %p2940_p2 = scmp.lt.s32.totalorder %s2227_s7, 6  ;;  %s2531_s19 = int_to_ptr.vmem [resolvable:$true] %s270_s19 }
  0x74   : > { %s303_s29 = scalar_lea.vmem [#allocation8], %s2356_s16  ;;  %s257_s6 = scalar_lea.sflag [#allocation4], %s2504_s3 }
  0x75   : > { %p2527_p12 = pnand %p2940_p2, %p2474_p0  ;;  %s2534_s26 = sshll.u32 %s303_s29, 4  ;;  %s2565_s26 = int_to_ptr.vmem [resolvable:$true] %s2534_s26 }
  0x76   : > { %s1969_s15 = scalar_lea.hbm %s2521_s22, 128  ;;  %s1974_s12 = scalar_lea.hbm %s2871_s0, 256 }
  0x77   : > { %s2941_s13 = scalar_select %p2527_p12, 1, 0 }
  0x78   : > { %p1970_p7 = scmp.ne.s32.totalorder %s2521_s22, %s1969_s15  ;;  %p2541_p1 = pneg %p2527_p12 }
  0x79   : > { %p1975_p5 = scmp.lt.u32.totalorder %s2521_s22, %s2871_s0  ;;  %p1976_p4 = scmp.lt.u32.totalorder %s1974_s12, %s1969_s15 }
  0x7a   : > { %p1972_p0 = pnand %p2541_p1, %p1970_p7  ;;  %p1978_p11 = scmp.lt.u32.totalorder %s1969_s15, %s2521_s22 }
  0x7b   : > { %p1977_p2 = por %p1976_p4, %p1975_p5 }
  0x7c   : > { %p1973_p3 = pneg %p1972_p0 }
  0x7d   : > { %p1979_p9 = por %p1978_p11, %p1977_p2 }
  0x7f   : > { %p1980_p13 = pnand %p1979_p9, %p1973_p3 }
  0x81   : > { %1983 = shalt.err (!%p1980_p13)
}
  0x82   : > { %s1984_s29 = scalar_lea.vmem %s2531_s19, 128  ;;  %s2234_s28 = smov [#allocation3]  }
  0x83   : > { %p1985_p7 = scmp.ne.s32.totalorder %s2531_s19, %s1984_s29  ;;  %s1989_s21 = sshll.u32 %s2234_s28, 4  ;;  %s1990_s21 = int_to_ptr.vmem [resolvable:$false] %s1989_s21 }
  0x84   : > { %s1991_s27 = scalar_lea.vmem %s1990_s21, 256  ;;  %p1992_p6 = scmp.lt.s32.totalorder %s2531_s19, %s1990_s21 }
  0x85   : > { %p1987_p0 = pnand %p1985_p7, %p2541_p1  ;;  %p1993_p8 = scmp.lt.s32.totalorder %s1991_s27, %s1984_s29 }
  0x87   : > { %p1988_p10 = pneg %p1987_p0  ;;  %p1994_p5 = por %p1993_p8, %p1992_p6 }
  0x89   : > { %p1995_p4 = pnand %p1994_p5, %p1988_p10 }
  0x8b   : > { %1998 = shalt.err (!%p1995_p4)
}
  0x8c   : > { %1639 = dma.hbm_to_vmem [thread:$0]  (!%p2527_p12), %s2521_s22, 128, %s2531_s19, %s257_s6  }
  0x8d   : > { %s1492_s15 = sshll.u32 %s2504_s3, 4  ;;  %s1999_s12 = scalar_lea.hbm %s2375_s17, 4096 }
  0x8e   : > { %p2000_p13 = scmp.ne.s32.totalorder %s2375_s17, %s1999_s12  ;;  %p2943_p6 = scmp.ne.s32.totalorder %s2921_s23, 0 }
  0x8f   : > { %s2004_s28 = scalar_lea.hbm %s2873_s2, 12288  ;;  %p2005_p9 = scmp.lt.u32.totalorder %s2375_s17, %s2873_s2 }
  0x90   : > { %p2002_p8 = pnand %p2000_p13, %p2943_p6  ;;  %p2006_p11 = scmp.lt.u32.totalorder %s2004_s28, %s1999_s12 }
  0x91   : > { %p2008_p2 = scmp.lt.u32.totalorder %s1999_s12, %s2375_s17 }
  0x92   : > { %p2003_p10 = pneg %p2002_p8  ;;  %p2007_p3 = por %p2006_p11, %p2005_p9 }
  0x94   : > { %p2009_p7 = por %p2008_p2, %p2007_p3 }
  0x96   : > { %p2010_p0 = pnand %p2009_p7, %p2003_p10 }
  0x98   : > { %2013 = shalt.err (!%p2010_p0)
}
  0x99   : > { %s2014_s22 = scalar_lea.vmem %s2565_s26, 4096  ;;  %s2235_s19 = smov [#allocation8]  }
  0x9a   : > { %p2015_p5 = scmp.ne.s32.totalorder %s2565_s26, %s2014_s22  ;;  %s2019_s6 = sshll.u32 %s2235_s19, 4  ;;  %s2020_s6 = int_to_ptr.vmem [resolvable:$false] %s2019_s6 }
  0x9b   : > { %s2021_s16 = scalar_lea.vmem %s2020_s6, 8192  ;;  %p2022_p8 = scmp.lt.s32.totalorder %s2565_s26, %s2020_s6 }
  0x9c   : > { %p2017_p4 = pnand %p2015_p5, %p2943_p6  ;;  %p2023_p12 = scmp.lt.s32.totalorder %s2021_s16, %s2014_s22 }
  0x9e   : > { %p2018_p13 = pneg %p2017_p4  ;;  %p2024_p9 = por %p2023_p12, %p2022_p8 }
  0xa0   : > { %p2025_p11 = pnand %p2024_p9, %p2018_p13 }
  0xa2   : > { %2028 = shalt.err (!%p2025_p11)
}
  0xa3   : > { %p2944_p10 = scmp.ne.s32.totalorder %s2919_s20, 0  ;;  %s1619_s23 = sshll.u32 %s2223_s30, 8 }
  0xa4   : > { %s2597_s28 = scalar_lea.hbm %s2875_s4, %s1619_s23  ;;  %s346_s20 = scalar_lea.vmem [#allocation11], %s1492_s15 }
  0xa5   : > { %1645 = dma.hbm_to_vmem [thread:$0]  (!%p2944_p10), %s2375_s17, 4096, %s2565_s26, %s2379_s8, %s2926_s14, %s2926_s14, %s2925_s1  }
  0xa6   : > { %s356_s21 = sshll.u32 %s346_s20, 4  ;;  %s2029_s27 = scalar_lea.hbm %s2597_s28, 256  ;;  %s357_s21 = int_to_ptr.vmem [resolvable:$true] %s356_s21 }
  0xa7   : > { %p2030_p12 = scmp.ne.s32.totalorder %s2597_s28, %s2029_s27  ;;  %s2034_s17 = scalar_lea.hbm %s2875_s4, 512 }
  0xa8   : > { %p2035_p2 = scmp.lt.u32.totalorder %s2597_s28, %s2875_s4  ;;  %p2036_p7 = scmp.lt.u32.totalorder %s2034_s17, %s2029_s27 }
  0xa9   : > { %p2032_p6 = pnand %p2030_p12, %p2541_p1  ;;  %p2038_p5 = scmp.lt.u32.totalorder %s2029_s27, %s2597_s28 }
  0xaa   : > { %p2037_p0 = por %p2036_p7, %p2035_p2 }
  0xab   : > { %p2033_p3 = pneg %p2032_p6 }
  0xac   : > { %p2039_p4 = por %p2038_p5, %p2037_p0 }
  0xae   : > { %p2040_p13 = pnand %p2039_p4, %p2033_p3 }
  0xb0   : > { %2043 = shalt.err (!%p2040_p13)
}
  0xb1   : > { %s2044_s15 = scalar_lea.vmem %s357_s21, 256  ;;  %s2236_s22 = smov [#allocation11]  }
  0xb2   : > { %p2045_p8 = scmp.ne.s32.totalorder %s357_s21, %s2044_s15  ;;  %s2049_s19 = sshll.u32 %s2236_s22, 4  ;;  %s2050_s19 = int_to_ptr.vmem [resolvable:$false] %s2049_s19 }
  0xb3   : > { %s2051_s6 = scalar_lea.vmem %s2050_s19, 512  ;;  %p2052_p10 = scmp.lt.s32.totalorder %s357_s21, %s2050_s19 }
  0xb4   : > { %p2047_p9 = pnand %p2045_p8, %p2541_p1  ;;  %p2053_p12 = scmp.lt.s32.totalorder %s2051_s6, %s2044_s15 }
  0xb6   : > { %p2048_p11 = pneg %p2047_p9  ;;  %p2054_p6 = por %p2053_p12, %p2052_p10 }
  0xb8   : > { %p2055_p2 = pnand %p2054_p6, %p2048_p11 }
  0xba   : > { %2058 = shalt.err (!%p2055_p2)
}
  0xbb   : > { %p2945_p7 = scmp.ne.s32.totalorder %s2941_s13, 0  ;;  %s1495_s16 = sshll.u32 %s2504_s3, 5 }
  0xbc   : > { %s1620_s23 = sshll.u32 %s2223_s30, 9  ;;  %s367_s27 = scalar_lea.vmem [#allocation12], %s1495_s16 }
  0xbd   : > { %1651 = dma.hbm_to_vmem [thread:$0]  (!%p2945_p7), %s2597_s28, 256, %s357_s21, %s2429_s11  }
  0xbe   : > { %s2624_s20 = scalar_lea.hbm %s2876_s5, %s1620_s23  ;;  %s374_s26 = sshll.u32 %s367_s27, 4  ;;  %s2626_s26 = int_to_ptr.vmem [resolvable:$true] %s374_s26 }
  0xbf   : > { %s364_s8 = scalar_lea.sflag [#allocation13], %s2504_s3  ;;  %s2059_s17 = scalar_lea.hbm %s2624_s20, 512 }
  0xc0   : > { %p2060_p3 = scmp.ne.s32.totalorder %s2624_s20, %s2059_s17  ;;  %s2064_s21 = scalar_lea.hbm %s2876_s5, 1024 }
  0xc1   : > { %p2065_p4 = scmp.lt.u32.totalorder %s2624_s20, %s2876_s5  ;;  %p2066_p13 = scmp.lt.u32.totalorder %s2064_s21, %s2059_s17 }
  0xc2   : > { %p2062_p0 = pnand %p2060_p3, %p2541_p1  ;;  %p2068_p9 = scmp.lt.u32.totalorder %s2059_s17, %s2624_s20 }
  0xc3   : > { %p2067_p8 = por %p2066_p13, %p2065_p4 }
  0xc4   : > { %p2063_p5 = pneg %p2062_p0 }
  0xc5   : > { %p2069_p11 = por %p2068_p9, %p2067_p8 }
  0xc7   : > { %p2070_p10 = pnand %p2069_p11, %p2063_p5 }
  0xc9   : > { %2073 = shalt.err (!%p2070_p10)
}
  0xca   : > { %s2074_s15 = scalar_lea.vmem %s2626_s26, 512  ;;  %s2237_s22 = smov [#allocation12]  }
  0xcb   : > { %p2075_p12 = scmp.ne.s32.totalorder %s2626_s26, %s2074_s15  ;;  %s2079_s19 = sshll.u32 %s2237_s22, 4  ;;  %s2080_s19 = int_to_ptr.vmem [resolvable:$false] %s2079_s19 }
  0xcc   : > { %s2081_s6 = scalar_lea.vmem %s2080_s19, 1024  ;;  %p2082_p3 = scmp.lt.s32.totalorder %s2626_s26, %s2080_s19 }
  0xcd   : > { %p2077_p6 = pnand %p2075_p12, %p2541_p1  ;;  %p2083_p0 = scmp.lt.s32.totalorder %s2081_s6, %s2074_s15 }
  0xcf   : > { %p2078_p2 = pneg %p2077_p6  ;;  %p2084_p4 = por %p2083_p0, %p2082_p3 }
  0xd1   : > { %p2085_p13 = pnand %p2084_p4, %p2078_p2 }
  0xd3   : > { %2088 = shalt.err (!%p2085_p13)
}
  0xd4   : > { %s2238_s16 = smov 256   ;;  %s2239_s23 = smov 16  }
  0xd5   : > { %1654 = dma.hbm_to_vmem [thread:$0]  (!%p2945_p7), %s2624_s20, 512, %s2626_s26, %s364_s8, %s2238_s16, %s2238_s16, %s2239_s23  }
  0xd6   : > { %p2946_p1 = scmp.ne.s32.totalorder %s2922_s10, 0 }
  0xd7   : > { %s2655_s18 = sand.u32 (!%p2946_p1), 1, %s2203_s25   ;;  %p2947_p5 = scmp.ne.s32.totalorder (!%p2946_p1), %s2932_s9, 0 }
  0xd8   : > { %386 = sbr.rel (%p2946_p1) target bundleno = 889 (0x379), region = 44  ;;  %s1499_s12 = sshll.u32 (!%p2946_p1), %s2655_s18, 3 }
  0xd9   : > { %s389_s29 = scalar_lea.sflag (!%p2946_p1), [#allocation4], %s2655_s18  ;;  %s2659_s27 = scalar_lea.vmem (!%p2946_p1), [#allocation3], %s1499_s12 }
  0xdf   : > { %2162 = dma.done.wait (%p2947_p5), %s389_s29, 128  }
  0xe0   : > { %2164 = vsyncadd (%p2947_p5), %s389_s29, 4294967168  ;;  %s2948_s3 = sld [smem:[#allocation29_spill]]  ;;  %s2949_s13 = sld [smem:[#allocation21_spill]] }
  0xe1   : > { %s2950_s20 = sld [smem:[#allocation31_spill]] }
  0xe6   : > { %s397_s10 = sand.u32 1, %s2948_s3   ;;  %s399_s26 = sand.u32 1, %s2949_s13  }
  0xe7   : > { %s1500_s8 = sshll.u32 %s399_s26, 8  ;;  %s398_s17 = scalar_lea.sflag [#allocation7], %s397_s10 }
  0xe8   : > { %s2667_s11 = scalar_lea.vmem [#allocation6], %s1500_s8  ;;  %p2951_p7 = scmp.ne.s32.totalorder %s2950_s20, 0 }
  0xea   : > { %2166 = dma.done.wait (%p2951_p7), %s398_s17, 8192  }
  0xeb   : > { %2168 = vsyncadd (%p2951_p7), %s398_s17, 4294959104  ;;  %s2673_s28 = scalar_lea.vmem [#allocation8], %s1500_s8  ;;  %s416_s21 = scalar_lea.sflag [#allocation10], %s397_s10 }
  0xec   : > { %s2675_s1 = scalar_lea.vmem [#allocation9], %s1500_s8 }
  0xed   : > { %2170 = dma.done.wait (%p2951_p7), %s416_s21, 4096  }
  0xee   : > { %2172 = vsyncadd (%p2951_p7), %s416_s21, 4294963200  ;;  %s1503_s14 = sshll.u32 %s2655_s18, 4 }
  0xef   : > { %s2682_s15 = scalar_lea.vmem [#allocation11], %s1503_s14 }
  0xf0   : > { %2174 = dma.done.wait (%p2947_p5), %s416_s21, 256  }
  0xf1   : > { %2176 = vsyncadd (%p2947_p5), %s416_s21, 4294967040  ;;  %s1504_s22 = sshll.u32 %s2655_s18, 5  ;;  %s434_s19 = scalar_lea.sflag [#allocation13], %s2655_s18 }
  0xf2   : > { %s2690_s6 = scalar_lea.vmem [#allocation12], %s1504_s22 }
  0xf3   : > { %2178 = dma.done.wait (%p2947_p5), %s434_s19, 512  }
  0xf4   : > { %2180 = vsyncadd (%p2947_p5), %s434_s19, 4294966784  ;;  %s2696_s16 = scalar_lea.vmem [#allocation14], %s1503_s14  ;;  %s2952_s23 = sld [smem:[#allocation24_spill]] }
  0xfa   : > { %p1506_p8 = scmp.ne.s32.totalorder %s2952_s23, 0 }
  0xfb   : > { %v2240_v0 = vmov (!%p1506_p8), 0.0  }
  0xfc   : > { %497 = sbr.rel (%p1506_p8) target bundleno = 259 (0x103), region = 72  ;;  %498 = vst [vmem:[#allocation2] sm:$0xff] (!%p1506_p8), %v2240_v0  ;;  %499 = vst [vmem:[#allocation2 + $0x8] sm:$0xff] (!%p1506_p8), %v2240_v0 }
 0x103 PF: > { %v1755_v1 = vld [vmem:[%s2667_s11 + $0x4] ss:$8 sps:$4 sm:$0xff]   ;;  %v1757_v2 = vld [vmem:[%s2667_s11] ss:$8 sps:$4 sm:$0xff]   ;;  %v1758_v3 = vld [vmem:[%s2667_s11 + $0x14] ss:$8 sps:$4 sm:$0xff]  }
 0x104   : > { %700 = vmatprep.subr.bf16.mxu0 %v1755_v1  ;;  %v1767_v4 = vld [vmem:[%s2673_s28 + $0x4] ss:$8 sps:$4 sm:$0xff]   ;;  %v1769_v5 = vld [vmem:[%s2673_s28] ss:$8 sps:$4 sm:$0xff]   ;;  %v1760_v6 = vld [vmem:[%s2667_s11 + $0x10] ss:$8 sps:$4 sm:$0xff]  }
 0x105   : > { %701 = vmatpush1.bf16.xpose.msra.mxu0 %v1757_v2  ;;  %v1761_v7 = vld [vmem:[%s2667_s11 + $0x24] ss:$8 sps:$4 sm:$0xff]   ;;  %933 = vmatprep.subr.bf16.mxu1 %v1767_v4  ;;  %v1773_v8 = vld [vmem:[%s2673_s28 + $0x14] ss:$8 sps:$4 sm:$0xff]   ;;  %v1775_v9 = vld [vmem:[%s2673_s28 + $0x10] ss:$8 sps:$4 sm:$0xff]  }
 0x106   : > { %702 = vmatprep.subr.bf16.mxu0 %v1758_v3  ;;  %934 = vmatpush1.bf16.xpose.msra.mxu1 %v1769_v5  ;;  %v1779_v10 = vld [vmem:[%s2673_s28 + $0x24] ss:$8 sps:$4 sm:$0xff]   ;;  %v1763_v11 = vld [vmem:[%s2667_s11 + $0x20] ss:$8 sps:$4 sm:$0xff]   ;;  %v1764_v12 = vld [vmem:[%s2667_s11 + $0x34] ss:$8 sps:$4 sm:$0xff]  }
 0x107   : > { %935 = vmatprep.subr.bf16.mxu1 %v1773_v8  ;;  %v1781_v13 = vld [vmem:[%s2673_s28 + $0x20] ss:$8 sps:$4 sm:$0xff]   ;;  %v1785_v14 = vld [vmem:[%s2673_s28 + $0x34] ss:$8 sps:$4 sm:$0xff]   ;;  %v1766_v15 = vld [vmem:[%s2667_s11 + $0x30] ss:$8 sps:$4 sm:$0xff]  }
 0x108   : > { %v1770_v16 = vld [vmem:[%s2667_s11 + $0x44] ss:$8 sps:$4 sm:$0xff]   ;;  %v1787_v17 = vld [vmem:[%s2673_s28 + $0x30] ss:$8 sps:$4 sm:$0xff]   ;;  %v1772_v19 = vld [vmem:[%s2667_s11 + $0x40] ss:$8 sps:$4 sm:$0xff]  }
 0x109   : > { %v1791_v18 = vld [vmem:[%s2673_s28 + $0x44] ss:$8 sps:$4 sm:$0xff]   ;;  %v1776_v20 = vld [vmem:[%s2667_s11 + $0x54] ss:$8 sps:$4 sm:$0xff]   ;;  %v1793_v21 = vld [vmem:[%s2673_s28 + $0x40] ss:$8 sps:$4 sm:$0xff]  }
 0x10a   : > { %v1797_v22 = vld [vmem:[%s2673_s28 + $0x54] ss:$8 sps:$4 sm:$0xff]   ;;  %v1778_v24 = vld [vmem:[%s2667_s11 + $0x50] ss:$8 sps:$4 sm:$0xff]   ;;  %v1782_v26 = vld [vmem:[%s2667_s11 + $0x64] ss:$8 sps:$4 sm:$0xff]  }
 0x10b   : > { %v2722_v23 = vld [vmem:[%s2659_s27] sm:$0xff]  ;;  %v1803_v28 = vld [vmem:[%s2673_s28 + $0x64] ss:$8 sps:$4 sm:$0xff]   ;;  %v1784_v29 = vld [vmem:[%s2667_s11 + $0x60] ss:$8 sps:$4 sm:$0xff]   ;;  %s2953_s9 = sld [smem:[#allocation24_spill]] }
 0x10c   : > { %v1508_v25 = vcombine.high %v2722_v23, %v2722_v23  ;;  %v1799_v27 = vld [vmem:[%s2673_s28 + $0x50] ss:$8 sps:$4 sm:$0xff]   ;;  %v1788_v30 = vld [vmem:[%s2667_s11 + $0x74] ss:$8 sps:$4 sm:$0xff]   ;;  %v1805_v32 = vld [vmem:[%s2673_s28 + $0x60] ss:$8 sps:$4 sm:$0xff]   ;;  %v1507_v4 = vcombine.low %v2722_v23, %v2722_v23 }
 0x10d   : > { %703 = vmatpush1.bf16.xpose.msra.mxu0 %v1760_v6  ;;  %v1790_v31 = vld [vmem:[%s2667_s11 + $0x70] ss:$8 sps:$4 sm:$0xff]   ;;  %v1809_v33 = vld [vmem:[%s2673_s28 + $0x74] ss:$8 sps:$4 sm:$0xff]   ;;  %v1794_v34 = vld [vmem:[%s2667_s11 + $0x84] ss:$8 sps:$4 sm:$0xff]  }
 0x10e   : > { %704 = vmatprep.subr.bf16.mxu0 %v1761_v7  ;;  %936 = vmatpush1.bf16.xpose.msra.mxu1 %v1775_v9  ;;  %v1811_v35 = vld [vmem:[%s2673_s28 + $0x70] ss:$8 sps:$4 sm:$0xff]   ;;  %v1815_v36 = vld [vmem:[%s2673_s28 + $0x84] ss:$8 sps:$4 sm:$0xff]   ;;  %v1796_v37 = vld [vmem:[%s2667_s11 + $0x80] ss:$8 sps:$4 sm:$0xff]  }
 0x10f   : > { %937 = vmatprep.subr.bf16.mxu1 %v1779_v10  ;;  %732 = vmatprep.mubr.bf16.mxu0 %v1508_v25  ;;  %v1800_v38 = vld [vmem:[%s2667_s11 + $0x94] ss:$8 sps:$4 sm:$0xff]   ;;  %v1817_v39 = vld [vmem:[%s2673_s28 + $0x80] ss:$8 sps:$4 sm:$0xff]   ;;  %v1802_v41 = vld [vmem:[%s2667_s11 + $0x90] ss:$8 sps:$4 sm:$0xff]  }
 0x110   : > { %965 = vmatprep.mubr.bf16.mxu1 %v1508_v25  ;;  %v1821_v40 = vld [vmem:[%s2673_s28 + $0x94] ss:$8 sps:$4 sm:$0xff]   ;;  %v1806_v42 = vld [vmem:[%s2667_s11 + $0xa4] ss:$8 sps:$4 sm:$0xff]   ;;  %v1823_v43 = vld [vmem:[%s2673_s28 + $0x90] ss:$8 sps:$4 sm:$0xff]  }
 0x111   : > { %v1827_v44 = vld [vmem:[%s2673_s28 + $0xa4] ss:$8 sps:$4 sm:$0xff]   ;;  %v1808_v45 = vld [vmem:[%s2667_s11 + $0xa0] ss:$8 sps:$4 sm:$0xff]   ;;  %v1812_v46 = vld [vmem:[%s2667_s11 + $0xb4] ss:$8 sps:$4 sm:$0xff]  }
 0x112   : > { %v1829_v47 = vld [vmem:[%s2673_s28 + $0xa0] ss:$8 sps:$4 sm:$0xff]   ;;  %v1833_v48 = vld [vmem:[%s2673_s28 + $0xb4] ss:$8 sps:$4 sm:$0xff]   ;;  %v1814_v49 = vld [vmem:[%s2667_s11 + $0xb0] ss:$8 sps:$4 sm:$0xff]  }
 0x113   : > { %v1818_v50 = vld [vmem:[%s2667_s11 + $0xc4] ss:$8 sps:$4 sm:$0xff]   ;;  %v1835_v51 = vld [vmem:[%s2673_s28 + $0xb0] ss:$8 sps:$4 sm:$0xff]   ;;  %v1820_v53 = vld [vmem:[%s2667_s11 + $0xc0] ss:$8 sps:$4 sm:$0xff]  }
 0x114   : > { %v1839_v52 = vld [vmem:[%s2673_s28 + $0xc4] ss:$8 sps:$4 sm:$0xff]   ;;  %v1824_v54 = vld [vmem:[%s2667_s11 + $0xd4] ss:$8 sps:$4 sm:$0xff]   ;;  %v1841_v55 = vld [vmem:[%s2673_s28 + $0xc0] ss:$8 sps:$4 sm:$0xff]  }
 0x115   : > { %705 = vmatpush1.bf16.xpose.msra.mxu0 %v1763_v11  ;;  %v1844_v56 = vld [vmem:[%s2673_s28 + $0xd4] ss:$8 sps:$4 sm:$0xff]   ;;  %v1826_v57 = vld [vmem:[%s2667_s11 + $0xd0] ss:$8 sps:$4 sm:$0xff]   ;;  %v1830_v58 = vld [vmem:[%s2667_s11 + $0xe4] ss:$8 sps:$4 sm:$0xff]  }
 0x116   : > { %706 = vmatprep.subr.bf16.mxu0 %v1764_v12  ;;  %938 = vmatpush1.bf16.xpose.msra.mxu1 %v1781_v13  ;;  %v1846_v59 = vld [vmem:[%s2673_s28 + $0xd0] ss:$8 sps:$4 sm:$0xff]   ;;  %v1847_v60 = vld [vmem:[%s2673_s28 + $0xe4] ss:$8 sps:$4 sm:$0xff]   ;;  %v1832_v61 = vld [vmem:[%s2667_s11 + $0xe0] ss:$8 sps:$4 sm:$0xff]  }
 0x117   : > { %939 = vmatprep.subr.bf16.mxu1 %v1785_v14  ;;  %v1836_v62 = vld [vmem:[%s2667_s11 + $0xf4] ss:$8 sps:$4 sm:$0xff]   ;;  %v1849_v63 = vld [vmem:[%s2673_s28 + $0xe0] ss:$8 sps:$4 sm:$0xff]   ;;  %v1838_v1 = vld [vmem:[%s2667_s11 + $0xf0] ss:$8 sps:$4 sm:$0xff]  }
 0x118   : > { %v1850_v0 = vld [vmem:[%s2673_s28 + $0xf4] ss:$8 sps:$4 sm:$0xff]   ;;  %v1855_v2 = vld [vmem:[%s2675_s1 + $0x4] ss:$8 sps:$4 sm:$0xff]   ;;  %v1852_v3 = vld [vmem:[%s2673_s28 + $0xf0] ss:$8 sps:$4 sm:$0xff]  }
 0x119   : > { %v1853_v5 = vld [vmem:[%s2675_s1] ss:$8 sps:$4 sm:$0xff]   ;;  %v1858_v6 = vld [vmem:[%s2675_s1 + $0x14] ss:$8 sps:$4 sm:$0xff]   ;;  %v1856_v7 = vld [vmem:[%s2675_s1 + $0x10] ss:$8 sps:$4 sm:$0xff]  }
 0x11a   : > { %v1861_v8 = vld [vmem:[%s2675_s1 + $0x24] ss:$8 sps:$4 sm:$0xff]   ;;  %v1859_v9 = vld [vmem:[%s2675_s1 + $0x20] ss:$8 sps:$4 sm:$0xff]   ;;  %v1864_v10 = vld [vmem:[%s2675_s1 + $0x34] ss:$8 sps:$4 sm:$0xff]  }
 0x11b   : > { %v1862_v11 = vld [vmem:[%s2675_s1 + $0x30] ss:$8 sps:$4 sm:$0xff]   ;;  %v1867_v12 = vld [vmem:[%s2675_s1 + $0x44] ss:$8 sps:$4 sm:$0xff]   ;;  %v1865_v13 = vld [vmem:[%s2675_s1 + $0x40] ss:$8 sps:$4 sm:$0xff]  }
 0x11c   : > { %v1870_v14 = vld [vmem:[%s2675_s1 + $0x54] ss:$8 sps:$4 sm:$0xff]   ;;  %v1880_v23 = vld [vmem:[%s2675_s1 + $0x90] ss:$8 sps:$4 sm:$0xff]   ;;  %v1883_v25 = vld [vmem:[%s2675_s1 + $0xa0] ss:$8 sps:$4 sm:$0xff]  }
 0x11d   : > { %707 = vmatpush1.bf16.xpose.msra.mxu0 %v1766_v15  ;;  %v1868_v15 = vld [vmem:[%s2675_s1 + $0x50] ss:$8 sps:$4 sm:$0xff]   ;;  %p1607_p9 = scmp.ne.s32.totalorder %s2953_s9, 2 }
 0x11e   : > { %708 = vmatprep.subr.bf16.mxu0 %v1770_v16  ;;  %940 = vmatpush1.bf16.xpose.msra.mxu1 %v1787_v17  ;;  %v1873_v16 = vld [vmem:[%s2675_s1 + $0x64] ss:$8 sps:$4 sm:$0xff]   ;;  %v1871_v17 = vld [vmem:[%s2675_s1 + $0x60] ss:$8 sps:$4 sm:$0xff]  }
 0x11f   : > { %941 = vmatprep.subr.bf16.mxu1 %v1791_v18  ;;  %v1876_v18 = vld [vmem:[%s2675_s1 + $0x74] ss:$8 sps:$4 sm:$0xff]  }
 0x125   : > { %709 = vmatpush1.bf16.xpose.msra.mxu0 %v1772_v19  ;;  %v1874_v19 = vld [vmem:[%s2675_s1 + $0x70] ss:$8 sps:$4 sm:$0xff]  }
 0x126   : > { %710 = vmatprep.subr.bf16.mxu0 %v1776_v20  ;;  %942 = vmatpush1.bf16.xpose.msra.mxu1 %v1793_v21  ;;  %v1879_v20 = vld [vmem:[%s2675_s1 + $0x84] ss:$8 sps:$4 sm:$0xff]   ;;  %v1877_v21 = vld [vmem:[%s2675_s1 + $0x80] ss:$8 sps:$4 sm:$0xff]  }
 0x127   : > { %943 = vmatprep.subr.bf16.mxu1 %v1797_v22  ;;  %v1882_v22 = vld [vmem:[%s2675_s1 + $0x94] ss:$8 sps:$4 sm:$0xff]  }
 0x12d   : > { %711 = vmatpush1.bf16.xpose.msra.mxu0 %v1778_v24  ;;  %v1885_v24 = vld [vmem:[%s2675_s1 + $0xa4] ss:$8 sps:$4 sm:$0xff]  }
 0x12e   : > { %712 = vmatprep.subr.bf16.mxu0 %v1782_v26  ;;  %944 = vmatpush1.bf16.xpose.msra.mxu1 %v1799_v27  ;;  %v1888_v26 = vld [vmem:[%s2675_s1 + $0xb4] ss:$8 sps:$4 sm:$0xff]   ;;  %v1886_v27 = vld [vmem:[%s2675_s1 + $0xb0] ss:$8 sps:$4 sm:$0xff]  }
 0x12f   : > { %945 = vmatprep.subr.bf16.mxu1 %v1803_v28  ;;  %v1891_v28 = vld [vmem:[%s2675_s1 + $0xc4] ss:$8 sps:$4 sm:$0xff]  }
 0x135   : > { %713 = vmatpush1.bf16.xpose.msra.mxu0 %v1784_v29  ;;  %v1889_v29 = vld [vmem:[%s2675_s1 + $0xc0] ss:$8 sps:$4 sm:$0xff]  }
 0x136   : > { %714 = vmatprep.subr.bf16.mxu0 %v1788_v30  ;;  %946 = vmatpush1.bf16.xpose.msra.mxu1 %v1805_v32  ;;  %v1894_v30 = vld [vmem:[%s2675_s1 + $0xd4] ss:$8 sps:$4 sm:$0xff]   ;;  %v1897_v32 = vld [vmem:[%s2675_s1 + $0xe4] ss:$8 sps:$4 sm:$0xff]  }
 0x137   : > { %947 = vmatprep.subr.bf16.mxu1 %v1809_v33  ;;  %v1895_v33 = vld [vmem:[%s2675_s1 + $0xe0] ss:$8 sps:$4 sm:$0xff]  }
 0x13d   : > { %715 = vmatpush1.bf16.xpose.msra.mxu0 %v1790_v31  ;;  %v1892_v31 = vld [vmem:[%s2675_s1 + $0xd0] ss:$8 sps:$4 sm:$0xff]  }
 0x13e   : > { %716 = vmatprep.subr.bf16.mxu0 %v1794_v34  ;;  %948 = vmatpush1.bf16.xpose.msra.mxu1 %v1811_v35  ;;  %v1900_v34 = vld [vmem:[%s2675_s1 + $0xf4] ss:$8 sps:$4 sm:$0xff]   ;;  %v1898_v35 = vld [vmem:[%s2675_s1 + $0xf0] ss:$8 sps:$4 sm:$0xff]  }
 0x13f   : > { %949 = vmatprep.subr.bf16.mxu1 %v1815_v36 }
 0x145   : > { %717 = vmatpush1.bf16.xpose.msra.mxu0 %v1796_v37 }
 0x146   : > { %718 = vmatprep.subr.bf16.mxu0 %v1800_v38  ;;  %950 = vmatpush1.bf16.xpose.msra.mxu1 %v1817_v39 }
 0x147   : > { %951 = vmatprep.subr.bf16.mxu1 %v1821_v40 }
 0x14d   : > { %719 = vmatpush1.bf16.xpose.msra.mxu0 %v1802_v41 }
 0x14e   : > { %720 = vmatprep.subr.bf16.mxu0 %v1806_v42  ;;  %952 = vmatpush1.bf16.xpose.msra.mxu1 %v1823_v43 }
 0x14f   : > { %953 = vmatprep.subr.bf16.mxu1 %v1827_v44 }
 0x155   : > { %721 = vmatpush1.bf16.xpose.msra.mxu0 %v1808_v45 }
 0x156   : > { %722 = vmatprep.subr.bf16.mxu0 %v1812_v46  ;;  %954 = vmatpush1.bf16.xpose.msra.mxu1 %v1829_v47 }
 0x157   : > { %955 = vmatprep.subr.bf16.mxu1 %v1833_v48 }
 0x15d   : > { %723 = vmatpush1.bf16.xpose.msra.mxu0 %v1814_v49 }
 0x15e   : > { %724 = vmatprep.subr.bf16.mxu0 %v1818_v50  ;;  %956 = vmatpush1.bf16.xpose.msra.mxu1 %v1835_v51 }
 0x15f   : > { %957 = vmatprep.subr.bf16.mxu1 %v1839_v52 }
 0x165   : > { %725 = vmatpush1.bf16.xpose.msra.mxu0 %v1820_v53 }
 0x166   : > { %726 = vmatprep.subr.bf16.mxu0 %v1824_v54  ;;  %958 = vmatpush1.bf16.xpose.msra.mxu1 %v1841_v55 }
 0x167   : > { %959 = vmatprep.subr.bf16.mxu1 %v1844_v56 }
 0x16d   : > { %727 = vmatpush1.bf16.xpose.msra.mxu0 %v1826_v57 }
 0x16e   : > { %728 = vmatprep.subr.bf16.mxu0 %v1830_v58  ;;  %960 = vmatpush1.bf16.xpose.msra.mxu1 %v1846_v59  ;;  %v990_v58 = vld [vmem:[#allocation2] sm:$0xff]  ;;  %v991_v59 = vld [vmem:[#allocation2 + $0x8] sm:$0xff] }
 0x16f   : > { %961 = vmatprep.subr.bf16.mxu1 %v1847_v60 }
 0x175   : > { %729 = vmatpush1.bf16.xpose.msra.mxu0 %v1832_v61 }
 0x176   : > { %730 = vmatprep.subr.bf16.mxu0 %v1836_v62  ;;  %962 = vmatpush1.bf16.xpose.msra.mxu1 %v1849_v63 }
 0x177   : > { %963 = vmatprep.subr.bf16.mxu1 %v1850_v0 }
 0x17d   : > { %731 = vmatpush1.bf16.xpose.msra.mxu0 %v1838_v1 }
 0x17e   : > { %1186 = vmatprep.subr.bf16.mxu0 %v1855_v2  ;;  %964 = vmatpush1.bf16.xpose.msra.mxu1 %v1852_v3  ;;  %v1241_v2 = vlaneseq (!%p1607_p9) }
 0x180   : > { %v1242_v3 = vshrl.u32 (!%p1607_p9), %v1241_v2, 7 }
 0x184   : > { %733 = vmatmul.mubr.bf16.vlgmr.msra.gmra.mrb[0].mxu0 %v1507_v4 }
 0x185   : > { %1187 = vmatpush1.bf16.xpose.msra.mxu0 %v1853_v5  ;;  %966 = vmatmul.mubr.bf16.vlgmr.msra.gmra.mrb[0].mxu1 %v1507_v4  ;;  %v1235_v4 = vld [vmem:[%s2690_s6 + $0x10] sm:$0xf] (!%p1607_p9)  ;;  %v1236_v5 = vld [vmem:[%s2690_s6 + $0x18] sm:$0xf] (!%p1607_p9) }
 0x186   : > { %1188 = vmatprep.subr.bf16.mxu0 %v1858_v6  ;;  %v1243_v6 = vsub.s32 (!%p1607_p9), 3, %v1242_v3 }
 0x18d   : > { %1189 = vmatpush1.bf16.xpose.msra.mxu0 %v1856_v7 }
 0x18e   : > { %1190 = vmatprep.subr.bf16.mxu0 %v1861_v8 }
 0x195   : > { %1191 = vmatpush1.bf16.xpose.msra.mxu0 %v1859_v9  ;;  %v1244_v9 = vrot.slane (!%p1607_p9), %v1235_v4, %v1243_v6 }
 0x196   : > { %1192 = vmatprep.subr.bf16.mxu0 %v1864_v10  ;;  %v1248_v10 = vrot.slane (!%p1607_p9), %v1236_v5, %v1243_v6 }
 0x19d   : > { %1193 = vmatpush1.bf16.xpose.msra.mxu0 %v1862_v11  ;;  %v1237_v11 = vld [vmem:[%s2682_s15] sm:$0xff] (!%p1607_p9) }
 0x19e   : > { %1194 = vmatprep.subr.bf16.mxu0 %v1867_v12  ;;  %v1238_v12 = vld [vmem:[%s2682_s15 + $0x8] sm:$0xff] (!%p1607_p9) }
 0x1a5   : > { %1195 = vmatpush1.bf16.xpose.msra.mxu0 %v1865_v13 }
 0x1a6   : > { %1196 = vmatprep.subr.bf16.mxu0 %v1870_v14 }
 0x1ad   : > { %1197 = vmatpush1.bf16.xpose.msra.mxu0 %v1868_v15 }
 0x1ae   : > { %1198 = vmatprep.subr.bf16.mxu0 %v1873_v16 }
 0x1b5   : > { %1199 = vmatpush1.bf16.xpose.msra.mxu0 %v1871_v17 }
 0x1b6   : > { %1200 = vmatprep.subr.bf16.mxu0 %v1876_v18 }
 0x1bd   : > { %1201 = vmatpush1.bf16.xpose.msra.mxu0 %v1874_v19 }
 0x1be   : > { %1202 = vmatprep.subr.bf16.mxu0 %v1879_v20 }
 0x1c5   : > { %1203 = vmatpush1.bf16.xpose.msra.mxu0 %v1877_v21 }
 0x1c6   : > { %1204 = vmatprep.subr.bf16.mxu0 %v1882_v22 }
 0x1cd   : > { %1205 = vmatpush1.bf16.xpose.msra.mxu0 %v1880_v23 }
 0x1ce   : > { %1206 = vmatprep.subr.bf16.mxu0 %v1885_v24 }
 0x1d5   : > { %1207 = vmatpush1.bf16.xpose.msra.mxu0 %v1883_v25 }
 0x1d6   : > { %1208 = vmatprep.subr.bf16.mxu0 %v1888_v26 }
 0x1dd   : > { %1209 = vmatpush1.bf16.xpose.msra.mxu0 %v1886_v27 }
 0x1de   : > { %1210 = vmatprep.subr.bf16.mxu0 %v1891_v28 }
 0x1e5   : > { %1211 = vmatpush1.bf16.xpose.msra.mxu0 %v1889_v29 }
 0x1e6   : > { %1212 = vmatprep.subr.bf16.mxu0 %v1894_v30 }
 0x1ed   : > { %1213 = vmatpush1.bf16.xpose.msra.mxu0 %v1892_v31 }
 0x1ee   : > { %1214 = vmatprep.subr.bf16.mxu0 %v1897_v32 }
 0x1f5   : > { %1215 = vmatpush1.bf16.xpose.msra.mxu0 %v1895_v33 }
 0x1f6   : > { %1216 = vmatprep.subr.bf16.mxu0 %v1900_v34 }
 0x1fd   : > { %1217 = vmatpush1.bf16.xpose.msra.mxu0 %v1898_v35 }
 0x257   : > { %v734_v36 = vpop.f32.mrb[0].mxu0 }
 0x258   : > { %v1573_v37 = vmul.f32 -1.442695, %v734_v36  ;;  %v736_v38 = vpop.f32.mrb[1].mxu0  ;;  %v967_v42 = vpop.f32.mrb[0].mxu1 }
 0x259   : > { %v1574_v39 = vmul.f32 -1.442695, %v736_v38  ;;  %v738_v40 = vpop.f32.mrb[2].mxu0  ;;  %v969_v43 = vpop.f32.mrb[1].mxu1 }
 0x25a   : > { %1901 = vpow2.f32 %v1573_v37  ;;  %v739_v41 = vpop.f32.mrb[3].mxu0  ;;  %v971_v44 = vpop.f32.mrb[2].mxu1 }
 0x25b   : > { %1903 = vpow2.f32 %v1574_v39  ;;  %v972_v45 = vpop.f32.mrb[3].mxu1 }
 0x264   : > { %v1902_v46 = vpop.eup %1901 }
 0x265   : > { %v1904_v47 = vpop.eup %1903  ;;  %v980_v48 = vadd.f32 1.0, %v1902_v46 }
 0x266   : > { %v981_v49 = vadd.f32 1.0, %v1904_v47 }
 0x267   : > { %1905 = vrcp.f32 %v980_v48 }
 0x268   : > { %1907 = vrcp.f32 %v981_v49 }
 0x271   : > { %v1906_v50 = vpop.eup %1905 }
 0x272   : > { %v1908_v51 = vpop.eup %1907  ;;  %v986_v52 = vmul.f32 %v1906_v50, %v734_v36 }
 0x273   : > { %v987_v53 = vmul.f32 %v1908_v51, %v736_v38 }
 0x274   : > { %v988_v54 = vmul.f32 %v986_v52, %v967_v42 }
 0x275   : > { %v989_v55 = vmul.f32 %v987_v53, %v969_v43 }
 0x276   : > { %v992_v57 = vpack.c.bf16 %v988_v54, %v988_v54 }
 0x277   : > { %v993_v56 = vpack.c.bf16 %v989_v55, %v989_v55 }
 0x279   : > { %1218 = vmatprep.mubr.bf16.mxu0 %v993_v56 }
 0x27a   : > { %1219 = vmatmul.mubr.bf16.vlgmr.msra.gmra.mrb[4].mxu0 %v992_v57 }
 0x34b   : > { %1234 = sbr.rel (%p1607_p9) target bundleno = 862 (0x35e), region = 76 }
 0x34d   : > { %v1220_v60 = vpop.f32.mrb[4].mxu0 }
 0x34e   : > { %v1227_v61 = vadd.f32 %v1220_v60, %v990_v58  ;;  %v1222_v62 = vpop.f32.mrb[5].mxu0 }
 0x34f   : > { %v1228_v63 = vadd.f32 %v1222_v62, %v991_v59  ;;  %v1224_v0 = vpop.f32.mrb[6].mxu0 }
 0x350   : > { %1229 = vst [vmem:[#allocation2] sm:$0xff] %v1227_v61  ;;  %v1225_v1 = vpop.f32.mrb[7].mxu0 }
 0x351   : > { %1230 = vst [vmem:[#allocation2 + $0x8] sm:$0xff] %v1228_v63 }
 0x357   : > { %v1239_v7 = vld [vmem:[#allocation2] sm:$0xff] }
 0x358   : > { %v1240_v8 = vld [vmem:[#allocation2 + $0x8] sm:$0xff]  ;;  %v1249_v13 = vmul.f32 %v1244_v9, %v1239_v7 }
 0x359   : > { %v1250_v14 = vmul.f32 %v1248_v10, %v1240_v8 }
 0x35a   : > { %v1251_v15 = vadd.f32 %v1249_v13, %v1237_v11 }
 0x35b   : > { %v1252_v16 = vadd.f32 %v1250_v14, %v1238_v12 }
 0x35c   : > { %1253 = vst [vmem:[%s2696_s16] sm:$0xff] %v1251_v15 }
 0x35d   : > { %1254 = vst [vmem:[%s2696_s16 + $0x8] sm:$0xff] %v1252_v16 }
 0x35e PF: > { %s2954_s12 = sld [smem:[#allocation25_spill]]  ;;  %s2955_s29 = sld [smem:[#allocation32_spill]] }
 0x35f   : > { %s2956_s20 = sld [smem:[#allocation37_spill]]  ;;  %s1272_s26 = sshll.u32 %s2696_s16, 4  ;;  %s1273_s26 = int_to_ptr.vmem [resolvable:$true] %s1272_s26 }
 0x360   : > { %s1256_s8 = scalar_lea.sflag [#allocation5], %s2655_s18  ;;  %s2089_s17 = scalar_lea.vmem %s1273_s26, 256 }
 0x361   : > { %p2090_p11 = scmp.ne.s32.totalorder %s1273_s26, %s2089_s17  ;;  %s2241_s11 = smov [#allocation14]  }
 0x362   : > { %s2093_s28 = sshll.u32 %s2241_s11, 4  ;;  %s2094_s28 = int_to_ptr.vmem [resolvable:$false] %s2093_s28 }
 0x363   : > { %s2095_s21 = scalar_lea.vmem %s2094_s28, 512  ;;  %p2096_p2 = scmp.lt.s32.totalorder %s1273_s26, %s2094_s28 }
 0x364   : > { %s1621_s27 = sshll.u32 %s2954_s12, 8  ;;  %p2957_p10 = scmp.ne.s32.totalorder %s2955_s29, 0 }
 0x365   : > { %s2813_s10 = scalar_lea.hbm %s2956_s20, %s1621_s27  ;;  %p2097_p3 = scmp.lt.s32.totalorder %s2095_s21, %s2089_s17 }
 0x366   : > { %p2091_p12 = pnand %p2090_p11, %p2957_p10 }
 0x367   : > { %p2098_p0 = por %p2097_p3, %p2096_p2 }
 0x368   : > { %p2092_p6 = pneg %p2091_p12 }
 0x36a   : > { %p2099_p4 = pnand %p2098_p0, %p2092_p6 }
 0x36c   : > { %2102 = shalt.err (!%p2099_p4)
}
 0x36d   : > { %s2103_s18 = scalar_lea.hbm %s2813_s10, 256  ;;  %s2107_s15 = scalar_lea.hbm %s2956_s20, 512 }
 0x36e   : > { %p2104_p13 = scmp.ne.s32.totalorder %s2813_s10, %s2103_s18  ;;  %p2108_p7 = scmp.lt.u32.totalorder %s2813_s10, %s2956_s20 }
 0x36f   : > { %p2109_p8 = scmp.lt.u32.totalorder %s2107_s15, %s2103_s18  ;;  %p2111_p11 = scmp.lt.u32.totalorder %s2103_s18, %s2813_s10 }
 0x370   : > { %p2105_p1 = pnand %p2104_p13, %p2957_p10 }
 0x371   : > { %p2110_p9 = por %p2109_p8, %p2108_p7 }
 0x372   : > { %p2106_p5 = pneg %p2105_p1 }
 0x373   : > { %p2112_p12 = por %p2111_p11, %p2110_p9 }
 0x375   : > { %p2113_p6 = pnand %p2112_p12, %p2106_p5 }
 0x377   : > { %2116 = shalt.err (!%p2113_p6)
}
 0x378   : > { %1634 = dma.vmem_to_hbm [thread:$0]  (%p2957_p10), %s1273_s26, 256, %s2813_s10, %s1256_s8  }
 0x379 PF: > { %s2958_s6 = sld [smem:[#allocation34_spill]]  ;;  %p1660_p2 = scmp.ge.s32.totalorder %s2227_s7, 2 }
 0x37a   : > { %s1284_s16 = sand.u32 1, %s2199_s24  }
 0x37b   : > { %s1285_s23 = scalar_lea.sflag [#allocation5], %s1284_s16 }
 0x37f   : > { %p2959_p3 = scmp.ne.s32.totalorder %s2958_s6, 0 }
 0x381   : > { %p1656_p0 = pnand %p1660_p2, %p2959_p3 }
 0x383   : > { %2182 = dma.done.wait (!%p1656_p0), %s1285_s23, 256  }
 0x384   : > { %2184 = vsyncadd (!%p1656_p0), %s1285_s23, 4294967040  ;;  %s31_s7 = sadd.s32 1, %s2227_s7   ;;  %s2960_s21 = sld [smem:[#allocation21_spill]] }
 0x385   : > { %p28_p4 = scmp.ge.s32.totalorder %s31_s7, 8   ;;  %s2961_s22 = sld [smem:[#allocation22_spill]] }
 0x386   : > { %s2962_s23 = sld [smem:[#allocation28_spill]]  ;;  %s2963_s9 = sld [smem:[#allocation23_spill]] }
 0x387   : > { %s2964_s26 = sld [smem:[#allocation33_spill]]  ;;  %s2965_s27 = sld [smem:[#allocation26_spill]] }
 0x388   : > { %s2966_s29 = sld [smem:[#allocation27_spill]]  ;;  %s2967_s12 = sld [smem:[#allocation30_spill]] }
 0x389   : > { %s2968_s24 = smov %s2203_s25  ;;  %s2970_s28 = smov %s2223_s30 }
 0x38a   :  { %30 = sbr.rel (!%p28_p4) target bundleno = 19 (0x13), region = 158 }
 0x38c   : > { %s2969_s25 = smov %s2963_s9 }
 0x38e   : > { %s2971_s30 = smov %s2967_s12 }
 0x391   :  { %1290 = vsyncpa [#allocation4], 1 }
 0x392   :  { %1292 = vsyncpa [#allocation4 + $0x1], 1 }
 0x393   :  { %1293 = vsyncpa [#allocation7], 1 }
 0x394   :  { %1295 = vsyncpa [#allocation7 + $0x1], 1 }
 0x395   :  { %1296 = vsyncpa [#allocation10], 1 }
 0x396   :  { %1298 = vsyncpa [#allocation10 + $0x1], 1 }
 0x397   :  { %1299 = vsyncpa [#allocation13], 1 }
 0x398   :  { %1301 = vsyncpa [#allocation13 + $0x1], 1 }
 0x399   :  { %1302 = vsyncpa [#allocation5], 1 }
 0x39a   :  { %1304 = vsyncpa [#allocation5 + $0x1], 1 }

// kernel: aura_flow_joint_block_forward.13
= control target key start
LH: loop header
LB: loop body
LE: loop exit
PB: predicated region body
PF: predicated region fallthrough
CT: control target
= control target key end

     0   :  { %s2965_s0 = inlined_call_operand.hbm [shape: bf16[2,16,256], index: 0, kind: input, shape index: {}]   ;;  %s2966_s1 = inlined_call_operand.hbm [shape: bf16[768,256], index: 1, kind: input, shape index: {}]   ;;  %s2967_s2 = inlined_call_operand.hbm [shape: bf16[768,256], index: 2, kind: input, shape index: {}]   ;;  %s2968_s3 = inlined_call_operand.hbm [shape: bf16[256,768], index: 3, kind: input, shape index: {}]   ;;  %s2969_s4 = inlined_call_operand.hbm [shape: f32[2,16,256], index: 4, kind: input, shape index: {}]   ;;  %s2970_s5 = inlined_call_operand.hbm [shape: f32[2,12,256], index: 5, kind: input, shape index: {}]   ;;  %s2971_s6 = inlined_call_operand.hbm [shape: f32[2,16,256], index: 6, kind: output, shape index: {}]  }
   0x1   :  { %3001 = sst [smem:[#allocation35_spill]] %s2966_s1 }
   0x2   :  { %3002 = sst [smem:[#allocation36_spill]] %s2968_s3 }
   0x3   :  { %3003 = sst [smem:[#allocation37_spill]] %s2971_s6 }
   0x4   :  { %11 = vsyncpa [#allocation4], 0 }
   0x5   :  { %13 = vsyncpa [#allocation4 + $0x1], 0 }
   0x6   :  { %14 = vsyncpa [#allocation7], 0 }
   0x7   :  { %16 = vsyncpa [#allocation7 + $0x1], 0 }
   0x8   :  { %17 = vsyncpa [#allocation10], 0 }
   0x9   :  { %19 = vsyncpa [#allocation10 + $0x1], 0 }
   0xa   :  { %20 = vsyncpa [#allocation13], 0 }
   0xb   :  { %22 = vsyncpa [#allocation13 + $0x1], 0 }
   0xc   :  { %23 = vsyncpa [#allocation5], 0 }
   0xd   :  { %25 = vsyncpa [#allocation5 + $0x1], 0  ;;  %s2348_s21 = smov 0   ;;  %s2350_s22 = smov 0  }
   0xe   :  { %s2352_s23 = smov 0   ;;  %s2354_s24 = smov 0  }
   0xf   :  { %s2356_s25 = smov 0   ;;  %s2358_s26 = smov 0  }
  0x10   :  { %s2360_s27 = smov 0   ;;  %s2362_s28 = smov 0  }
  0x11   :  { %s2364_s29 = smov 0   ;;  %s2366_s30 = smov 0  }
  0x12   :  { %s2368_s7 = smov 0  }
  0x13 LB: > { %3004 = sst [smem:[#allocation21_spill]] %s2260_s22  ;;  %s2402_s8 = sadd.s32 4294967295, %s2296_s7   ;;  %s2296_s7 = sphi %s2368_s7, %s31_s7   ;;  %s2292_s30 = sphi %s2366_s30, %s3068_s30   ;;  %s2288_s29 = sphi %s2364_s29, %s3063_s29   ;;  %s2284_s28 = sphi %s2362_s28, %s3067_s28   ;;  %s2280_s27 = sphi %s2360_s27, %s3062_s27   ;;  %s2276_s26 = sphi %s2358_s26, %s3061_s26   ;;  %s2272_s25 = sphi %s2356_s25, %s3066_s25   ;;  %s2268_s24 = sphi %s2354_s24, %s3065_s24   ;;  %s2264_s23 = sphi %s2352_s23, %s3059_s23   ;;  %s2260_s22 = sphi %s2350_s22, %s3058_s22   ;;  %s2256_s21 = sphi %s2348_s21, %s3057_s21  }
  0x14   : > { %3005 = sst [smem:[#allocation22_spill]] %s2264_s23  ;;  %s43_s9 = sadd.s32 1, %s2288_s29 }
  0x15   : > { %3006 = sst [smem:[#allocation23_spill]] %s2268_s24  ;;  %p2405_p0 = scmp.ge.s32.totalorder %s43_s9, 3 }
  0x16   : > { %3007 = sst [smem:[#allocation24_spill]] %s2276_s26  ;;  %p2977_p1 = scmp.eq.s32.totalorder %s2296_s7, 0 }
  0x17   : > { %3008 = sst [smem:[#allocation25_spill]] %s2280_s27  ;;  %p2976_p2 = scmp.eq.s32.totalorder %s2402_s8, 0 }
  0x18   : > { %3009 = sst [smem:[#allocation26_spill]] %s2284_s28  ;;  %s85_s11 = sadd.s32 1, %s2264_s23 }
  0x19   : > { %3010 = sst [smem:[#allocation27_spill]] %s2288_s29  ;;  %s3070_s9 = smov (%p2405_p0, %s43_s9), 0 }
  0x1a   : > { %3011 = sst [smem:[#allocation28_spill]] %s2402_s8  ;;  %p92_p3 = scmp.ne.s32.totalorder %s2264_s23, %s2260_s22 }
  0x1b   : > { %s3012_s10 = scalar_select %p2405_p0, 1, 0 }
  0x1c   : > { %3013 = sst [smem:[#allocation29_spill]] %s3070_s9  ;;  %p98_p4 = scmp.ne.s32.totalorder %s2260_s22, %s2256_s21 }
  0x1d   : > { %s82_s12 = ssub.s32 %s2288_s29, %s3070_s9  ;;  %p94_p6 = por %p92_p3, %p2977_p1 }
  0x1e   : > { %p83_p5 = scmp.eq.s32.totalorder %s82_s12, 0  ;;  %p2425_p7 = por %p98_p4, %p2976_p2 }
  0x1f   : > { %p2975_p8 = scmp.lt.s32.totalorder %s2296_s7, 6  ;;  %s282_s16 = sand.u32 1, %s2264_s23  }
  0x20   : > { %s3014_s13 = scalar_select %p2425_p7, 1, 0 }
  0x21   : > { %s2431_s14 = scalar_select %p83_p5, %s2264_s23, %s85_s11  }
  0x22   : > { %3015 = sst [smem:[#allocation30_spill]] %s3014_s13  ;;  %s2435_s17 = sshll.u32 %s282_s16, 8 }
  0x23   : > { %3016 = sst [smem:[#allocation31_spill]] %s2431_s14  ;;  %s1673_s18 = sshll.u32 %s2288_s29, 12 }
  0x24   : > { %s3017_s1 = sld [smem:[#allocation35_spill]]  ;;  %s284_s12 = scalar_lea.vmem [#allocation6], %s2435_s17 }
  0x25   : > { %s292_s9 = sshll.u32 %s284_s12, 4  ;;  %p2448_p9 = pnand %p2975_p8, %p94_p6  ;;  %s2444_s9 = int_to_ptr.vmem [resolvable:$true] %s292_s9 }
  0x26   : > { %s2455_s19 = scalar_lea.hbm %s2967_s2, %s1673_s18  ;;  %s3019_s20 = sand.u32 1, %s2296_s7  }
  0x27   : > { %s3018_s11 = scalar_select %p2448_p9, 1, 0 }
  0x28   : > { %s2460_s14 = scalar_lea.sflag [#allocation7], %s3019_s20  ;;  %p2466_p12 = pneg %p2448_p9 }
  0x2a   : > { %s2441_s21 = scalar_lea.hbm %s3017_s1, %s1673_s18  ;;  %s1983_s18 = scalar_lea.hbm %s3017_s1, 12288 }
  0x2b   : > { %s1978_s23 = scalar_lea.hbm %s2441_s21, 4096  ;;  %p1984_p4 = scmp.lt.u32.totalorder %s2441_s21, %s3017_s1 }
  0x2c   : > { %p1979_p11 = scmp.ne.s32.totalorder %s2441_s21, %s1978_s23  ;;  %p1985_p5 = scmp.lt.u32.totalorder %s1983_s18, %s1978_s23 }
  0x2d   : > { %s3020_s12 = scalar_select %p2466_p12, 1, 0 }
  0x2e   : > { %p1981_p13 = pnand %p2466_p12, %p1979_p11  ;;  %p1986_p6 = por %p1985_p5, %p1984_p4 }
  0x2f   : > { %p1987_p8 = scmp.lt.u32.totalorder %s1978_s23, %s2441_s21 }
  0x30   : > { %p1982_p3 = pneg %p1981_p13 }
  0x31   : > { %p1988_p2 = por %p1987_p8, %p1986_p6 }
  0x33   : > { %p1989_p1 = pnand %p1988_p2, %p1982_p3 }
  0x35   : > { %1992 = shalt.err (!%p1989_p1)
}
  0x36   : > { %s1993_s20 = scalar_lea.vmem %s2444_s9, 4096  ;;  %s2298_s6 = smov [#allocation6]  }
  0x37   : > { %p1994_p11 = scmp.ne.s32.totalorder %s2444_s9, %s1993_s20  ;;  %s1998_s15 = sshll.u32 %s2298_s6, 4  ;;  %s1999_s15 = int_to_ptr.vmem [resolvable:$false] %s1998_s15 }
  0x38   : > { %s2000_s28 = scalar_lea.vmem %s1999_s15, 8192  ;;  %p2001_p7 = scmp.lt.s32.totalorder %s2444_s9, %s1999_s15 }
  0x39   : > { %p1996_p13 = pnand %p1994_p11, %p2466_p12  ;;  %p2002_p0 = scmp.lt.s32.totalorder %s2000_s28, %s1993_s20 }
  0x3b   : > { %p1997_p10 = pneg %p1996_p13  ;;  %p2003_p4 = por %p2002_p0, %p2001_p7 }
  0x3d   : > { %p2004_p5 = pnand %p2003_p4, %p1997_p10 }
  0x3f   : > { %2007 = shalt.err (!%p2004_p5)
}
  0x40   : > { %s2980_s23 = smov 128   ;;  %s2982_s18 = smov 8  }
  0x41   : > { %1700 = dma.hbm_to_vmem [thread:$0]  (!%p2448_p9), %s2441_s21, 4096, %s2444_s9, %s2460_s14, %s2980_s23, %s2980_s23, %s2982_s18  }
  0x42   : > { %p388_p0 = scmp.lt.s32.totalorder %s2296_s7, 7  ;;  %s1676_s16 = sshll.u32 %s2288_s29, 7 }
  0x43   : > { %s328_s20 = scalar_lea.vmem [#allocation9], %s2435_s17  ;;  %p3021_p1 = scmp.ge.s32.totalorder %s2296_s7, 1 }
  0x44   : > { %s335_s6 = sshll.u32 %s328_s20, 4  ;;  %s3023_s3 = sld [smem:[#allocation36_spill]]  ;;  %s2507_s6 = int_to_ptr.vmem [resolvable:$true] %s335_s6 }
  0x45   : > { %p2498_p2 = pnand %p3021_p1, %p388_p0  ;;  %s3024_s9 = sand.u32 1, %s2296_s7  }
  0x46   : > { %s2511_s21 = scalar_lea.sflag [#allocation10], %s3024_s9 }
  0x47   : > { %s3022_s15 = scalar_select %p2498_p2, 1, 0 }
  0x4a   : > { %s2505_s27 = scalar_lea.hbm %s3023_s3, %s1676_s16  ;;  %s2013_s1 = scalar_lea.hbm %s3023_s3, 12288 }
  0x4b   : > { %s2008_s20 = scalar_lea.hbm %s2505_s27, 4096  ;;  %p2014_p3 = scmp.lt.u32.totalorder %s2505_s27, %s3023_s3 }
  0x4c   : > { %p2009_p7 = scmp.ne.s32.totalorder %s2505_s27, %s2008_s20  ;;  %p2015_p6 = scmp.lt.u32.totalorder %s2013_s1, %s2008_s20 }
  0x4d   : > { %p2017_p13 = scmp.lt.u32.totalorder %s2008_s20, %s2505_s27 }
  0x4e   : > { %p2011_p8 = pnand %p2009_p7, %p2466_p12  ;;  %p2016_p11 = por %p2015_p6, %p2014_p3 }
  0x50   : > { %p2012_p10 = pneg %p2011_p8  ;;  %p2018_p4 = por %p2017_p13, %p2016_p11 }
  0x52   : > { %p2019_p5 = pnand %p2018_p4, %p2012_p10 }
  0x54   : > { %2022 = shalt.err (!%p2019_p5)
}
  0x55   : > { %s2023_s9 = scalar_lea.vmem %s2507_s6, 4096  ;;  %s2301_s23 = smov [#allocation9]  }
  0x56   : > { %p2024_p0 = scmp.ne.s32.totalorder %s2507_s6, %s2023_s9  ;;  %s2028_s18 = sshll.u32 %s2301_s23, 4  ;;  %s2029_s18 = int_to_ptr.vmem [resolvable:$false] %s2028_s18 }
  0x57   : > { %s2030_s16 = scalar_lea.vmem %s2029_s18, 8192  ;;  %p2031_p8 = scmp.lt.s32.totalorder %s2507_s6, %s2029_s18 }
  0x58   : > { %p2026_p1 = pnand %p2024_p0, %p2466_p12  ;;  %p2032_p2 = scmp.lt.s32.totalorder %s2030_s16, %s2023_s9 }
  0x5a   : > { %p2027_p7 = pneg %p2026_p1  ;;  %p2033_p3 = por %p2032_p2, %p2031_p8 }
  0x5c   : > { %p2034_p6 = pnand %p2033_p3, %p2027_p7 }
  0x5e   : > { %2037 = shalt.err (!%p2034_p6)
}
  0x5f   : > { %s2302_s20 = smov 384   ;;  %s3025_s1 = smov 8  }
  0x60   : > { %s3026_s28 = smov 128   ;;  %s1531_s9 = sadd.s32 4294967294, %s2296_s7  }
  0x61   : > { %1706 = dma.hbm_to_vmem [thread:$0]  (!%p2448_p9), %s2505_s27, 4096, %s2507_s6, %s2511_s21, %s2302_s20, %s3026_s28, %s3025_s1  }
  0x62   : > { %s50_s23 = sadd.s32 1, %s2292_s30  ;;  %p3027_p2 = scmp.ne.s32.totalorder %s3012_s10, 0 }
  0x63   : > { %s59_s18 = sadd.s32 1, %s2276_s26  ;;  %p66_p10 = scmp.ne.s32.totalorder %s2276_s26, %s2272_s25 }
  0x64   : > { %s3072_s23 = smov (!%p3027_p2, %s50_s23), %s2292_s30  ;;  %p72_p13 = scmp.ne.s32.totalorder %s2272_s25, %s2268_s24 }
  0x65   : > { %p52_p11 = scmp.ge.s32.totalorder %s3072_s23, 2  ;;  %p3028_p4 = scmp.eq.s32.totalorder %s2296_s7, 0 }
  0x66   : > { %p230_p0 = scmp.eq.s32.totalorder %s2402_s8, 5  ;;  %p3031_p1 = scmp.eq.s32.totalorder %s2402_s8, 0 }
  0x67   : > { %p2549_p5 = por %p3028_p4, %p66_p10  ;;  %s3074_s23 = smov (%p52_p11, %s3072_s23), 0 }
  0x68   : > { %3030 = sst [smem:[#allocation32_spill]] %s3074_s23  ;;  %p2558_p7 = por %p3031_p1, %p72_p13 }
  0x69   : > { %p2562_p8 = por %p230_p0, %p66_p10  ;;  %s54_s6 = ssub.s32 %s2292_s30, %s3074_s23 }
  0x6a   : > { %s3032_s27 = scalar_select %p2558_p7, 1, 0 }
  0x6b   : > { %s3034_s10 = scalar_select %p2562_p8, 1, 0 }
  0x6c   : > { %3033 = sst [smem:[#allocation33_spill]] %s3032_s27  ;;  %p236_p3 = scmp.eq.s32.totalorder %s1531_s9, 5 }
  0x6d   : > { %p57_p6 = scmp.eq.s32.totalorder %s54_s6, 0  ;;  %s2569_s20 = sand.u32 1, %s2276_s26  }
  0x6e   : > { %p2571_p2 = por %p236_p3, %p72_p13  ;;  %s1534_s24 = sshll.u32 %s2569_s20, 4 }
  0x6f   : > { %s2576_s29 = scalar_select %p57_p6, %s2276_s26, %s59_s18  }
  0x70   : > { %s3035_s3 = scalar_select %p2571_p2, 1, 0 }
  0x71   : > { %3036 = sst [smem:[#allocation34_spill]] %s2576_s29  ;;  %s1671_s13 = sshll.u32 %s2292_s30, 8 }
  0x72   : > { %s2583_s27 = scalar_lea.hbm %s2965_s0, %s1671_s13  ;;  %s260_s9 = scalar_lea.vmem [#allocation3], %s1534_s24 }
  0x73   : > { %s270_s6 = sshll.u32 %s260_s9, 4  ;;  %p3037_p10 = scmp.lt.s32.totalorder %s2296_s7, 6  ;;  %s2593_s6 = int_to_ptr.vmem [resolvable:$true] %s270_s6 }
  0x74   : > { %s306_s18 = scalar_lea.vmem [#allocation8], %s2435_s17  ;;  %s257_s22 = scalar_lea.sflag [#allocation4], %s2569_s20 }
  0x75   : > { %p2589_p11 = pnand %p3037_p10, %p2549_p5  ;;  %s2596_s29 = sshll.u32 %s306_s18, 4  ;;  %s2632_s29 = int_to_ptr.vmem [resolvable:$true] %s2596_s29 }
  0x76   : > { %s2038_s8 = scalar_lea.hbm %s2583_s27, 256  ;;  %s2043_s9 = scalar_lea.hbm %s2965_s0, 512 }
  0x77   : > { %s3038_s23 = scalar_select %p2589_p11, 1, 0 }
  0x78   : > { %p2039_p13 = scmp.ne.s32.totalorder %s2583_s27, %s2038_s8  ;;  %p2603_p4 = pneg %p2589_p11 }
  0x79   : > { %p2044_p1 = scmp.lt.u32.totalorder %s2583_s27, %s2965_s0  ;;  %p2045_p3 = scmp.lt.u32.totalorder %s2043_s9, %s2038_s8 }
  0x7a   : > { %p2041_p5 = pnand %p2603_p4, %p2039_p13  ;;  %p2047_p10 = scmp.lt.u32.totalorder %s2038_s8, %s2583_s27 }
  0x7b   : > { %p2046_p6 = por %p2045_p3, %p2044_p1 }
  0x7c   : > { %p2042_p0 = pneg %p2041_p5 }
  0x7d   : > { %p2048_p2 = por %p2047_p10, %p2046_p6 }
  0x7f   : > { %p2049_p8 = pnand %p2048_p2, %p2042_p0 }
  0x81   : > { %2052 = shalt.err (!%p2049_p8)
}
  0x82   : > { %s2053_s18 = scalar_lea.vmem %s2593_s6, 256  ;;  %s2303_s13 = smov [#allocation3]  }
  0x83   : > { %p2054_p13 = scmp.ne.s32.totalorder %s2593_s6, %s2053_s18  ;;  %s2058_s16 = sshll.u32 %s2303_s13, 4  ;;  %s2059_s16 = int_to_ptr.vmem [resolvable:$false] %s2058_s16 }
  0x84   : > { %s2060_s26 = scalar_lea.vmem %s2059_s16, 512  ;;  %p2061_p9 = scmp.lt.s32.totalorder %s2593_s6, %s2059_s16 }
  0x85   : > { %p2056_p5 = pnand %p2054_p13, %p2603_p4  ;;  %p2062_p12 = scmp.lt.s32.totalorder %s2060_s26, %s2053_s18 }
  0x87   : > { %p2057_p7 = pneg %p2056_p5  ;;  %p2063_p1 = por %p2062_p12, %p2061_p9 }
  0x89   : > { %p2064_p3 = pnand %p2063_p1, %p2057_p7 }
  0x8b   : > { %2067 = shalt.err (!%p2064_p3)
}
  0x8c   : > { %1697 = dma.hbm_to_vmem [thread:$0]  (!%p2589_p11), %s2583_s27, 256, %s2593_s6, %s257_s22, %s3026_s28, %s3026_s28, %s3025_s1  }
  0x8d   : > { %s1548_s8 = sshll.u32 %s2569_s20, 5  ;;  %s2068_s9 = scalar_lea.hbm %s2455_s19, 4096 }
  0x8e   : > { %p2069_p9 = scmp.ne.s32.totalorder %s2455_s19, %s2068_s9  ;;  %p3040_p12 = scmp.ne.s32.totalorder %s3020_s12, 0 }
  0x8f   : > { %s2073_s13 = scalar_lea.hbm %s2967_s2, 12288  ;;  %p2074_p2 = scmp.lt.u32.totalorder %s2455_s19, %s2967_s2 }
  0x90   : > { %p2071_p7 = pnand %p2069_p9, %p3040_p12  ;;  %p2075_p0 = scmp.lt.u32.totalorder %s2073_s13, %s2068_s9 }
  0x91   : > { %p2077_p10 = scmp.lt.u32.totalorder %s2068_s9, %s2455_s19 }
  0x92   : > { %p2072_p8 = pneg %p2071_p7  ;;  %p2076_p6 = por %p2075_p0, %p2074_p2 }
  0x94   : > { %p2078_p13 = por %p2077_p10, %p2076_p6 }
  0x96   : > { %p2079_p5 = pnand %p2078_p13, %p2072_p8 }
  0x98   : > { %2082 = shalt.err (!%p2079_p5)
}
  0x99   : > { %s2083_s27 = scalar_lea.vmem %s2632_s29, 4096  ;;  %s2304_s6 = smov [#allocation8]  }
  0x9a   : > { %p2084_p1 = scmp.ne.s32.totalorder %s2632_s29, %s2083_s27  ;;  %s2088_s22 = sshll.u32 %s2304_s6, 4  ;;  %s2089_s22 = int_to_ptr.vmem [resolvable:$false] %s2088_s22 }
  0x9b   : > { %s2090_s17 = scalar_lea.vmem %s2089_s22, 8192  ;;  %p2091_p7 = scmp.lt.s32.totalorder %s2632_s29, %s2089_s22 }
  0x9c   : > { %p2086_p3 = pnand %p2084_p1, %p3040_p12  ;;  %p2092_p11 = scmp.lt.s32.totalorder %s2090_s17, %s2083_s27 }
  0x9e   : > { %p2087_p9 = pneg %p2086_p3  ;;  %p2093_p2 = por %p2092_p11, %p2091_p7 }
  0xa0   : > { %p2094_p0 = pnand %p2093_p2, %p2087_p9 }
  0xa2   : > { %2097 = shalt.err (!%p2094_p0)
}
  0xa3   : > { %p3041_p8 = scmp.ne.s32.totalorder %s3018_s11, 0  ;;  %s1677_s12 = sshll.u32 %s2292_s30, 9 }
  0xa4   : > { %s2666_s13 = scalar_lea.hbm %s2969_s4, %s1677_s12  ;;  %s349_s11 = scalar_lea.vmem [#allocation11], %s1548_s8 }
  0xa5   : > { %1703 = dma.hbm_to_vmem [thread:$0]  (!%p3041_p8), %s2455_s19, 4096, %s2632_s29, %s2460_s14, %s3026_s28, %s3026_s28, %s3025_s1  }
  0xa6   : > { %s359_s16 = sshll.u32 %s349_s11, 4  ;;  %s2098_s26 = scalar_lea.hbm %s2666_s13, 512  ;;  %s2670_s16 = int_to_ptr.vmem [resolvable:$true] %s359_s16 }
  0xa7   : > { %p2099_p11 = scmp.ne.s32.totalorder %s2666_s13, %s2098_s26  ;;  %s2103_s19 = scalar_lea.hbm %s2969_s4, 1024 }
  0xa8   : > { %p2104_p10 = scmp.lt.u32.totalorder %s2666_s13, %s2969_s4  ;;  %p2105_p13 = scmp.lt.u32.totalorder %s2103_s19, %s2098_s26 }
  0xa9   : > { %p2101_p12 = pnand %p2099_p11, %p2603_p4  ;;  %p2107_p1 = scmp.lt.u32.totalorder %s2098_s26, %s2666_s13 }
  0xaa   : > { %p2106_p5 = por %p2105_p13, %p2104_p10 }
  0xab   : > { %p2102_p6 = pneg %p2101_p12 }
  0xac   : > { %p2108_p3 = por %p2107_p1, %p2106_p5 }
  0xae   : > { %p2109_p9 = pnand %p2108_p3, %p2102_p6 }
  0xb0   : > { %2112 = shalt.err (!%p2109_p9)
}
  0xb1   : > { %s2113_s27 = scalar_lea.vmem %s2670_s16, 512  ;;  %s2305_s6 = smov [#allocation11]  }
  0xb2   : > { %p2114_p7 = scmp.ne.s32.totalorder %s2670_s16, %s2113_s27  ;;  %s2118_s22 = sshll.u32 %s2305_s6, 4  ;;  %s2119_s22 = int_to_ptr.vmem [resolvable:$false] %s2118_s22 }
  0xb3   : > { %s2120_s17 = scalar_lea.vmem %s2119_s22, 1024  ;;  %p2121_p8 = scmp.lt.s32.totalorder %s2670_s16, %s2119_s22 }
  0xb4   : > { %p2116_p2 = pnand %p2114_p7, %p2603_p4  ;;  %p2122_p11 = scmp.lt.s32.totalorder %s2120_s17, %s2113_s27 }
  0xb6   : > { %p2117_p0 = pneg %p2116_p2  ;;  %p2123_p12 = por %p2122_p11, %p2121_p8 }
  0xb8   : > { %p2124_p10 = pnand %p2123_p12, %p2117_p0 }
  0xba   : > { %2127 = shalt.err (!%p2124_p10)
}
  0xbb   : > { %s2306_s9 = smov 256   ;;  %s2307_s18 = smov 16  }
  0xbc   : > { %p3042_p6 = scmp.ne.s32.totalorder %s3038_s23, 0  ;;  %s2702_s29 = scalar_lea.hbm %s2970_s5, %s1677_s12 }
  0xbd   : > { %s373_s14 = scalar_lea.vmem [#allocation12], %s1548_s8  ;;  %s370_s1 = scalar_lea.sflag [#allocation13], %s2569_s20 }
  0xbe   : > { %1709 = dma.hbm_to_vmem [thread:$0]  (!%p3042_p6), %s2666_s13, 512, %s2670_s16, %s2511_s21, %s2306_s9, %s2306_s9, %s2307_s18  }
  0xbf   : > { %s380_s19 = sshll.u32 %s373_s14, 4  ;;  %s2128_s28 = scalar_lea.hbm %s2702_s29, 512  ;;  %s2706_s19 = int_to_ptr.vmem [resolvable:$true] %s380_s19 }
  0xc0   : > { %p2129_p13 = scmp.ne.s32.totalorder %s2702_s29, %s2128_s28  ;;  %s2133_s12 = scalar_lea.hbm %s2970_s5, 1024 }
  0xc1   : > { %p2134_p3 = scmp.lt.u32.totalorder %s2702_s29, %s2970_s5  ;;  %p2135_p9 = scmp.lt.u32.totalorder %s2133_s12, %s2128_s28 }
  0xc2   : > { %p2131_p5 = pnand %p2129_p13, %p2603_p4  ;;  %p2137_p2 = scmp.lt.u32.totalorder %s2128_s28, %s2702_s29 }
  0xc3   : > { %p2136_p7 = por %p2135_p9, %p2134_p3 }
  0xc4   : > { %p2132_p1 = pneg %p2131_p5 }
  0xc5   : > { %p2138_p0 = por %p2137_p2, %p2136_p7 }
  0xc7   : > { %p2139_p8 = pnand %p2138_p0, %p2132_p1 }
  0xc9   : > { %2142 = shalt.err (!%p2139_p8)
}
  0xca   : > { %s2143_s8 = scalar_lea.vmem %s2706_s19, 512  ;;  %s2308_s6 = smov [#allocation12]  }
  0xcb   : > { %p2144_p11 = scmp.ne.s32.totalorder %s2706_s19, %s2143_s8  ;;  %s2148_s22 = sshll.u32 %s2308_s6, 4  ;;  %s2149_s22 = int_to_ptr.vmem [resolvable:$false] %s2148_s22 }
  0xcc   : > { %s2150_s17 = scalar_lea.vmem %s2149_s22, 1024  ;;  %p2151_p13 = scmp.lt.s32.totalorder %s2706_s19, %s2149_s22 }
  0xcd   : > { %p2146_p12 = pnand %p2144_p11, %p2603_p4  ;;  %p2152_p5 = scmp.lt.s32.totalorder %s2150_s17, %s2143_s8 }
  0xcf   : > { %p2147_p10 = pneg %p2146_p12  ;;  %p2153_p3 = por %p2152_p5, %p2151_p13 }
  0xd1   : > { %p2154_p9 = pnand %p2153_p3, %p2147_p10 }
  0xd3   : > { %2157 = shalt.err (!%p2154_p9)
}
  0xd4   : > { %1712 = dma.hbm_to_vmem [thread:$0]  (!%p3042_p6), %s2702_s29, 512, %s2706_s19, %s370_s1, %s2306_s9, %s2306_s9, %s2307_s18  }
  0xd5   : > { %p3043_p4 = scmp.ne.s32.totalorder %s3022_s15, 0 }
  0xd6   : > { %s3044_s24 = sld [smem:[#allocation33_spill]] (!%p3043_p4)  ;;  %s2738_s11 = sand.u32 (!%p3043_p4), 1, %s2272_s25  }
  0xd7   : > { %392 = sbr.rel (%p3043_p4) target bundleno = 892 (0x37c), region = 44  ;;  %s1555_s26 = sshll.u32 (!%p3043_p4), %s2738_s11, 4 }
  0xd8   : > { %s395_s14 = scalar_lea.sflag (!%p3043_p4), [#allocation4], %s2738_s11  ;;  %s2742_s23 = scalar_lea.vmem (!%p3043_p4), [#allocation3], %s1555_s26 }
  0xdc   : > { %p3045_p1 = scmp.ne.s32.totalorder (!%p3043_p4), %s3044_s24, 0 }
  0xde   : > { %2231 = dma.done.wait (%p3045_p1), %s395_s14, 256  }
  0xdf   : > { %2233 = vsyncadd (%p3045_p1), %s395_s14, 4294967040  ;;  %s3046_s20 = sld [smem:[#allocation28_spill]]  ;;  %s3047_s9 = sld [smem:[#allocation21_spill]] }
  0xe0   : > { %s3048_s18 = sld [smem:[#allocation30_spill]] }
  0xe5   : > { %s403_s15 = sand.u32 1, %s3046_s20   ;;  %s405_s29 = sand.u32 1, %s3047_s9  }
  0xe6   : > { %s1556_s19 = sshll.u32 %s405_s29, 8  ;;  %s404_s1 = scalar_lea.sflag [#allocation7], %s403_s15 }
  0xe7   : > { %s2750_s28 = scalar_lea.vmem [#allocation6], %s1556_s19  ;;  %p3049_p6 = scmp.ne.s32.totalorder %s3048_s18, 0 }
  0xe9   : > { %2235 = dma.done.wait (%p3049_p6), %s404_s1, 8192  }
  0xea   : > { %2237 = vsyncadd (%p3049_p6), %s404_s1, 4294959104  ;;  %s2756_s21 = scalar_lea.vmem [#allocation8], %s1556_s19  ;;  %s422_s13 = scalar_lea.sflag [#allocation10], %s403_s15 }
  0xeb   : > { %s2758_s12 = scalar_lea.vmem [#allocation9], %s1556_s19 }
  0xec   : > { %2239 = dma.done.wait (%p3049_p6), %s422_s13, 4096  }
  0xed   : > { %2241 = vsyncadd (%p3049_p6), %s422_s13, 4294963200  ;;  %s2765_s16 = sshll.u32 %s2738_s11, 5 }
  0xee   : > { %s2768_s27 = scalar_lea.vmem [#allocation11], %s2765_s16 }
  0xef   : > { %2243 = dma.done.wait (%p3045_p1), %s422_s13, 512  }
  0xf0   : > { %2245 = vsyncadd (%p3045_p1), %s422_s13, 4294966784  ;;  %s440_s8 = scalar_lea.sflag [#allocation13], %s2738_s11  ;;  %s443_s6 = scalar_lea.vmem [#allocation12], %s2765_s16 }
  0xf1   : > { %2247 = dma.done.wait (%p3045_p1), %s440_s8, 512  }
  0xf2   : > { %2249 = vsyncadd (%p3045_p1), %s440_s8, 4294966784  ;;  %s2781_s22 = scalar_lea.vmem [#allocation14], %s2765_s16  ;;  %s3050_s17 = sld [smem:[#allocation25_spill]] }
  0xf8   : > { %p1562_p7 = scmp.ne.s32.totalorder %s3050_s17, 0 }
  0xf9   : > { %v2309_v0 = vmov (!%p1562_p7), 0.0  }
  0xfa   : > { %506 = sbr.rel (%p1562_p7) target bundleno = 257 (0x101), region = 72  ;;  %507 = vst [vmem:[#allocation2] sm:$0xff] (!%p1562_p7), %v2309_v0  ;;  %508 = vst [vmem:[#allocation2 + $0x8] sm:$0xff] (!%p1562_p7), %v2309_v0 }
  0xfb   : > { %509 = vst [vmem:[#allocation2 + $0x10] sm:$0xff] (!%p1562_p7), %v2309_v0  ;;  %510 = vst [vmem:[#allocation2 + $0x18] sm:$0xff] (!%p1562_p7), %v2309_v0 }
 0x101 PF: > { %v1815_v1 = vld [vmem:[%s2750_s28 + $0x4] ss:$8 sps:$4 sm:$0xff]   ;;  %v1817_v2 = vld [vmem:[%s2750_s28] ss:$8 sps:$4 sm:$0xff]   ;;  %v1818_v3 = vld [vmem:[%s2750_s28 + $0x14] ss:$8 sps:$4 sm:$0xff]  }
 0x102   : > { %715 = vmatprep.subr.bf16.mxu0 %v1815_v1  ;;  %v1827_v4 = vld [vmem:[%s2756_s21 + $0x4] ss:$8 sps:$4 sm:$0xff]   ;;  %v1829_v5 = vld [vmem:[%s2756_s21] ss:$8 sps:$4 sm:$0xff]   ;;  %v1820_v6 = vld [vmem:[%s2750_s28 + $0x10] ss:$8 sps:$4 sm:$0xff]  }
 0x103   : > { %716 = vmatpush1.bf16.xpose.msra.mxu0 %v1817_v2  ;;  %v1821_v7 = vld [vmem:[%s2750_s28 + $0x24] ss:$8 sps:$4 sm:$0xff]   ;;  %950 = vmatprep.subr.bf16.mxu1 %v1827_v4  ;;  %v1833_v8 = vld [vmem:[%s2756_s21 + $0x14] ss:$8 sps:$4 sm:$0xff]   ;;  %v1835_v9 = vld [vmem:[%s2756_s21 + $0x10] ss:$8 sps:$4 sm:$0xff]  }
 0x104   : > { %717 = vmatprep.subr.bf16.mxu0 %v1818_v3  ;;  %951 = vmatpush1.bf16.xpose.msra.mxu1 %v1829_v5  ;;  %v1839_v10 = vld [vmem:[%s2756_s21 + $0x24] ss:$8 sps:$4 sm:$0xff]   ;;  %v1823_v11 = vld [vmem:[%s2750_s28 + $0x20] ss:$8 sps:$4 sm:$0xff]   ;;  %v1824_v12 = vld [vmem:[%s2750_s28 + $0x34] ss:$8 sps:$4 sm:$0xff]  }
 0x105   : > { %952 = vmatprep.subr.bf16.mxu1 %v1833_v8  ;;  %v1841_v13 = vld [vmem:[%s2756_s21 + $0x20] ss:$8 sps:$4 sm:$0xff]   ;;  %v1845_v14 = vld [vmem:[%s2756_s21 + $0x34] ss:$8 sps:$4 sm:$0xff]   ;;  %v1826_v15 = vld [vmem:[%s2750_s28 + $0x30] ss:$8 sps:$4 sm:$0xff]  }
 0x106   : > { %v1830_v16 = vld [vmem:[%s2750_s28 + $0x44] ss:$8 sps:$4 sm:$0xff]   ;;  %v1847_v17 = vld [vmem:[%s2756_s21 + $0x30] ss:$8 sps:$4 sm:$0xff]   ;;  %v1832_v19 = vld [vmem:[%s2750_s28 + $0x40] ss:$8 sps:$4 sm:$0xff]  }
 0x107   : > { %v1851_v18 = vld [vmem:[%s2756_s21 + $0x44] ss:$8 sps:$4 sm:$0xff]   ;;  %v1836_v20 = vld [vmem:[%s2750_s28 + $0x54] ss:$8 sps:$4 sm:$0xff]   ;;  %v1853_v21 = vld [vmem:[%s2756_s21 + $0x40] ss:$8 sps:$4 sm:$0xff]  }
 0x108   : > { %v1857_v22 = vld [vmem:[%s2756_s21 + $0x54] ss:$8 sps:$4 sm:$0xff]   ;;  %v1838_v23 = vld [vmem:[%s2750_s28 + $0x50] ss:$8 sps:$4 sm:$0xff]   ;;  %v1842_v25 = vld [vmem:[%s2750_s28 + $0x64] ss:$8 sps:$4 sm:$0xff]  }
 0x109   : > { %v1904_v24 = vld [vmem:[%s2742_s23 + $0x4] ss:$8 sps:$4 sm:$0xff]   ;;  %v1859_v26 = vld [vmem:[%s2756_s21 + $0x50] ss:$8 sps:$4 sm:$0xff]   ;;  %v1844_v28 = vld [vmem:[%s2750_s28 + $0x60] ss:$8 sps:$4 sm:$0xff]  }
 0x10a   : > { %747 = vmatprep.mubr.bf16.mxu0 %v1904_v24  ;;  %982 = vmatprep.mubr.bf16.mxu1 %v1904_v24  ;;  %v1863_v27 = vld [vmem:[%s2756_s21 + $0x64] ss:$8 sps:$4 sm:$0xff]   ;;  %v1848_v29 = vld [vmem:[%s2750_s28 + $0x74] ss:$8 sps:$4 sm:$0xff]   ;;  %v1850_v30 = vld [vmem:[%s2750_s28 + $0x70] ss:$8 sps:$4 sm:$0xff]  }
 0x10b   : > { %718 = vmatpush1.bf16.xpose.msra.mxu0 %v1820_v6  ;;  %v1865_v31 = vld [vmem:[%s2756_s21 + $0x60] ss:$8 sps:$4 sm:$0xff]   ;;  %v1854_v32 = vld [vmem:[%s2750_s28 + $0x84] ss:$8 sps:$4 sm:$0xff]   ;;  %v1869_v33 = vld [vmem:[%s2756_s21 + $0x74] ss:$8 sps:$4 sm:$0xff]  }
 0x10c   : > { %719 = vmatprep.subr.bf16.mxu0 %v1821_v7  ;;  %953 = vmatpush1.bf16.xpose.msra.mxu1 %v1835_v9  ;;  %v1871_v34 = vld [vmem:[%s2756_s21 + $0x70] ss:$8 sps:$4 sm:$0xff]   ;;  %v1875_v35 = vld [vmem:[%s2756_s21 + $0x84] ss:$8 sps:$4 sm:$0xff]   ;;  %v1856_v36 = vld [vmem:[%s2750_s28 + $0x80] ss:$8 sps:$4 sm:$0xff]  }
 0x10d   : > { %954 = vmatprep.subr.bf16.mxu1 %v1839_v10  ;;  %v1860_v37 = vld [vmem:[%s2750_s28 + $0x94] ss:$8 sps:$4 sm:$0xff]   ;;  %v1877_v38 = vld [vmem:[%s2756_s21 + $0x80] ss:$8 sps:$4 sm:$0xff]   ;;  %v1862_v40 = vld [vmem:[%s2750_s28 + $0x90] ss:$8 sps:$4 sm:$0xff]  }
 0x10e   : > { %v1881_v39 = vld [vmem:[%s2756_s21 + $0x94] ss:$8 sps:$4 sm:$0xff]   ;;  %v1866_v41 = vld [vmem:[%s2750_s28 + $0xa4] ss:$8 sps:$4 sm:$0xff]   ;;  %v1883_v42 = vld [vmem:[%s2756_s21 + $0x90] ss:$8 sps:$4 sm:$0xff]  }
 0x10f   : > { %v1887_v43 = vld [vmem:[%s2756_s21 + $0xa4] ss:$8 sps:$4 sm:$0xff]   ;;  %v1868_v44 = vld [vmem:[%s2750_s28 + $0xa0] ss:$8 sps:$4 sm:$0xff]   ;;  %v1872_v45 = vld [vmem:[%s2750_s28 + $0xb4] ss:$8 sps:$4 sm:$0xff]  }
 0x110   : > { %v1889_v46 = vld [vmem:[%s2756_s21 + $0xa0] ss:$8 sps:$4 sm:$0xff]   ;;  %v1893_v47 = vld [vmem:[%s2756_s21 + $0xb4] ss:$8 sps:$4 sm:$0xff]   ;;  %v1874_v48 = vld [vmem:[%s2750_s28 + $0xb0] ss:$8 sps:$4 sm:$0xff]  }
 0x111   : > { %v1878_v49 = vld [vmem:[%s2750_s28 + $0xc4] ss:$8 sps:$4 sm:$0xff]   ;;  %v1895_v50 = vld [vmem:[%s2756_s21 + $0xb0] ss:$8 sps:$4 sm:$0xff]   ;;  %v1880_v52 = vld [vmem:[%s2750_s28 + $0xc0] ss:$8 sps:$4 sm:$0xff]  }
 0x112   : > { %v1899_v51 = vld [vmem:[%s2756_s21 + $0xc4] ss:$8 sps:$4 sm:$0xff]   ;;  %v1884_v53 = vld [vmem:[%s2750_s28 + $0xd4] ss:$8 sps:$4 sm:$0xff]   ;;  %v1901_v54 = vld [vmem:[%s2756_s21 + $0xc0] ss:$8 sps:$4 sm:$0xff]  }
 0x113   : > { %720 = vmatpush1.bf16.xpose.msra.mxu0 %v1823_v11  ;;  %v1905_v55 = vld [vmem:[%s2756_s21 + $0xd4] ss:$8 sps:$4 sm:$0xff]   ;;  %v1886_v56 = vld [vmem:[%s2750_s28 + $0xd0] ss:$8 sps:$4 sm:$0xff]   ;;  %v1890_v57 = vld [vmem:[%s2750_s28 + $0xe4] ss:$8 sps:$4 sm:$0xff]  }
 0x114   : > { %721 = vmatprep.subr.bf16.mxu0 %v1824_v12  ;;  %955 = vmatpush1.bf16.xpose.msra.mxu1 %v1841_v13  ;;  %v1907_v58 = vld [vmem:[%s2756_s21 + $0xd0] ss:$8 sps:$4 sm:$0xff]   ;;  %v1908_v59 = vld [vmem:[%s2756_s21 + $0xe4] ss:$8 sps:$4 sm:$0xff]   ;;  %v1892_v60 = vld [vmem:[%s2750_s28 + $0xe0] ss:$8 sps:$4 sm:$0xff]  }
 0x115   : > { %956 = vmatprep.subr.bf16.mxu1 %v1845_v14  ;;  %v1896_v61 = vld [vmem:[%s2750_s28 + $0xf4] ss:$8 sps:$4 sm:$0xff]   ;;  %v1910_v62 = vld [vmem:[%s2756_s21 + $0xe0] ss:$8 sps:$4 sm:$0xff]   ;;  %v1898_v0 = vld [vmem:[%s2750_s28 + $0xf0] ss:$8 sps:$4 sm:$0xff]  }
 0x116   : > { %v1911_v63 = vld [vmem:[%s2756_s21 + $0xf4] ss:$8 sps:$4 sm:$0xff]   ;;  %v1916_v1 = vld [vmem:[%s2758_s12 + $0x4] ss:$8 sps:$4 sm:$0xff]   ;;  %v1913_v2 = vld [vmem:[%s2756_s21 + $0xf0] ss:$8 sps:$4 sm:$0xff]  }
 0x117   : > { %v1902_v3 = vld [vmem:[%s2742_s23] ss:$8 sps:$4 sm:$0xff]   ;;  %v1919_v5 = vld [vmem:[%s2758_s12 + $0x14] ss:$8 sps:$4 sm:$0xff]   ;;  %v1922_v7 = vld [vmem:[%s2758_s12 + $0x24] ss:$8 sps:$4 sm:$0xff]  }
 0x118   : > { %v1914_v4 = vld [vmem:[%s2758_s12] ss:$8 sps:$4 sm:$0xff]   ;;  %v1917_v6 = vld [vmem:[%s2758_s12 + $0x10] ss:$8 sps:$4 sm:$0xff]   ;;  %v1925_v9 = vld [vmem:[%s2758_s12 + $0x34] ss:$8 sps:$4 sm:$0xff]  }
 0x119   : > { %v1920_v8 = vld [vmem:[%s2758_s12 + $0x20] ss:$8 sps:$4 sm:$0xff]   ;;  %v1923_v10 = vld [vmem:[%s2758_s12 + $0x30] ss:$8 sps:$4 sm:$0xff]   ;;  %v1928_v11 = vld [vmem:[%s2758_s12 + $0x44] ss:$8 sps:$4 sm:$0xff]  }
 0x11a   : > { %v1926_v12 = vld [vmem:[%s2758_s12 + $0x40] ss:$8 sps:$4 sm:$0xff]   ;;  %v1931_v13 = vld [vmem:[%s2758_s12 + $0x54] ss:$8 sps:$4 sm:$0xff]   ;;  %v1929_v14 = vld [vmem:[%s2758_s12 + $0x50] ss:$8 sps:$4 sm:$0xff]  }
 0x11b   : > { %722 = vmatpush1.bf16.xpose.msra.mxu0 %v1826_v15  ;;  %v1934_v15 = vld [vmem:[%s2758_s12 + $0x64] ss:$8 sps:$4 sm:$0xff]   ;;  %v1944_v24 = vld [vmem:[%s2758_s12 + $0xa0] ss:$8 sps:$4 sm:$0xff]   ;;  %s3051_s24 = sld [smem:[#allocation25_spill]] }
 0x11c   : > { %723 = vmatprep.subr.bf16.mxu0 %v1830_v16  ;;  %957 = vmatpush1.bf16.xpose.msra.mxu1 %v1847_v17  ;;  %v1932_v16 = vld [vmem:[%s2758_s12 + $0x60] ss:$8 sps:$4 sm:$0xff]   ;;  %v1937_v17 = vld [vmem:[%s2758_s12 + $0x74] ss:$8 sps:$4 sm:$0xff]  }
 0x11d   : > { %958 = vmatprep.subr.bf16.mxu1 %v1851_v18  ;;  %v1935_v18 = vld [vmem:[%s2758_s12 + $0x70] ss:$8 sps:$4 sm:$0xff]  }
 0x121   : > { %p1665_p2 = scmp.ne.s32.totalorder %s3051_s24, 2 }
 0x123   : > { %724 = vmatpush1.bf16.xpose.msra.mxu0 %v1832_v19  ;;  %v1940_v19 = vld [vmem:[%s2758_s12 + $0x84] ss:$8 sps:$4 sm:$0xff]  }
 0x124   : > { %725 = vmatprep.subr.bf16.mxu0 %v1836_v20  ;;  %959 = vmatpush1.bf16.xpose.msra.mxu1 %v1853_v21  ;;  %v1938_v20 = vld [vmem:[%s2758_s12 + $0x80] ss:$8 sps:$4 sm:$0xff]   ;;  %v1943_v21 = vld [vmem:[%s2758_s12 + $0x94] ss:$8 sps:$4 sm:$0xff]  }
 0x125   : > { %960 = vmatprep.subr.bf16.mxu1 %v1857_v22  ;;  %v1941_v22 = vld [vmem:[%s2758_s12 + $0x90] ss:$8 sps:$4 sm:$0xff]  }
 0x12b   : > { %726 = vmatpush1.bf16.xpose.msra.mxu0 %v1838_v23  ;;  %v1946_v23 = vld [vmem:[%s2758_s12 + $0xa4] ss:$8 sps:$4 sm:$0xff]  }
 0x12c   : > { %727 = vmatprep.subr.bf16.mxu0 %v1842_v25  ;;  %961 = vmatpush1.bf16.xpose.msra.mxu1 %v1859_v26  ;;  %v1949_v25 = vld [vmem:[%s2758_s12 + $0xb4] ss:$8 sps:$4 sm:$0xff]   ;;  %v1947_v26 = vld [vmem:[%s2758_s12 + $0xb0] ss:$8 sps:$4 sm:$0xff]  }
 0x12d   : > { %962 = vmatprep.subr.bf16.mxu1 %v1863_v27  ;;  %v1952_v27 = vld [vmem:[%s2758_s12 + $0xc4] ss:$8 sps:$4 sm:$0xff]  }
 0x133   : > { %728 = vmatpush1.bf16.xpose.msra.mxu0 %v1844_v28  ;;  %v1950_v28 = vld [vmem:[%s2758_s12 + $0xc0] ss:$8 sps:$4 sm:$0xff]  }
 0x134   : > { %729 = vmatprep.subr.bf16.mxu0 %v1848_v29  ;;  %963 = vmatpush1.bf16.xpose.msra.mxu1 %v1865_v31  ;;  %v1955_v29 = vld [vmem:[%s2758_s12 + $0xd4] ss:$8 sps:$4 sm:$0xff]   ;;  %v1958_v31 = vld [vmem:[%s2758_s12 + $0xe4] ss:$8 sps:$4 sm:$0xff]  }
 0x135   : > { %964 = vmatprep.subr.bf16.mxu1 %v1869_v33  ;;  %v1961_v33 = vld [vmem:[%s2758_s12 + $0xf4] ss:$8 sps:$4 sm:$0xff]  }
 0x13b   : > { %730 = vmatpush1.bf16.xpose.msra.mxu0 %v1850_v30  ;;  %v1953_v30 = vld [vmem:[%s2758_s12 + $0xd0] ss:$8 sps:$4 sm:$0xff]  }
 0x13c   : > { %731 = vmatprep.subr.bf16.mxu0 %v1854_v32  ;;  %965 = vmatpush1.bf16.xpose.msra.mxu1 %v1871_v34  ;;  %v1956_v32 = vld [vmem:[%s2758_s12 + $0xe0] ss:$8 sps:$4 sm:$0xff]   ;;  %v1959_v34 = vld [vmem:[%s2758_s12 + $0xf0] ss:$8 sps:$4 sm:$0xff]  }
 0x13d   : > { %966 = vmatprep.subr.bf16.mxu1 %v1875_v35 }
 0x143   : > { %732 = vmatpush1.bf16.xpose.msra.mxu0 %v1856_v36 }
 0x144   : > { %733 = vmatprep.subr.bf16.mxu0 %v1860_v37  ;;  %967 = vmatpush1.bf16.xpose.msra.mxu1 %v1877_v38 }
 0x145   : > { %968 = vmatprep.subr.bf16.mxu1 %v1881_v39 }
 0x14b   : > { %734 = vmatpush1.bf16.xpose.msra.mxu0 %v1862_v40 }
 0x14c   : > { %735 = vmatprep.subr.bf16.mxu0 %v1866_v41  ;;  %969 = vmatpush1.bf16.xpose.msra.mxu1 %v1883_v42 }
 0x14d   : > { %970 = vmatprep.subr.bf16.mxu1 %v1887_v43 }
 0x153   : > { %736 = vmatpush1.bf16.xpose.msra.mxu0 %v1868_v44 }
 0x154   : > { %737 = vmatprep.subr.bf16.mxu0 %v1872_v45  ;;  %971 = vmatpush1.bf16.xpose.msra.mxu1 %v1889_v46 }
 0x155   : > { %972 = vmatprep.subr.bf16.mxu1 %v1893_v47 }
 0x15b   : > { %738 = vmatpush1.bf16.xpose.msra.mxu0 %v1874_v48 }
 0x15c   : > { %739 = vmatprep.subr.bf16.mxu0 %v1878_v49  ;;  %973 = vmatpush1.bf16.xpose.msra.mxu1 %v1895_v50 }
 0x15d   : > { %974 = vmatprep.subr.bf16.mxu1 %v1899_v51 }
 0x163   : > { %740 = vmatpush1.bf16.xpose.msra.mxu0 %v1880_v52 }
 0x164   : > { %741 = vmatprep.subr.bf16.mxu0 %v1884_v53  ;;  %975 = vmatpush1.bf16.xpose.msra.mxu1 %v1901_v54 }
 0x165   : > { %976 = vmatprep.subr.bf16.mxu1 %v1905_v55 }
 0x16b   : > { %742 = vmatpush1.bf16.xpose.msra.mxu0 %v1886_v56 }
 0x16c   : > { %743 = vmatprep.subr.bf16.mxu0 %v1890_v57  ;;  %977 = vmatpush1.bf16.xpose.msra.mxu1 %v1907_v58 }
 0x16d   : > { %978 = vmatprep.subr.bf16.mxu1 %v1908_v59 }
 0x173   : > { %744 = vmatpush1.bf16.xpose.msra.mxu0 %v1892_v60 }
 0x174   : > { %745 = vmatprep.subr.bf16.mxu0 %v1896_v61  ;;  %979 = vmatpush1.bf16.xpose.msra.mxu1 %v1910_v62 }
 0x175   : > { %980 = vmatprep.subr.bf16.mxu1 %v1911_v63 }
 0x17b   : > { %746 = vmatpush1.bf16.xpose.msra.mxu0 %v1898_v0 }
 0x17c   : > { %1223 = vmatprep.subr.bf16.mxu0 %v1916_v1  ;;  %981 = vmatpush1.bf16.xpose.msra.mxu1 %v1913_v2 }
 0x182   : > { %748 = vmatmul.mubr.bf16.vlgmr.msra.gmra.mrb[0].mxu0 %v1902_v3 }
 0x183   : > { %1224 = vmatpush1.bf16.xpose.msra.mxu0 %v1914_v4  ;;  %983 = vmatmul.mubr.bf16.vlgmr.msra.gmra.mrb[0].mxu1 %v1902_v3 }
 0x184   : > { %1225 = vmatprep.subr.bf16.mxu0 %v1919_v5  ;;  %v1025_v5 = vld [vmem:[#allocation2] sm:$0xff] }
 0x18b   : > { %1226 = vmatpush1.bf16.xpose.msra.mxu0 %v1917_v6  ;;  %v1026_v6 = vld [vmem:[#allocation2 + $0x8] sm:$0xff] }
 0x18c   : > { %1227 = vmatprep.subr.bf16.mxu0 %v1922_v7 }
 0x193   : > { %1228 = vmatpush1.bf16.xpose.msra.mxu0 %v1920_v8  ;;  %v1027_v8 = vld [vmem:[#allocation2 + $0x10] sm:$0xff] }
 0x194   : > { %1229 = vmatprep.subr.bf16.mxu0 %v1925_v9 }
 0x19b   : > { %1230 = vmatpush1.bf16.xpose.msra.mxu0 %v1923_v10 }
 0x19c   : > { %1231 = vmatprep.subr.bf16.mxu0 %v1928_v11  ;;  %v1028_v11 = vld [vmem:[#allocation2 + $0x18] sm:$0xff] }
 0x1a3   : > { %1232 = vmatpush1.bf16.xpose.msra.mxu0 %v1926_v12 }
 0x1a4   : > { %1233 = vmatprep.subr.bf16.mxu0 %v1931_v13 }
 0x1ab   : > { %1234 = vmatpush1.bf16.xpose.msra.mxu0 %v1929_v14 }
 0x1ac   : > { %1235 = vmatprep.subr.bf16.mxu0 %v1934_v15 }
 0x1b3   : > { %1236 = vmatpush1.bf16.xpose.msra.mxu0 %v1932_v16 }
 0x1b4   : > { %1237 = vmatprep.subr.bf16.mxu0 %v1937_v17  ;;  %v1288_v17 = vlaneseq (!%p1665_p2) }
 0x1bb   : > { %1238 = vmatpush1.bf16.xpose.msra.mxu0 %v1935_v18  ;;  %v1289_v18 = vshrl.u32 (!%p1665_p2), %v1288_v17, 7 }
 0x1bc   : > { %1239 = vmatprep.subr.bf16.mxu0 %v1940_v19  ;;  %v1278_v19 = vld [vmem:[%s443_s6] sm:$0xff] (!%p1665_p2) }
 0x1c3   : > { %1240 = vmatpush1.bf16.xpose.msra.mxu0 %v1938_v20  ;;  %v1279_v20 = vld [vmem:[%s443_s6 + $0x8] sm:$0xff] (!%p1665_p2) }
 0x1c4   : > { %1241 = vmatprep.subr.bf16.mxu0 %v1943_v21 }
 0x1cb   : > { %1242 = vmatpush1.bf16.xpose.msra.mxu0 %v1941_v22  ;;  %v1290_v22 = vsub.s32 (!%p1665_p2), 5, %v1289_v18 }
 0x1cc   : > { %1243 = vmatprep.subr.bf16.mxu0 %v1946_v23 }
 0x1d3   : > { %1244 = vmatpush1.bf16.xpose.msra.mxu0 %v1944_v24 }
 0x1d4   : > { %1245 = vmatprep.subr.bf16.mxu0 %v1949_v25 }
 0x1db   : > { %1246 = vmatpush1.bf16.xpose.msra.mxu0 %v1947_v26  ;;  %v1280_v26 = vld [vmem:[%s2768_s27] sm:$0xff] (!%p1665_p2) }
 0x1dc   : > { %1247 = vmatprep.subr.bf16.mxu0 %v1952_v27  ;;  %v1291_v27 = vrot.slane (!%p1665_p2), %v1278_v19, %v1290_v22 }
 0x1e3   : > { %1248 = vmatpush1.bf16.xpose.msra.mxu0 %v1950_v28  ;;  %v1295_v28 = vrot.slane (!%p1665_p2), %v1279_v20, %v1290_v22 }
 0x1e4   : > { %1249 = vmatprep.subr.bf16.mxu0 %v1955_v29  ;;  %v1281_v29 = vld [vmem:[%s2768_s27 + $0x8] sm:$0xff] (!%p1665_p2) }
 0x1eb   : > { %1250 = vmatpush1.bf16.xpose.msra.mxu0 %v1953_v30  ;;  %v1282_v30 = vld [vmem:[%s2768_s27 + $0x10] sm:$0xff] (!%p1665_p2) }
 0x1ec   : > { %1251 = vmatprep.subr.bf16.mxu0 %v1958_v31  ;;  %v1283_v31 = vld [vmem:[%s2768_s27 + $0x18] sm:$0xff] (!%p1665_p2) }
 0x1f3   : > { %1252 = vmatpush1.bf16.xpose.msra.mxu0 %v1956_v32 }
 0x1f4   : > { %1253 = vmatprep.subr.bf16.mxu0 %v1961_v33 }
 0x1fb   : > { %1254 = vmatpush1.bf16.xpose.msra.mxu0 %v1959_v34 }
 0x255   : > { %v749_v35 = vpop.f32.mrb[0].mxu0 }
 0x256   : > { %v1629_v36 = vmul.f32 -1.442695, %v749_v35  ;;  %v751_v37 = vpop.f32.mrb[1].mxu0  ;;  %v984_v43 = vpop.f32.mrb[0].mxu1 }
 0x257   : > { %v1630_v38 = vmul.f32 -1.442695, %v751_v37  ;;  %v753_v39 = vpop.f32.mrb[2].mxu0  ;;  %v986_v44 = vpop.f32.mrb[1].mxu1 }
 0x258   : > { %1962 = vpow2.f32 %v1629_v36  ;;  %v1631_v40 = vmul.f32 -1.442695, %v753_v39  ;;  %v755_v41 = vpop.f32.mrb[3].mxu0  ;;  %v988_v45 = vpop.f32.mrb[2].mxu1 }
 0x259   : > { %1964 = vpow2.f32 %v1630_v38  ;;  %v1632_v42 = vmul.f32 -1.442695, %v755_v41  ;;  %v990_v46 = vpop.f32.mrb[3].mxu1 }
 0x25a   : > { %1966 = vpow2.f32 %v1631_v40 }
 0x25b   : > { %1968 = vpow2.f32 %v1632_v42 }
 0x262   : > { %v1963_v47 = vpop.eup %1962 }
 0x263   : > { %v1965_v48 = vpop.eup %1964  ;;  %v1005_v49 = vadd.f32 1.0, %v1963_v47 }
 0x264   : > { %v1967_v50 = vpop.eup %1966  ;;  %v1006_v51 = vadd.f32 1.0, %v1965_v48 }
 0x265   : > { %v1969_v52 = vpop.eup %1968  ;;  %1970 = vrcp.f32 %v1005_v49  ;;  %v1007_v53 = vadd.f32 1.0, %v1967_v50 }
 0x266   : > { %1972 = vrcp.f32 %v1006_v51  ;;  %v1008_v54 = vadd.f32 1.0, %v1969_v52 }
 0x267   : > { %1974 = vrcp.f32 %v1007_v53 }
 0x268   : > { %1976 = vrcp.f32 %v1008_v54 }
 0x26f   : > { %v1971_v55 = vpop.eup %1970 }
 0x270   : > { %v1973_v56 = vpop.eup %1972  ;;  %v1017_v57 = vmul.f32 %v1971_v55, %v749_v35 }
 0x271   : > { %v1975_v58 = vpop.eup %1974  ;;  %v1018_v59 = vmul.f32 %v1973_v56, %v751_v37 }
 0x272   : > { %v1977_v60 = vpop.eup %1976  ;;  %v1019_v61 = vmul.f32 %v1975_v58, %v753_v39  ;;  %v1021_v62 = vmul.f32 %v1017_v57, %v984_v43 }
 0x273   : > { %v1020_v63 = vmul.f32 %v1977_v60, %v755_v41  ;;  %v1022_v0 = vmul.f32 %v1018_v59, %v986_v44 }
 0x274   : > { %v1023_v1 = vmul.f32 %v1019_v61, %v988_v45 }
 0x275   : > { %v1024_v2 = vmul.f32 %v1020_v63, %v990_v46 }
 0x276   : > { %v1029_v3 = vpack.c.bf16 %v1023_v1, %v1021_v62 }
 0x277   : > { %v1030_v4 = vpack.c.bf16 %v1024_v2, %v1022_v0 }
 0x279   : > { %1255 = vmatprep.mubr.bf16.mxu0 %v1030_v4 }
 0x27a   : > { %1256 = vmatmul.mubr.bf16.vlgmr.msra.gmra.mrb[4].mxu0 %v1029_v3 }
 0x34d   : > { %v1257_v7 = vpop.f32.mrb[4].mxu0  ;;  %1277 = sbr.rel (%p1665_p2) target bundleno = 864 (0x360), region = 76 }
 0x34e   : > { %v1266_v9 = vadd.f32 %v1257_v7, %v1025_v5  ;;  %v1259_v10 = vpop.f32.mrb[5].mxu0 }
 0x34f   : > { %v1267_v12 = vadd.f32 %v1259_v10, %v1026_v6  ;;  %v1261_v13 = vpop.f32.mrb[6].mxu0 }
 0x350   : > { %1270 = vst [vmem:[#allocation2] sm:$0xff] %v1266_v9  ;;  %v1268_v14 = vadd.f32 %v1261_v13, %v1027_v8  ;;  %v1263_v15 = vpop.f32.mrb[7].mxu0 }
 0x351   : > { %1271 = vst [vmem:[#allocation2 + $0x8] sm:$0xff] %v1267_v12  ;;  %v1269_v16 = vadd.f32 %v1263_v15, %v1028_v11 }
 0x352   : > { %1272 = vst [vmem:[#allocation2 + $0x10] sm:$0xff] %v1268_v14 }
 0x353   : > { %1273 = vst [vmem:[#allocation2 + $0x18] sm:$0xff] %v1269_v16 }
 0x357   : > { %v1284_v21 = vld [vmem:[#allocation2] sm:$0xff] }
 0x358   : > { %v1285_v23 = vld [vmem:[#allocation2 + $0x8] sm:$0xff]  ;;  %v1296_v32 = vmul.f32 %v1291_v27, %v1284_v21 }
 0x359   : > { %v1286_v24 = vld [vmem:[#allocation2 + $0x10] sm:$0xff]  ;;  %v1297_v33 = vmul.f32 %v1295_v28, %v1285_v23 }
 0x35a   : > { %v1287_v25 = vld [vmem:[#allocation2 + $0x18] sm:$0xff]  ;;  %v1298_v34 = vmul.f32 %v1291_v27, %v1286_v24  ;;  %v1300_v36 = vadd.f32 %v1296_v32, %v1280_v26 }
 0x35b   : > { %v1299_v35 = vmul.f32 %v1295_v28, %v1287_v25  ;;  %v1301_v37 = vadd.f32 %v1297_v33, %v1281_v29 }
 0x35c   : > { %v1302_v38 = vadd.f32 %v1298_v34, %v1282_v30  ;;  %1304 = vst [vmem:[%s2781_s22] sm:$0xff] %v1300_v36 }
 0x35d   : > { %v1303_v39 = vadd.f32 %v1299_v35, %v1283_v31  ;;  %1305 = vst [vmem:[%s2781_s22 + $0x8] sm:$0xff] %v1301_v37 }
 0x35e   : > { %1306 = vst [vmem:[%s2781_s22 + $0x10] sm:$0xff] %v1302_v38 }
 0x35f   : > { %1307 = vst [vmem:[%s2781_s22 + $0x18] sm:$0xff] %v1303_v39 }
 0x360 PF: > { %s3052_s26 = sld [smem:[#allocation26_spill]]  ;;  %s3053_s9 = sld [smem:[#allocation37_spill]] }
 0x361   : > { %s1325_s15 = sshll.u32 %s2781_s22, 4  ;;  %s1309_s29 = scalar_lea.sflag [#allocation5], %s2738_s11  ;;  %s2902_s15 = int_to_ptr.vmem [resolvable:$true] %s1325_s15 }
 0x362   : > { %s2158_s19 = scalar_lea.vmem %s2902_s15, 512  ;;  %p3054_p8 = scmp.ne.s32.totalorder %s3034_s10, 0 }
 0x363   : > { %p2159_p0 = scmp.ne.s32.totalorder %s2902_s15, %s2158_s19  ;;  %s2310_s1 = smov [#allocation14]  }
 0x364   : > { %s2162_s28 = sshll.u32 %s2310_s1, 4  ;;  %s2163_s28 = int_to_ptr.vmem [resolvable:$false] %s2162_s28 }
 0x365   : > { %p2160_p11 = pnand %p2159_p0, %p3054_p8  ;;  %s2164_s21 = scalar_lea.vmem %s2163_s28, 1024 }
 0x366   : > { %s1679_s14 = sshll.u32 %s3052_s26, 9  ;;  %p2165_p10 = scmp.lt.s32.totalorder %s2902_s15, %s2163_s28 }
 0x367   : > { %s2899_s18 = scalar_lea.hbm %s3053_s9, %s1679_s14  ;;  %p2161_p12 = pneg %p2160_p11 }
 0x368   : > { %p2166_p13 = scmp.lt.s32.totalorder %s2164_s21, %s2158_s19 }
 0x36a   : > { %p2167_p5 = por %p2166_p13, %p2165_p10 }
 0x36c   : > { %p2168_p3 = pnand %p2167_p5, %p2161_p12 }
 0x36e   : > { %2171 = shalt.err (!%p2168_p3)
}
 0x36f   : > { %s2172_s13 = scalar_lea.hbm %s2899_s18, 512  ;;  %s2176_s27 = scalar_lea.hbm %s3053_s9, 1024 }
 0x370   : > { %p2173_p9 = scmp.ne.s32.totalorder %s2899_s18, %s2172_s13  ;;  %p2177_p6 = scmp.lt.u32.totalorder %s2899_s18, %s3053_s9 }
 0x371   : > { %p2178_p7 = scmp.lt.u32.totalorder %s2176_s27, %s2172_s13  ;;  %p2180_p0 = scmp.lt.u32.totalorder %s2172_s13, %s2899_s18 }
 0x372   : > { %p2174_p4 = pnand %p2173_p9, %p3054_p8 }
 0x373   : > { %p2179_p2 = por %p2178_p7, %p2177_p6 }
 0x374   : > { %p2175_p1 = pneg %p2174_p4 }
 0x375   : > { %p2181_p11 = por %p2180_p0, %p2179_p2 }
 0x377   : > { %p2182_p12 = pnand %p2181_p11, %p2175_p1 }
 0x379   : > { %2185 = shalt.err (!%p2182_p12)
}
 0x37a   : > { %s2311_s22 = smov 256   ;;  %s2312_s17 = smov 16  }
 0x37b   : > { %1692 = dma.vmem_to_hbm [thread:$0]  (%p3054_p8), %s2902_s15, 512, %s2899_s18, %s1309_s29, %s2311_s22, %s2311_s22, %s2312_s17  }
 0x37c PF: > { %s3055_s24 = sld [smem:[#allocation23_spill]]  ;;  %p1718_p10 = scmp.ge.s32.totalorder %s2296_s7, 2 }
 0x37d   : > { %p3056_p13 = scmp.ne.s32.totalorder %s3035_s3, 0 }
 0x37f   : > { %p1714_p5 = pnand %p1718_p10, %p3056_p13 }
 0x382   : > { %s1340_s26 = sand.u32 1, %s3055_s24  }
 0x383   : > { %s1341_s14 = scalar_lea.sflag [#allocation5], %s1340_s26 }
 0x384   : > { %2251 = dma.done.wait (!%p1714_p5), %s1341_s14, 512  }
 0x385   : > { %2253 = vsyncadd (!%p1714_p5), %s1341_s14, 4294966784  ;;  %s31_s7 = sadd.s32 1, %s2296_s7   ;;  %s3057_s21 = sld [smem:[#allocation21_spill]] }
 0x386   : > { %p28_p3 = scmp.ge.s32.totalorder %s31_s7, 8   ;;  %s3058_s22 = sld [smem:[#allocation22_spill]] }
 0x387   : > { %s3059_s23 = sld [smem:[#allocation31_spill]]  ;;  %s3060_s10 = sld [smem:[#allocation24_spill]] }
 0x388   : > { %s3061_s26 = sld [smem:[#allocation34_spill]]  ;;  %s3062_s27 = sld [smem:[#allocation27_spill]] }
 0x389   : > { %s3063_s29 = sld [smem:[#allocation29_spill]]  ;;  %s3064_s11 = sld [smem:[#allocation32_spill]] }
 0x38a   : > { %s3065_s24 = smov %s2272_s25  ;;  %s3067_s28 = smov %s2292_s30 }
 0x38b   :  { %30 = sbr.rel (!%p28_p3) target bundleno = 19 (0x13), region = 158 }
 0x38d   : > { %s3066_s25 = smov %s3060_s10 }
 0x38f   : > { %s3068_s30 = smov %s3064_s11 }
 0x392   :  { %1346 = vsyncpa [#allocation4], 1 }
 0x393   :  { %1348 = vsyncpa [#allocation4 + $0x1], 1 }
 0x394   :  { %1349 = vsyncpa [#allocation7], 1 }
 0x395   :  { %1351 = vsyncpa [#allocation7 + $0x1], 1 }
 0x396   :  { %1352 = vsyncpa [#allocation10], 1 }
 0x397   :  { %1354 = vsyncpa [#allocation10 + $0x1], 1 }
 0x398   :  { %1355 = vsyncpa [#allocation13], 1 }
 0x399   :  { %1357 = vsyncpa [#allocation13 + $0x1], 1 }
 0x39a   :  { %1358 = vsyncpa [#allocation5], 1 }
 0x39b   :  { %1360 = vsyncpa [#allocation5 + $0x1], 1 }

</bundles_post_ra>
